<compile_context>
chip_gen: v7x
topology: tpu7x:2x2x1
jax: 0.10.0
libtpu: 0.0.40
codegen_flags: <defaults>
</compile_context>

<pallas_src>
import jax
import jax.numpy as jnp
from jax import lax
from jax.experimental import pallas as pl
from jax.experimental.pallas import tpu as pltpu

POOL = 8             # conv / deconv stride along time
FILTER_1 = 50        # conv output channels (= LSTM-1 input size after torch's .view)
FILTER_LSTM = [50, 1]
KH = 10              # kernel height (time taps)


# ----------------------------- Pallas kernel -----------------------------

def _full_spec(shape):
    nd = len(shape)
    return pl.BlockSpec(shape, lambda i: (0,) * nd)


def _sigmoid(z):
    # exp and the approximate reciprocal both land on the EUP slot, keeping the
    # VPU free inside the serial recurrence.
    return pl.reciprocal(1.0 + jnp.exp(-z), approx=True)


def _tae_fused_kernel(seq1_ref,
                      wih1f_ref, whh1f_ref, b1f_ref,
                      wih1b_ref, whh1b_ref, b1b_ref,
                      wih2f_ref, whh2f_ref, b2f_ref,
                      wih2b_ref, whh2b_ref, b2b_ref,
                      kmat_ref, bdec_ref,
                      feat_ref, dec_ref,
                      projf_scr, projb_scr, l1f_scr, l1b_scr):
    HB, _ = seq1_ref.shape            # (H*BP, 50), time-major rows t*BP + b
    H = kmat_ref.shape[0]             # pooled sequence length
    BP = HB // H                      # padded batch (multiple of 8 sublanes)
    H1 = whh1f_ref.shape[0]           # LSTM-1 hidden size (50)

    seq1 = seq1_ref[...]

    # ---- LSTM-1 input projections hoisted out of the recurrence:
    #      one (H*BP,50)x(50,200) MXU matmul + one bias broadcast per direction.
    projf_scr[...] = (jnp.dot(seq1, wih1f_ref[...],
                              preferred_element_type=jnp.float32) + b1f_ref[...])
    projb_scr[...] = (jnp.dot(seq1, wih1b_ref[...],
                              preferred_element_type=jnp.float32) + b1b_ref[...])

    def lstm1_direction(proj_scr, whh_ref, out_scr, reverse):
        whh = whh_ref[...]                                  # (50, 200) loaded once
        h = jnp.zeros((BP, H1), jnp.float32)
        c = jnp.zeros((BP, H1), jnp.float32)
        # Recurrence fully unrolled (H is static) so the scheduler sees all steps.
        for step in range(H):
            t = H - 1 - step if reverse else step
            gates = proj_scr[pl.ds(t * BP, BP), :] + jnp.dot(
                h, whh, preferred_element_type=jnp.float32)  # (BP, 4*H1), gate order i,f,g,o
            sg = _sigmoid(gates)
            i_g = sg[:, 0:H1]
            f_g = sg[:, H1:2 * H1]
            o_g = sg[:, 3 * H1:4 * H1]
            g_g = jnp.tanh(gates[:, 2 * H1:3 * H1])
            c = f_g * c + i_g * g_g
            h = o_g * jnp.tanh(c)
            out_scr[pl.ds(t * BP, BP), :] = h               # aligned dense store, no RMW

    lstm1_direction(projf_scr, whh1f_ref, l1f_scr, reverse=False)
    lstm1_direction(projb_scr, whh1b_ref, l1b_scr, reverse=True)

    # Bidirectional sum of layer 1: one dense add (replaces per-step read-modify-write).
    seq2 = l1f_scr[...] + l1b_scr[...]                      # (H*BP, 50)

    # ---- LSTM-2 (hidden=1): all gate pre-activations as one matmul per direction.
    g2f = (jnp.dot(seq2, wih2f_ref[...], preferred_element_type=jnp.float32)
           + b2f_ref[...])                                  # (H*BP, 4)
    g2b = (jnp.dot(seq2, wih2b_ref[...], preferred_element_type=jnp.float32)
           + b2b_ref[...])

    lane_t = lax.broadcasted_iota(jnp.int32, (1, H), 1)     # time index on lanes

    def lstm2_direction(gpre, whh_ref, reverse):
        whh = whh_ref[...]                                  # (1, 4)
        h = jnp.zeros((BP, 1), jnp.float32)
        c = jnp.zeros((BP, 1), jnp.float32)
        acc = jnp.zeros((BP, H), jnp.float32)               # lane-dense accumulator
        for step in range(H):
            t = H - 1 - step if reverse else step
            gates = gpre[t * BP:(t + 1) * BP, :] + h * whh  # (BP, 4) scalar recurrence
            sg = _sigmoid(gates)
            i_g = sg[:, 0:1]
            f_g = sg[:, 1:2]
            o_g = sg[:, 3:4]
            g_g = jnp.tanh(gates[:, 2:3])
            c = f_g * c + i_g * g_g
            h = o_g * jnp.tanh(c)
            acc = acc + jnp.where(lane_t == t, h, 0.0)      # stays in registers
        return acc

    feats = (lstm2_direction(g2f, whh2f_ref, reverse=False)
             + lstm2_direction(g2b, whh2b_ref, reverse=True))   # (BP, H)

    feat_ref[...] = feats                                   # single lane-dense store

    # ---- decoder ConvTranspose2d as feats @ Kmat + bias, fused in the same kernel.
    dec_ref[...] = (jnp.dot(feats, kmat_ref[...],
                            preferred_element_type=jnp.float32) + bdec_ref[...])


def tae_fused_call(seq1, p, BP, H, T, F):
    H1 = FILTER_LSTM[0]
    args = (seq1,
            p['wih1f'], p['whh1f'], p['b1f'],
            p['wih1b'], p['whh1b'], p['b1b'],
            p['wih2f'], p['whh2f'], p['b2f'],
            p['wih2b'], p['whh2b'], p['b2b'],
            p['kmat'], p['bdec'])
    return pl.pallas_call(
        _tae_fused_kernel,
        out_shape=(jax.ShapeDtypeStruct((BP, H), jnp.float32),
                   jax.ShapeDtypeStruct((BP, T * F), jnp.float32)),
        grid=(1,),
        in_specs=[_full_spec(a.shape) for a in args],
        out_specs=(_full_spec((BP, H)), _full_spec((BP, T * F))),
        scratch_shapes=[pltpu.VMEM((H * BP, 4 * H1), jnp.float32),   # fwd input proj
                        pltpu.VMEM((H * BP, 4 * H1), jnp.float32),   # bwd input proj
                        pltpu.VMEM((H * BP, H1), jnp.float32),       # fwd layer-1 out
                        pltpu.VMEM((H * BP, H1), jnp.float32)],      # bwd layer-1 out
        compiler_params=pltpu.CompilerParams(
            dimension_semantics=("arbitrary",)),
    )(*args)


# ------------------------------ Parameters --------------------------------

def init_params(key, input_shape):
    _, T, F = input_shape
    C1 = FILTER_1
    H1, H2 = FILTER_LSTM
    keys = iter(jax.random.split(key, 16))
    scale = 0.1
    p = {}
    # Conv2d(F, C1, (10,1), stride=(POOL,1)) as an im2col matmul weight (row = k*F + f).
    p['wc'] = jax.random.normal(next(keys), (KH * F, C1), jnp.float32) * scale
    p['bc'] = jax.random.normal(next(keys), (1, C1), jnp.float32) * scale

    # Gate-concatenated LSTM weights (in, 4*hid), PyTorch gate order (i, f, g, o);
    # the bias holds b_ih + b_hh folded together.
    def lstm_dir(kk, din, hid):
        k1, k2, k3 = jax.random.split(kk, 3)
        return (jax.random.normal(k1, (din, 4 * hid), jnp.float32) * scale,
                jax.random.normal(k2, (hid, 4 * hid), jnp.float32) * scale,
                jax.random.normal(k3, (1, 4 * hid), jnp.float32) * scale)

    p['wih1f'], p['whh1f'], p['b1f'] = lstm_dir(next(keys), C1, H1)
    p['wih1b'], p['whh1b'], p['b1b'] = lstm_dir(next(keys), C1, H1)
    p['wih2f'], p['whh2f'], p['b2f'] = lstm_dir(next(keys), H1, H2)
    p['wih2b'], p['whh2b'], p['b2b'] = lstm_dir(next(keys), H1, H2)

    # ConvTranspose2d(1, F, (10,1), stride=(POOL,1)) weight (tap, out_channel) + bias.
    p['wd'] = jax.random.normal(next(keys), (KH, F), jnp.float32) * scale
    p['bd'] = jax.random.normal(next(keys), (F,), jnp.float32) * scale
    return p


def prepare_params(p, input_shape):
    """Precompute the decoder ConvTranspose2d as a dense (H, T*F) matmul weight.

    Depends only on the weights and static shapes, so it is built ONCE here
    instead of re-deriving the iota/clip/gather/where graph every forward call.
    """
    _, T, F = input_shape
    s = POOL
    pad_enc = ((T - 1) * s + KH - T) // 2 + 1
    pad_dec = ((T - 1) * s + KH - T) // 2
    H = (T + 2 * pad_enc - KH) // s + 1
    h_idx = jnp.arange(H)[:, None]
    t_idx = jnp.arange(T)[None, :]
    kk = t_idx + pad_dec - h_idx * s                         # tap per (h_in, t_out)
    valid = (kk >= 0) & (kk < KH)
    kmat = jnp.where(valid[:, :, None], p['wd'][jnp.clip(kk, 0, KH - 1)], 0.0)
    p = dict(p)
    p['kmat'] = kmat.reshape(H, T * F)                       # (H, T*F)
    p['bdec'] = jnp.tile(p['bd'], T)[None, :]                # (1, T*F), col t*F+f -> bd[f]
    return p


# ------------------------------- Forward ----------------------------------

def tae_forward(x, p):
    B, T, F = x.shape
    C1 = FILTER_1
    s = POOL
    pad_enc = ((T - 1) * s + KH - T) // 2 + 1                # encoder Conv2d padding
    H = (T + 2 * pad_enc - KH) // s + 1                      # pooled length
    BP = max(8, ((B + 7) // 8) * 8)                          # pad batch to full sublanes

    # ---- XLA glue: batch pad, im2col, Conv2d matmul, torch `.view` relayout ----
    xp = jnp.pad(x, ((0, BP - B), (pad_enc, pad_enc), (0, 0)))
    gather = jnp.arange(H)[:, None] * s + jnp.arange(KH)[None, :]       # (H, KH), static
    xcol = xp[:, gather, :].reshape(BP, H, KH * F)                      # (BP, H, KH*F)
    conv = jnp.dot(xcol, p['wc'],
                   preferred_element_type=jnp.float32) + p['bc']        # (BP, H, C1)
    # torch: NCHW-contiguous (BP, C1, H, 1) .view(BP, H, C1)
    lstm_in = jnp.transpose(conv, (0, 2, 1)).reshape(BP, H, C1)
    seq1 = jnp.transpose(lstm_in, (1, 0, 2)).reshape(H * BP, C1)        # rows t*BP + b

    # ---- single fused Pallas kernel: BiLSTM(50) + BiLSTM(1) + deconv matmul ----
    feat, dec = tae_fused_call(seq1, p, BP, H, T, F)

    features = feat[:B]                                      # (B, H) == features.squeeze(2)
    out_deconv = dec[:B].reshape(B, T, F)[..., None]         # (B, T, F, 1)
    return features, out_deconv


# --------------------------------- main ------------------------------------

if __name__ == "__main__":
    B, T, F = 2, 16, 4
    input_shape = (B, T, F)

    key = jax.random.PRNGKey(0)
    kx, kp = jax.random.split(key)
    x = jax.random.normal(kx, (B, T, F), jnp.float32)
    params = prepare_params(init_params(kp, input_shape), input_shape)

    fwd = jax.jit(tae_forward)
    features, out_deconv = fwd(x, params)
    jax.block_until_ready((features, out_deconv))

    pad_enc = ((T - 1) * POOL + KH - T) // 2 + 1
    H = (T + 2 * pad_enc - KH) // POOL + 1
    assert features.shape == (B, H)
    assert out_deconv.shape == (B, T, F, 1)
    print("KERNEL_OK")
</pallas_src>

<mosaic_0001>
module attributes {stable_mosaic.version = 11 : i64} {
  func.func @_tae_fused_kernel(%arg0: i32, %arg1: memref<128x50xf32, #tpu.memory_space<vmem>>, %arg2: memref<50x200xf32, #tpu.memory_space<vmem>>, %arg3: memref<50x200xf32, #tpu.memory_space<vmem>>, %arg4: memref<1x200xf32, #tpu.memory_space<vmem>>, %arg5: memref<50x200xf32, #tpu.memory_space<vmem>>, %arg6: memref<50x200xf32, #tpu.memory_space<vmem>>, %arg7: memref<1x200xf32, #tpu.memory_space<vmem>>, %arg8: memref<50x4xf32, #tpu.memory_space<vmem>>, %arg9: memref<1x4xf32, #tpu.memory_space<vmem>>, %arg10: memref<1x4xf32, #tpu.memory_space<vmem>>, %arg11: memref<50x4xf32, #tpu.memory_space<vmem>>, %arg12: memref<1x4xf32, #tpu.memory_space<vmem>>, %arg13: memref<1x4xf32, #tpu.memory_space<vmem>>, %arg14: memref<16x64xf32, #tpu.memory_space<vmem>>, %arg15: memref<1x64xf32, #tpu.memory_space<vmem>>, %arg16: memref<8x16xf32, #tpu.memory_space<vmem>>, %arg17: memref<8x64xf32, #tpu.memory_space<vmem>>, %arg18: memref<128x200xf32, #tpu.memory_space<vmem>>, %arg19: memref<128x200xf32, #tpu.memory_space<vmem>>, %arg20: memref<128x50xf32, #tpu.memory_space<vmem>>, %arg21: memref<128x50xf32, #tpu.memory_space<vmem>>) attributes {dimension_semantics = [#tpu.dimension_semantics<arbitrary>], iteration_bounds = array<i64: 1>, scalar_prefetch = 0 : i64, scratch_operands = 4 : i64, tpu.core_type = #tpu.core_type<tc>, window_params = [{pipeline_mode = #tpu.pipeline_mode<synchronous>, transform_indices = @transform_0, window_bounds = array<i64: 128, 50>}, {pipeline_mode = #tpu.pipeline_mode<synchronous>, transform_indices = @transform_1, window_bounds = array<i64: 50, 200>}, {pipeline_mode = #tpu.pipeline_mode<synchronous>, transform_indices = @transform_2, window_bounds = array<i64: 50, 200>}, {pipeline_mode = #tpu.pipeline_mode<synchronous>, transform_indices = @transform_3, window_bounds = array<i64: 1, 200>}, {pipeline_mode = #tpu.pipeline_mode<synchronous>, transform_indices = @transform_4, window_bounds = array<i64: 50, 200>}, {pipeline_mode = #tpu.pipeline_mode<synchronous>, transform_indices = @transform_5, window_bounds = array<i64: 50, 200>}, {pipeline_mode = #tpu.pipeline_mode<synchronous>, transform_indices = @transform_6, window_bounds = array<i64: 1, 200>}, {pipeline_mode = #tpu.pipeline_mode<synchronous>, transform_indices = @transform_7, window_bounds = array<i64: 50, 4>}, {pipeline_mode = #tpu.pipeline_mode<synchronous>, transform_indices = @transform_8, window_bounds = array<i64: 1, 4>}, {pipeline_mode = #tpu.pipeline_mode<synchronous>, transform_indices = @transform_9, window_bounds = array<i64: 1, 4>}, {pipeline_mode = #tpu.pipeline_mode<synchronous>, transform_indices = @transform_10, window_bounds = array<i64: 50, 4>}, {pipeline_mode = #tpu.pipeline_mode<synchronous>, transform_indices = @transform_11, window_bounds = array<i64: 1, 4>}, {pipeline_mode = #tpu.pipeline_mode<synchronous>, transform_indices = @transform_12, window_bounds = array<i64: 1, 4>}, {pipeline_mode = #tpu.pipeline_mode<synchronous>, transform_indices = @transform_13, window_bounds = array<i64: 16, 64>}, {pipeline_mode = #tpu.pipeline_mode<synchronous>, transform_indices = @transform_14, window_bounds = array<i64: 1, 64>}, {pipeline_mode = #tpu.pipeline_mode<synchronous>, transform_indices = @transform_15, window_bounds = array<i64: 8, 16>}, {pipeline_mode = #tpu.pipeline_mode<synchronous>, transform_indices = @transform_16, window_bounds = array<i64: 8, 64>}]} {
    %c0 = arith.constant 0 : index
    %c0_0 = arith.constant 0 : index
    %0 = vector.load %arg1[%c0, %c0_0] : memref<128x50xf32, #tpu.memory_space<vmem>>, vector<128x50xf32>
    %c0_1 = arith.constant 0 : index
    %c0_2 = arith.constant 0 : index
    %1 = vector.load %arg2[%c0_1, %c0_2] : memref<50x200xf32, #tpu.memory_space<vmem>>, vector<50x200xf32>
    %cst = arith.constant dense<0.000000e+00> : vector<128x200xf32>
    %2 = tpu.matmul %0, %1, %cst {dimension_numbers = #tpu.dot_dimension_numbers<[1], [0], [0], [1], [0, 0, 1, 1], [], []>} : vector<128x50xf32>, vector<50x200xf32>, vector<128x200xf32> -> vector<128x200xf32>
    %c0_3 = arith.constant 0 : index
    %c0_4 = arith.constant 0 : index
    %3 = vector.load %arg4[%c0_3, %c0_4] : memref<1x200xf32, #tpu.memory_space<vmem>>, vector<1x200xf32>
    %4 = vector.broadcast %3 : vector<1x200xf32> to vector<128x200xf32>
    %5 = arith.addf %2, %4 : vector<128x200xf32>
    %c0_5 = arith.constant 0 : index
    %c0_6 = arith.constant 0 : index
    %6 = vector.load %arg18[%c0_5, %c0_6] : memref<128x200xf32, #tpu.memory_space<vmem>>, vector<128x200xf32>
    tpu.vector_store %arg18[%c0_5, %c0_6], %5 {strides = array<i32>} : memref<128x200xf32, #tpu.memory_space<vmem>>, vector<128x200xf32>,
    %c0_7 = arith.constant 0 : index
    %c0_8 = arith.constant 0 : index
    %7 = vector.load %arg5[%c0_7, %c0_8] : memref<50x200xf32, #tpu.memory_space<vmem>>, vector<50x200xf32>
    %cst_9 = arith.constant dense<0.000000e+00> : vector<128x200xf32>
    %8 = tpu.matmul %0, %7, %cst_9 {dimension_numbers = #tpu.dot_dimension_numbers<[1], [0], [0], [1], [0, 0, 1, 1], [], []>} : vector<128x50xf32>, vector<50x200xf32>, vector<128x200xf32> -> vector<128x200xf32>
    %c0_10 = arith.constant 0 : index
    %c0_11 = arith.constant 0 : index
    %9 = vector.load %arg7[%c0_10, %c0_11] : memref<1x200xf32, #tpu.memory_space<vmem>>, vector<1x200xf32>
    %10 = vector.broadcast %9 : vector<1x200xf32> to vector<128x200xf32>
    %11 = arith.addf %8, %10 : vector<128x200xf32>
    %c0_12 = arith.constant 0 : index
    %c0_13 = arith.constant 0 : index
    %12 = vector.load %arg19[%c0_12, %c0_13] : memref<128x200xf32, #tpu.memory_space<vmem>>, vector<128x200xf32>
    tpu.vector_store %arg19[%c0_12, %c0_13], %11 {strides = array<i32>} : memref<128x200xf32, #tpu.memory_space<vmem>>, vector<128x200xf32>,
    %c0_14 = arith.constant 0 : index
    %c0_15 = arith.constant 0 : index
    %13 = vector.load %arg3[%c0_14, %c0_15] : memref<50x200xf32, #tpu.memory_space<vmem>>, vector<50x200xf32>
    %cst_16 = arith.constant 0.000000e+00 : f32
    %14 = vector.broadcast %cst_16 : f32 to vector<8x50xf32>
    %cst_17 = arith.constant 0.000000e+00 : f32
    %15 = vector.broadcast %cst_17 : f32 to vector<8x50xf32>
    %c0_18 = arith.constant 0 : index
    %c0_19 = arith.constant 0 : index
    %16 = vector.load %arg18[%c0_18, %c0_19] : memref<128x200xf32, #tpu.memory_space<vmem>>, vector<8x200xf32>
    %cst_20 = arith.constant dense<0.000000e+00> : vector<8x200xf32>
    %17 = tpu.matmul %14, %13, %cst_20 {dimension_numbers = #tpu.dot_dimension_numbers<[1], [0], [0], [1], [0, 0, 1, 1], [], []>} : vector<8x50xf32>, vector<50x200xf32>, vector<8x200xf32> -> vector<8x200xf32>
    %18 = arith.addf %16, %17 : vector<8x200xf32>
    %cst_21 = arith.constant 0.000000e+00 : f32
    %19 = vector.broadcast %cst_21 : f32 to vector<8x200xf32>
    %20 = arith.subf %19, %18 : vector<8x200xf32>
    %21 = math.exp %20 : vector<8x200xf32>
    %cst_22 = arith.constant 1.000000e+00 : f32
    %22 = vector.broadcast %cst_22 : f32 to vector<8x200xf32>
    %23 = arith.addf %22, %21 : vector<8x200xf32>
    %24 = tpu.reciprocal %23 {approx = true} : vector<8x200xf32> -> vector<8x200xf32>
    %25 = vector.extract_strided_slice %24 {offsets = [0, 0], sizes = [8, 50], strides = [1, 1]} : vector<8x200xf32> to vector<8x50xf32>
    %26 = vector.extract_strided_slice %24 {offsets = [0, 50], sizes = [8, 50], strides = [1, 1]} : vector<8x200xf32> to vector<8x50xf32>
    %27 = vector.extract_strided_slice %24 {offsets = [0, 150], sizes = [8, 50], strides = [1, 1]} : vector<8x200xf32> to vector<8x50xf32>
    %28 = vector.extract_strided_slice %18 {offsets = [0, 100], sizes = [8, 50], strides = [1, 1]} : vector<8x200xf32> to vector<8x50xf32>
    %29 = math.tanh %28 : vector<8x50xf32>
    %30 = arith.mulf %26, %15 : vector<8x50xf32>
    %31 = arith.mulf %25, %29 : vector<8x50xf32>
    %32 = arith.addf %30, %31 : vector<8x50xf32>
    %33 = math.tanh %32 : vector<8x50xf32>
    %34 = arith.mulf %27, %33 : vector<8x50xf32>
    %c0_23 = arith.constant 0 : index
    %c0_24 = arith.constant 0 : index
    %35 = vector.load %arg20[%c0_23, %c0_24] : memref<128x50xf32, #tpu.memory_space<vmem>>, vector<8x50xf32>
    tpu.vector_store %arg20[%c0_23, %c0_24], %34 {strides = array<i32>} : memref<128x50xf32, #tpu.memory_space<vmem>>, vector<8x50xf32>,
    %c8 = arith.constant 8 : index
    %c0_25 = arith.constant 0 : index
    %36 = vector.load %arg18[%c8, %c0_25] : memref<128x200xf32, #tpu.memory_space<vmem>>, vector<8x200xf32>
    %cst_26 = arith.constant dense<0.000000e+00> : vector<8x200xf32>
    %37 = tpu.matmul %34, %13, %cst_26 {dimension_numbers = #tpu.dot_dimension_numbers<[1], [0], [0], [1], [0, 0, 1, 1], [], []>} : vector<8x50xf32>, vector<50x200xf32>, vector<8x200xf32> -> vector<8x200xf32>
    %38 = arith.addf %36, %37 : vector<8x200xf32>
    %cst_27 = arith.constant 0.000000e+00 : f32
    %39 = vector.broadcast %cst_27 : f32 to vector<8x200xf32>
    %40 = arith.subf %39, %38 : vector<8x200xf32>
    %41 = math.exp %40 : vector<8x200xf32>
    %cst_28 = arith.constant 1.000000e+00 : f32
    %42 = vector.broadcast %cst_28 : f32 to vector<8x200xf32>
    %43 = arith.addf %42, %41 : vector<8x200xf32>
    %44 = tpu.reciprocal %43 {approx = true} : vector<8x200xf32> -> vector<8x200xf32>
    %45 = vector.extract_strided_slice %44 {offsets = [0, 0], sizes = [8, 50], strides = [1, 1]} : vector<8x200xf32> to vector<8x50xf32>
    %46 = vector.extract_strided_slice %44 {offsets = [0, 50], sizes = [8, 50], strides = [1, 1]} : vector<8x200xf32> to vector<8x50xf32>
    %47 = vector.extract_strided_slice %44 {offsets = [0, 150], sizes = [8, 50], strides = [1, 1]} : vector<8x200xf32> to vector<8x50xf32>
    %48 = vector.extract_strided_slice %38 {offsets = [0, 100], sizes = [8, 50], strides = [1, 1]} : vector<8x200xf32> to vector<8x50xf32>
    %49 = math.tanh %48 : vector<8x50xf32>
    %50 = arith.mulf %46, %32 : vector<8x50xf32>
    %51 = arith.mulf %45, %49 : vector<8x50xf32>
    %52 = arith.addf %50, %51 : vector<8x50xf32>
    %53 = math.tanh %52 : vector<8x50xf32>
    %54 = arith.mulf %47, %53 : vector<8x50xf32>
    %c8_29 = arith.constant 8 : index
    %c0_30 = arith.constant 0 : index
    %55 = vector.load %arg20[%c8_29, %c0_30] : memref<128x50xf32, #tpu.memory_space<vmem>>, vector<8x50xf32>
    tpu.vector_store %arg20[%c8_29, %c0_30], %54 {strides = array<i32>} : memref<128x50xf32, #tpu.memory_space<vmem>>, vector<8x50xf32>,
    %c16 = arith.constant 16 : index
    %c0_31 = arith.constant 0 : index
    %56 = vector.load %arg18[%c16, %c0_31] : memref<128x200xf32, #tpu.memory_space<vmem>>, vector<8x200xf32>
    %cst_32 = arith.constant dense<0.000000e+00> : vector<8x200xf32>
    %57 = tpu.matmul %54, %13, %cst_32 {dimension_numbers = #tpu.dot_dimension_numbers<[1], [0], [0], [1], [0, 0, 1, 1], [], []>} : vector<8x50xf32>, vector<50x200xf32>, vector<8x200xf32> -> vector<8x200xf32>
    %58 = arith.addf %56, %57 : vector<8x200xf32>
    %cst_33 = arith.constant 0.000000e+00 : f32
    %59 = vector.broadcast %cst_33 : f32 to vector<8x200xf32>
    %60 = arith.subf %59, %58 : vector<8x200xf32>
    %61 = math.exp %60 : vector<8x200xf32>
    %cst_34 = arith.constant 1.000000e+00 : f32
    %62 = vector.broadcast %cst_34 : f32 to vector<8x200xf32>
    %63 = arith.addf %62, %61 : vector<8x200xf32>
    %64 = tpu.reciprocal %63 {approx = true} : vector<8x200xf32> -> vector<8x200xf32>
    %65 = vector.extract_strided_slice %64 {offsets = [0, 0], sizes = [8, 50], strides = [1, 1]} : vector<8x200xf32> to vector<8x50xf32>
    %66 = vector.extract_strided_slice %64 {offsets = [0, 50], sizes = [8, 50], strides = [1, 1]} : vector<8x200xf32> to vector<8x50xf32>
    %67 = vector.extract_strided_slice %64 {offsets = [0, 150], sizes = [8, 50], strides = [1, 1]} : vector<8x200xf32> to vector<8x50xf32>
    %68 = vector.extract_strided_slice %58 {offsets = [0, 100], sizes = [8, 50], strides = [1, 1]} : vector<8x200xf32> to vector<8x50xf32>
    %69 = math.tanh %68 : vector<8x50xf32>
    %70 = arith.mulf %66, %52 : vector<8x50xf32>
    %71 = arith.mulf %65, %69 : vector<8x50xf32>
    %72 = arith.addf %70, %71 : vector<8x50xf32>
    %73 = math.tanh %72 : vector<8x50xf32>
    %74 = arith.mulf %67, %73 : vector<8x50xf32>
    %c16_35 = arith.constant 16 : index
    %c0_36 = arith.constant 0 : index
    %75 = vector.load %arg20[%c16_35, %c0_36] : memref<128x50xf32, #tpu.memory_space<vmem>>, vector<8x50xf32>
    tpu.vector_store %arg20[%c16_35, %c0_36], %74 {strides = array<i32>} : memref<128x50xf32, #tpu.memory_space<vmem>>, vector<8x50xf32>,
    %c24 = arith.constant 24 : index
    %c0_37 = arith.constant 0 : index
    %76 = vector.load %arg18[%c24, %c0_37] : memref<128x200xf32, #tpu.memory_space<vmem>>, vector<8x200xf32>
    %cst_38 = arith.constant dense<0.000000e+00> : vector<8x200xf32>
    %77 = tpu.matmul %74, %13, %cst_38 {dimension_numbers = #tpu.dot_dimension_numbers<[1], [0], [0], [1], [0, 0, 1, 1], [], []>} : vector<8x50xf32>, vector<50x200xf32>, vector<8x200xf32> -> vector<8x200xf32>
    %78 = arith.addf %76, %77 : vector<8x200xf32>
    %cst_39 = arith.constant 0.000000e+00 : f32
    %79 = vector.broadcast %cst_39 : f32 to vector<8x200xf32>
    %80 = arith.subf %79, %78 : vector<8x200xf32>
    %81 = math.exp %80 : vector<8x200xf32>
    %cst_40 = arith.constant 1.000000e+00 : f32
    %82 = vector.broadcast %cst_40 : f32 to vector<8x200xf32>
    %83 = arith.addf %82, %81 : vector<8x200xf32>
    %84 = tpu.reciprocal %83 {approx = true} : vector<8x200xf32> -> vector<8x200xf32>
    %85 = vector.extract_strided_slice %84 {offsets = [0, 0], sizes = [8, 50], strides = [1, 1]} : vector<8x200xf32> to vector<8x50xf32>
    %86 = vector.extract_strided_slice %84 {offsets = [0, 50], sizes = [8, 50], strides = [1, 1]} : vector<8x200xf32> to vector<8x50xf32>
    %87 = vector.extract_strided_slice %84 {offsets = [0, 150], sizes = [8, 50], strides = [1, 1]} : vector<8x200xf32> to vector<8x50xf32>
    %88 = vector.extract_strided_slice %78 {offsets = [0, 100], sizes = [8, 50], strides = [1, 1]} : vector<8x200xf32> to vector<8x50xf32>
    %89 = math.tanh %88 : vector<8x50xf32>
    %90 = arith.mulf %86, %72 : vector<8x50xf32>
    %91 = arith.mulf %85, %89 : vector<8x50xf32>
    %92 = arith.addf %90, %91 : vector<8x50xf32>
    %93 = math.tanh %92 : vector<8x50xf32>
    %94 = arith.mulf %87, %93 : vector<8x50xf32>
    %c24_41 = arith.constant 24 : index
    %c0_42 = arith.constant 0 : index
    %95 = vector.load %arg20[%c24_41, %c0_42] : memref<128x50xf32, #tpu.memory_space<vmem>>, vector<8x50xf32>
    tpu.vector_store %arg20[%c24_41, %c0_42], %94 {strides = array<i32>} : memref<128x50xf32, #tpu.memory_space<vmem>>, vector<8x50xf32>,
    %c32 = arith.constant 32 : index
    %c0_43 = arith.constant 0 : index
    %96 = vector.load %arg18[%c32, %c0_43] : memref<128x200xf32, #tpu.memory_space<vmem>>, vector<8x200xf32>
    %cst_44 = arith.constant dense<0.000000e+00> : vector<8x200xf32>
    %97 = tpu.matmul %94, %13, %cst_44 {dimension_numbers = #tpu.dot_dimension_numbers<[1], [0], [0], [1], [0, 0, 1, 1], [], []>} : vector<8x50xf32>, vector<50x200xf32>, vector<8x200xf32> -> vector<8x200xf32>
    %98 = arith.addf %96, %97 : vector<8x200xf32>
    %cst_45 = arith.constant 0.000000e+00 : f32
    %99 = vector.broadcast %cst_45 : f32 to vector<8x200xf32>
    %100 = arith.subf %99, %98 : vector<8x200xf32>
    %101 = math.exp %100 : vector<8x200xf32>
    %cst_46 = arith.constant 1.000000e+00 : f32
    %102 = vector.broadcast %cst_46 : f32 to vector<8x200xf32>
    %103 = arith.addf %102, %101 : vector<8x200xf32>
    %104 = tpu.reciprocal %103 {approx = true} : vector<8x200xf32> -> vector<8x200xf32>
    %105 = vector.extract_strided_slice %104 {offsets = [0, 0], sizes = [8, 50], strides = [1, 1]} : vector<8x200xf32> to vector<8x50xf32>
    %106 = vector.extract_strided_slice %104 {offsets = [0, 50], sizes = [8, 50], strides = [1, 1]} : vector<8x200xf32> to vector<8x50xf32>
    %107 = vector.extract_strided_slice %104 {offsets = [0, 150], sizes = [8, 50], strides = [1, 1]} : vector<8x200xf32> to vector<8x50xf32>
    %108 = vector.extract_strided_slice %98 {offsets = [0, 100], sizes = [8, 50], strides = [1, 1]} : vector<8x200xf32> to vector<8x50xf32>
    %109 = math.tanh %108 : vector<8x50xf32>
    %110 = arith.mulf %106, %92 : vector<8x50xf32>
    %111 = arith.mulf %105, %109 : vector<8x50xf32>
    %112 = arith.addf %110, %111 : vector<8x50xf32>
    %113 = math.tanh %112 : vector<8x50xf32>
    %114 = arith.mulf %107, %113 : vector<8x50xf32>
    %c32_47 = arith.constant 32 : index
    %c0_48 = arith.constant 0 : index
    %115 = vector.load %arg20[%c32_47, %c0_48] : memref<128x50xf32, #tpu.memory_space<vmem>>, vector<8x50xf32>
    tpu.vector_store %arg20[%c32_47, %c0_48], %114 {strides = array<i32>} : memref<128x50xf32, #tpu.memory_space<vmem>>, vector<8x50xf32>,
    %c40 = arith.constant 40 : index
    %c0_49 = arith.constant 0 : index
    %116 = vector.load %arg18[%c40, %c0_49] : memref<128x200xf32, #tpu.memory_space<vmem>>, vector<8x200xf32>
    %cst_50 = arith.constant dense<0.000000e+00> : vector<8x200xf32>
    %117 = tpu.matmul %114, %13, %cst_50 {dimension_numbers = #tpu.dot_dimension_numbers<[1], [0], [0], [1], [0, 0, 1, 1], [], []>} : vector<8x50xf32>, vector<50x200xf32>, vector<8x200xf32> -> vector<8x200xf32>
    %118 = arith.addf %116, %117 : vector<8x200xf32>
    %cst_51 = arith.constant 0.000000e+00 : f32
    %119 = vector.broadcast %cst_51 : f32 to vector<8x200xf32>
    %120 = arith.subf %119, %118 : vector<8x200xf32>
    %121 = math.exp %120 : vector<8x200xf32>
    %cst_52 = arith.constant 1.000000e+00 : f32
    %122 = vector.broadcast %cst_52 : f32 to vector<8x200xf32>
    %123 = arith.addf %122, %121 : vector<8x200xf32>
    %124 = tpu.reciprocal %123 {approx = true} : vector<8x200xf32> -> vector<8x200xf32>
    %125 = vector.extract_strided_slice %124 {offsets = [0, 0], sizes = [8, 50], strides = [1, 1]} : vector<8x200xf32> to vector<8x50xf32>
    %126 = vector.extract_strided_slice %124 {offsets = [0, 50], sizes = [8, 50], strides = [1, 1]} : vector<8x200xf32> to vector<8x50xf32>
    %127 = vector.extract_strided_slice %124 {offsets = [0, 150], sizes = [8, 50], strides = [1, 1]} : vector<8x200xf32> to vector<8x50xf32>
    %128 = vector.extract_strided_slice %118 {offsets = [0, 100], sizes = [8, 50], strides = [1, 1]} : vector<8x200xf32> to vector<8x50xf32>
    %129 = math.tanh %128 : vector<8x50xf32>
    %130 = arith.mulf %126, %112 : vector<8x50xf32>
    %131 = arith.mulf %125, %129 : vector<8x50xf32>
    %132 = arith.addf %130, %131 : vector<8x50xf32>
    %133 = math.tanh %132 : vector<8x50xf32>
    %134 = arith.mulf %127, %133 : vector<8x50xf32>
    %c40_53 = arith.constant 40 : index
    %c0_54 = arith.constant 0 : index
    %135 = vector.load %arg20[%c40_53, %c0_54] : memref<128x50xf32, #tpu.memory_space<vmem>>, vector<8x50xf32>
    tpu.vector_store %arg20[%c40_53, %c0_54], %134 {strides = array<i32>} : memref<128x50xf32, #tpu.memory_space<vmem>>, vector<8x50xf32>,
    %c48 = arith.constant 48 : index
    %c0_55 = arith.constant 0 : index
    %136 = vector.load %arg18[%c48, %c0_55] : memref<128x200xf32, #tpu.memory_space<vmem>>, vector<8x200xf32>
    %cst_56 = arith.constant dense<0.000000e+00> : vector<8x200xf32>
    %137 = tpu.matmul %134, %13, %cst_56 {dimension_numbers = #tpu.dot_dimension_numbers<[1], [0], [0], [1], [0, 0, 1, 1], [], []>} : vector<8x50xf32>, vector<50x200xf32>, vector<8x200xf32> -> vector<8x200xf32>
    %138 = arith.addf %136, %137 : vector<8x200xf32>
    %cst_57 = arith.constant 0.000000e+00 : f32
    %139 = vector.broadcast %cst_57 : f32 to vector<8x200xf32>
    %140 = arith.subf %139, %138 : vector<8x200xf32>
    %141 = math.exp %140 : vector<8x200xf32>
    %cst_58 = arith.constant 1.000000e+00 : f32
    %142 = vector.broadcast %cst_58 : f32 to vector<8x200xf32>
    %143 = arith.addf %142, %141 : vector<8x200xf32>
    %144 = tpu.reciprocal %143 {approx = true} : vector<8x200xf32> -> vector<8x200xf32>
    %145 = vector.extract_strided_slice %144 {offsets = [0, 0], sizes = [8, 50], strides = [1, 1]} : vector<8x200xf32> to vector<8x50xf32>
    %146 = vector.extract_strided_slice %144 {offsets = [0, 50], sizes = [8, 50], strides = [1, 1]} : vector<8x200xf32> to vector<8x50xf32>
    %147 = vector.extract_strided_slice %144 {offsets = [0, 150], sizes = [8, 50], strides = [1, 1]} : vector<8x200xf32> to vector<8x50xf32>
    %148 = vector.extract_strided_slice %138 {offsets = [0, 100], sizes = [8, 50], strides = [1, 1]} : vector<8x200xf32> to vector<8x50xf32>
    %149 = math.tanh %148 : vector<8x50xf32>
    %150 = arith.mulf %146, %132 : vector<8x50xf32>
    %151 = arith.mulf %145, %149 : vector<8x50xf32>
    %152 = arith.addf %150, %151 : vector<8x50xf32>
    %153 = math.tanh %152 : vector<8x50xf32>
    %154 = arith.mulf %147, %153 : vector<8x50xf32>
    %c48_59 = arith.constant 48 : index
    %c0_60 = arith.constant 0 : index
    %155 = vector.load %arg20[%c48_59, %c0_60] : memref<128x50xf32, #tpu.memory_space<vmem>>, vector<8x50xf32>
    tpu.vector_store %arg20[%c48_59, %c0_60], %154 {strides = array<i32>} : memref<128x50xf32, #tpu.memory_space<vmem>>, vector<8x50xf32>,
    %c56 = arith.constant 56 : index
    %c0_61 = arith.constant 0 : index
    %156 = vector.load %arg18[%c56, %c0_61] : memref<128x200xf32, #tpu.memory_space<vmem>>, vector<8x200xf32>
    %cst_62 = arith.constant dense<0.000000e+00> : vector<8x200xf32>
    %157 = tpu.matmul %154, %13, %cst_62 {dimension_numbers = #tpu.dot_dimension_numbers<[1], [0], [0], [1], [0, 0, 1, 1], [], []>} : vector<8x50xf32>, vector<50x200xf32>, vector<8x200xf32> -> vector<8x200xf32>
    %158 = arith.addf %156, %157 : vector<8x200xf32>
    %cst_63 = arith.constant 0.000000e+00 : f32
    %159 = vector.broadcast %cst_63 : f32 to vector<8x200xf32>
    %160 = arith.subf %159, %158 : vector<8x200xf32>
    %161 = math.exp %160 : vector<8x200xf32>
    %cst_64 = arith.constant 1.000000e+00 : f32
    %162 = vector.broadcast %cst_64 : f32 to vector<8x200xf32>
    %163 = arith.addf %162, %161 : vector<8x200xf32>
    %164 = tpu.reciprocal %163 {approx = true} : vector<8x200xf32> -> vector<8x200xf32>
    %165 = vector.extract_strided_slice %164 {offsets = [0, 0], sizes = [8, 50], strides = [1, 1]} : vector<8x200xf32> to vector<8x50xf32>
    %166 = vector.extract_strided_slice %164 {offsets = [0, 50], sizes = [8, 50], strides = [1, 1]} : vector<8x200xf32> to vector<8x50xf32>
    %167 = vector.extract_strided_slice %164 {offsets = [0, 150], sizes = [8, 50], strides = [1, 1]} : vector<8x200xf32> to vector<8x50xf32>
    %168 = vector.extract_strided_slice %158 {offsets = [0, 100], sizes = [8, 50], strides = [1, 1]} : vector<8x200xf32> to vector<8x50xf32>
    %169 = math.tanh %168 : vector<8x50xf32>
    %170 = arith.mulf %166, %152 : vector<8x50xf32>
    %171 = arith.mulf %165, %169 : vector<8x50xf32>
    %172 = arith.addf %170, %171 : vector<8x50xf32>
    %173 = math.tanh %172 : vector<8x50xf32>
    %174 = arith.mulf %167, %173 : vector<8x50xf32>
    %c56_65 = arith.constant 56 : index
    %c0_66 = arith.constant 0 : index
    %175 = vector.load %arg20[%c56_65, %c0_66] : memref<128x50xf32, #tpu.memory_space<vmem>>, vector<8x50xf32>
    tpu.vector_store %arg20[%c56_65, %c0_66], %174 {strides = array<i32>} : memref<128x50xf32, #tpu.memory_space<vmem>>, vector<8x50xf32>,
    %c64 = arith.constant 64 : index
    %c0_67 = arith.constant 0 : index
    %176 = vector.load %arg18[%c64, %c0_67] : memref<128x200xf32, #tpu.memory_space<vmem>>, vector<8x200xf32>
    %cst_68 = arith.constant dense<0.000000e+00> : vector<8x200xf32>
    %177 = tpu.matmul %174, %13, %cst_68 {dimension_numbers = #tpu.dot_dimension_numbers<[1], [0], [0], [1], [0, 0, 1, 1], [], []>} : vector<8x50xf32>, vector<50x200xf32>, vector<8x200xf32> -> vector<8x200xf32>
    %178 = arith.addf %176, %177 : vector<8x200xf32>
    %cst_69 = arith.constant 0.000000e+00 : f32
    %179 = vector.broadcast %cst_69 : f32 to vector<8x200xf32>
    %180 = arith.subf %179, %178 : vector<8x200xf32>
    %181 = math.exp %180 : vector<8x200xf32>
    %cst_70 = arith.constant 1.000000e+00 : f32
    %182 = vector.broadcast %cst_70 : f32 to vector<8x200xf32>
    %183 = arith.addf %182, %181 : vector<8x200xf32>
    %184 = tpu.reciprocal %183 {approx = true} : vector<8x200xf32> -> vector<8x200xf32>
    %185 = vector.extract_strided_slice %184 {offsets = [0, 0], sizes = [8, 50], strides = [1, 1]} : vector<8x200xf32> to vector<8x50xf32>
    %186 = vector.extract_strided_slice %184 {offsets = [0, 50], sizes = [8, 50], strides = [1, 1]} : vector<8x200xf32> to vector<8x50xf32>
    %187 = vector.extract_strided_slice %184 {offsets = [0, 150], sizes = [8, 50], strides = [1, 1]} : vector<8x200xf32> to vector<8x50xf32>
    %188 = vector.extract_strided_slice %178 {offsets = [0, 100], sizes = [8, 50], strides = [1, 1]} : vector<8x200xf32> to vector<8x50xf32>
    %189 = math.tanh %188 : vector<8x50xf32>
    %190 = arith.mulf %186, %172 : vector<8x50xf32>
    %191 = arith.mulf %185, %189 : vector<8x50xf32>
    %192 = arith.addf %190, %191 : vector<8x50xf32>
    %193 = math.tanh %192 : vector<8x50xf32>
    %194 = arith.mulf %187, %193 : vector<8x50xf32>
    %c64_71 = arith.constant 64 : index
    %c0_72 = arith.constant 0 : index
    %195 = vector.load %arg20[%c64_71, %c0_72] : memref<128x50xf32, #tpu.memory_space<vmem>>, vector<8x50xf32>
    tpu.vector_store %arg20[%c64_71, %c0_72], %194 {strides = array<i32>} : memref<128x50xf32, #tpu.memory_space<vmem>>, vector<8x50xf32>,
    %c72 = arith.constant 72 : index
    %c0_73 = arith.constant 0 : index
    %196 = vector.load %arg18[%c72, %c0_73] : memref<128x200xf32, #tpu.memory_space<vmem>>, vector<8x200xf32>
    %cst_74 = arith.constant dense<0.000000e+00> : vector<8x200xf32>
    %197 = tpu.matmul %194, %13, %cst_74 {dimension_numbers = #tpu.dot_dimension_numbers<[1], [0], [0], [1], [0, 0, 1, 1], [], []>} : vector<8x50xf32>, vector<50x200xf32>, vector<8x200xf32> -> vector<8x200xf32>
    %198 = arith.addf %196, %197 : vector<8x200xf32>
    %cst_75 = arith.constant 0.000000e+00 : f32
    %199 = vector.broadcast %cst_75 : f32 to vector<8x200xf32>
    %200 = arith.subf %199, %198 : vector<8x200xf32>
    %201 = math.exp %200 : vector<8x200xf32>
    %cst_76 = arith.constant 1.000000e+00 : f32
    %202 = vector.broadcast %cst_76 : f32 to vector<8x200xf32>
    %203 = arith.addf %202, %201 : vector<8x200xf32>
    %204 = tpu.reciprocal %203 {approx = true} : vector<8x200xf32> -> vector<8x200xf32>
    %205 = vector.extract_strided_slice %204 {offsets = [0, 0], sizes = [8, 50], strides = [1, 1]} : vector<8x200xf32> to vector<8x50xf32>
    %206 = vector.extract_strided_slice %204 {offsets = [0, 50], sizes = [8, 50], strides = [1, 1]} : vector<8x200xf32> to vector<8x50xf32>
    %207 = vector.extract_strided_slice %204 {offsets = [0, 150], sizes = [8, 50], strides = [1, 1]} : vector<8x200xf32> to vector<8x50xf32>
    %208 = vector.extract_strided_slice %198 {offsets = [0, 100], sizes = [8, 50], strides = [1, 1]} : vector<8x200xf32> to vector<8x50xf32>
    %209 = math.tanh %208 : vector<8x50xf32>
    %210 = arith.mulf %206, %192 : vector<8x50xf32>
    %211 = arith.mulf %205, %209 : vector<8x50xf32>
    %212 = arith.addf %210, %211 : vector<8x50xf32>
    %213 = math.tanh %212 : vector<8x50xf32>
    %214 = arith.mulf %207, %213 : vector<8x50xf32>
    %c72_77 = arith.constant 72 : index
    %c0_78 = arith.constant 0 : index
    %215 = vector.load %arg20[%c72_77, %c0_78] : memref<128x50xf32, #tpu.memory_space<vmem>>, vector<8x50xf32>
    tpu.vector_store %arg20[%c72_77, %c0_78], %214 {strides = array<i32>} : memref<128x50xf32, #tpu.memory_space<vmem>>, vector<8x50xf32>,
    %c80 = arith.constant 80 : index
    %c0_79 = arith.constant 0 : index
    %216 = vector.load %arg18[%c80, %c0_79] : memref<128x200xf32, #tpu.memory_space<vmem>>, vector<8x200xf32>
    %cst_80 = arith.constant dense<0.000000e+00> : vector<8x200xf32>
    %217 = tpu.matmul %214, %13, %cst_80 {dimension_numbers = #tpu.dot_dimension_numbers<[1], [0], [0], [1], [0, 0, 1, 1], [], []>} : vector<8x50xf32>, vector<50x200xf32>, vector<8x200xf32> -> vector<8x200xf32>
    %218 = arith.addf %216, %217 : vector<8x200xf32>
    %cst_81 = arith.constant 0.000000e+00 : f32
    %219 = vector.broadcast %cst_81 : f32 to vector<8x200xf32>
    %220 = arith.subf %219, %218 : vector<8x200xf32>
    %221 = math.exp %220 : vector<8x200xf32>
    %cst_82 = arith.constant 1.000000e+00 : f32
    %222 = vector.broadcast %cst_82 : f32 to vector<8x200xf32>
    %223 = arith.addf %222, %221 : vector<8x200xf32>
    %224 = tpu.reciprocal %223 {approx = true} : vector<8x200xf32> -> vector<8x200xf32>
    %225 = vector.extract_strided_slice %224 {offsets = [0, 0], sizes = [8, 50], strides = [1, 1]} : vector<8x200xf32> to vector<8x50xf32>
    %226 = vector.extract_strided_slice %224 {offsets = [0, 50], sizes = [8, 50], strides = [1, 1]} : vector<8x200xf32> to vector<8x50xf32>
    %227 = vector.extract_strided_slice %224 {offsets = [0, 150], sizes = [8, 50], strides = [1, 1]} : vector<8x200xf32> to vector<8x50xf32>
    %228 = vector.extract_strided_slice %218 {offsets = [0, 100], sizes = [8, 50], strides = [1, 1]} : vector<8x200xf32> to vector<8x50xf32>
    %229 = math.tanh %228 : vector<8x50xf32>
    %230 = arith.mulf %226, %212 : vector<8x50xf32>
    %231 = arith.mulf %225, %229 : vector<8x50xf32>
    %232 = arith.addf %230, %231 : vector<8x50xf32>
    %233 = math.tanh %232 : vector<8x50xf32>
    %234 = arith.mulf %227, %233 : vector<8x50xf32>
    %c80_83 = arith.constant 80 : index
    %c0_84 = arith.constant 0 : index
    %235 = vector.load %arg20[%c80_83, %c0_84] : memref<128x50xf32, #tpu.memory_space<vmem>>, vector<8x50xf32>
    tpu.vector_store %arg20[%c80_83, %c0_84], %234 {strides = array<i32>} : memref<128x50xf32, #tpu.memory_space<vmem>>, vector<8x50xf32>,
    %c88 = arith.constant 88 : index
    %c0_85 = arith.constant 0 : index
    %236 = vector.load %arg18[%c88, %c0_85] : memref<128x200xf32, #tpu.memory_space<vmem>>, vector<8x200xf32>
    %cst_86 = arith.constant dense<0.000000e+00> : vector<8x200xf32>
    %237 = tpu.matmul %234, %13, %cst_86 {dimension_numbers = #tpu.dot_dimension_numbers<[1], [0], [0], [1], [0, 0, 1, 1], [], []>} : vector<8x50xf32>, vector<50x200xf32>, vector<8x200xf32> -> vector<8x200xf32>
    %238 = arith.addf %236, %237 : vector<8x200xf32>
    %cst_87 = arith.constant 0.000000e+00 : f32
    %239 = vector.broadcast %cst_87 : f32 to vector<8x200xf32>
    %240 = arith.subf %239, %238 : vector<8x200xf32>
    %241 = math.exp %240 : vector<8x200xf32>
    %cst_88 = arith.constant 1.000000e+00 : f32
    %242 = vector.broadcast %cst_88 : f32 to vector<8x200xf32>
    %243 = arith.addf %242, %241 : vector<8x200xf32>
    %244 = tpu.reciprocal %243 {approx = true} : vector<8x200xf32> -> vector<8x200xf32>
    %245 = vector.extract_strided_slice %244 {offsets = [0, 0], sizes = [8, 50], strides = [1, 1]} : vector<8x200xf32> to vector<8x50xf32>
    %246 = vector.extract_strided_slice %244 {offsets = [0, 50], sizes = [8, 50], strides = [1, 1]} : vector<8x200xf32> to vector<8x50xf32>
    %247 = vector.extract_strided_slice %244 {offsets = [0, 150], sizes = [8, 50], strides = [1, 1]} : vector<8x200xf32> to vector<8x50xf32>
    %248 = vector.extract_strided_slice %238 {offsets = [0, 100], sizes = [8, 50], strides = [1, 1]} : vector<8x200xf32> to vector<8x50xf32>
    %249 = math.tanh %248 : vector<8x50xf32>
    %250 = arith.mulf %246, %232 : vector<8x50xf32>
    %251 = arith.mulf %245, %249 : vector<8x50xf32>
    %252 = arith.addf %250, %251 : vector<8x50xf32>
    %253 = math.tanh %252 : vector<8x50xf32>
    %254 = arith.mulf %247, %253 : vector<8x50xf32>
    %c88_89 = arith.constant 88 : index
    %c0_90 = arith.constant 0 : index
    %255 = vector.load %arg20[%c88_89, %c0_90] : memref<128x50xf32, #tpu.memory_space<vmem>>, vector<8x50xf32>
    tpu.vector_store %arg20[%c88_89, %c0_90], %254 {strides = array<i32>} : memref<128x50xf32, #tpu.memory_space<vmem>>, vector<8x50xf32>,
    %c96 = arith.constant 96 : index
    %c0_91 = arith.constant 0 : index
    %256 = vector.load %arg18[%c96, %c0_91] : memref<128x200xf32, #tpu.memory_space<vmem>>, vector<8x200xf32>
    %cst_92 = arith.constant dense<0.000000e+00> : vector<8x200xf32>
    %257 = tpu.matmul %254, %13, %cst_92 {dimension_numbers = #tpu.dot_dimension_numbers<[1], [0], [0], [1], [0, 0, 1, 1], [], []>} : vector<8x50xf32>, vector<50x200xf32>, vector<8x200xf32> -> vector<8x200xf32>
    %258 = arith.addf %256, %257 : vector<8x200xf32>
    %cst_93 = arith.constant 0.000000e+00 : f32
    %259 = vector.broadcast %cst_93 : f32 to vector<8x200xf32>
    %260 = arith.subf %259, %258 : vector<8x200xf32>
    %261 = math.exp %260 : vector<8x200xf32>
    %cst_94 = arith.constant 1.000000e+00 : f32
    %262 = vector.broadcast %cst_94 : f32 to vector<8x200xf32>
    %263 = arith.addf %262, %261 : vector<8x200xf32>
    %264 = tpu.reciprocal %263 {approx = true} : vector<8x200xf32> -> vector<8x200xf32>
    %265 = vector.extract_strided_slice %264 {offsets = [0, 0], sizes = [8, 50], strides = [1, 1]} : vector<8x200xf32> to vector<8x50xf32>
    %266 = vector.extract_strided_slice %264 {offsets = [0, 50], sizes = [8, 50], strides = [1, 1]} : vector<8x200xf32> to vector<8x50xf32>
    %267 = vector.extract_strided_slice %264 {offsets = [0, 150], sizes = [8, 50], strides = [1, 1]} : vector<8x200xf32> to vector<8x50xf32>
    %268 = vector.extract_strided_slice %258 {offsets = [0, 100], sizes = [8, 50], strides = [1, 1]} : vector<8x200xf32> to vector<8x50xf32>
    %269 = math.tanh %268 : vector<8x50xf32>
    %270 = arith.mulf %266, %252 : vector<8x50xf32>
    %271 = arith.mulf %265, %269 : vector<8x50xf32>
    %272 = arith.addf %270, %271 : vector<8x50xf32>
    %273 = math.tanh %272 : vector<8x50xf32>
    %274 = arith.mulf %267, %273 : vector<8x50xf32>
    %c96_95 = arith.constant 96 : index
    %c0_96 = arith.constant 0 : index
    %275 = vector.load %arg20[%c96_95, %c0_96] : memref<128x50xf32, #tpu.memory_space<vmem>>, vector<8x50xf32>
    tpu.vector_store %arg20[%c96_95, %c0_96], %274 {strides = array<i32>} : memref<128x50xf32, #tpu.memory_space<vmem>>, vector<8x50xf32>,
    %c104 = arith.constant 104 : index
    %c0_97 = arith.constant 0 : index
    %276 = vector.load %arg18[%c104, %c0_97] : memref<128x200xf32, #tpu.memory_space<vmem>>, vector<8x200xf32>
    %cst_98 = arith.constant dense<0.000000e+00> : vector<8x200xf32>
    %277 = tpu.matmul %274, %13, %cst_98 {dimension_numbers = #tpu.dot_dimension_numbers<[1], [0], [0], [1], [0, 0, 1, 1], [], []>} : vector<8x50xf32>, vector<50x200xf32>, vector<8x200xf32> -> vector<8x200xf32>
    %278 = arith.addf %276, %277 : vector<8x200xf32>
    %cst_99 = arith.constant 0.000000e+00 : f32
    %279 = vector.broadcast %cst_99 : f32 to vector<8x200xf32>
    %280 = arith.subf %279, %278 : vector<8x200xf32>
    %281 = math.exp %280 : vector<8x200xf32>
    %cst_100 = arith.constant 1.000000e+00 : f32
    %282 = vector.broadcast %cst_100 : f32 to vector<8x200xf32>
    %283 = arith.addf %282, %281 : vector<8x200xf32>
    %284 = tpu.reciprocal %283 {approx = true} : vector<8x200xf32> -> vector<8x200xf32>
    %285 = vector.extract_strided_slice %284 {offsets = [0, 0], sizes = [8, 50], strides = [1, 1]} : vector<8x200xf32> to vector<8x50xf32>
    %286 = vector.extract_strided_slice %284 {offsets = [0, 50], sizes = [8, 50], strides = [1, 1]} : vector<8x200xf32> to vector<8x50xf32>
    %287 = vector.extract_strided_slice %284 {offsets = [0, 150], sizes = [8, 50], strides = [1, 1]} : vector<8x200xf32> to vector<8x50xf32>
    %288 = vector.extract_strided_slice %278 {offsets = [0, 100], sizes = [8, 50], strides = [1, 1]} : vector<8x200xf32> to vector<8x50xf32>
    %289 = math.tanh %288 : vector<8x50xf32>
    %290 = arith.mulf %286, %272 : vector<8x50xf32>
    %291 = arith.mulf %285, %289 : vector<8x50xf32>
    %292 = arith.addf %290, %291 : vector<8x50xf32>
    %293 = math.tanh %292 : vector<8x50xf32>
    %294 = arith.mulf %287, %293 : vector<8x50xf32>
    %c104_101 = arith.constant 104 : index
    %c0_102 = arith.constant 0 : index
    %295 = vector.load %arg20[%c104_101, %c0_102] : memref<128x50xf32, #tpu.memory_space<vmem>>, vector<8x50xf32>
    tpu.vector_store %arg20[%c104_101, %c0_102], %294 {strides = array<i32>} : memref<128x50xf32, #tpu.memory_space<vmem>>, vector<8x50xf32>,
    %c112 = arith.constant 112 : index
    %c0_103 = arith.constant 0 : index
    %296 = vector.load %arg18[%c112, %c0_103] : memref<128x200xf32, #tpu.memory_space<vmem>>, vector<8x200xf32>
    %cst_104 = arith.constant dense<0.000000e+00> : vector<8x200xf32>
    %297 = tpu.matmul %294, %13, %cst_104 {dimension_numbers = #tpu.dot_dimension_numbers<[1], [0], [0], [1], [0, 0, 1, 1], [], []>} : vector<8x50xf32>, vector<50x200xf32>, vector<8x200xf32> -> vector<8x200xf32>
    %298 = arith.addf %296, %297 : vector<8x200xf32>
    %cst_105 = arith.constant 0.000000e+00 : f32
    %299 = vector.broadcast %cst_105 : f32 to vector<8x200xf32>
    %300 = arith.subf %299, %298 : vector<8x200xf32>
    %301 = math.exp %300 : vector<8x200xf32>
    %cst_106 = arith.constant 1.000000e+00 : f32
    %302 = vector.broadcast %cst_106 : f32 to vector<8x200xf32>
    %303 = arith.addf %302, %301 : vector<8x200xf32>
    %304 = tpu.reciprocal %303 {approx = true} : vector<8x200xf32> -> vector<8x200xf32>
    %305 = vector.extract_strided_slice %304 {offsets = [0, 0], sizes = [8, 50], strides = [1, 1]} : vector<8x200xf32> to vector<8x50xf32>
    %306 = vector.extract_strided_slice %304 {offsets = [0, 50], sizes = [8, 50], strides = [1, 1]} : vector<8x200xf32> to vector<8x50xf32>
    %307 = vector.extract_strided_slice %304 {offsets = [0, 150], sizes = [8, 50], strides = [1, 1]} : vector<8x200xf32> to vector<8x50xf32>
    %308 = vector.extract_strided_slice %298 {offsets = [0, 100], sizes = [8, 50], strides = [1, 1]} : vector<8x200xf32> to vector<8x50xf32>
    %309 = math.tanh %308 : vector<8x50xf32>
    %310 = arith.mulf %306, %292 : vector<8x50xf32>
    %311 = arith.mulf %305, %309 : vector<8x50xf32>
    %312 = arith.addf %310, %311 : vector<8x50xf32>
    %313 = math.tanh %312 : vector<8x50xf32>
    %314 = arith.mulf %307, %313 : vector<8x50xf32>
    %c112_107 = arith.constant 112 : index
    %c0_108 = arith.constant 0 : index
    %315 = vector.load %arg20[%c112_107, %c0_108] : memref<128x50xf32, #tpu.memory_space<vmem>>, vector<8x50xf32>
    tpu.vector_store %arg20[%c112_107, %c0_108], %314 {strides = array<i32>} : memref<128x50xf32, #tpu.memory_space<vmem>>, vector<8x50xf32>,
    %c120 = arith.constant 120 : index
    %c0_109 = arith.constant 0 : index
    %316 = vector.load %arg18[%c120, %c0_109] : memref<128x200xf32, #tpu.memory_space<vmem>>, vector<8x200xf32>
    %cst_110 = arith.constant dense<0.000000e+00> : vector<8x200xf32>
    %317 = tpu.matmul %314, %13, %cst_110 {dimension_numbers = #tpu.dot_dimension_numbers<[1], [0], [0], [1], [0, 0, 1, 1], [], []>} : vector<8x50xf32>, vector<50x200xf32>, vector<8x200xf32> -> vector<8x200xf32>
    %318 = arith.addf %316, %317 : vector<8x200xf32>
    %cst_111 = arith.constant 0.000000e+00 : f32
    %319 = vector.broadcast %cst_111 : f32 to vector<8x200xf32>
    %320 = arith.subf %319, %318 : vector<8x200xf32>
    %321 = math.exp %320 : vector<8x200xf32>
    %cst_112 = arith.constant 1.000000e+00 : f32
    %322 = vector.broadcast %cst_112 : f32 to vector<8x200xf32>
    %323 = arith.addf %322, %321 : vector<8x200xf32>
    %324 = tpu.reciprocal %323 {approx = true} : vector<8x200xf32> -> vector<8x200xf32>
    %325 = vector.extract_strided_slice %324 {offsets = [0, 0], sizes = [8, 50], strides = [1, 1]} : vector<8x200xf32> to vector<8x50xf32>
    %326 = vector.extract_strided_slice %324 {offsets = [0, 50], sizes = [8, 50], strides = [1, 1]} : vector<8x200xf32> to vector<8x50xf32>
    %327 = vector.extract_strided_slice %324 {offsets = [0, 150], sizes = [8, 50], strides = [1, 1]} : vector<8x200xf32> to vector<8x50xf32>
    %328 = vector.extract_strided_slice %318 {offsets = [0, 100], sizes = [8, 50], strides = [1, 1]} : vector<8x200xf32> to vector<8x50xf32>
    %329 = math.tanh %328 : vector<8x50xf32>
    %330 = arith.mulf %326, %312 : vector<8x50xf32>
    %331 = arith.mulf %325, %329 : vector<8x50xf32>
    %332 = arith.addf %330, %331 : vector<8x50xf32>
    %333 = math.tanh %332 : vector<8x50xf32>
    %334 = arith.mulf %327, %333 : vector<8x50xf32>
    %c120_113 = arith.constant 120 : index
    %c0_114 = arith.constant 0 : index
    %335 = vector.load %arg20[%c120_113, %c0_114] : memref<128x50xf32, #tpu.memory_space<vmem>>, vector<8x50xf32>
    tpu.vector_store %arg20[%c120_113, %c0_114], %334 {strides = array<i32>} : memref<128x50xf32, #tpu.memory_space<vmem>>, vector<8x50xf32>,
    %c0_115 = arith.constant 0 : index
    %c0_116 = arith.constant 0 : index
    %336 = vector.load %arg6[%c0_115, %c0_116] : memref<50x200xf32, #tpu.memory_space<vmem>>, vector<50x200xf32>
    %cst_117 = arith.constant 0.000000e+00 : f32
    %337 = vector.broadcast %cst_117 : f32 to vector<8x50xf32>
    %cst_118 = arith.constant 0.000000e+00 : f32
    %338 = vector.broadcast %cst_118 : f32 to vector<8x50xf32>
    %c120_119 = arith.constant 120 : index
    %c0_120 = arith.constant 0 : index
    %339 = vector.load %arg19[%c120_119, %c0_120] : memref<128x200xf32, #tpu.memory_space<vmem>>, vector<8x200xf32>
    %cst_121 = arith.constant dense<0.000000e+00> : vector<8x200xf32>
    %340 = tpu.matmul %337, %336, %cst_121 {dimension_numbers = #tpu.dot_dimension_numbers<[1], [0], [0], [1], [0, 0, 1, 1], [], []>} : vector<8x50xf32>, vector<50x200xf32>, vector<8x200xf32> -> vector<8x200xf32>
    %341 = arith.addf %339, %340 : vector<8x200xf32>
    %cst_122 = arith.constant 0.000000e+00 : f32
    %342 = vector.broadcast %cst_122 : f32 to vector<8x200xf32>
    %343 = arith.subf %342, %341 : vector<8x200xf32>
    %344 = math.exp %343 : vector<8x200xf32>
    %cst_123 = arith.constant 1.000000e+00 : f32
    %345 = vector.broadcast %cst_123 : f32 to vector<8x200xf32>
    %346 = arith.addf %345, %344 : vector<8x200xf32>
    %347 = tpu.reciprocal %346 {approx = true} : vector<8x200xf32> -> vector<8x200xf32>
    %348 = vector.extract_strided_slice %347 {offsets = [0, 0], sizes = [8, 50], strides = [1, 1]} : vector<8x200xf32> to vector<8x50xf32>
    %349 = vector.extract_strided_slice %347 {offsets = [0, 50], sizes = [8, 50], strides = [1, 1]} : vector<8x200xf32> to vector<8x50xf32>
    %350 = vector.extract_strided_slice %347 {offsets = [0, 150], sizes = [8, 50], strides = [1, 1]} : vector<8x200xf32> to vector<8x50xf32>
    %351 = vector.extract_strided_slice %341 {offsets = [0, 100], sizes = [8, 50], strides = [1, 1]} : vector<8x200xf32> to vector<8x50xf32>
    %352 = math.tanh %351 : vector<8x50xf32>
    %353 = arith.mulf %349, %338 : vector<8x50xf32>
    %354 = arith.mulf %348, %352 : vector<8x50xf32>
    %355 = arith.addf %353, %354 : vector<8x50xf32>
    %356 = math.tanh %355 : vector<8x50xf32>
    %357 = arith.mulf %350, %356 : vector<8x50xf32>
    %c120_124 = arith.constant 120 : index
    %c0_125 = arith.constant 0 : index
    %358 = vector.load %arg21[%c120_124, %c0_125] : memref<128x50xf32, #tpu.memory_space<vmem>>, vector<8x50xf32>
    tpu.vector_store %arg21[%c120_124, %c0_125], %357 {strides = array<i32>} : memref<128x50xf32, #tpu.memory_space<vmem>>, vector<8x50xf32>,
    %c112_126 = arith.constant 112 : index
    %c0_127 = arith.constant 0 : index
    %359 = vector.load %arg19[%c112_126, %c0_127] : memref<128x200xf32, #tpu.memory_space<vmem>>, vector<8x200xf32>
    %cst_128 = arith.constant dense<0.000000e+00> : vector<8x200xf32>
    %360 = tpu.matmul %357, %336, %cst_128 {dimension_numbers = #tpu.dot_dimension_numbers<[1], [0], [0], [1], [0, 0, 1, 1], [], []>} : vector<8x50xf32>, vector<50x200xf32>, vector<8x200xf32> -> vector<8x200xf32>
    %361 = arith.addf %359, %360 : vector<8x200xf32>
    %cst_129 = arith.constant 0.000000e+00 : f32
    %362 = vector.broadcast %cst_129 : f32 to vector<8x200xf32>
    %363 = arith.subf %362, %361 : vector<8x200xf32>
    %364 = math.exp %363 : vector<8x200xf32>
    %cst_130 = arith.constant 1.000000e+00 : f32
    %365 = vector.broadcast %cst_130 : f32 to vector<8x200xf32>
    %366 = arith.addf %365, %364 : vector<8x200xf32>
    %367 = tpu.reciprocal %366 {approx = true} : vector<8x200xf32> -> vector<8x200xf32>
    %368 = vector.extract_strided_slice %367 {offsets = [0, 0], sizes = [8, 50], strides = [1, 1]} : vector<8x200xf32> to vector<8x50xf32>
    %369 = vector.extract_strided_slice %367 {offsets = [0, 50], sizes = [8, 50], strides = [1, 1]} : vector<8x200xf32> to vector<8x50xf32>
    %370 = vector.extract_strided_slice %367 {offsets = [0, 150], sizes = [8, 50], strides = [1, 1]} : vector<8x200xf32> to vector<8x50xf32>
    %371 = vector.extract_strided_slice %361 {offsets = [0, 100], sizes = [8, 50], strides = [1, 1]} : vector<8x200xf32> to vector<8x50xf32>
    %372 = math.tanh %371 : vector<8x50xf32>
    %373 = arith.mulf %369, %355 : vector<8x50xf32>
    %374 = arith.mulf %368, %372 : vector<8x50xf32>
    %375 = arith.addf %373, %374 : vector<8x50xf32>
    %376 = math.tanh %375 : vector<8x50xf32>
    %377 = arith.mulf %370, %376 : vector<8x50xf32>
    %c112_131 = arith.constant 112 : index
    %c0_132 = arith.constant 0 : index
    %378 = vector.load %arg21[%c112_131, %c0_132] : memref<128x50xf32, #tpu.memory_space<vmem>>, vector<8x50xf32>
    tpu.vector_store %arg21[%c112_131, %c0_132], %377 {strides = array<i32>} : memref<128x50xf32, #tpu.memory_space<vmem>>, vector<8x50xf32>,
    %c104_133 = arith.constant 104 : index
    %c0_134 = arith.constant 0 : index
    %379 = vector.load %arg19[%c104_133, %c0_134] : memref<128x200xf32, #tpu.memory_space<vmem>>, vector<8x200xf32>
    %cst_135 = arith.constant dense<0.000000e+00> : vector<8x200xf32>
    %380 = tpu.matmul %377, %336, %cst_135 {dimension_numbers = #tpu.dot_dimension_numbers<[1], [0], [0], [1], [0, 0, 1, 1], [], []>} : vector<8x50xf32>, vector<50x200xf32>, vector<8x200xf32> -> vector<8x200xf32>
    %381 = arith.addf %379, %380 : vector<8x200xf32>
    %cst_136 = arith.constant 0.000000e+00 : f32
    %382 = vector.broadcast %cst_136 : f32 to vector<8x200xf32>
    %383 = arith.subf %382, %381 : vector<8x200xf32>
    %384 = math.exp %383 : vector<8x200xf32>
    %cst_137 = arith.constant 1.000000e+00 : f32
    %385 = vector.broadcast %cst_137 : f32 to vector<8x200xf32>
    %386 = arith.addf %385, %384 : vector<8x200xf32>
    %387 = tpu.reciprocal %386 {approx = true} : vector<8x200xf32> -> vector<8x200xf32>
    %388 = vector.extract_strided_slice %387 {offsets = [0, 0], sizes = [8, 50], strides = [1, 1]} : vector<8x200xf32> to vector<8x50xf32>
    %389 = vector.extract_strided_slice %387 {offsets = [0, 50], sizes = [8, 50], strides = [1, 1]} : vector<8x200xf32> to vector<8x50xf32>
    %390 = vector.extract_strided_slice %387 {offsets = [0, 150], sizes = [8, 50], strides = [1, 1]} : vector<8x200xf32> to vector<8x50xf32>
    %391 = vector.extract_strided_slice %381 {offsets = [0, 100], sizes = [8, 50], strides = [1, 1]} : vector<8x200xf32> to vector<8x50xf32>
    %392 = math.tanh %391 : vector<8x50xf32>
    %393 = arith.mulf %389, %375 : vector<8x50xf32>
    %394 = arith.mulf %388, %392 : vector<8x50xf32>
    %395 = arith.addf %393, %394 : vector<8x50xf32>
    %396 = math.tanh %395 : vector<8x50xf32>
    %397 = arith.mulf %390, %396 : vector<8x50xf32>
    %c104_138 = arith.constant 104 : index
    %c0_139 = arith.constant 0 : index
    %398 = vector.load %arg21[%c104_138, %c0_139] : memref<128x50xf32, #tpu.memory_space<vmem>>, vector<8x50xf32>
    tpu.vector_store %arg21[%c104_138, %c0_139], %397 {strides = array<i32>} : memref<128x50xf32, #tpu.memory_space<vmem>>, vector<8x50xf32>,
    %c96_140 = arith.constant 96 : index
    %c0_141 = arith.constant 0 : index
    %399 = vector.load %arg19[%c96_140, %c0_141] : memref<128x200xf32, #tpu.memory_space<vmem>>, vector<8x200xf32>
    %cst_142 = arith.constant dense<0.000000e+00> : vector<8x200xf32>
    %400 = tpu.matmul %397, %336, %cst_142 {dimension_numbers = #tpu.dot_dimension_numbers<[1], [0], [0], [1], [0, 0, 1, 1], [], []>} : vector<8x50xf32>, vector<50x200xf32>, vector<8x200xf32> -> vector<8x200xf32>
    %401 = arith.addf %399, %400 : vector<8x200xf32>
    %cst_143 = arith.constant 0.000000e+00 : f32
    %402 = vector.broadcast %cst_143 : f32 to vector<8x200xf32>
    %403 = arith.subf %402, %401 : vector<8x200xf32>
    %404 = math.exp %403 : vector<8x200xf32>
    %cst_144 = arith.constant 1.000000e+00 : f32
    %405 = vector.broadcast %cst_144 : f32 to vector<8x200xf32>
    %406 = arith.addf %405, %404 : vector<8x200xf32>
    %407 = tpu.reciprocal %406 {approx = true} : vector<8x200xf32> -> vector<8x200xf32>
    %408 = vector.extract_strided_slice %407 {offsets = [0, 0], sizes = [8, 50], strides = [1, 1]} : vector<8x200xf32> to vector<8x50xf32>
    %409 = vector.extract_strided_slice %407 {offsets = [0, 50], sizes = [8, 50], strides = [1, 1]} : vector<8x200xf32> to vector<8x50xf32>
    %410 = vector.extract_strided_slice %407 {offsets = [0, 150], sizes = [8, 50], strides = [1, 1]} : vector<8x200xf32> to vector<8x50xf32>
    %411 = vector.extract_strided_slice %401 {offsets = [0, 100], sizes = [8, 50], strides = [1, 1]} : vector<8x200xf32> to vector<8x50xf32>
    %412 = math.tanh %411 : vector<8x50xf32>
    %413 = arith.mulf %409, %395 : vector<8x50xf32>
    %414 = arith.mulf %408, %412 : vector<8x50xf32>
    %415 = arith.addf %413, %414 : vector<8x50xf32>
    %416 = math.tanh %415 : vector<8x50xf32>
    %417 = arith.mulf %410, %416 : vector<8x50xf32>
    %c96_145 = arith.constant 96 : index
    %c0_146 = arith.constant 0 : index
    %418 = vector.load %arg21[%c96_145, %c0_146] : memref<128x50xf32, #tpu.memory_space<vmem>>, vector<8x50xf32>
    tpu.vector_store %arg21[%c96_145, %c0_146], %417 {strides = array<i32>} : memref<128x50xf32, #tpu.memory_space<vmem>>, vector<8x50xf32>,
    %c88_147 = arith.constant 88 : index
    %c0_148 = arith.constant 0 : index
    %419 = vector.load %arg19[%c88_147, %c0_148] : memref<128x200xf32, #tpu.memory_space<vmem>>, vector<8x200xf32>
    %cst_149 = arith.constant dense<0.000000e+00> : vector<8x200xf32>
    %420 = tpu.matmul %417, %336, %cst_149 {dimension_numbers = #tpu.dot_dimension_numbers<[1], [0], [0], [1], [0, 0, 1, 1], [], []>} : vector<8x50xf32>, vector<50x200xf32>, vector<8x200xf32> -> vector<8x200xf32>
    %421 = arith.addf %419, %420 : vector<8x200xf32>
    %cst_150 = arith.constant 0.000000e+00 : f32
    %422 = vector.broadcast %cst_150 : f32 to vector<8x200xf32>
    %423 = arith.subf %422, %421 : vector<8x200xf32>
    %424 = math.exp %423 : vector<8x200xf32>
    %cst_151 = arith.constant 1.000000e+00 : f32
    %425 = vector.broadcast %cst_151 : f32 to vector<8x200xf32>
    %426 = arith.addf %425, %424 : vector<8x200xf32>
    %427 = tpu.reciprocal %426 {approx = true} : vector<8x200xf32> -> vector<8x200xf32>
    %428 = vector.extract_strided_slice %427 {offsets = [0, 0], sizes = [8, 50], strides = [1, 1]} : vector<8x200xf32> to vector<8x50xf32>
    %429 = vector.extract_strided_slice %427 {offsets = [0, 50], sizes = [8, 50], strides = [1, 1]} : vector<8x200xf32> to vector<8x50xf32>
    %430 = vector.extract_strided_slice %427 {offsets = [0, 150], sizes = [8, 50], strides = [1, 1]} : vector<8x200xf32> to vector<8x50xf32>
    %431 = vector.extract_strided_slice %421 {offsets = [0, 100], sizes = [8, 50], strides = [1, 1]} : vector<8x200xf32> to vector<8x50xf32>
    %432 = math.tanh %431 : vector<8x50xf32>
    %433 = arith.mulf %429, %415 : vector<8x50xf32>
    %434 = arith.mulf %428, %432 : vector<8x50xf32>
    %435 = arith.addf %433, %434 : vector<8x50xf32>
    %436 = math.tanh %435 : vector<8x50xf32>
    %437 = arith.mulf %430, %436 : vector<8x50xf32>
    %c88_152 = arith.constant 88 : index
    %c0_153 = arith.constant 0 : index
    %438 = vector.load %arg21[%c88_152, %c0_153] : memref<128x50xf32, #tpu.memory_space<vmem>>, vector<8x50xf32>
    tpu.vector_store %arg21[%c88_152, %c0_153], %437 {strides = array<i32>} : memref<128x50xf32, #tpu.memory_space<vmem>>, vector<8x50xf32>,
    %c80_154 = arith.constant 80 : index
    %c0_155 = arith.constant 0 : index
    %439 = vector.load %arg19[%c80_154, %c0_155] : memref<128x200xf32, #tpu.memory_space<vmem>>, vector<8x200xf32>
    %cst_156 = arith.constant dense<0.000000e+00> : vector<8x200xf32>
    %440 = tpu.matmul %437, %336, %cst_156 {dimension_numbers = #tpu.dot_dimension_numbers<[1], [0], [0], [1], [0, 0, 1, 1], [], []>} : vector<8x50xf32>, vector<50x200xf32>, vector<8x200xf32> -> vector<8x200xf32>
    %441 = arith.addf %439, %440 : vector<8x200xf32>
    %cst_157 = arith.constant 0.000000e+00 : f32
    %442 = vector.broadcast %cst_157 : f32 to vector<8x200xf32>
    %443 = arith.subf %442, %441 : vector<8x200xf32>
    %444 = math.exp %443 : vector<8x200xf32>
    %cst_158 = arith.constant 1.000000e+00 : f32
    %445 = vector.broadcast %cst_158 : f32 to vector<8x200xf32>
    %446 = arith.addf %445, %444 : vector<8x200xf32>
    %447 = tpu.reciprocal %446 {approx = true} : vector<8x200xf32> -> vector<8x200xf32>
    %448 = vector.extract_strided_slice %447 {offsets = [0, 0], sizes = [8, 50], strides = [1, 1]} : vector<8x200xf32> to vector<8x50xf32>
    %449 = vector.extract_strided_slice %447 {offsets = [0, 50], sizes = [8, 50], strides = [1, 1]} : vector<8x200xf32> to vector<8x50xf32>
    %450 = vector.extract_strided_slice %447 {offsets = [0, 150], sizes = [8, 50], strides = [1, 1]} : vector<8x200xf32> to vector<8x50xf32>
    %451 = vector.extract_strided_slice %441 {offsets = [0, 100], sizes = [8, 50], strides = [1, 1]} : vector<8x200xf32> to vector<8x50xf32>
    %452 = math.tanh %451 : vector<8x50xf32>
    %453 = arith.mulf %449, %435 : vector<8x50xf32>
    %454 = arith.mulf %448, %452 : vector<8x50xf32>
    %455 = arith.addf %453, %454 : vector<8x50xf32>
    %456 = math.tanh %455 : vector<8x50xf32>
    %457 = arith.mulf %450, %456 : vector<8x50xf32>
    %c80_159 = arith.constant 80 : index
    %c0_160 = arith.constant 0 : index
    %458 = vector.load %arg21[%c80_159, %c0_160] : memref<128x50xf32, #tpu.memory_space<vmem>>, vector<8x50xf32>
    tpu.vector_store %arg21[%c80_159, %c0_160], %457 {strides = array<i32>} : memref<128x50xf32, #tpu.memory_space<vmem>>, vector<8x50xf32>,
    %c72_161 = arith.constant 72 : index
    %c0_162 = arith.constant 0 : index
    %459 = vector.load %arg19[%c72_161, %c0_162] : memref<128x200xf32, #tpu.memory_space<vmem>>, vector<8x200xf32>
    %cst_163 = arith.constant dense<0.000000e+00> : vector<8x200xf32>
    %460 = tpu.matmul %457, %336, %cst_163 {dimension_numbers = #tpu.dot_dimension_numbers<[1], [0], [0], [1], [0, 0, 1, 1], [], []>} : vector<8x50xf32>, vector<50x200xf32>, vector<8x200xf32> -> vector<8x200xf32>
    %461 = arith.addf %459, %460 : vector<8x200xf32>
    %cst_164 = arith.constant 0.000000e+00 : f32
    %462 = vector.broadcast %cst_164 : f32 to vector<8x200xf32>
    %463 = arith.subf %462, %461 : vector<8x200xf32>
    %464 = math.exp %463 : vector<8x200xf32>
    %cst_165 = arith.constant 1.000000e+00 : f32
    %465 = vector.broadcast %cst_165 : f32 to vector<8x200xf32>
    %466 = arith.addf %465, %464 : vector<8x200xf32>
    %467 = tpu.reciprocal %466 {approx = true} : vector<8x200xf32> -> vector<8x200xf32>
    %468 = vector.extract_strided_slice %467 {offsets = [0, 0], sizes = [8, 50], strides = [1, 1]} : vector<8x200xf32> to vector<8x50xf32>
    %469 = vector.extract_strided_slice %467 {offsets = [0, 50], sizes = [8, 50], strides = [1, 1]} : vector<8x200xf32> to vector<8x50xf32>
    %470 = vector.extract_strided_slice %467 {offsets = [0, 150], sizes = [8, 50], strides = [1, 1]} : vector<8x200xf32> to vector<8x50xf32>
    %471 = vector.extract_strided_slice %461 {offsets = [0, 100], sizes = [8, 50], strides = [1, 1]} : vector<8x200xf32> to vector<8x50xf32>
    %472 = math.tanh %471 : vector<8x50xf32>
    %473 = arith.mulf %469, %455 : vector<8x50xf32>
    %474 = arith.mulf %468, %472 : vector<8x50xf32>
    %475 = arith.addf %473, %474 : vector<8x50xf32>
    %476 = math.tanh %475 : vector<8x50xf32>
    %477 = arith.mulf %470, %476 : vector<8x50xf32>
    %c72_166 = arith.constant 72 : index
    %c0_167 = arith.constant 0 : index
    %478 = vector.load %arg21[%c72_166, %c0_167] : memref<128x50xf32, #tpu.memory_space<vmem>>, vector<8x50xf32>
    tpu.vector_store %arg21[%c72_166, %c0_167], %477 {strides = array<i32>} : memref<128x50xf32, #tpu.memory_space<vmem>>, vector<8x50xf32>,
    %c64_168 = arith.constant 64 : index
    %c0_169 = arith.constant 0 : index
    %479 = vector.load %arg19[%c64_168, %c0_169] : memref<128x200xf32, #tpu.memory_space<vmem>>, vector<8x200xf32>
    %cst_170 = arith.constant dense<0.000000e+00> : vector<8x200xf32>
    %480 = tpu.matmul %477, %336, %cst_170 {dimension_numbers = #tpu.dot_dimension_numbers<[1], [0], [0], [1], [0, 0, 1, 1], [], []>} : vector<8x50xf32>, vector<50x200xf32>, vector<8x200xf32> -> vector<8x200xf32>
    %481 = arith.addf %479, %480 : vector<8x200xf32>
    %cst_171 = arith.constant 0.000000e+00 : f32
    %482 = vector.broadcast %cst_171 : f32 to vector<8x200xf32>
    %483 = arith.subf %482, %481 : vector<8x200xf32>
    %484 = math.exp %483 : vector<8x200xf32>
    %cst_172 = arith.constant 1.000000e+00 : f32
    %485 = vector.broadcast %cst_172 : f32 to vector<8x200xf32>
    %486 = arith.addf %485, %484 : vector<8x200xf32>
    %487 = tpu.reciprocal %486 {approx = true} : vector<8x200xf32> -> vector<8x200xf32>
    %488 = vector.extract_strided_slice %487 {offsets = [0, 0], sizes = [8, 50], strides = [1, 1]} : vector<8x200xf32> to vector<8x50xf32>
    %489 = vector.extract_strided_slice %487 {offsets = [0, 50], sizes = [8, 50], strides = [1, 1]} : vector<8x200xf32> to vector<8x50xf32>
    %490 = vector.extract_strided_slice %487 {offsets = [0, 150], sizes = [8, 50], strides = [1, 1]} : vector<8x200xf32> to vector<8x50xf32>
    %491 = vector.extract_strided_slice %481 {offsets = [0, 100], sizes = [8, 50], strides = [1, 1]} : vector<8x200xf32> to vector<8x50xf32>
    %492 = math.tanh %491 : vector<8x50xf32>
    %493 = arith.mulf %489, %475 : vector<8x50xf32>
    %494 = arith.mulf %488, %492 : vector<8x50xf32>
    %495 = arith.addf %493, %494 : vector<8x50xf32>
    %496 = math.tanh %495 : vector<8x50xf32>
    %497 = arith.mulf %490, %496 : vector<8x50xf32>
    %c64_173 = arith.constant 64 : index
    %c0_174 = arith.constant 0 : index
    %498 = vector.load %arg21[%c64_173, %c0_174] : memref<128x50xf32, #tpu.memory_space<vmem>>, vector<8x50xf32>
    tpu.vector_store %arg21[%c64_173, %c0_174], %497 {strides = array<i32>} : memref<128x50xf32, #tpu.memory_space<vmem>>, vector<8x50xf32>,
    %c56_175 = arith.constant 56 : index
    %c0_176 = arith.constant 0 : index
    %499 = vector.load %arg19[%c56_175, %c0_176] : memref<128x200xf32, #tpu.memory_space<vmem>>, vector<8x200xf32>
    %cst_177 = arith.constant dense<0.000000e+00> : vector<8x200xf32>
    %500 = tpu.matmul %497, %336, %cst_177 {dimension_numbers = #tpu.dot_dimension_numbers<[1], [0], [0], [1], [0, 0, 1, 1], [], []>} : vector<8x50xf32>, vector<50x200xf32>, vector<8x200xf32> -> vector<8x200xf32>
    %501 = arith.addf %499, %500 : vector<8x200xf32>
    %cst_178 = arith.constant 0.000000e+00 : f32
    %502 = vector.broadcast %cst_178 : f32 to vector<8x200xf32>
    %503 = arith.subf %502, %501 : vector<8x200xf32>
    %504 = math.exp %503 : vector<8x200xf32>
    %cst_179 = arith.constant 1.000000e+00 : f32
    %505 = vector.broadcast %cst_179 : f32 to vector<8x200xf32>
    %506 = arith.addf %505, %504 : vector<8x200xf32>
    %507 = tpu.reciprocal %506 {approx = true} : vector<8x200xf32> -> vector<8x200xf32>
    %508 = vector.extract_strided_slice %507 {offsets = [0, 0], sizes = [8, 50], strides = [1, 1]} : vector<8x200xf32> to vector<8x50xf32>
    %509 = vector.extract_strided_slice %507 {offsets = [0, 50], sizes = [8, 50], strides = [1, 1]} : vector<8x200xf32> to vector<8x50xf32>
    %510 = vector.extract_strided_slice %507 {offsets = [0, 150], sizes = [8, 50], strides = [1, 1]} : vector<8x200xf32> to vector<8x50xf32>
    %511 = vector.extract_strided_slice %501 {offsets = [0, 100], sizes = [8, 50], strides = [1, 1]} : vector<8x200xf32> to vector<8x50xf32>
    %512 = math.tanh %511 : vector<8x50xf32>
    %513 = arith.mulf %509, %495 : vector<8x50xf32>
    %514 = arith.mulf %508, %512 : vector<8x50xf32>
    %515 = arith.addf %513, %514 : vector<8x50xf32>
    %516 = math.tanh %515 : vector<8x50xf32>
    %517 = arith.mulf %510, %516 : vector<8x50xf32>
    %c56_180 = arith.constant 56 : index
    %c0_181 = arith.constant 0 : index
    %518 = vector.load %arg21[%c56_180, %c0_181] : memref<128x50xf32, #tpu.memory_space<vmem>>, vector<8x50xf32>
    tpu.vector_store %arg21[%c56_180, %c0_181], %517 {strides = array<i32>} : memref<128x50xf32, #tpu.memory_space<vmem>>, vector<8x50xf32>,
    %c48_182 = arith.constant 48 : index
    %c0_183 = arith.constant 0 : index
    %519 = vector.load %arg19[%c48_182, %c0_183] : memref<128x200xf32, #tpu.memory_space<vmem>>, vector<8x200xf32>
    %cst_184 = arith.constant dense<0.000000e+00> : vector<8x200xf32>
    %520 = tpu.matmul %517, %336, %cst_184 {dimension_numbers = #tpu.dot_dimension_numbers<[1], [0], [0], [1], [0, 0, 1, 1], [], []>} : vector<8x50xf32>, vector<50x200xf32>, vector<8x200xf32> -> vector<8x200xf32>
    %521 = arith.addf %519, %520 : vector<8x200xf32>
    %cst_185 = arith.constant 0.000000e+00 : f32
    %522 = vector.broadcast %cst_185 : f32 to vector<8x200xf32>
    %523 = arith.subf %522, %521 : vector<8x200xf32>
    %524 = math.exp %523 : vector<8x200xf32>
    %cst_186 = arith.constant 1.000000e+00 : f32
    %525 = vector.broadcast %cst_186 : f32 to vector<8x200xf32>
    %526 = arith.addf %525, %524 : vector<8x200xf32>
    %527 = tpu.reciprocal %526 {approx = true} : vector<8x200xf32> -> vector<8x200xf32>
    %528 = vector.extract_strided_slice %527 {offsets = [0, 0], sizes = [8, 50], strides = [1, 1]} : vector<8x200xf32> to vector<8x50xf32>
    %529 = vector.extract_strided_slice %527 {offsets = [0, 50], sizes = [8, 50], strides = [1, 1]} : vector<8x200xf32> to vector<8x50xf32>
    %530 = vector.extract_strided_slice %527 {offsets = [0, 150], sizes = [8, 50], strides = [1, 1]} : vector<8x200xf32> to vector<8x50xf32>
    %531 = vector.extract_strided_slice %521 {offsets = [0, 100], sizes = [8, 50], strides = [1, 1]} : vector<8x200xf32> to vector<8x50xf32>
    %532 = math.tanh %531 : vector<8x50xf32>
    %533 = arith.mulf %529, %515 : vector<8x50xf32>
    %534 = arith.mulf %528, %532 : vector<8x50xf32>
    %535 = arith.addf %533, %534 : vector<8x50xf32>
    %536 = math.tanh %535 : vector<8x50xf32>
    %537 = arith.mulf %530, %536 : vector<8x50xf32>
    %c48_187 = arith.constant 48 : index
    %c0_188 = arith.constant 0 : index
    %538 = vector.load %arg21[%c48_187, %c0_188] : memref<128x50xf32, #tpu.memory_space<vmem>>, vector<8x50xf32>
    tpu.vector_store %arg21[%c48_187, %c0_188], %537 {strides = array<i32>} : memref<128x50xf32, #tpu.memory_space<vmem>>, vector<8x50xf32>,
    %c40_189 = arith.constant 40 : index
    %c0_190 = arith.constant 0 : index
    %539 = vector.load %arg19[%c40_189, %c0_190] : memref<128x200xf32, #tpu.memory_space<vmem>>, vector<8x200xf32>
    %cst_191 = arith.constant dense<0.000000e+00> : vector<8x200xf32>
    %540 = tpu.matmul %537, %336, %cst_191 {dimension_numbers = #tpu.dot_dimension_numbers<[1], [0], [0], [1], [0, 0, 1, 1], [], []>} : vector<8x50xf32>, vector<50x200xf32>, vector<8x200xf32> -> vector<8x200xf32>
    %541 = arith.addf %539, %540 : vector<8x200xf32>
    %cst_192 = arith.constant 0.000000e+00 : f32
    %542 = vector.broadcast %cst_192 : f32 to vector<8x200xf32>
    %543 = arith.subf %542, %541 : vector<8x200xf32>
    %544 = math.exp %543 : vector<8x200xf32>
    %cst_193 = arith.constant 1.000000e+00 : f32
    %545 = vector.broadcast %cst_193 : f32 to vector<8x200xf32>
    %546 = arith.addf %545, %544 : vector<8x200xf32>
    %547 = tpu.reciprocal %546 {approx = true} : vector<8x200xf32> -> vector<8x200xf32>
    %548 = vector.extract_strided_slice %547 {offsets = [0, 0], sizes = [8, 50], strides = [1, 1]} : vector<8x200xf32> to vector<8x50xf32>
    %549 = vector.extract_strided_slice %547 {offsets = [0, 50], sizes = [8, 50], strides = [1, 1]} : vector<8x200xf32> to vector<8x50xf32>
    %550 = vector.extract_strided_slice %547 {offsets = [0, 150], sizes = [8, 50], strides = [1, 1]} : vector<8x200xf32> to vector<8x50xf32>
    %551 = vector.extract_strided_slice %541 {offsets = [0, 100], sizes = [8, 50], strides = [1, 1]} : vector<8x200xf32> to vector<8x50xf32>
    %552 = math.tanh %551 : vector<8x50xf32>
    %553 = arith.mulf %549, %535 : vector<8x50xf32>
    %554 = arith.mulf %548, %552 : vector<8x50xf32>
    %555 = arith.addf %553, %554 : vector<8x50xf32>
    %556 = math.tanh %555 : vector<8x50xf32>
    %557 = arith.mulf %550, %556 : vector<8x50xf32>
    %c40_194 = arith.constant 40 : index
    %c0_195 = arith.constant 0 : index
    %558 = vector.load %arg21[%c40_194, %c0_195] : memref<128x50xf32, #tpu.memory_space<vmem>>, vector<8x50xf32>
    tpu.vector_store %arg21[%c40_194, %c0_195], %557 {strides = array<i32>} : memref<128x50xf32, #tpu.memory_space<vmem>>, vector<8x50xf32>,
    %c32_196 = arith.constant 32 : index
    %c0_197 = arith.constant 0 : index
    %559 = vector.load %arg19[%c32_196, %c0_197] : memref<128x200xf32, #tpu.memory_space<vmem>>, vector<8x200xf32>
    %cst_198 = arith.constant dense<0.000000e+00> : vector<8x200xf32>
    %560 = tpu.matmul %557, %336, %cst_198 {dimension_numbers = #tpu.dot_dimension_numbers<[1], [0], [0], [1], [0, 0, 1, 1], [], []>} : vector<8x50xf32>, vector<50x200xf32>, vector<8x200xf32> -> vector<8x200xf32>
    %561 = arith.addf %559, %560 : vector<8x200xf32>
    %cst_199 = arith.constant 0.000000e+00 : f32
    %562 = vector.broadcast %cst_199 : f32 to vector<8x200xf32>
    %563 = arith.subf %562, %561 : vector<8x200xf32>
    %564 = math.exp %563 : vector<8x200xf32>
    %cst_200 = arith.constant 1.000000e+00 : f32
    %565 = vector.broadcast %cst_200 : f32 to vector<8x200xf32>
    %566 = arith.addf %565, %564 : vector<8x200xf32>
    %567 = tpu.reciprocal %566 {approx = true} : vector<8x200xf32> -> vector<8x200xf32>
    %568 = vector.extract_strided_slice %567 {offsets = [0, 0], sizes = [8, 50], strides = [1, 1]} : vector<8x200xf32> to vector<8x50xf32>
    %569 = vector.extract_strided_slice %567 {offsets = [0, 50], sizes = [8, 50], strides = [1, 1]} : vector<8x200xf32> to vector<8x50xf32>
    %570 = vector.extract_strided_slice %567 {offsets = [0, 150], sizes = [8, 50], strides = [1, 1]} : vector<8x200xf32> to vector<8x50xf32>
    %571 = vector.extract_strided_slice %561 {offsets = [0, 100], sizes = [8, 50], strides = [1, 1]} : vector<8x200xf32> to vector<8x50xf32>
    %572 = math.tanh %571 : vector<8x50xf32>
    %573 = arith.mulf %569, %555 : vector<8x50xf32>
    %574 = arith.mulf %568, %572 : vector<8x50xf32>
    %575 = arith.addf %573, %574 : vector<8x50xf32>
    %576 = math.tanh %575 : vector<8x50xf32>
    %577 = arith.mulf %570, %576 : vector<8x50xf32>
    %c32_201 = arith.constant 32 : index
    %c0_202 = arith.constant 0 : index
    %578 = vector.load %arg21[%c32_201, %c0_202] : memref<128x50xf32, #tpu.memory_space<vmem>>, vector<8x50xf32>
    tpu.vector_store %arg21[%c32_201, %c0_202], %577 {strides = array<i32>} : memref<128x50xf32, #tpu.memory_space<vmem>>, vector<8x50xf32>,
    %c24_203 = arith.constant 24 : index
    %c0_204 = arith.constant 0 : index
    %579 = vector.load %arg19[%c24_203, %c0_204] : memref<128x200xf32, #tpu.memory_space<vmem>>, vector<8x200xf32>
    %cst_205 = arith.constant dense<0.000000e+00> : vector<8x200xf32>
    %580 = tpu.matmul %577, %336, %cst_205 {dimension_numbers = #tpu.dot_dimension_numbers<[1], [0], [0], [1], [0, 0, 1, 1], [], []>} : vector<8x50xf32>, vector<50x200xf32>, vector<8x200xf32> -> vector<8x200xf32>
    %581 = arith.addf %579, %580 : vector<8x200xf32>
    %cst_206 = arith.constant 0.000000e+00 : f32
    %582 = vector.broadcast %cst_206 : f32 to vector<8x200xf32>
    %583 = arith.subf %582, %581 : vector<8x200xf32>
    %584 = math.exp %583 : vector<8x200xf32>
    %cst_207 = arith.constant 1.000000e+00 : f32
    %585 = vector.broadcast %cst_207 : f32 to vector<8x200xf32>
    %586 = arith.addf %585, %584 : vector<8x200xf32>
    %587 = tpu.reciprocal %586 {approx = true} : vector<8x200xf32> -> vector<8x200xf32>
    %588 = vector.extract_strided_slice %587 {offsets = [0, 0], sizes = [8, 50], strides = [1, 1]} : vector<8x200xf32> to vector<8x50xf32>
    %589 = vector.extract_strided_slice %587 {offsets = [0, 50], sizes = [8, 50], strides = [1, 1]} : vector<8x200xf32> to vector<8x50xf32>
    %590 = vector.extract_strided_slice %587 {offsets = [0, 150], sizes = [8, 50], strides = [1, 1]} : vector<8x200xf32> to vector<8x50xf32>
    %591 = vector.extract_strided_slice %581 {offsets = [0, 100], sizes = [8, 50], strides = [1, 1]} : vector<8x200xf32> to vector<8x50xf32>
    %592 = math.tanh %591 : vector<8x50xf32>
    %593 = arith.mulf %589, %575 : vector<8x50xf32>
    %594 = arith.mulf %588, %592 : vector<8x50xf32>
    %595 = arith.addf %593, %594 : vector<8x50xf32>
    %596 = math.tanh %595 : vector<8x50xf32>
    %597 = arith.mulf %590, %596 : vector<8x50xf32>
    %c24_208 = arith.constant 24 : index
    %c0_209 = arith.constant 0 : index
    %598 = vector.load %arg21[%c24_208, %c0_209] : memref<128x50xf32, #tpu.memory_space<vmem>>, vector<8x50xf32>
    tpu.vector_store %arg21[%c24_208, %c0_209], %597 {strides = array<i32>} : memref<128x50xf32, #tpu.memory_space<vmem>>, vector<8x50xf32>,
    %c16_210 = arith.constant 16 : index
    %c0_211 = arith.constant 0 : index
    %599 = vector.load %arg19[%c16_210, %c0_211] : memref<128x200xf32, #tpu.memory_space<vmem>>, vector<8x200xf32>
    %cst_212 = arith.constant dense<0.000000e+00> : vector<8x200xf32>
    %600 = tpu.matmul %597, %336, %cst_212 {dimension_numbers = #tpu.dot_dimension_numbers<[1], [0], [0], [1], [0, 0, 1, 1], [], []>} : vector<8x50xf32>, vector<50x200xf32>, vector<8x200xf32> -> vector<8x200xf32>
    %601 = arith.addf %599, %600 : vector<8x200xf32>
    %cst_213 = arith.constant 0.000000e+00 : f32
    %602 = vector.broadcast %cst_213 : f32 to vector<8x200xf32>
    %603 = arith.subf %602, %601 : vector<8x200xf32>
    %604 = math.exp %603 : vector<8x200xf32>
    %cst_214 = arith.constant 1.000000e+00 : f32
    %605 = vector.broadcast %cst_214 : f32 to vector<8x200xf32>
    %606 = arith.addf %605, %604 : vector<8x200xf32>
    %607 = tpu.reciprocal %606 {approx = true} : vector<8x200xf32> -> vector<8x200xf32>
    %608 = vector.extract_strided_slice %607 {offsets = [0, 0], sizes = [8, 50], strides = [1, 1]} : vector<8x200xf32> to vector<8x50xf32>
    %609 = vector.extract_strided_slice %607 {offsets = [0, 50], sizes = [8, 50], strides = [1, 1]} : vector<8x200xf32> to vector<8x50xf32>
    %610 = vector.extract_strided_slice %607 {offsets = [0, 150], sizes = [8, 50], strides = [1, 1]} : vector<8x200xf32> to vector<8x50xf32>
    %611 = vector.extract_strided_slice %601 {offsets = [0, 100], sizes = [8, 50], strides = [1, 1]} : vector<8x200xf32> to vector<8x50xf32>
    %612 = math.tanh %611 : vector<8x50xf32>
    %613 = arith.mulf %609, %595 : vector<8x50xf32>
    %614 = arith.mulf %608, %612 : vector<8x50xf32>
    %615 = arith.addf %613, %614 : vector<8x50xf32>
    %616 = math.tanh %615 : vector<8x50xf32>
    %617 = arith.mulf %610, %616 : vector<8x50xf32>
    %c16_215 = arith.constant 16 : index
    %c0_216 = arith.constant 0 : index
    %618 = vector.load %arg21[%c16_215, %c0_216] : memref<128x50xf32, #tpu.memory_space<vmem>>, vector<8x50xf32>
    tpu.vector_store %arg21[%c16_215, %c0_216], %617 {strides = array<i32>} : memref<128x50xf32, #tpu.memory_space<vmem>>, vector<8x50xf32>,
    %c8_217 = arith.constant 8 : index
    %c0_218 = arith.constant 0 : index
    %619 = vector.load %arg19[%c8_217, %c0_218] : memref<128x200xf32, #tpu.memory_space<vmem>>, vector<8x200xf32>
    %cst_219 = arith.constant dense<0.000000e+00> : vector<8x200xf32>
    %620 = tpu.matmul %617, %336, %cst_219 {dimension_numbers = #tpu.dot_dimension_numbers<[1], [0], [0], [1], [0, 0, 1, 1], [], []>} : vector<8x50xf32>, vector<50x200xf32>, vector<8x200xf32> -> vector<8x200xf32>
    %621 = arith.addf %619, %620 : vector<8x200xf32>
    %cst_220 = arith.constant 0.000000e+00 : f32
    %622 = vector.broadcast %cst_220 : f32 to vector<8x200xf32>
    %623 = arith.subf %622, %621 : vector<8x200xf32>
    %624 = math.exp %623 : vector<8x200xf32>
    %cst_221 = arith.constant 1.000000e+00 : f32
    %625 = vector.broadcast %cst_221 : f32 to vector<8x200xf32>
    %626 = arith.addf %625, %624 : vector<8x200xf32>
    %627 = tpu.reciprocal %626 {approx = true} : vector<8x200xf32> -> vector<8x200xf32>
    %628 = vector.extract_strided_slice %627 {offsets = [0, 0], sizes = [8, 50], strides = [1, 1]} : vector<8x200xf32> to vector<8x50xf32>
    %629 = vector.extract_strided_slice %627 {offsets = [0, 50], sizes = [8, 50], strides = [1, 1]} : vector<8x200xf32> to vector<8x50xf32>
    %630 = vector.extract_strided_slice %627 {offsets = [0, 150], sizes = [8, 50], strides = [1, 1]} : vector<8x200xf32> to vector<8x50xf32>
    %631 = vector.extract_strided_slice %621 {offsets = [0, 100], sizes = [8, 50], strides = [1, 1]} : vector<8x200xf32> to vector<8x50xf32>
    %632 = math.tanh %631 : vector<8x50xf32>
    %633 = arith.mulf %629, %615 : vector<8x50xf32>
    %634 = arith.mulf %628, %632 : vector<8x50xf32>
    %635 = arith.addf %633, %634 : vector<8x50xf32>
    %636 = math.tanh %635 : vector<8x50xf32>
    %637 = arith.mulf %630, %636 : vector<8x50xf32>
    %c8_222 = arith.constant 8 : index
    %c0_223 = arith.constant 0 : index
    %638 = vector.load %arg21[%c8_222, %c0_223] : memref<128x50xf32, #tpu.memory_space<vmem>>, vector<8x50xf32>
    tpu.vector_store %arg21[%c8_222, %c0_223], %637 {strides = array<i32>} : memref<128x50xf32, #tpu.memory_space<vmem>>, vector<8x50xf32>,
    %c0_224 = arith.constant 0 : index
    %c0_225 = arith.constant 0 : index
    %639 = vector.load %arg19[%c0_224, %c0_225] : memref<128x200xf32, #tpu.memory_space<vmem>>, vector<8x200xf32>
    %cst_226 = arith.constant dense<0.000000e+00> : vector<8x200xf32>
    %640 = tpu.matmul %637, %336, %cst_226 {dimension_numbers = #tpu.dot_dimension_numbers<[1], [0], [0], [1], [0, 0, 1, 1], [], []>} : vector<8x50xf32>, vector<50x200xf32>, vector<8x200xf32> -> vector<8x200xf32>
    %641 = arith.addf %639, %640 : vector<8x200xf32>
    %cst_227 = arith.constant 0.000000e+00 : f32
    %642 = vector.broadcast %cst_227 : f32 to vector<8x200xf32>
    %643 = arith.subf %642, %641 : vector<8x200xf32>
    %644 = math.exp %643 : vector<8x200xf32>
    %cst_228 = arith.constant 1.000000e+00 : f32
    %645 = vector.broadcast %cst_228 : f32 to vector<8x200xf32>
    %646 = arith.addf %645, %644 : vector<8x200xf32>
    %647 = tpu.reciprocal %646 {approx = true} : vector<8x200xf32> -> vector<8x200xf32>
    %648 = vector.extract_strided_slice %647 {offsets = [0, 0], sizes = [8, 50], strides = [1, 1]} : vector<8x200xf32> to vector<8x50xf32>
    %649 = vector.extract_strided_slice %647 {offsets = [0, 50], sizes = [8, 50], strides = [1, 1]} : vector<8x200xf32> to vector<8x50xf32>
    %650 = vector.extract_strided_slice %647 {offsets = [0, 150], sizes = [8, 50], strides = [1, 1]} : vector<8x200xf32> to vector<8x50xf32>
    %651 = vector.extract_strided_slice %641 {offsets = [0, 100], sizes = [8, 50], strides = [1, 1]} : vector<8x200xf32> to vector<8x50xf32>
    %652 = math.tanh %651 : vector<8x50xf32>
    %653 = arith.mulf %649, %635 : vector<8x50xf32>
    %654 = arith.mulf %648, %652 : vector<8x50xf32>
    %655 = arith.addf %653, %654 : vector<8x50xf32>
    %656 = math.tanh %655 : vector<8x50xf32>
    %657 = arith.mulf %650, %656 : vector<8x50xf32>
    %c0_229 = arith.constant 0 : index
    %c0_230 = arith.constant 0 : index
    %658 = vector.load %arg21[%c0_229, %c0_230] : memref<128x50xf32, #tpu.memory_space<vmem>>, vector<8x50xf32>
    tpu.vector_store %arg21[%c0_229, %c0_230], %657 {strides = array<i32>} : memref<128x50xf32, #tpu.memory_space<vmem>>, vector<8x50xf32>,
    %c0_231 = arith.constant 0 : index
    %c0_232 = arith.constant 0 : index
    %659 = vector.load %arg20[%c0_231, %c0_232] : memref<128x50xf32, #tpu.memory_space<vmem>>, vector<128x50xf32>
    %c0_233 = arith.constant 0 : index
    %c0_234 = arith.constant 0 : index
    %660 = vector.load %arg21[%c0_233, %c0_234] : memref<128x50xf32, #tpu.memory_space<vmem>>, vector<128x50xf32>
    %661 = arith.addf %659, %660 : vector<128x50xf32>
    %c0_235 = arith.constant 0 : index
    %c0_236 = arith.constant 0 : index
    %662 = vector.load %arg8[%c0_235, %c0_236] : memref<50x4xf32, #tpu.memory_space<vmem>>, vector<50x4xf32>
    %cst_237 = arith.constant dense<0.000000e+00> : vector<128x4xf32>
    %663 = tpu.matmul %661, %662, %cst_237 {dimension_numbers = #tpu.dot_dimension_numbers<[1], [0], [0], [1], [0, 0, 1, 1], [], []>} : vector<128x50xf32>, vector<50x4xf32>, vector<128x4xf32> -> vector<128x4xf32>
    %c0_238 = arith.constant 0 : index
    %c0_239 = arith.constant 0 : index
    %664 = vector.load %arg10[%c0_238, %c0_239] : memref<1x4xf32, #tpu.memory_space<vmem>>, vector<1x4xf32>
    %665 = vector.broadcast %664 : vector<1x4xf32> to vector<128x4xf32>
    %666 = arith.addf %663, %665 : vector<128x4xf32>
    %c0_240 = arith.constant 0 : index
    %c0_241 = arith.constant 0 : index
    %667 = vector.load %arg11[%c0_240, %c0_241] : memref<50x4xf32, #tpu.memory_space<vmem>>, vector<50x4xf32>
    %cst_242 = arith.constant dense<0.000000e+00> : vector<128x4xf32>
    %668 = tpu.matmul %661, %667, %cst_242 {dimension_numbers = #tpu.dot_dimension_numbers<[1], [0], [0], [1], [0, 0, 1, 1], [], []>} : vector<128x50xf32>, vector<50x4xf32>, vector<128x4xf32> -> vector<128x4xf32>
    %c0_243 = arith.constant 0 : index
    %c0_244 = arith.constant 0 : index
    %669 = vector.load %arg13[%c0_243, %c0_244] : memref<1x4xf32, #tpu.memory_space<vmem>>, vector<1x4xf32>
    %670 = vector.broadcast %669 : vector<1x4xf32> to vector<128x4xf32>
    %671 = arith.addf %668, %670 : vector<128x4xf32>
    %672 = tpu.iota {dimensions = array<i32: 1>} : vector<1x16xi32>
    %c0_245 = arith.constant 0 : index
    %c0_246 = arith.constant 0 : index
    %673 = vector.load %arg9[%c0_245, %c0_246] : memref<1x4xf32, #tpu.memory_space<vmem>>, vector<1x4xf32>
    %cst_247 = arith.constant 0.000000e+00 : f32
    %674 = vector.broadcast %cst_247 : f32 to vector<8x1xf32>
    %cst_248 = arith.constant 0.000000e+00 : f32
    %675 = vector.broadcast %cst_248 : f32 to vector<8x1xf32>
    %cst_249 = arith.constant 0.000000e+00 : f32
    %676 = vector.broadcast %cst_249 : f32 to vector<8x16xf32>
    %677 = vector.extract_strided_slice %666 {offsets = [0, 0], sizes = [8, 4], strides = [1, 1]} : vector<128x4xf32> to vector<8x4xf32>
    %678 = vector.broadcast %674 : vector<8x1xf32> to vector<8x4xf32>
    %679 = vector.broadcast %673 : vector<1x4xf32> to vector<8x4xf32>
    %680 = arith.mulf %678, %679 : vector<8x4xf32>
    %681 = arith.addf %677, %680 : vector<8x4xf32>
    %cst_250 = arith.constant 0.000000e+00 : f32
    %682 = vector.broadcast %cst_250 : f32 to vector<8x4xf32>
    %683 = arith.subf %682, %681 : vector<8x4xf32>
    %684 = math.exp %683 : vector<8x4xf32>
    %cst_251 = arith.constant 1.000000e+00 : f32
    %685 = vector.broadcast %cst_251 : f32 to vector<8x4xf32>
    %686 = arith.addf %685, %684 : vector<8x4xf32>
    %687 = tpu.reciprocal %686 {approx = true} : vector<8x4xf32> -> vector<8x4xf32>
    %688 = vector.extract_strided_slice %687 {offsets = [0, 0], sizes = [8, 1], strides = [1, 1]} : vector<8x4xf32> to vector<8x1xf32>
    %689 = vector.extract_strided_slice %687 {offsets = [0, 1], sizes = [8, 1], strides = [1, 1]} : vector<8x4xf32> to vector<8x1xf32>
    %690 = vector.extract_strided_slice %687 {offsets = [0, 3], sizes = [8, 1], strides = [1, 1]} : vector<8x4xf32> to vector<8x1xf32>
    %691 = vector.extract_strided_slice %681 {offsets = [0, 2], sizes = [8, 1], strides = [1, 1]} : vector<8x4xf32> to vector<8x1xf32>
    %692 = math.tanh %691 : vector<8x1xf32>
    %693 = arith.mulf %689, %675 : vector<8x1xf32>
    %694 = arith.mulf %688, %692 : vector<8x1xf32>
    %695 = arith.addf %693, %694 : vector<8x1xf32>
    %696 = math.tanh %695 : vector<8x1xf32>
    %697 = arith.mulf %690, %696 : vector<8x1xf32>
    %c0_i32 = arith.constant 0 : i32
    %698 = vector.broadcast %c0_i32 : i32 to vector<1x16xi32>
    %699 = arith.cmpi eq, %672, %698 : vector<1x16xi32>
    %cst_252 = arith.constant 0.000000e+00 : f32
    %700 = vector.shape_cast %699 : vector<1x16xi1> to vector<1x16xi1>
    %701 = vector.broadcast %700 : vector<1x16xi1> to vector<8x16xi1>
    %702 = vector.shape_cast %697 : vector<8x1xf32> to vector<8x1xf32>
    %703 = vector.broadcast %702 : vector<8x1xf32> to vector<8x16xf32>
    %704 = vector.broadcast %cst_252 : f32 to vector<8x16xf32>
    %705 = arith.select %701, %703, %704 : vector<8x16xi1>, vector<8x16xf32>
    %706 = arith.addf %676, %705 : vector<8x16xf32>
    %707 = vector.extract_strided_slice %666 {offsets = [8, 0], sizes = [8, 4], strides = [1, 1]} : vector<128x4xf32> to vector<8x4xf32>
    %708 = vector.broadcast %697 : vector<8x1xf32> to vector<8x4xf32>
    %709 = vector.broadcast %673 : vector<1x4xf32> to vector<8x4xf32>
    %710 = arith.mulf %708, %709 : vector<8x4xf32>
    %711 = arith.addf %707, %710 : vector<8x4xf32>
    %cst_253 = arith.constant 0.000000e+00 : f32
    %712 = vector.broadcast %cst_253 : f32 to vector<8x4xf32>
    %713 = arith.subf %712, %711 : vector<8x4xf32>
    %714 = math.exp %713 : vector<8x4xf32>
    %cst_254 = arith.constant 1.000000e+00 : f32
    %715 = vector.broadcast %cst_254 : f32 to vector<8x4xf32>
    %716 = arith.addf %715, %714 : vector<8x4xf32>
    %717 = tpu.reciprocal %716 {approx = true} : vector<8x4xf32> -> vector<8x4xf32>
    %718 = vector.extract_strided_slice %717 {offsets = [0, 0], sizes = [8, 1], strides = [1, 1]} : vector<8x4xf32> to vector<8x1xf32>
    %719 = vector.extract_strided_slice %717 {offsets = [0, 1], sizes = [8, 1], strides = [1, 1]} : vector<8x4xf32> to vector<8x1xf32>
    %720 = vector.extract_strided_slice %717 {offsets = [0, 3], sizes = [8, 1], strides = [1, 1]} : vector<8x4xf32> to vector<8x1xf32>
    %721 = vector.extract_strided_slice %711 {offsets = [0, 2], sizes = [8, 1], strides = [1, 1]} : vector<8x4xf32> to vector<8x1xf32>
    %722 = math.tanh %721 : vector<8x1xf32>
    %723 = arith.mulf %719, %695 : vector<8x1xf32>
    %724 = arith.mulf %718, %722 : vector<8x1xf32>
    %725 = arith.addf %723, %724 : vector<8x1xf32>
    %726 = math.tanh %725 : vector<8x1xf32>
    %727 = arith.mulf %720, %726 : vector<8x1xf32>
    %c1_i32 = arith.constant 1 : i32
    %728 = vector.broadcast %c1_i32 : i32 to vector<1x16xi32>
    %729 = arith.cmpi eq, %672, %728 : vector<1x16xi32>
    %cst_255 = arith.constant 0.000000e+00 : f32
    %730 = vector.shape_cast %729 : vector<1x16xi1> to vector<1x16xi1>
    %731 = vector.broadcast %730 : vector<1x16xi1> to vector<8x16xi1>
    %732 = vector.shape_cast %727 : vector<8x1xf32> to vector<8x1xf32>
    %733 = vector.broadcast %732 : vector<8x1xf32> to vector<8x16xf32>
    %734 = vector.broadcast %cst_255 : f32 to vector<8x16xf32>
    %735 = arith.select %731, %733, %734 : vector<8x16xi1>, vector<8x16xf32>
    %736 = arith.addf %706, %735 : vector<8x16xf32>
    %737 = vector.extract_strided_slice %666 {offsets = [16, 0], sizes = [8, 4], strides = [1, 1]} : vector<128x4xf32> to vector<8x4xf32>
    %738 = vector.broadcast %727 : vector<8x1xf32> to vector<8x4xf32>
    %739 = vector.broadcast %673 : vector<1x4xf32> to vector<8x4xf32>
    %740 = arith.mulf %738, %739 : vector<8x4xf32>
    %741 = arith.addf %737, %740 : vector<8x4xf32>
    %cst_256 = arith.constant 0.000000e+00 : f32
    %742 = vector.broadcast %cst_256 : f32 to vector<8x4xf32>
    %743 = arith.subf %742, %741 : vector<8x4xf32>
    %744 = math.exp %743 : vector<8x4xf32>
    %cst_257 = arith.constant 1.000000e+00 : f32
    %745 = vector.broadcast %cst_257 : f32 to vector<8x4xf32>
    %746 = arith.addf %745, %744 : vector<8x4xf32>
    %747 = tpu.reciprocal %746 {approx = true} : vector<8x4xf32> -> vector<8x4xf32>
    %748 = vector.extract_strided_slice %747 {offsets = [0, 0], sizes = [8, 1], strides = [1, 1]} : vector<8x4xf32> to vector<8x1xf32>
    %749 = vector.extract_strided_slice %747 {offsets = [0, 1], sizes = [8, 1], strides = [1, 1]} : vector<8x4xf32> to vector<8x1xf32>
    %750 = vector.extract_strided_slice %747 {offsets = [0, 3], sizes = [8, 1], strides = [1, 1]} : vector<8x4xf32> to vector<8x1xf32>
    %751 = vector.extract_strided_slice %741 {offsets = [0, 2], sizes = [8, 1], strides = [1, 1]} : vector<8x4xf32> to vector<8x1xf32>
    %752 = math.tanh %751 : vector<8x1xf32>
    %753 = arith.mulf %749, %725 : vector<8x1xf32>
    %754 = arith.mulf %748, %752 : vector<8x1xf32>
    %755 = arith.addf %753, %754 : vector<8x1xf32>
    %756 = math.tanh %755 : vector<8x1xf32>
    %757 = arith.mulf %750, %756 : vector<8x1xf32>
    %c2_i32 = arith.constant 2 : i32
    %758 = vector.broadcast %c2_i32 : i32 to vector<1x16xi32>
    %759 = arith.cmpi eq, %672, %758 : vector<1x16xi32>
    %cst_258 = arith.constant 0.000000e+00 : f32
    %760 = vector.shape_cast %759 : vector<1x16xi1> to vector<1x16xi1>
    %761 = vector.broadcast %760 : vector<1x16xi1> to vector<8x16xi1>
    %762 = vector.shape_cast %757 : vector<8x1xf32> to vector<8x1xf32>
    %763 = vector.broadcast %762 : vector<8x1xf32> to vector<8x16xf32>
    %764 = vector.broadcast %cst_258 : f32 to vector<8x16xf32>
    %765 = arith.select %761, %763, %764 : vector<8x16xi1>, vector<8x16xf32>
    %766 = arith.addf %736, %765 : vector<8x16xf32>
    %767 = vector.extract_strided_slice %666 {offsets = [24, 0], sizes = [8, 4], strides = [1, 1]} : vector<128x4xf32> to vector<8x4xf32>
    %768 = vector.broadcast %757 : vector<8x1xf32> to vector<8x4xf32>
    %769 = vector.broadcast %673 : vector<1x4xf32> to vector<8x4xf32>
    %770 = arith.mulf %768, %769 : vector<8x4xf32>
    %771 = arith.addf %767, %770 : vector<8x4xf32>
    %cst_259 = arith.constant 0.000000e+00 : f32
    %772 = vector.broadcast %cst_259 : f32 to vector<8x4xf32>
    %773 = arith.subf %772, %771 : vector<8x4xf32>
    %774 = math.exp %773 : vector<8x4xf32>
    %cst_260 = arith.constant 1.000000e+00 : f32
    %775 = vector.broadcast %cst_260 : f32 to vector<8x4xf32>
    %776 = arith.addf %775, %774 : vector<8x4xf32>
    %777 = tpu.reciprocal %776 {approx = true} : vector<8x4xf32> -> vector<8x4xf32>
    %778 = vector.extract_strided_slice %777 {offsets = [0, 0], sizes = [8, 1], strides = [1, 1]} : vector<8x4xf32> to vector<8x1xf32>
    %779 = vector.extract_strided_slice %777 {offsets = [0, 1], sizes = [8, 1], strides = [1, 1]} : vector<8x4xf32> to vector<8x1xf32>
    %780 = vector.extract_strided_slice %777 {offsets = [0, 3], sizes = [8, 1], strides = [1, 1]} : vector<8x4xf32> to vector<8x1xf32>
    %781 = vector.extract_strided_slice %771 {offsets = [0, 2], sizes = [8, 1], strides = [1, 1]} : vector<8x4xf32> to vector<8x1xf32>
    %782 = math.tanh %781 : vector<8x1xf32>
    %783 = arith.mulf %779, %755 : vector<8x1xf32>
    %784 = arith.mulf %778, %782 : vector<8x1xf32>
    %785 = arith.addf %783, %784 : vector<8x1xf32>
    %786 = math.tanh %785 : vector<8x1xf32>
    %787 = arith.mulf %780, %786 : vector<8x1xf32>
    %c3_i32 = arith.constant 3 : i32
    %788 = vector.broadcast %c3_i32 : i32 to vector<1x16xi32>
    %789 = arith.cmpi eq, %672, %788 : vector<1x16xi32>
    %cst_261 = arith.constant 0.000000e+00 : f32
    %790 = vector.shape_cast %789 : vector<1x16xi1> to vector<1x16xi1>
    %791 = vector.broadcast %790 : vector<1x16xi1> to vector<8x16xi1>
    %792 = vector.shape_cast %787 : vector<8x1xf32> to vector<8x1xf32>
    %793 = vector.broadcast %792 : vector<8x1xf32> to vector<8x16xf32>
    %794 = vector.broadcast %cst_261 : f32 to vector<8x16xf32>
    %795 = arith.select %791, %793, %794 : vector<8x16xi1>, vector<8x16xf32>
    %796 = arith.addf %766, %795 : vector<8x16xf32>
    %797 = vector.extract_strided_slice %666 {offsets = [32, 0], sizes = [8, 4], strides = [1, 1]} : vector<128x4xf32> to vector<8x4xf32>
    %798 = vector.broadcast %787 : vector<8x1xf32> to vector<8x4xf32>
    %799 = vector.broadcast %673 : vector<1x4xf32> to vector<8x4xf32>
    %800 = arith.mulf %798, %799 : vector<8x4xf32>
    %801 = arith.addf %797, %800 : vector<8x4xf32>
    %cst_262 = arith.constant 0.000000e+00 : f32
    %802 = vector.broadcast %cst_262 : f32 to vector<8x4xf32>
    %803 = arith.subf %802, %801 : vector<8x4xf32>
    %804 = math.exp %803 : vector<8x4xf32>
    %cst_263 = arith.constant 1.000000e+00 : f32
    %805 = vector.broadcast %cst_263 : f32 to vector<8x4xf32>
    %806 = arith.addf %805, %804 : vector<8x4xf32>
    %807 = tpu.reciprocal %806 {approx = true} : vector<8x4xf32> -> vector<8x4xf32>
    %808 = vector.extract_strided_slice %807 {offsets = [0, 0], sizes = [8, 1], strides = [1, 1]} : vector<8x4xf32> to vector<8x1xf32>
    %809 = vector.extract_strided_slice %807 {offsets = [0, 1], sizes = [8, 1], strides = [1, 1]} : vector<8x4xf32> to vector<8x1xf32>
    %810 = vector.extract_strided_slice %807 {offsets = [0, 3], sizes = [8, 1], strides = [1, 1]} : vector<8x4xf32> to vector<8x1xf32>
    %811 = vector.extract_strided_slice %801 {offsets = [0, 2], sizes = [8, 1], strides = [1, 1]} : vector<8x4xf32> to vector<8x1xf32>
    %812 = math.tanh %811 : vector<8x1xf32>
    %813 = arith.mulf %809, %785 : vector<8x1xf32>
    %814 = arith.mulf %808, %812 : vector<8x1xf32>
    %815 = arith.addf %813, %814 : vector<8x1xf32>
    %816 = math.tanh %815 : vector<8x1xf32>
    %817 = arith.mulf %810, %816 : vector<8x1xf32>
    %c4_i32 = arith.constant 4 : i32
    %818 = vector.broadcast %c4_i32 : i32 to vector<1x16xi32>
    %819 = arith.cmpi eq, %672, %818 : vector<1x16xi32>
    %cst_264 = arith.constant 0.000000e+00 : f32
    %820 = vector.shape_cast %819 : vector<1x16xi1> to vector<1x16xi1>
    %821 = vector.broadcast %820 : vector<1x16xi1> to vector<8x16xi1>
    %822 = vector.shape_cast %817 : vector<8x1xf32> to vector<8x1xf32>
    %823 = vector.broadcast %822 : vector<8x1xf32> to vector<8x16xf32>
    %824 = vector.broadcast %cst_264 : f32 to vector<8x16xf32>
    %825 = arith.select %821, %823, %824 : vector<8x16xi1>, vector<8x16xf32>
    %826 = arith.addf %796, %825 : vector<8x16xf32>
    %827 = vector.extract_strided_slice %666 {offsets = [40, 0], sizes = [8, 4], strides = [1, 1]} : vector<128x4xf32> to vector<8x4xf32>
    %828 = vector.broadcast %817 : vector<8x1xf32> to vector<8x4xf32>
    %829 = vector.broadcast %673 : vector<1x4xf32> to vector<8x4xf32>
    %830 = arith.mulf %828, %829 : vector<8x4xf32>
    %831 = arith.addf %827, %830 : vector<8x4xf32>
    %cst_265 = arith.constant 0.000000e+00 : f32
    %832 = vector.broadcast %cst_265 : f32 to vector<8x4xf32>
    %833 = arith.subf %832, %831 : vector<8x4xf32>
    %834 = math.exp %833 : vector<8x4xf32>
    %cst_266 = arith.constant 1.000000e+00 : f32
    %835 = vector.broadcast %cst_266 : f32 to vector<8x4xf32>
    %836 = arith.addf %835, %834 : vector<8x4xf32>
    %837 = tpu.reciprocal %836 {approx = true} : vector<8x4xf32> -> vector<8x4xf32>
    %838 = vector.extract_strided_slice %837 {offsets = [0, 0], sizes = [8, 1], strides = [1, 1]} : vector<8x4xf32> to vector<8x1xf32>
    %839 = vector.extract_strided_slice %837 {offsets = [0, 1], sizes = [8, 1], strides = [1, 1]} : vector<8x4xf32> to vector<8x1xf32>
    %840 = vector.extract_strided_slice %837 {offsets = [0, 3], sizes = [8, 1], strides = [1, 1]} : vector<8x4xf32> to vector<8x1xf32>
    %841 = vector.extract_strided_slice %831 {offsets = [0, 2], sizes = [8, 1], strides = [1, 1]} : vector<8x4xf32> to vector<8x1xf32>
    %842 = math.tanh %841 : vector<8x1xf32>
    %843 = arith.mulf %839, %815 : vector<8x1xf32>
    %844 = arith.mulf %838, %842 : vector<8x1xf32>
    %845 = arith.addf %843, %844 : vector<8x1xf32>
    %846 = math.tanh %845 : vector<8x1xf32>
    %847 = arith.mulf %840, %846 : vector<8x1xf32>
    %c5_i32 = arith.constant 5 : i32
    %848 = vector.broadcast %c5_i32 : i32 to vector<1x16xi32>
    %849 = arith.cmpi eq, %672, %848 : vector<1x16xi32>
    %cst_267 = arith.constant 0.000000e+00 : f32
    %850 = vector.shape_cast %849 : vector<1x16xi1> to vector<1x16xi1>
    %851 = vector.broadcast %850 : vector<1x16xi1> to vector<8x16xi1>
    %852 = vector.shape_cast %847 : vector<8x1xf32> to vector<8x1xf32>
    %853 = vector.broadcast %852 : vector<8x1xf32> to vector<8x16xf32>
    %854 = vector.broadcast %cst_267 : f32 to vector<8x16xf32>
    %855 = arith.select %851, %853, %854 : vector<8x16xi1>, vector<8x16xf32>
    %856 = arith.addf %826, %855 : vector<8x16xf32>
    %857 = vector.extract_strided_slice %666 {offsets = [48, 0], sizes = [8, 4], strides = [1, 1]} : vector<128x4xf32> to vector<8x4xf32>
    %858 = vector.broadcast %847 : vector<8x1xf32> to vector<8x4xf32>
    %859 = vector.broadcast %673 : vector<1x4xf32> to vector<8x4xf32>
    %860 = arith.mulf %858, %859 : vector<8x4xf32>
    %861 = arith.addf %857, %860 : vector<8x4xf32>
    %cst_268 = arith.constant 0.000000e+00 : f32
    %862 = vector.broadcast %cst_268 : f32 to vector<8x4xf32>
    %863 = arith.subf %862, %861 : vector<8x4xf32>
    %864 = math.exp %863 : vector<8x4xf32>
    %cst_269 = arith.constant 1.000000e+00 : f32
    %865 = vector.broadcast %cst_269 : f32 to vector<8x4xf32>
    %866 = arith.addf %865, %864 : vector<8x4xf32>
    %867 = tpu.reciprocal %866 {approx = true} : vector<8x4xf32> -> vector<8x4xf32>
    %868 = vector.extract_strided_slice %867 {offsets = [0, 0], sizes = [8, 1], strides = [1, 1]} : vector<8x4xf32> to vector<8x1xf32>
    %869 = vector.extract_strided_slice %867 {offsets = [0, 1], sizes = [8, 1], strides = [1, 1]} : vector<8x4xf32> to vector<8x1xf32>
    %870 = vector.extract_strided_slice %867 {offsets = [0, 3], sizes = [8, 1], strides = [1, 1]} : vector<8x4xf32> to vector<8x1xf32>
    %871 = vector.extract_strided_slice %861 {offsets = [0, 2], sizes = [8, 1], strides = [1, 1]} : vector<8x4xf32> to vector<8x1xf32>
    %872 = math.tanh %871 : vector<8x1xf32>
    %873 = arith.mulf %869, %845 : vector<8x1xf32>
    %874 = arith.mulf %868, %872 : vector<8x1xf32>
    %875 = arith.addf %873, %874 : vector<8x1xf32>
    %876 = math.tanh %875 : vector<8x1xf32>
    %877 = arith.mulf %870, %876 : vector<8x1xf32>
    %c6_i32 = arith.constant 6 : i32
    %878 = vector.broadcast %c6_i32 : i32 to vector<1x16xi32>
    %879 = arith.cmpi eq, %672, %878 : vector<1x16xi32>
    %cst_270 = arith.constant 0.000000e+00 : f32
    %880 = vector.shape_cast %879 : vector<1x16xi1> to vector<1x16xi1>
    %881 = vector.broadcast %880 : vector<1x16xi1> to vector<8x16xi1>
    %882 = vector.shape_cast %877 : vector<8x1xf32> to vector<8x1xf32>
    %883 = vector.broadcast %882 : vector<8x1xf32> to vector<8x16xf32>
    %884 = vector.broadcast %cst_270 : f32 to vector<8x16xf32>
    %885 = arith.select %881, %883, %884 : vector<8x16xi1>, vector<8x16xf32>
    %886 = arith.addf %856, %885 : vector<8x16xf32>
    %887 = vector.extract_strided_slice %666 {offsets = [56, 0], sizes = [8, 4], strides = [1, 1]} : vector<128x4xf32> to vector<8x4xf32>
    %888 = vector.broadcast %877 : vector<8x1xf32> to vector<8x4xf32>
    %889 = vector.broadcast %673 : vector<1x4xf32> to vector<8x4xf32>
    %890 = arith.mulf %888, %889 : vector<8x4xf32>
    %891 = arith.addf %887, %890 : vector<8x4xf32>
    %cst_271 = arith.constant 0.000000e+00 : f32
    %892 = vector.broadcast %cst_271 : f32 to vector<8x4xf32>
    %893 = arith.subf %892, %891 : vector<8x4xf32>
    %894 = math.exp %893 : vector<8x4xf32>
    %cst_272 = arith.constant 1.000000e+00 : f32
    %895 = vector.broadcast %cst_272 : f32 to vector<8x4xf32>
    %896 = arith.addf %895, %894 : vector<8x4xf32>
    %897 = tpu.reciprocal %896 {approx = true} : vector<8x4xf32> -> vector<8x4xf32>
    %898 = vector.extract_strided_slice %897 {offsets = [0, 0], sizes = [8, 1], strides = [1, 1]} : vector<8x4xf32> to vector<8x1xf32>
    %899 = vector.extract_strided_slice %897 {offsets = [0, 1], sizes = [8, 1], strides = [1, 1]} : vector<8x4xf32> to vector<8x1xf32>
    %900 = vector.extract_strided_slice %897 {offsets = [0, 3], sizes = [8, 1], strides = [1, 1]} : vector<8x4xf32> to vector<8x1xf32>
    %901 = vector.extract_strided_slice %891 {offsets = [0, 2], sizes = [8, 1], strides = [1, 1]} : vector<8x4xf32> to vector<8x1xf32>
    %902 = math.tanh %901 : vector<8x1xf32>
    %903 = arith.mulf %899, %875 : vector<8x1xf32>
    %904 = arith.mulf %898, %902 : vector<8x1xf32>
    %905 = arith.addf %903, %904 : vector<8x1xf32>
    %906 = math.tanh %905 : vector<8x1xf32>
    %907 = arith.mulf %900, %906 : vector<8x1xf32>
    %c7_i32 = arith.constant 7 : i32
    %908 = vector.broadcast %c7_i32 : i32 to vector<1x16xi32>
    %909 = arith.cmpi eq, %672, %908 : vector<1x16xi32>
    %cst_273 = arith.constant 0.000000e+00 : f32
    %910 = vector.shape_cast %909 : vector<1x16xi1> to vector<1x16xi1>
    %911 = vector.broadcast %910 : vector<1x16xi1> to vector<8x16xi1>
    %912 = vector.shape_cast %907 : vector<8x1xf32> to vector<8x1xf32>
    %913 = vector.broadcast %912 : vector<8x1xf32> to vector<8x16xf32>
    %914 = vector.broadcast %cst_273 : f32 to vector<8x16xf32>
    %915 = arith.select %911, %913, %914 : vector<8x16xi1>, vector<8x16xf32>
    %916 = arith.addf %886, %915 : vector<8x16xf32>
    %917 = vector.extract_strided_slice %666 {offsets = [64, 0], sizes = [8, 4], strides = [1, 1]} : vector<128x4xf32> to vector<8x4xf32>
    %918 = vector.broadcast %907 : vector<8x1xf32> to vector<8x4xf32>
    %919 = vector.broadcast %673 : vector<1x4xf32> to vector<8x4xf32>
    %920 = arith.mulf %918, %919 : vector<8x4xf32>
    %921 = arith.addf %917, %920 : vector<8x4xf32>
    %cst_274 = arith.constant 0.000000e+00 : f32
    %922 = vector.broadcast %cst_274 : f32 to vector<8x4xf32>
    %923 = arith.subf %922, %921 : vector<8x4xf32>
    %924 = math.exp %923 : vector<8x4xf32>
    %cst_275 = arith.constant 1.000000e+00 : f32
    %925 = vector.broadcast %cst_275 : f32 to vector<8x4xf32>
    %926 = arith.addf %925, %924 : vector<8x4xf32>
    %927 = tpu.reciprocal %926 {approx = true} : vector<8x4xf32> -> vector<8x4xf32>
    %928 = vector.extract_strided_slice %927 {offsets = [0, 0], sizes = [8, 1], strides = [1, 1]} : vector<8x4xf32> to vector<8x1xf32>
    %929 = vector.extract_strided_slice %927 {offsets = [0, 1], sizes = [8, 1], strides = [1, 1]} : vector<8x4xf32> to vector<8x1xf32>
    %930 = vector.extract_strided_slice %927 {offsets = [0, 3], sizes = [8, 1], strides = [1, 1]} : vector<8x4xf32> to vector<8x1xf32>
    %931 = vector.extract_strided_slice %921 {offsets = [0, 2], sizes = [8, 1], strides = [1, 1]} : vector<8x4xf32> to vector<8x1xf32>
    %932 = math.tanh %931 : vector<8x1xf32>
    %933 = arith.mulf %929, %905 : vector<8x1xf32>
    %934 = arith.mulf %928, %932 : vector<8x1xf32>
    %935 = arith.addf %933, %934 : vector<8x1xf32>
    %936 = math.tanh %935 : vector<8x1xf32>
    %937 = arith.mulf %930, %936 : vector<8x1xf32>
    %c8_i32 = arith.constant 8 : i32
    %938 = vector.broadcast %c8_i32 : i32 to vector<1x16xi32>
    %939 = arith.cmpi eq, %672, %938 : vector<1x16xi32>
    %cst_276 = arith.constant 0.000000e+00 : f32
    %940 = vector.shape_cast %939 : vector<1x16xi1> to vector<1x16xi1>
    %941 = vector.broadcast %940 : vector<1x16xi1> to vector<8x16xi1>
    %942 = vector.shape_cast %937 : vector<8x1xf32> to vector<8x1xf32>
    %943 = vector.broadcast %942 : vector<8x1xf32> to vector<8x16xf32>
    %944 = vector.broadcast %cst_276 : f32 to vector<8x16xf32>
    %945 = arith.select %941, %943, %944 : vector<8x16xi1>, vector<8x16xf32>
    %946 = arith.addf %916, %945 : vector<8x16xf32>
    %947 = vector.extract_strided_slice %666 {offsets = [72, 0], sizes = [8, 4], strides = [1, 1]} : vector<128x4xf32> to vector<8x4xf32>
    %948 = vector.broadcast %937 : vector<8x1xf32> to vector<8x4xf32>
    %949 = vector.broadcast %673 : vector<1x4xf32> to vector<8x4xf32>
    %950 = arith.mulf %948, %949 : vector<8x4xf32>
    %951 = arith.addf %947, %950 : vector<8x4xf32>
    %cst_277 = arith.constant 0.000000e+00 : f32
    %952 = vector.broadcast %cst_277 : f32 to vector<8x4xf32>
    %953 = arith.subf %952, %951 : vector<8x4xf32>
    %954 = math.exp %953 : vector<8x4xf32>
    %cst_278 = arith.constant 1.000000e+00 : f32
    %955 = vector.broadcast %cst_278 : f32 to vector<8x4xf32>
    %956 = arith.addf %955, %954 : vector<8x4xf32>
    %957 = tpu.reciprocal %956 {approx = true} : vector<8x4xf32> -> vector<8x4xf32>
    %958 = vector.extract_strided_slice %957 {offsets = [0, 0], sizes = [8, 1], strides = [1, 1]} : vector<8x4xf32> to vector<8x1xf32>
    %959 = vector.extract_strided_slice %957 {offsets = [0, 1], sizes = [8, 1], strides = [1, 1]} : vector<8x4xf32> to vector<8x1xf32>
    %960 = vector.extract_strided_slice %957 {offsets = [0, 3], sizes = [8, 1], strides = [1, 1]} : vector<8x4xf32> to vector<8x1xf32>
    %961 = vector.extract_strided_slice %951 {offsets = [0, 2], sizes = [8, 1], strides = [1, 1]} : vector<8x4xf32> to vector<8x1xf32>
    %962 = math.tanh %961 : vector<8x1xf32>
    %963 = arith.mulf %959, %935 : vector<8x1xf32>
    %964 = arith.mulf %958, %962 : vector<8x1xf32>
    %965 = arith.addf %963, %964 : vector<8x1xf32>
    %966 = math.tanh %965 : vector<8x1xf32>
    %967 = arith.mulf %960, %966 : vector<8x1xf32>
    %c9_i32 = arith.constant 9 : i32
    %968 = vector.broadcast %c9_i32 : i32 to vector<1x16xi32>
    %969 = arith.cmpi eq, %672, %968 : vector<1x16xi32>
    %cst_279 = arith.constant 0.000000e+00 : f32
    %970 = vector.shape_cast %969 : vector<1x16xi1> to vector<1x16xi1>
    %971 = vector.broadcast %970 : vector<1x16xi1> to vector<8x16xi1>
    %972 = vector.shape_cast %967 : vector<8x1xf32> to vector<8x1xf32>
    %973 = vector.broadcast %972 : vector<8x1xf32> to vector<8x16xf32>
    %974 = vector.broadcast %cst_279 : f32 to vector<8x16xf32>
    %975 = arith.select %971, %973, %974 : vector<8x16xi1>, vector<8x16xf32>
    %976 = arith.addf %946, %975 : vector<8x16xf32>
    %977 = vector.extract_strided_slice %666 {offsets = [80, 0], sizes = [8, 4], strides = [1, 1]} : vector<128x4xf32> to vector<8x4xf32>
    %978 = vector.broadcast %967 : vector<8x1xf32> to vector<8x4xf32>
    %979 = vector.broadcast %673 : vector<1x4xf32> to vector<8x4xf32>
    %980 = arith.mulf %978, %979 : vector<8x4xf32>
    %981 = arith.addf %977, %980 : vector<8x4xf32>
    %cst_280 = arith.constant 0.000000e+00 : f32
    %982 = vector.broadcast %cst_280 : f32 to vector<8x4xf32>
    %983 = arith.subf %982, %981 : vector<8x4xf32>
    %984 = math.exp %983 : vector<8x4xf32>
    %cst_281 = arith.constant 1.000000e+00 : f32
    %985 = vector.broadcast %cst_281 : f32 to vector<8x4xf32>
    %986 = arith.addf %985, %984 : vector<8x4xf32>
    %987 = tpu.reciprocal %986 {approx = true} : vector<8x4xf32> -> vector<8x4xf32>
    %988 = vector.extract_strided_slice %987 {offsets = [0, 0], sizes = [8, 1], strides = [1, 1]} : vector<8x4xf32> to vector<8x1xf32>
    %989 = vector.extract_strided_slice %987 {offsets = [0, 1], sizes = [8, 1], strides = [1, 1]} : vector<8x4xf32> to vector<8x1xf32>
    %990 = vector.extract_strided_slice %987 {offsets = [0, 3], sizes = [8, 1], strides = [1, 1]} : vector<8x4xf32> to vector<8x1xf32>
    %991 = vector.extract_strided_slice %981 {offsets = [0, 2], sizes = [8, 1], strides = [1, 1]} : vector<8x4xf32> to vector<8x1xf32>
    %992 = math.tanh %991 : vector<8x1xf32>
    %993 = arith.mulf %989, %965 : vector<8x1xf32>
    %994 = arith.mulf %988, %992 : vector<8x1xf32>
    %995 = arith.addf %993, %994 : vector<8x1xf32>
    %996 = math.tanh %995 : vector<8x1xf32>
    %997 = arith.mulf %990, %996 : vector<8x1xf32>
    %c10_i32 = arith.constant 10 : i32
    %998 = vector.broadcast %c10_i32 : i32 to vector<1x16xi32>
    %999 = arith.cmpi eq, %672, %998 : vector<1x16xi32>
    %cst_282 = arith.constant 0.000000e+00 : f32
    %1000 = vector.shape_cast %999 : vector<1x16xi1> to vector<1x16xi1>
    %1001 = vector.broadcast %1000 : vector<1x16xi1> to vector<8x16xi1>
    %1002 = vector.shape_cast %997 : vector<8x1xf32> to vector<8x1xf32>
    %1003 = vector.broadcast %1002 : vector<8x1xf32> to vector<8x16xf32>
    %1004 = vector.broadcast %cst_282 : f32 to vector<8x16xf32>
    %1005 = arith.select %1001, %1003, %1004 : vector<8x16xi1>, vector<8x16xf32>
    %1006 = arith.addf %976, %1005 : vector<8x16xf32>
    %1007 = vector.extract_strided_slice %666 {offsets = [88, 0], sizes = [8, 4], strides = [1, 1]} : vector<128x4xf32> to vector<8x4xf32>
    %1008 = vector.broadcast %997 : vector<8x1xf32> to vector<8x4xf32>
    %1009 = vector.broadcast %673 : vector<1x4xf32> to vector<8x4xf32>
    %1010 = arith.mulf %1008, %1009 : vector<8x4xf32>
    %1011 = arith.addf %1007, %1010 : vector<8x4xf32>
    %cst_283 = arith.constant 0.000000e+00 : f32
    %1012 = vector.broadcast %cst_283 : f32 to vector<8x4xf32>
    %1013 = arith.subf %1012, %1011 : vector<8x4xf32>
    %1014 = math.exp %1013 : vector<8x4xf32>
    %cst_284 = arith.constant 1.000000e+00 : f32
    %1015 = vector.broadcast %cst_284 : f32 to vector<8x4xf32>
    %1016 = arith.addf %1015, %1014 : vector<8x4xf32>
    %1017 = tpu.reciprocal %1016 {approx = true} : vector<8x4xf32> -> vector<8x4xf32>
    %1018 = vector.extract_strided_slice %1017 {offsets = [0, 0], sizes = [8, 1], strides = [1, 1]} : vector<8x4xf32> to vector<8x1xf32>
    %1019 = vector.extract_strided_slice %1017 {offsets = [0, 1], sizes = [8, 1], strides = [1, 1]} : vector<8x4xf32> to vector<8x1xf32>
    %1020 = vector.extract_strided_slice %1017 {offsets = [0, 3], sizes = [8, 1], strides = [1, 1]} : vector<8x4xf32> to vector<8x1xf32>
    %1021 = vector.extract_strided_slice %1011 {offsets = [0, 2], sizes = [8, 1], strides = [1, 1]} : vector<8x4xf32> to vector<8x1xf32>
    %1022 = math.tanh %1021 : vector<8x1xf32>
    %1023 = arith.mulf %1019, %995 : vector<8x1xf32>
    %1024 = arith.mulf %1018, %1022 : vector<8x1xf32>
    %1025 = arith.addf %1023, %1024 : vector<8x1xf32>
    %1026 = math.tanh %1025 : vector<8x1xf32>
    %1027 = arith.mulf %1020, %1026 : vector<8x1xf32>
    %c11_i32 = arith.constant 11 : i32
    %1028 = vector.broadcast %c11_i32 : i32 to vector<1x16xi32>
    %1029 = arith.cmpi eq, %672, %1028 : vector<1x16xi32>
    %cst_285 = arith.constant 0.000000e+00 : f32
    %1030 = vector.shape_cast %1029 : vector<1x16xi1> to vector<1x16xi1>
    %1031 = vector.broadcast %1030 : vector<1x16xi1> to vector<8x16xi1>
    %1032 = vector.shape_cast %1027 : vector<8x1xf32> to vector<8x1xf32>
    %1033 = vector.broadcast %1032 : vector<8x1xf32> to vector<8x16xf32>
    %1034 = vector.broadcast %cst_285 : f32 to vector<8x16xf32>
    %1035 = arith.select %1031, %1033, %1034 : vector<8x16xi1>, vector<8x16xf32>
    %1036 = arith.addf %1006, %1035 : vector<8x16xf32>
    %1037 = vector.extract_strided_slice %666 {offsets = [96, 0], sizes = [8, 4], strides = [1, 1]} : vector<128x4xf32> to vector<8x4xf32>
    %1038 = vector.broadcast %1027 : vector<8x1xf32> to vector<8x4xf32>
    %1039 = vector.broadcast %673 : vector<1x4xf32> to vector<8x4xf32>
    %1040 = arith.mulf %1038, %1039 : vector<8x4xf32>
    %1041 = arith.addf %1037, %1040 : vector<8x4xf32>
    %cst_286 = arith.constant 0.000000e+00 : f32
    %1042 = vector.broadcast %cst_286 : f32 to vector<8x4xf32>
    %1043 = arith.subf %1042, %1041 : vector<8x4xf32>
    %1044 = math.exp %1043 : vector<8x4xf32>
    %cst_287 = arith.constant 1.000000e+00 : f32
    %1045 = vector.broadcast %cst_287 : f32 to vector<8x4xf32>
    %1046 = arith.addf %1045, %1044 : vector<8x4xf32>
    %1047 = tpu.reciprocal %1046 {approx = true} : vector<8x4xf32> -> vector<8x4xf32>
    %1048 = vector.extract_strided_slice %1047 {offsets = [0, 0], sizes = [8, 1], strides = [1, 1]} : vector<8x4xf32> to vector<8x1xf32>
    %1049 = vector.extract_strided_slice %1047 {offsets = [0, 1], sizes = [8, 1], strides = [1, 1]} : vector<8x4xf32> to vector<8x1xf32>
    %1050 = vector.extract_strided_slice %1047 {offsets = [0, 3], sizes = [8, 1], strides = [1, 1]} : vector<8x4xf32> to vector<8x1xf32>
    %1051 = vector.extract_strided_slice %1041 {offsets = [0, 2], sizes = [8, 1], strides = [1, 1]} : vector<8x4xf32> to vector<8x1xf32>
    %1052 = math.tanh %1051 : vector<8x1xf32>
    %1053 = arith.mulf %1049, %1025 : vector<8x1xf32>
    %1054 = arith.mulf %1048, %1052 : vector<8x1xf32>
    %1055 = arith.addf %1053, %1054 : vector<8x1xf32>
    %1056 = math.tanh %1055 : vector<8x1xf32>
    %1057 = arith.mulf %1050, %1056 : vector<8x1xf32>
    %c12_i32 = arith.constant 12 : i32
    %1058 = vector.broadcast %c12_i32 : i32 to vector<1x16xi32>
    %1059 = arith.cmpi eq, %672, %1058 : vector<1x16xi32>
    %cst_288 = arith.constant 0.000000e+00 : f32
    %1060 = vector.shape_cast %1059 : vector<1x16xi1> to vector<1x16xi1>
    %1061 = vector.broadcast %1060 : vector<1x16xi1> to vector<8x16xi1>
    %1062 = vector.shape_cast %1057 : vector<8x1xf32> to vector<8x1xf32>
    %1063 = vector.broadcast %1062 : vector<8x1xf32> to vector<8x16xf32>
    %1064 = vector.broadcast %cst_288 : f32 to vector<8x16xf32>
    %1065 = arith.select %1061, %1063, %1064 : vector<8x16xi1>, vector<8x16xf32>
    %1066 = arith.addf %1036, %1065 : vector<8x16xf32>
    %1067 = vector.extract_strided_slice %666 {offsets = [104, 0], sizes = [8, 4], strides = [1, 1]} : vector<128x4xf32> to vector<8x4xf32>
    %1068 = vector.broadcast %1057 : vector<8x1xf32> to vector<8x4xf32>
    %1069 = vector.broadcast %673 : vector<1x4xf32> to vector<8x4xf32>
    %1070 = arith.mulf %1068, %1069 : vector<8x4xf32>
    %1071 = arith.addf %1067, %1070 : vector<8x4xf32>
    %cst_289 = arith.constant 0.000000e+00 : f32
    %1072 = vector.broadcast %cst_289 : f32 to vector<8x4xf32>
    %1073 = arith.subf %1072, %1071 : vector<8x4xf32>
    %1074 = math.exp %1073 : vector<8x4xf32>
    %cst_290 = arith.constant 1.000000e+00 : f32
    %1075 = vector.broadcast %cst_290 : f32 to vector<8x4xf32>
    %1076 = arith.addf %1075, %1074 : vector<8x4xf32>
    %1077 = tpu.reciprocal %1076 {approx = true} : vector<8x4xf32> -> vector<8x4xf32>
    %1078 = vector.extract_strided_slice %1077 {offsets = [0, 0], sizes = [8, 1], strides = [1, 1]} : vector<8x4xf32> to vector<8x1xf32>
    %1079 = vector.extract_strided_slice %1077 {offsets = [0, 1], sizes = [8, 1], strides = [1, 1]} : vector<8x4xf32> to vector<8x1xf32>
    %1080 = vector.extract_strided_slice %1077 {offsets = [0, 3], sizes = [8, 1], strides = [1, 1]} : vector<8x4xf32> to vector<8x1xf32>
    %1081 = vector.extract_strided_slice %1071 {offsets = [0, 2], sizes = [8, 1], strides = [1, 1]} : vector<8x4xf32> to vector<8x1xf32>
    %1082 = math.tanh %1081 : vector<8x1xf32>
    %1083 = arith.mulf %1079, %1055 : vector<8x1xf32>
    %1084 = arith.mulf %1078, %1082 : vector<8x1xf32>
    %1085 = arith.addf %1083, %1084 : vector<8x1xf32>
    %1086 = math.tanh %1085 : vector<8x1xf32>
    %1087 = arith.mulf %1080, %1086 : vector<8x1xf32>
    %c13_i32 = arith.constant 13 : i32
    %1088 = vector.broadcast %c13_i32 : i32 to vector<1x16xi32>
    %1089 = arith.cmpi eq, %672, %1088 : vector<1x16xi32>
    %cst_291 = arith.constant 0.000000e+00 : f32
    %1090 = vector.shape_cast %1089 : vector<1x16xi1> to vector<1x16xi1>
    %1091 = vector.broadcast %1090 : vector<1x16xi1> to vector<8x16xi1>
    %1092 = vector.shape_cast %1087 : vector<8x1xf32> to vector<8x1xf32>
    %1093 = vector.broadcast %1092 : vector<8x1xf32> to vector<8x16xf32>
    %1094 = vector.broadcast %cst_291 : f32 to vector<8x16xf32>
    %1095 = arith.select %1091, %1093, %1094 : vector<8x16xi1>, vector<8x16xf32>
    %1096 = arith.addf %1066, %1095 : vector<8x16xf32>
    %1097 = vector.extract_strided_slice %666 {offsets = [112, 0], sizes = [8, 4], strides = [1, 1]} : vector<128x4xf32> to vector<8x4xf32>
    %1098 = vector.broadcast %1087 : vector<8x1xf32> to vector<8x4xf32>
    %1099 = vector.broadcast %673 : vector<1x4xf32> to vector<8x4xf32>
    %1100 = arith.mulf %1098, %1099 : vector<8x4xf32>
    %1101 = arith.addf %1097, %1100 : vector<8x4xf32>
    %cst_292 = arith.constant 0.000000e+00 : f32
    %1102 = vector.broadcast %cst_292 : f32 to vector<8x4xf32>
    %1103 = arith.subf %1102, %1101 : vector<8x4xf32>
    %1104 = math.exp %1103 : vector<8x4xf32>
    %cst_293 = arith.constant 1.000000e+00 : f32
    %1105 = vector.broadcast %cst_293 : f32 to vector<8x4xf32>
    %1106 = arith.addf %1105, %1104 : vector<8x4xf32>
    %1107 = tpu.reciprocal %1106 {approx = true} : vector<8x4xf32> -> vector<8x4xf32>
    %1108 = vector.extract_strided_slice %1107 {offsets = [0, 0], sizes = [8, 1], strides = [1, 1]} : vector<8x4xf32> to vector<8x1xf32>
    %1109 = vector.extract_strided_slice %1107 {offsets = [0, 1], sizes = [8, 1], strides = [1, 1]} : vector<8x4xf32> to vector<8x1xf32>
    %1110 = vector.extract_strided_slice %1107 {offsets = [0, 3], sizes = [8, 1], strides = [1, 1]} : vector<8x4xf32> to vector<8x1xf32>
    %1111 = vector.extract_strided_slice %1101 {offsets = [0, 2], sizes = [8, 1], strides = [1, 1]} : vector<8x4xf32> to vector<8x1xf32>
    %1112 = math.tanh %1111 : vector<8x1xf32>
    %1113 = arith.mulf %1109, %1085 : vector<8x1xf32>
    %1114 = arith.mulf %1108, %1112 : vector<8x1xf32>
    %1115 = arith.addf %1113, %1114 : vector<8x1xf32>
    %1116 = math.tanh %1115 : vector<8x1xf32>
    %1117 = arith.mulf %1110, %1116 : vector<8x1xf32>
    %c14_i32 = arith.constant 14 : i32
    %1118 = vector.broadcast %c14_i32 : i32 to vector<1x16xi32>
    %1119 = arith.cmpi eq, %672, %1118 : vector<1x16xi32>
    %cst_294 = arith.constant 0.000000e+00 : f32
    %1120 = vector.shape_cast %1119 : vector<1x16xi1> to vector<1x16xi1>
    %1121 = vector.broadcast %1120 : vector<1x16xi1> to vector<8x16xi1>
    %1122 = vector.shape_cast %1117 : vector<8x1xf32> to vector<8x1xf32>
    %1123 = vector.broadcast %1122 : vector<8x1xf32> to vector<8x16xf32>
    %1124 = vector.broadcast %cst_294 : f32 to vector<8x16xf32>
    %1125 = arith.select %1121, %1123, %1124 : vector<8x16xi1>, vector<8x16xf32>
    %1126 = arith.addf %1096, %1125 : vector<8x16xf32>
    %1127 = vector.extract_strided_slice %666 {offsets = [120, 0], sizes = [8, 4], strides = [1, 1]} : vector<128x4xf32> to vector<8x4xf32>
    %1128 = vector.broadcast %1117 : vector<8x1xf32> to vector<8x4xf32>
    %1129 = vector.broadcast %673 : vector<1x4xf32> to vector<8x4xf32>
    %1130 = arith.mulf %1128, %1129 : vector<8x4xf32>
    %1131 = arith.addf %1127, %1130 : vector<8x4xf32>
    %cst_295 = arith.constant 0.000000e+00 : f32
    %1132 = vector.broadcast %cst_295 : f32 to vector<8x4xf32>
    %1133 = arith.subf %1132, %1131 : vector<8x4xf32>
    %1134 = math.exp %1133 : vector<8x4xf32>
    %cst_296 = arith.constant 1.000000e+00 : f32
    %1135 = vector.broadcast %cst_296 : f32 to vector<8x4xf32>
    %1136 = arith.addf %1135, %1134 : vector<8x4xf32>
    %1137 = tpu.reciprocal %1136 {approx = true} : vector<8x4xf32> -> vector<8x4xf32>
    %1138 = vector.extract_strided_slice %1137 {offsets = [0, 0], sizes = [8, 1], strides = [1, 1]} : vector<8x4xf32> to vector<8x1xf32>
    %1139 = vector.extract_strided_slice %1137 {offsets = [0, 1], sizes = [8, 1], strides = [1, 1]} : vector<8x4xf32> to vector<8x1xf32>
    %1140 = vector.extract_strided_slice %1137 {offsets = [0, 3], sizes = [8, 1], strides = [1, 1]} : vector<8x4xf32> to vector<8x1xf32>
    %1141 = vector.extract_strided_slice %1131 {offsets = [0, 2], sizes = [8, 1], strides = [1, 1]} : vector<8x4xf32> to vector<8x1xf32>
    %1142 = math.tanh %1141 : vector<8x1xf32>
    %1143 = arith.mulf %1139, %1115 : vector<8x1xf32>
    %1144 = arith.mulf %1138, %1142 : vector<8x1xf32>
    %1145 = arith.addf %1143, %1144 : vector<8x1xf32>
    %1146 = math.tanh %1145 : vector<8x1xf32>
    %1147 = arith.mulf %1140, %1146 : vector<8x1xf32>
    %c15_i32 = arith.constant 15 : i32
    %1148 = vector.broadcast %c15_i32 : i32 to vector<1x16xi32>
    %1149 = arith.cmpi eq, %672, %1148 : vector<1x16xi32>
    %cst_297 = arith.constant 0.000000e+00 : f32
    %1150 = vector.shape_cast %1149 : vector<1x16xi1> to vector<1x16xi1>
    %1151 = vector.broadcast %1150 : vector<1x16xi1> to vector<8x16xi1>
    %1152 = vector.shape_cast %1147 : vector<8x1xf32> to vector<8x1xf32>
    %1153 = vector.broadcast %1152 : vector<8x1xf32> to vector<8x16xf32>
    %1154 = vector.broadcast %cst_297 : f32 to vector<8x16xf32>
    %1155 = arith.select %1151, %1153, %1154 : vector<8x16xi1>, vector<8x16xf32>
    %1156 = arith.addf %1126, %1155 : vector<8x16xf32>
    %c0_298 = arith.constant 0 : index
    %c0_299 = arith.constant 0 : index
    %1157 = vector.load %arg12[%c0_298, %c0_299] : memref<1x4xf32, #tpu.memory_space<vmem>>, vector<1x4xf32>
    %cst_300 = arith.constant 0.000000e+00 : f32
    %1158 = vector.broadcast %cst_300 : f32 to vector<8x1xf32>
    %cst_301 = arith.constant 0.000000e+00 : f32
    %1159 = vector.broadcast %cst_301 : f32 to vector<8x1xf32>
    %cst_302 = arith.constant 0.000000e+00 : f32
    %1160 = vector.broadcast %cst_302 : f32 to vector<8x16xf32>
    %1161 = vector.extract_strided_slice %671 {offsets = [120, 0], sizes = [8, 4], strides = [1, 1]} : vector<128x4xf32> to vector<8x4xf32>
    %1162 = vector.broadcast %1158 : vector<8x1xf32> to vector<8x4xf32>
    %1163 = vector.broadcast %1157 : vector<1x4xf32> to vector<8x4xf32>
    %1164 = arith.mulf %1162, %1163 : vector<8x4xf32>
    %1165 = arith.addf %1161, %1164 : vector<8x4xf32>
    %cst_303 = arith.constant 0.000000e+00 : f32
    %1166 = vector.broadcast %cst_303 : f32 to vector<8x4xf32>
    %1167 = arith.subf %1166, %1165 : vector<8x4xf32>
    %1168 = math.exp %1167 : vector<8x4xf32>
    %cst_304 = arith.constant 1.000000e+00 : f32
    %1169 = vector.broadcast %cst_304 : f32 to vector<8x4xf32>
    %1170 = arith.addf %1169, %1168 : vector<8x4xf32>
    %1171 = tpu.reciprocal %1170 {approx = true} : vector<8x4xf32> -> vector<8x4xf32>
    %1172 = vector.extract_strided_slice %1171 {offsets = [0, 0], sizes = [8, 1], strides = [1, 1]} : vector<8x4xf32> to vector<8x1xf32>
    %1173 = vector.extract_strided_slice %1171 {offsets = [0, 1], sizes = [8, 1], strides = [1, 1]} : vector<8x4xf32> to vector<8x1xf32>
    %1174 = vector.extract_strided_slice %1171 {offsets = [0, 3], sizes = [8, 1], strides = [1, 1]} : vector<8x4xf32> to vector<8x1xf32>
    %1175 = vector.extract_strided_slice %1165 {offsets = [0, 2], sizes = [8, 1], strides = [1, 1]} : vector<8x4xf32> to vector<8x1xf32>
    %1176 = math.tanh %1175 : vector<8x1xf32>
    %1177 = arith.mulf %1173, %1159 : vector<8x1xf32>
    %1178 = arith.mulf %1172, %1176 : vector<8x1xf32>
    %1179 = arith.addf %1177, %1178 : vector<8x1xf32>
    %1180 = math.tanh %1179 : vector<8x1xf32>
    %1181 = arith.mulf %1174, %1180 : vector<8x1xf32>
    %c15_i32_305 = arith.constant 15 : i32
    %1182 = vector.broadcast %c15_i32_305 : i32 to vector<1x16xi32>
    %1183 = arith.cmpi eq, %672, %1182 : vector<1x16xi32>
    %cst_306 = arith.constant 0.000000e+00 : f32
    %1184 = vector.shape_cast %1183 : vector<1x16xi1> to vector<1x16xi1>
    %1185 = vector.broadcast %1184 : vector<1x16xi1> to vector<8x16xi1>
    %1186 = vector.shape_cast %1181 : vector<8x1xf32> to vector<8x1xf32>
    %1187 = vector.broadcast %1186 : vector<8x1xf32> to vector<8x16xf32>
    %1188 = vector.broadcast %cst_306 : f32 to vector<8x16xf32>
    %1189 = arith.select %1185, %1187, %1188 : vector<8x16xi1>, vector<8x16xf32>
    %1190 = arith.addf %1160, %1189 : vector<8x16xf32>
    %1191 = vector.extract_strided_slice %671 {offsets = [112, 0], sizes = [8, 4], strides = [1, 1]} : vector<128x4xf32> to vector<8x4xf32>
    %1192 = vector.broadcast %1181 : vector<8x1xf32> to vector<8x4xf32>
    %1193 = vector.broadcast %1157 : vector<1x4xf32> to vector<8x4xf32>
    %1194 = arith.mulf %1192, %1193 : vector<8x4xf32>
    %1195 = arith.addf %1191, %1194 : vector<8x4xf32>
    %cst_307 = arith.constant 0.000000e+00 : f32
    %1196 = vector.broadcast %cst_307 : f32 to vector<8x4xf32>
    %1197 = arith.subf %1196, %1195 : vector<8x4xf32>
    %1198 = math.exp %1197 : vector<8x4xf32>
    %cst_308 = arith.constant 1.000000e+00 : f32
    %1199 = vector.broadcast %cst_308 : f32 to vector<8x4xf32>
    %1200 = arith.addf %1199, %1198 : vector<8x4xf32>
    %1201 = tpu.reciprocal %1200 {approx = true} : vector<8x4xf32> -> vector<8x4xf32>
    %1202 = vector.extract_strided_slice %1201 {offsets = [0, 0], sizes = [8, 1], strides = [1, 1]} : vector<8x4xf32> to vector<8x1xf32>
    %1203 = vector.extract_strided_slice %1201 {offsets = [0, 1], sizes = [8, 1], strides = [1, 1]} : vector<8x4xf32> to vector<8x1xf32>
    %1204 = vector.extract_strided_slice %1201 {offsets = [0, 3], sizes = [8, 1], strides = [1, 1]} : vector<8x4xf32> to vector<8x1xf32>
    %1205 = vector.extract_strided_slice %1195 {offsets = [0, 2], sizes = [8, 1], strides = [1, 1]} : vector<8x4xf32> to vector<8x1xf32>
    %1206 = math.tanh %1205 : vector<8x1xf32>
    %1207 = arith.mulf %1203, %1179 : vector<8x1xf32>
    %1208 = arith.mulf %1202, %1206 : vector<8x1xf32>
    %1209 = arith.addf %1207, %1208 : vector<8x1xf32>
    %1210 = math.tanh %1209 : vector<8x1xf32>
    %1211 = arith.mulf %1204, %1210 : vector<8x1xf32>
    %c14_i32_309 = arith.constant 14 : i32
    %1212 = vector.broadcast %c14_i32_309 : i32 to vector<1x16xi32>
    %1213 = arith.cmpi eq, %672, %1212 : vector<1x16xi32>
    %cst_310 = arith.constant 0.000000e+00 : f32
    %1214 = vector.shape_cast %1213 : vector<1x16xi1> to vector<1x16xi1>
    %1215 = vector.broadcast %1214 : vector<1x16xi1> to vector<8x16xi1>
    %1216 = vector.shape_cast %1211 : vector<8x1xf32> to vector<8x1xf32>
    %1217 = vector.broadcast %1216 : vector<8x1xf32> to vector<8x16xf32>
    %1218 = vector.broadcast %cst_310 : f32 to vector<8x16xf32>
    %1219 = arith.select %1215, %1217, %1218 : vector<8x16xi1>, vector<8x16xf32>
    %1220 = arith.addf %1190, %1219 : vector<8x16xf32>
    %1221 = vector.extract_strided_slice %671 {offsets = [104, 0], sizes = [8, 4], strides = [1, 1]} : vector<128x4xf32> to vector<8x4xf32>
    %1222 = vector.broadcast %1211 : vector<8x1xf32> to vector<8x4xf32>
    %1223 = vector.broadcast %1157 : vector<1x4xf32> to vector<8x4xf32>
    %1224 = arith.mulf %1222, %1223 : vector<8x4xf32>
    %1225 = arith.addf %1221, %1224 : vector<8x4xf32>
    %cst_311 = arith.constant 0.000000e+00 : f32
    %1226 = vector.broadcast %cst_311 : f32 to vector<8x4xf32>
    %1227 = arith.subf %1226, %1225 : vector<8x4xf32>
    %1228 = math.exp %1227 : vector<8x4xf32>
    %cst_312 = arith.constant 1.000000e+00 : f32
    %1229 = vector.broadcast %cst_312 : f32 to vector<8x4xf32>
    %1230 = arith.addf %1229, %1228 : vector<8x4xf32>
    %1231 = tpu.reciprocal %1230 {approx = true} : vector<8x4xf32> -> vector<8x4xf32>
    %1232 = vector.extract_strided_slice %1231 {offsets = [0, 0], sizes = [8, 1], strides = [1, 1]} : vector<8x4xf32> to vector<8x1xf32>
    %1233 = vector.extract_strided_slice %1231 {offsets = [0, 1], sizes = [8, 1], strides = [1, 1]} : vector<8x4xf32> to vector<8x1xf32>
    %1234 = vector.extract_strided_slice %1231 {offsets = [0, 3], sizes = [8, 1], strides = [1, 1]} : vector<8x4xf32> to vector<8x1xf32>
    %1235 = vector.extract_strided_slice %1225 {offsets = [0, 2], sizes = [8, 1], strides = [1, 1]} : vector<8x4xf32> to vector<8x1xf32>
    %1236 = math.tanh %1235 : vector<8x1xf32>
    %1237 = arith.mulf %1233, %1209 : vector<8x1xf32>
    %1238 = arith.mulf %1232, %1236 : vector<8x1xf32>
    %1239 = arith.addf %1237, %1238 : vector<8x1xf32>
    %1240 = math.tanh %1239 : vector<8x1xf32>
    %1241 = arith.mulf %1234, %1240 : vector<8x1xf32>
    %c13_i32_313 = arith.constant 13 : i32
    %1242 = vector.broadcast %c13_i32_313 : i32 to vector<1x16xi32>
    %1243 = arith.cmpi eq, %672, %1242 : vector<1x16xi32>
    %cst_314 = arith.constant 0.000000e+00 : f32
    %1244 = vector.shape_cast %1243 : vector<1x16xi1> to vector<1x16xi1>
    %1245 = vector.broadcast %1244 : vector<1x16xi1> to vector<8x16xi1>
    %1246 = vector.shape_cast %1241 : vector<8x1xf32> to vector<8x1xf32>
    %1247 = vector.broadcast %1246 : vector<8x1xf32> to vector<8x16xf32>
    %1248 = vector.broadcast %cst_314 : f32 to vector<8x16xf32>
    %1249 = arith.select %1245, %1247, %1248 : vector<8x16xi1>, vector<8x16xf32>
    %1250 = arith.addf %1220, %1249 : vector<8x16xf32>
    %1251 = vector.extract_strided_slice %671 {offsets = [96, 0], sizes = [8, 4], strides = [1, 1]} : vector<128x4xf32> to vector<8x4xf32>
    %1252 = vector.broadcast %1241 : vector<8x1xf32> to vector<8x4xf32>
    %1253 = vector.broadcast %1157 : vector<1x4xf32> to vector<8x4xf32>
    %1254 = arith.mulf %1252, %1253 : vector<8x4xf32>
    %1255 = arith.addf %1251, %1254 : vector<8x4xf32>
    %cst_315 = arith.constant 0.000000e+00 : f32
    %1256 = vector.broadcast %cst_315 : f32 to vector<8x4xf32>
    %1257 = arith.subf %1256, %1255 : vector<8x4xf32>
    %1258 = math.exp %1257 : vector<8x4xf32>
    %cst_316 = arith.constant 1.000000e+00 : f32
    %1259 = vector.broadcast %cst_316 : f32 to vector<8x4xf32>
    %1260 = arith.addf %1259, %1258 : vector<8x4xf32>
    %1261 = tpu.reciprocal %1260 {approx = true} : vector<8x4xf32> -> vector<8x4xf32>
    %1262 = vector.extract_strided_slice %1261 {offsets = [0, 0], sizes = [8, 1], strides = [1, 1]} : vector<8x4xf32> to vector<8x1xf32>
    %1263 = vector.extract_strided_slice %1261 {offsets = [0, 1], sizes = [8, 1], strides = [1, 1]} : vector<8x4xf32> to vector<8x1xf32>
    %1264 = vector.extract_strided_slice %1261 {offsets = [0, 3], sizes = [8, 1], strides = [1, 1]} : vector<8x4xf32> to vector<8x1xf32>
    %1265 = vector.extract_strided_slice %1255 {offsets = [0, 2], sizes = [8, 1], strides = [1, 1]} : vector<8x4xf32> to vector<8x1xf32>
    %1266 = math.tanh %1265 : vector<8x1xf32>
    %1267 = arith.mulf %1263, %1239 : vector<8x1xf32>
    %1268 = arith.mulf %1262, %1266 : vector<8x1xf32>
    %1269 = arith.addf %1267, %1268 : vector<8x1xf32>
    %1270 = math.tanh %1269 : vector<8x1xf32>
    %1271 = arith.mulf %1264, %1270 : vector<8x1xf32>
    %c12_i32_317 = arith.constant 12 : i32
    %1272 = vector.broadcast %c12_i32_317 : i32 to vector<1x16xi32>
    %1273 = arith.cmpi eq, %672, %1272 : vector<1x16xi32>
    %cst_318 = arith.constant 0.000000e+00 : f32
    %1274 = vector.shape_cast %1273 : vector<1x16xi1> to vector<1x16xi1>
    %1275 = vector.broadcast %1274 : vector<1x16xi1> to vector<8x16xi1>
    %1276 = vector.shape_cast %1271 : vector<8x1xf32> to vector<8x1xf32>
    %1277 = vector.broadcast %1276 : vector<8x1xf32> to vector<8x16xf32>
    %1278 = vector.broadcast %cst_318 : f32 to vector<8x16xf32>
    %1279 = arith.select %1275, %1277, %1278 : vector<8x16xi1>, vector<8x16xf32>
    %1280 = arith.addf %1250, %1279 : vector<8x16xf32>
    %1281 = vector.extract_strided_slice %671 {offsets = [88, 0], sizes = [8, 4], strides = [1, 1]} : vector<128x4xf32> to vector<8x4xf32>
    %1282 = vector.broadcast %1271 : vector<8x1xf32> to vector<8x4xf32>
    %1283 = vector.broadcast %1157 : vector<1x4xf32> to vector<8x4xf32>
    %1284 = arith.mulf %1282, %1283 : vector<8x4xf32>
    %1285 = arith.addf %1281, %1284 : vector<8x4xf32>
    %cst_319 = arith.constant 0.000000e+00 : f32
    %1286 = vector.broadcast %cst_319 : f32 to vector<8x4xf32>
    %1287 = arith.subf %1286, %1285 : vector<8x4xf32>
    %1288 = math.exp %1287 : vector<8x4xf32>
    %cst_320 = arith.constant 1.000000e+00 : f32
    %1289 = vector.broadcast %cst_320 : f32 to vector<8x4xf32>
    %1290 = arith.addf %1289, %1288 : vector<8x4xf32>
    %1291 = tpu.reciprocal %1290 {approx = true} : vector<8x4xf32> -> vector<8x4xf32>
    %1292 = vector.extract_strided_slice %1291 {offsets = [0, 0], sizes = [8, 1], strides = [1, 1]} : vector<8x4xf32> to vector<8x1xf32>
    %1293 = vector.extract_strided_slice %1291 {offsets = [0, 1], sizes = [8, 1], strides = [1, 1]} : vector<8x4xf32> to vector<8x1xf32>
    %1294 = vector.extract_strided_slice %1291 {offsets = [0, 3], sizes = [8, 1], strides = [1, 1]} : vector<8x4xf32> to vector<8x1xf32>
    %1295 = vector.extract_strided_slice %1285 {offsets = [0, 2], sizes = [8, 1], strides = [1, 1]} : vector<8x4xf32> to vector<8x1xf32>
    %1296 = math.tanh %1295 : vector<8x1xf32>
    %1297 = arith.mulf %1293, %1269 : vector<8x1xf32>
    %1298 = arith.mulf %1292, %1296 : vector<8x1xf32>
    %1299 = arith.addf %1297, %1298 : vector<8x1xf32>
    %1300 = math.tanh %1299 : vector<8x1xf32>
    %1301 = arith.mulf %1294, %1300 : vector<8x1xf32>
    %c11_i32_321 = arith.constant 11 : i32
    %1302 = vector.broadcast %c11_i32_321 : i32 to vector<1x16xi32>
    %1303 = arith.cmpi eq, %672, %1302 : vector<1x16xi32>
    %cst_322 = arith.constant 0.000000e+00 : f32
    %1304 = vector.shape_cast %1303 : vector<1x16xi1> to vector<1x16xi1>
    %1305 = vector.broadcast %1304 : vector<1x16xi1> to vector<8x16xi1>
    %1306 = vector.shape_cast %1301 : vector<8x1xf32> to vector<8x1xf32>
    %1307 = vector.broadcast %1306 : vector<8x1xf32> to vector<8x16xf32>
    %1308 = vector.broadcast %cst_322 : f32 to vector<8x16xf32>
    %1309 = arith.select %1305, %1307, %1308 : vector<8x16xi1>, vector<8x16xf32>
    %1310 = arith.addf %1280, %1309 : vector<8x16xf32>
    %1311 = vector.extract_strided_slice %671 {offsets = [80, 0], sizes = [8, 4], strides = [1, 1]} : vector<128x4xf32> to vector<8x4xf32>
    %1312 = vector.broadcast %1301 : vector<8x1xf32> to vector<8x4xf32>
    %1313 = vector.broadcast %1157 : vector<1x4xf32> to vector<8x4xf32>
    %1314 = arith.mulf %1312, %1313 : vector<8x4xf32>
    %1315 = arith.addf %1311, %1314 : vector<8x4xf32>
    %cst_323 = arith.constant 0.000000e+00 : f32
    %1316 = vector.broadcast %cst_323 : f32 to vector<8x4xf32>
    %1317 = arith.subf %1316, %1315 : vector<8x4xf32>
    %1318 = math.exp %1317 : vector<8x4xf32>
    %cst_324 = arith.constant 1.000000e+00 : f32
    %1319 = vector.broadcast %cst_324 : f32 to vector<8x4xf32>
    %1320 = arith.addf %1319, %1318 : vector<8x4xf32>
    %1321 = tpu.reciprocal %1320 {approx = true} : vector<8x4xf32> -> vector<8x4xf32>
    %1322 = vector.extract_strided_slice %1321 {offsets = [0, 0], sizes = [8, 1], strides = [1, 1]} : vector<8x4xf32> to vector<8x1xf32>
    %1323 = vector.extract_strided_slice %1321 {offsets = [0, 1], sizes = [8, 1], strides = [1, 1]} : vector<8x4xf32> to vector<8x1xf32>
    %1324 = vector.extract_strided_slice %1321 {offsets = [0, 3], sizes = [8, 1], strides = [1, 1]} : vector<8x4xf32> to vector<8x1xf32>
    %1325 = vector.extract_strided_slice %1315 {offsets = [0, 2], sizes = [8, 1], strides = [1, 1]} : vector<8x4xf32> to vector<8x1xf32>
    %1326 = math.tanh %1325 : vector<8x1xf32>
    %1327 = arith.mulf %1323, %1299 : vector<8x1xf32>
    %1328 = arith.mulf %1322, %1326 : vector<8x1xf32>
    %1329 = arith.addf %1327, %1328 : vector<8x1xf32>
    %1330 = math.tanh %1329 : vector<8x1xf32>
    %1331 = arith.mulf %1324, %1330 : vector<8x1xf32>
    %c10_i32_325 = arith.constant 10 : i32
    %1332 = vector.broadcast %c10_i32_325 : i32 to vector<1x16xi32>
    %1333 = arith.cmpi eq, %672, %1332 : vector<1x16xi32>
    %cst_326 = arith.constant 0.000000e+00 : f32
    %1334 = vector.shape_cast %1333 : vector<1x16xi1> to vector<1x16xi1>
    %1335 = vector.broadcast %1334 : vector<1x16xi1> to vector<8x16xi1>
    %1336 = vector.shape_cast %1331 : vector<8x1xf32> to vector<8x1xf32>
    %1337 = vector.broadcast %1336 : vector<8x1xf32> to vector<8x16xf32>
    %1338 = vector.broadcast %cst_326 : f32 to vector<8x16xf32>
    %1339 = arith.select %1335, %1337, %1338 : vector<8x16xi1>, vector<8x16xf32>
    %1340 = arith.addf %1310, %1339 : vector<8x16xf32>
    %1341 = vector.extract_strided_slice %671 {offsets = [72, 0], sizes = [8, 4], strides = [1, 1]} : vector<128x4xf32> to vector<8x4xf32>
    %1342 = vector.broadcast %1331 : vector<8x1xf32> to vector<8x4xf32>
    %1343 = vector.broadcast %1157 : vector<1x4xf32> to vector<8x4xf32>
    %1344 = arith.mulf %1342, %1343 : vector<8x4xf32>
    %1345 = arith.addf %1341, %1344 : vector<8x4xf32>
    %cst_327 = arith.constant 0.000000e+00 : f32
    %1346 = vector.broadcast %cst_327 : f32 to vector<8x4xf32>
    %1347 = arith.subf %1346, %1345 : vector<8x4xf32>
    %1348 = math.exp %1347 : vector<8x4xf32>
    %cst_328 = arith.constant 1.000000e+00 : f32
    %1349 = vector.broadcast %cst_328 : f32 to vector<8x4xf32>
    %1350 = arith.addf %1349, %1348 : vector<8x4xf32>
    %1351 = tpu.reciprocal %1350 {approx = true} : vector<8x4xf32> -> vector<8x4xf32>
    %1352 = vector.extract_strided_slice %1351 {offsets = [0, 0], sizes = [8, 1], strides = [1, 1]} : vector<8x4xf32> to vector<8x1xf32>
    %1353 = vector.extract_strided_slice %1351 {offsets = [0, 1], sizes = [8, 1], strides = [1, 1]} : vector<8x4xf32> to vector<8x1xf32>
    %1354 = vector.extract_strided_slice %1351 {offsets = [0, 3], sizes = [8, 1], strides = [1, 1]} : vector<8x4xf32> to vector<8x1xf32>
    %1355 = vector.extract_strided_slice %1345 {offsets = [0, 2], sizes = [8, 1], strides = [1, 1]} : vector<8x4xf32> to vector<8x1xf32>
    %1356 = math.tanh %1355 : vector<8x1xf32>
    %1357 = arith.mulf %1353, %1329 : vector<8x1xf32>
    %1358 = arith.mulf %1352, %1356 : vector<8x1xf32>
    %1359 = arith.addf %1357, %1358 : vector<8x1xf32>
    %1360 = math.tanh %1359 : vector<8x1xf32>
    %1361 = arith.mulf %1354, %1360 : vector<8x1xf32>
    %c9_i32_329 = arith.constant 9 : i32
    %1362 = vector.broadcast %c9_i32_329 : i32 to vector<1x16xi32>
    %1363 = arith.cmpi eq, %672, %1362 : vector<1x16xi32>
    %cst_330 = arith.constant 0.000000e+00 : f32
    %1364 = vector.shape_cast %1363 : vector<1x16xi1> to vector<1x16xi1>
    %1365 = vector.broadcast %1364 : vector<1x16xi1> to vector<8x16xi1>
    %1366 = vector.shape_cast %1361 : vector<8x1xf32> to vector<8x1xf32>
    %1367 = vector.broadcast %1366 : vector<8x1xf32> to vector<8x16xf32>
    %1368 = vector.broadcast %cst_330 : f32 to vector<8x16xf32>
    %1369 = arith.select %1365, %1367, %1368 : vector<8x16xi1>, vector<8x16xf32>
    %1370 = arith.addf %1340, %1369 : vector<8x16xf32>
    %1371 = vector.extract_strided_slice %671 {offsets = [64, 0], sizes = [8, 4], strides = [1, 1]} : vector<128x4xf32> to vector<8x4xf32>
    %1372 = vector.broadcast %1361 : vector<8x1xf32> to vector<8x4xf32>
    %1373 = vector.broadcast %1157 : vector<1x4xf32> to vector<8x4xf32>
    %1374 = arith.mulf %1372, %1373 : vector<8x4xf32>
    %1375 = arith.addf %1371, %1374 : vector<8x4xf32>
    %cst_331 = arith.constant 0.000000e+00 : f32
    %1376 = vector.broadcast %cst_331 : f32 to vector<8x4xf32>
    %1377 = arith.subf %1376, %1375 : vector<8x4xf32>
    %1378 = math.exp %1377 : vector<8x4xf32>
    %cst_332 = arith.constant 1.000000e+00 : f32
    %1379 = vector.broadcast %cst_332 : f32 to vector<8x4xf32>
    %1380 = arith.addf %1379, %1378 : vector<8x4xf32>
    %1381 = tpu.reciprocal %1380 {approx = true} : vector<8x4xf32> -> vector<8x4xf32>
    %1382 = vector.extract_strided_slice %1381 {offsets = [0, 0], sizes = [8, 1], strides = [1, 1]} : vector<8x4xf32> to vector<8x1xf32>
    %1383 = vector.extract_strided_slice %1381 {offsets = [0, 1], sizes = [8, 1], strides = [1, 1]} : vector<8x4xf32> to vector<8x1xf32>
    %1384 = vector.extract_strided_slice %1381 {offsets = [0, 3], sizes = [8, 1], strides = [1, 1]} : vector<8x4xf32> to vector<8x1xf32>
    %1385 = vector.extract_strided_slice %1375 {offsets = [0, 2], sizes = [8, 1], strides = [1, 1]} : vector<8x4xf32> to vector<8x1xf32>
    %1386 = math.tanh %1385 : vector<8x1xf32>
    %1387 = arith.mulf %1383, %1359 : vector<8x1xf32>
    %1388 = arith.mulf %1382, %1386 : vector<8x1xf32>
    %1389 = arith.addf %1387, %1388 : vector<8x1xf32>
    %1390 = math.tanh %1389 : vector<8x1xf32>
    %1391 = arith.mulf %1384, %1390 : vector<8x1xf32>
    %c8_i32_333 = arith.constant 8 : i32
    %1392 = vector.broadcast %c8_i32_333 : i32 to vector<1x16xi32>
    %1393 = arith.cmpi eq, %672, %1392 : vector<1x16xi32>
    %cst_334 = arith.constant 0.000000e+00 : f32
    %1394 = vector.shape_cast %1393 : vector<1x16xi1> to vector<1x16xi1>
    %1395 = vector.broadcast %1394 : vector<1x16xi1> to vector<8x16xi1>
    %1396 = vector.shape_cast %1391 : vector<8x1xf32> to vector<8x1xf32>
    %1397 = vector.broadcast %1396 : vector<8x1xf32> to vector<8x16xf32>
    %1398 = vector.broadcast %cst_334 : f32 to vector<8x16xf32>
    %1399 = arith.select %1395, %1397, %1398 : vector<8x16xi1>, vector<8x16xf32>
    %1400 = arith.addf %1370, %1399 : vector<8x16xf32>
    %1401 = vector.extract_strided_slice %671 {offsets = [56, 0], sizes = [8, 4], strides = [1, 1]} : vector<128x4xf32> to vector<8x4xf32>
    %1402 = vector.broadcast %1391 : vector<8x1xf32> to vector<8x4xf32>
    %1403 = vector.broadcast %1157 : vector<1x4xf32> to vector<8x4xf32>
    %1404 = arith.mulf %1402, %1403 : vector<8x4xf32>
    %1405 = arith.addf %1401, %1404 : vector<8x4xf32>
    %cst_335 = arith.constant 0.000000e+00 : f32
    %1406 = vector.broadcast %cst_335 : f32 to vector<8x4xf32>
    %1407 = arith.subf %1406, %1405 : vector<8x4xf32>
    %1408 = math.exp %1407 : vector<8x4xf32>
    %cst_336 = arith.constant 1.000000e+00 : f32
    %1409 = vector.broadcast %cst_336 : f32 to vector<8x4xf32>
    %1410 = arith.addf %1409, %1408 : vector<8x4xf32>
    %1411 = tpu.reciprocal %1410 {approx = true} : vector<8x4xf32> -> vector<8x4xf32>
    %1412 = vector.extract_strided_slice %1411 {offsets = [0, 0], sizes = [8, 1], strides = [1, 1]} : vector<8x4xf32> to vector<8x1xf32>
    %1413 = vector.extract_strided_slice %1411 {offsets = [0, 1], sizes = [8, 1], strides = [1, 1]} : vector<8x4xf32> to vector<8x1xf32>
    %1414 = vector.extract_strided_slice %1411 {offsets = [0, 3], sizes = [8, 1], strides = [1, 1]} : vector<8x4xf32> to vector<8x1xf32>
    %1415 = vector.extract_strided_slice %1405 {offsets = [0, 2], sizes = [8, 1], strides = [1, 1]} : vector<8x4xf32> to vector<8x1xf32>
    %1416 = math.tanh %1415 : vector<8x1xf32>
    %1417 = arith.mulf %1413, %1389 : vector<8x1xf32>
    %1418 = arith.mulf %1412, %1416 : vector<8x1xf32>
    %1419 = arith.addf %1417, %1418 : vector<8x1xf32>
    %1420 = math.tanh %1419 : vector<8x1xf32>
    %1421 = arith.mulf %1414, %1420 : vector<8x1xf32>
    %c7_i32_337 = arith.constant 7 : i32
    %1422 = vector.broadcast %c7_i32_337 : i32 to vector<1x16xi32>
    %1423 = arith.cmpi eq, %672, %1422 : vector<1x16xi32>
    %cst_338 = arith.constant 0.000000e+00 : f32
    %1424 = vector.shape_cast %1423 : vector<1x16xi1> to vector<1x16xi1>
    %1425 = vector.broadcast %1424 : vector<1x16xi1> to vector<8x16xi1>
    %1426 = vector.shape_cast %1421 : vector<8x1xf32> to vector<8x1xf32>
    %1427 = vector.broadcast %1426 : vector<8x1xf32> to vector<8x16xf32>
    %1428 = vector.broadcast %cst_338 : f32 to vector<8x16xf32>
    %1429 = arith.select %1425, %1427, %1428 : vector<8x16xi1>, vector<8x16xf32>
    %1430 = arith.addf %1400, %1429 : vector<8x16xf32>
    %1431 = vector.extract_strided_slice %671 {offsets = [48, 0], sizes = [8, 4], strides = [1, 1]} : vector<128x4xf32> to vector<8x4xf32>
    %1432 = vector.broadcast %1421 : vector<8x1xf32> to vector<8x4xf32>
    %1433 = vector.broadcast %1157 : vector<1x4xf32> to vector<8x4xf32>
    %1434 = arith.mulf %1432, %1433 : vector<8x4xf32>
    %1435 = arith.addf %1431, %1434 : vector<8x4xf32>
    %cst_339 = arith.constant 0.000000e+00 : f32
    %1436 = vector.broadcast %cst_339 : f32 to vector<8x4xf32>
    %1437 = arith.subf %1436, %1435 : vector<8x4xf32>
    %1438 = math.exp %1437 : vector<8x4xf32>
    %cst_340 = arith.constant 1.000000e+00 : f32
    %1439 = vector.broadcast %cst_340 : f32 to vector<8x4xf32>
    %1440 = arith.addf %1439, %1438 : vector<8x4xf32>
    %1441 = tpu.reciprocal %1440 {approx = true} : vector<8x4xf32> -> vector<8x4xf32>
    %1442 = vector.extract_strided_slice %1441 {offsets = [0, 0], sizes = [8, 1], strides = [1, 1]} : vector<8x4xf32> to vector<8x1xf32>
    %1443 = vector.extract_strided_slice %1441 {offsets = [0, 1], sizes = [8, 1], strides = [1, 1]} : vector<8x4xf32> to vector<8x1xf32>
    %1444 = vector.extract_strided_slice %1441 {offsets = [0, 3], sizes = [8, 1], strides = [1, 1]} : vector<8x4xf32> to vector<8x1xf32>
    %1445 = vector.extract_strided_slice %1435 {offsets = [0, 2], sizes = [8, 1], strides = [1, 1]} : vector<8x4xf32> to vector<8x1xf32>
    %1446 = math.tanh %1445 : vector<8x1xf32>
    %1447 = arith.mulf %1443, %1419 : vector<8x1xf32>
    %1448 = arith.mulf %1442, %1446 : vector<8x1xf32>
    %1449 = arith.addf %1447, %1448 : vector<8x1xf32>
    %1450 = math.tanh %1449 : vector<8x1xf32>
    %1451 = arith.mulf %1444, %1450 : vector<8x1xf32>
    %c6_i32_341 = arith.constant 6 : i32
    %1452 = vector.broadcast %c6_i32_341 : i32 to vector<1x16xi32>
    %1453 = arith.cmpi eq, %672, %1452 : vector<1x16xi32>
    %cst_342 = arith.constant 0.000000e+00 : f32
    %1454 = vector.shape_cast %1453 : vector<1x16xi1> to vector<1x16xi1>
    %1455 = vector.broadcast %1454 : vector<1x16xi1> to vector<8x16xi1>
    %1456 = vector.shape_cast %1451 : vector<8x1xf32> to vector<8x1xf32>
    %1457 = vector.broadcast %1456 : vector<8x1xf32> to vector<8x16xf32>
    %1458 = vector.broadcast %cst_342 : f32 to vector<8x16xf32>
    %1459 = arith.select %1455, %1457, %1458 : vector<8x16xi1>, vector<8x16xf32>
    %1460 = arith.addf %1430, %1459 : vector<8x16xf32>
    %1461 = vector.extract_strided_slice %671 {offsets = [40, 0], sizes = [8, 4], strides = [1, 1]} : vector<128x4xf32> to vector<8x4xf32>
    %1462 = vector.broadcast %1451 : vector<8x1xf32> to vector<8x4xf32>
    %1463 = vector.broadcast %1157 : vector<1x4xf32> to vector<8x4xf32>
    %1464 = arith.mulf %1462, %1463 : vector<8x4xf32>
    %1465 = arith.addf %1461, %1464 : vector<8x4xf32>
    %cst_343 = arith.constant 0.000000e+00 : f32
    %1466 = vector.broadcast %cst_343 : f32 to vector<8x4xf32>
    %1467 = arith.subf %1466, %1465 : vector<8x4xf32>
    %1468 = math.exp %1467 : vector<8x4xf32>
    %cst_344 = arith.constant 1.000000e+00 : f32
    %1469 = vector.broadcast %cst_344 : f32 to vector<8x4xf32>
    %1470 = arith.addf %1469, %1468 : vector<8x4xf32>
    %1471 = tpu.reciprocal %1470 {approx = true} : vector<8x4xf32> -> vector<8x4xf32>
    %1472 = vector.extract_strided_slice %1471 {offsets = [0, 0], sizes = [8, 1], strides = [1, 1]} : vector<8x4xf32> to vector<8x1xf32>
    %1473 = vector.extract_strided_slice %1471 {offsets = [0, 1], sizes = [8, 1], strides = [1, 1]} : vector<8x4xf32> to vector<8x1xf32>
    %1474 = vector.extract_strided_slice %1471 {offsets = [0, 3], sizes = [8, 1], strides = [1, 1]} : vector<8x4xf32> to vector<8x1xf32>
    %1475 = vector.extract_strided_slice %1465 {offsets = [0, 2], sizes = [8, 1], strides = [1, 1]} : vector<8x4xf32> to vector<8x1xf32>
    %1476 = math.tanh %1475 : vector<8x1xf32>
    %1477 = arith.mulf %1473, %1449 : vector<8x1xf32>
    %1478 = arith.mulf %1472, %1476 : vector<8x1xf32>
    %1479 = arith.addf %1477, %1478 : vector<8x1xf32>
    %1480 = math.tanh %1479 : vector<8x1xf32>
    %1481 = arith.mulf %1474, %1480 : vector<8x1xf32>
    %c5_i32_345 = arith.constant 5 : i32
    %1482 = vector.broadcast %c5_i32_345 : i32 to vector<1x16xi32>
    %1483 = arith.cmpi eq, %672, %1482 : vector<1x16xi32>
    %cst_346 = arith.constant 0.000000e+00 : f32
    %1484 = vector.shape_cast %1483 : vector<1x16xi1> to vector<1x16xi1>
    %1485 = vector.broadcast %1484 : vector<1x16xi1> to vector<8x16xi1>
    %1486 = vector.shape_cast %1481 : vector<8x1xf32> to vector<8x1xf32>
    %1487 = vector.broadcast %1486 : vector<8x1xf32> to vector<8x16xf32>
    %1488 = vector.broadcast %cst_346 : f32 to vector<8x16xf32>
    %1489 = arith.select %1485, %1487, %1488 : vector<8x16xi1>, vector<8x16xf32>
    %1490 = arith.addf %1460, %1489 : vector<8x16xf32>
    %1491 = vector.extract_strided_slice %671 {offsets = [32, 0], sizes = [8, 4], strides = [1, 1]} : vector<128x4xf32> to vector<8x4xf32>
    %1492 = vector.broadcast %1481 : vector<8x1xf32> to vector<8x4xf32>
    %1493 = vector.broadcast %1157 : vector<1x4xf32> to vector<8x4xf32>
    %1494 = arith.mulf %1492, %1493 : vector<8x4xf32>
    %1495 = arith.addf %1491, %1494 : vector<8x4xf32>
    %cst_347 = arith.constant 0.000000e+00 : f32
    %1496 = vector.broadcast %cst_347 : f32 to vector<8x4xf32>
    %1497 = arith.subf %1496, %1495 : vector<8x4xf32>
    %1498 = math.exp %1497 : vector<8x4xf32>
    %cst_348 = arith.constant 1.000000e+00 : f32
    %1499 = vector.broadcast %cst_348 : f32 to vector<8x4xf32>
    %1500 = arith.addf %1499, %1498 : vector<8x4xf32>
    %1501 = tpu.reciprocal %1500 {approx = true} : vector<8x4xf32> -> vector<8x4xf32>
    %1502 = vector.extract_strided_slice %1501 {offsets = [0, 0], sizes = [8, 1], strides = [1, 1]} : vector<8x4xf32> to vector<8x1xf32>
    %1503 = vector.extract_strided_slice %1501 {offsets = [0, 1], sizes = [8, 1], strides = [1, 1]} : vector<8x4xf32> to vector<8x1xf32>
    %1504 = vector.extract_strided_slice %1501 {offsets = [0, 3], sizes = [8, 1], strides = [1, 1]} : vector<8x4xf32> to vector<8x1xf32>
    %1505 = vector.extract_strided_slice %1495 {offsets = [0, 2], sizes = [8, 1], strides = [1, 1]} : vector<8x4xf32> to vector<8x1xf32>
    %1506 = math.tanh %1505 : vector<8x1xf32>
    %1507 = arith.mulf %1503, %1479 : vector<8x1xf32>
    %1508 = arith.mulf %1502, %1506 : vector<8x1xf32>
    %1509 = arith.addf %1507, %1508 : vector<8x1xf32>
    %1510 = math.tanh %1509 : vector<8x1xf32>
    %1511 = arith.mulf %1504, %1510 : vector<8x1xf32>
    %c4_i32_349 = arith.constant 4 : i32
    %1512 = vector.broadcast %c4_i32_349 : i32 to vector<1x16xi32>
    %1513 = arith.cmpi eq, %672, %1512 : vector<1x16xi32>
    %cst_350 = arith.constant 0.000000e+00 : f32
    %1514 = vector.shape_cast %1513 : vector<1x16xi1> to vector<1x16xi1>
    %1515 = vector.broadcast %1514 : vector<1x16xi1> to vector<8x16xi1>
    %1516 = vector.shape_cast %1511 : vector<8x1xf32> to vector<8x1xf32>
    %1517 = vector.broadcast %1516 : vector<8x1xf32> to vector<8x16xf32>
    %1518 = vector.broadcast %cst_350 : f32 to vector<8x16xf32>
    %1519 = arith.select %1515, %1517, %1518 : vector<8x16xi1>, vector<8x16xf32>
    %1520 = arith.addf %1490, %1519 : vector<8x16xf32>
    %1521 = vector.extract_strided_slice %671 {offsets = [24, 0], sizes = [8, 4], strides = [1, 1]} : vector<128x4xf32> to vector<8x4xf32>
    %1522 = vector.broadcast %1511 : vector<8x1xf32> to vector<8x4xf32>
    %1523 = vector.broadcast %1157 : vector<1x4xf32> to vector<8x4xf32>
    %1524 = arith.mulf %1522, %1523 : vector<8x4xf32>
    %1525 = arith.addf %1521, %1524 : vector<8x4xf32>
    %cst_351 = arith.constant 0.000000e+00 : f32
    %1526 = vector.broadcast %cst_351 : f32 to vector<8x4xf32>
    %1527 = arith.subf %1526, %1525 : vector<8x4xf32>
    %1528 = math.exp %1527 : vector<8x4xf32>
    %cst_352 = arith.constant 1.000000e+00 : f32
    %1529 = vector.broadcast %cst_352 : f32 to vector<8x4xf32>
    %1530 = arith.addf %1529, %1528 : vector<8x4xf32>
    %1531 = tpu.reciprocal %1530 {approx = true} : vector<8x4xf32> -> vector<8x4xf32>
    %1532 = vector.extract_strided_slice %1531 {offsets = [0, 0], sizes = [8, 1], strides = [1, 1]} : vector<8x4xf32> to vector<8x1xf32>
    %1533 = vector.extract_strided_slice %1531 {offsets = [0, 1], sizes = [8, 1], strides = [1, 1]} : vector<8x4xf32> to vector<8x1xf32>
    %1534 = vector.extract_strided_slice %1531 {offsets = [0, 3], sizes = [8, 1], strides = [1, 1]} : vector<8x4xf32> to vector<8x1xf32>
    %1535 = vector.extract_strided_slice %1525 {offsets = [0, 2], sizes = [8, 1], strides = [1, 1]} : vector<8x4xf32> to vector<8x1xf32>
    %1536 = math.tanh %1535 : vector<8x1xf32>
    %1537 = arith.mulf %1533, %1509 : vector<8x1xf32>
    %1538 = arith.mulf %1532, %1536 : vector<8x1xf32>
    %1539 = arith.addf %1537, %1538 : vector<8x1xf32>
    %1540 = math.tanh %1539 : vector<8x1xf32>
    %1541 = arith.mulf %1534, %1540 : vector<8x1xf32>
    %c3_i32_353 = arith.constant 3 : i32
    %1542 = vector.broadcast %c3_i32_353 : i32 to vector<1x16xi32>
    %1543 = arith.cmpi eq, %672, %1542 : vector<1x16xi32>
    %cst_354 = arith.constant 0.000000e+00 : f32
    %1544 = vector.shape_cast %1543 : vector<1x16xi1> to vector<1x16xi1>
    %1545 = vector.broadcast %1544 : vector<1x16xi1> to vector<8x16xi1>
    %1546 = vector.shape_cast %1541 : vector<8x1xf32> to vector<8x1xf32>
    %1547 = vector.broadcast %1546 : vector<8x1xf32> to vector<8x16xf32>
    %1548 = vector.broadcast %cst_354 : f32 to vector<8x16xf32>
    %1549 = arith.select %1545, %1547, %1548 : vector<8x16xi1>, vector<8x16xf32>
    %1550 = arith.addf %1520, %1549 : vector<8x16xf32>
    %1551 = vector.extract_strided_slice %671 {offsets = [16, 0], sizes = [8, 4], strides = [1, 1]} : vector<128x4xf32> to vector<8x4xf32>
    %1552 = vector.broadcast %1541 : vector<8x1xf32> to vector<8x4xf32>
    %1553 = vector.broadcast %1157 : vector<1x4xf32> to vector<8x4xf32>
    %1554 = arith.mulf %1552, %1553 : vector<8x4xf32>
    %1555 = arith.addf %1551, %1554 : vector<8x4xf32>
    %cst_355 = arith.constant 0.000000e+00 : f32
    %1556 = vector.broadcast %cst_355 : f32 to vector<8x4xf32>
    %1557 = arith.subf %1556, %1555 : vector<8x4xf32>
    %1558 = math.exp %1557 : vector<8x4xf32>
    %cst_356 = arith.constant 1.000000e+00 : f32
    %1559 = vector.broadcast %cst_356 : f32 to vector<8x4xf32>
    %1560 = arith.addf %1559, %1558 : vector<8x4xf32>
    %1561 = tpu.reciprocal %1560 {approx = true} : vector<8x4xf32> -> vector<8x4xf32>
    %1562 = vector.extract_strided_slice %1561 {offsets = [0, 0], sizes = [8, 1], strides = [1, 1]} : vector<8x4xf32> to vector<8x1xf32>
    %1563 = vector.extract_strided_slice %1561 {offsets = [0, 1], sizes = [8, 1], strides = [1, 1]} : vector<8x4xf32> to vector<8x1xf32>
    %1564 = vector.extract_strided_slice %1561 {offsets = [0, 3], sizes = [8, 1], strides = [1, 1]} : vector<8x4xf32> to vector<8x1xf32>
    %1565 = vector.extract_strided_slice %1555 {offsets = [0, 2], sizes = [8, 1], strides = [1, 1]} : vector<8x4xf32> to vector<8x1xf32>
    %1566 = math.tanh %1565 : vector<8x1xf32>
    %1567 = arith.mulf %1563, %1539 : vector<8x1xf32>
    %1568 = arith.mulf %1562, %1566 : vector<8x1xf32>
    %1569 = arith.addf %1567, %1568 : vector<8x1xf32>
    %1570 = math.tanh %1569 : vector<8x1xf32>
    %1571 = arith.mulf %1564, %1570 : vector<8x1xf32>
    %c2_i32_357 = arith.constant 2 : i32
    %1572 = vector.broadcast %c2_i32_357 : i32 to vector<1x16xi32>
    %1573 = arith.cmpi eq, %672, %1572 : vector<1x16xi32>
    %cst_358 = arith.constant 0.000000e+00 : f32
    %1574 = vector.shape_cast %1573 : vector<1x16xi1> to vector<1x16xi1>
    %1575 = vector.broadcast %1574 : vector<1x16xi1> to vector<8x16xi1>
    %1576 = vector.shape_cast %1571 : vector<8x1xf32> to vector<8x1xf32>
    %1577 = vector.broadcast %1576 : vector<8x1xf32> to vector<8x16xf32>
    %1578 = vector.broadcast %cst_358 : f32 to vector<8x16xf32>
    %1579 = arith.select %1575, %1577, %1578 : vector<8x16xi1>, vector<8x16xf32>
    %1580 = arith.addf %1550, %1579 : vector<8x16xf32>
    %1581 = vector.extract_strided_slice %671 {offsets = [8, 0], sizes = [8, 4], strides = [1, 1]} : vector<128x4xf32> to vector<8x4xf32>
    %1582 = vector.broadcast %1571 : vector<8x1xf32> to vector<8x4xf32>
    %1583 = vector.broadcast %1157 : vector<1x4xf32> to vector<8x4xf32>
    %1584 = arith.mulf %1582, %1583 : vector<8x4xf32>
    %1585 = arith.addf %1581, %1584 : vector<8x4xf32>
    %cst_359 = arith.constant 0.000000e+00 : f32
    %1586 = vector.broadcast %cst_359 : f32 to vector<8x4xf32>
    %1587 = arith.subf %1586, %1585 : vector<8x4xf32>
    %1588 = math.exp %1587 : vector<8x4xf32>
    %cst_360 = arith.constant 1.000000e+00 : f32
    %1589 = vector.broadcast %cst_360 : f32 to vector<8x4xf32>
    %1590 = arith.addf %1589, %1588 : vector<8x4xf32>
    %1591 = tpu.reciprocal %1590 {approx = true} : vector<8x4xf32> -> vector<8x4xf32>
    %1592 = vector.extract_strided_slice %1591 {offsets = [0, 0], sizes = [8, 1], strides = [1, 1]} : vector<8x4xf32> to vector<8x1xf32>
    %1593 = vector.extract_strided_slice %1591 {offsets = [0, 1], sizes = [8, 1], strides = [1, 1]} : vector<8x4xf32> to vector<8x1xf32>
    %1594 = vector.extract_strided_slice %1591 {offsets = [0, 3], sizes = [8, 1], strides = [1, 1]} : vector<8x4xf32> to vector<8x1xf32>
    %1595 = vector.extract_strided_slice %1585 {offsets = [0, 2], sizes = [8, 1], strides = [1, 1]} : vector<8x4xf32> to vector<8x1xf32>
    %1596 = math.tanh %1595 : vector<8x1xf32>
    %1597 = arith.mulf %1593, %1569 : vector<8x1xf32>
    %1598 = arith.mulf %1592, %1596 : vector<8x1xf32>
    %1599 = arith.addf %1597, %1598 : vector<8x1xf32>
    %1600 = math.tanh %1599 : vector<8x1xf32>
    %1601 = arith.mulf %1594, %1600 : vector<8x1xf32>
    %c1_i32_361 = arith.constant 1 : i32
    %1602 = vector.broadcast %c1_i32_361 : i32 to vector<1x16xi32>
    %1603 = arith.cmpi eq, %672, %1602 : vector<1x16xi32>
    %cst_362 = arith.constant 0.000000e+00 : f32
    %1604 = vector.shape_cast %1603 : vector<1x16xi1> to vector<1x16xi1>
    %1605 = vector.broadcast %1604 : vector<1x16xi1> to vector<8x16xi1>
    %1606 = vector.shape_cast %1601 : vector<8x1xf32> to vector<8x1xf32>
    %1607 = vector.broadcast %1606 : vector<8x1xf32> to vector<8x16xf32>
    %1608 = vector.broadcast %cst_362 : f32 to vector<8x16xf32>
    %1609 = arith.select %1605, %1607, %1608 : vector<8x16xi1>, vector<8x16xf32>
    %1610 = arith.addf %1580, %1609 : vector<8x16xf32>
    %1611 = vector.extract_strided_slice %671 {offsets = [0, 0], sizes = [8, 4], strides = [1, 1]} : vector<128x4xf32> to vector<8x4xf32>
    %1612 = vector.broadcast %1601 : vector<8x1xf32> to vector<8x4xf32>
    %1613 = vector.broadcast %1157 : vector<1x4xf32> to vector<8x4xf32>
    %1614 = arith.mulf %1612, %1613 : vector<8x4xf32>
    %1615 = arith.addf %1611, %1614 : vector<8x4xf32>
    %cst_363 = arith.constant 0.000000e+00 : f32
    %1616 = vector.broadcast %cst_363 : f32 to vector<8x4xf32>
    %1617 = arith.subf %1616, %1615 : vector<8x4xf32>
    %1618 = math.exp %1617 : vector<8x4xf32>
    %cst_364 = arith.constant 1.000000e+00 : f32
    %1619 = vector.broadcast %cst_364 : f32 to vector<8x4xf32>
    %1620 = arith.addf %1619, %1618 : vector<8x4xf32>
    %1621 = tpu.reciprocal %1620 {approx = true} : vector<8x4xf32> -> vector<8x4xf32>
    %1622 = vector.extract_strided_slice %1621 {offsets = [0, 0], sizes = [8, 1], strides = [1, 1]} : vector<8x4xf32> to vector<8x1xf32>
    %1623 = vector.extract_strided_slice %1621 {offsets = [0, 1], sizes = [8, 1], strides = [1, 1]} : vector<8x4xf32> to vector<8x1xf32>
    %1624 = vector.extract_strided_slice %1621 {offsets = [0, 3], sizes = [8, 1], strides = [1, 1]} : vector<8x4xf32> to vector<8x1xf32>
    %1625 = vector.extract_strided_slice %1615 {offsets = [0, 2], sizes = [8, 1], strides = [1, 1]} : vector<8x4xf32> to vector<8x1xf32>
    %1626 = math.tanh %1625 : vector<8x1xf32>
    %1627 = arith.mulf %1623, %1599 : vector<8x1xf32>
    %1628 = arith.mulf %1622, %1626 : vector<8x1xf32>
    %1629 = arith.addf %1627, %1628 : vector<8x1xf32>
    %1630 = math.tanh %1629 : vector<8x1xf32>
    %1631 = arith.mulf %1624, %1630 : vector<8x1xf32>
    %c0_i32_365 = arith.constant 0 : i32
    %1632 = vector.broadcast %c0_i32_365 : i32 to vector<1x16xi32>
    %1633 = arith.cmpi eq, %672, %1632 : vector<1x16xi32>
    %cst_366 = arith.constant 0.000000e+00 : f32
    %1634 = vector.shape_cast %1633 : vector<1x16xi1> to vector<1x16xi1>
    %1635 = vector.broadcast %1634 : vector<1x16xi1> to vector<8x16xi1>
    %1636 = vector.shape_cast %1631 : vector<8x1xf32> to vector<8x1xf32>
    %1637 = vector.broadcast %1636 : vector<8x1xf32> to vector<8x16xf32>
    %1638 = vector.broadcast %cst_366 : f32 to vector<8x16xf32>
    %1639 = arith.select %1635, %1637, %1638 : vector<8x16xi1>, vector<8x16xf32>
    %1640 = arith.addf %1610, %1639 : vector<8x16xf32>
    %1641 = arith.addf %1156, %1640 : vector<8x16xf32>
    %c0_367 = arith.constant 0 : index
    %c0_368 = arith.constant 0 : index
    %1642 = vector.load %arg16[%c0_367, %c0_368] : memref<8x16xf32, #tpu.memory_space<vmem>>, vector<8x16xf32>
    tpu.vector_store %arg16[%c0_367, %c0_368], %1641 {strides = array<i32>} : memref<8x16xf32, #tpu.memory_space<vmem>>, vector<8x16xf32>,
    %c0_369 = arith.constant 0 : index
    %c0_370 = arith.constant 0 : index
    %1643 = vector.load %arg14[%c0_369, %c0_370] : memref<16x64xf32, #tpu.memory_space<vmem>>, vector<16x64xf32>
    %cst_371 = arith.constant dense<0.000000e+00> : vector<8x64xf32>
    %1644 = tpu.matmul %1641, %1643, %cst_371 {dimension_numbers = #tpu.dot_dimension_numbers<[1], [0], [0], [1], [0, 0, 1, 1], [], []>} : vector<8x16xf32>, vector<16x64xf32>, vector<8x64xf32> -> vector<8x64xf32>
    %c0_372 = arith.constant 0 : index
    %c0_373 = arith.constant 0 : index
    %1645 = vector.load %arg15[%c0_372, %c0_373] : memref<1x64xf32, #tpu.memory_space<vmem>>, vector<1x64xf32>
    %1646 = vector.broadcast %1645 : vector<1x64xf32> to vector<8x64xf32>
    %1647 = arith.addf %1644, %1646 : vector<8x64xf32>
    %c0_374 = arith.constant 0 : index
    %c0_375 = arith.constant 0 : index
    %1648 = vector.load %arg17[%c0_374, %c0_375] : memref<8x64xf32, #tpu.memory_space<vmem>>, vector<8x64xf32>
    tpu.vector_store %arg17[%c0_374, %c0_375], %1647 {strides = array<i32>} : memref<8x64xf32, #tpu.memory_space<vmem>>, vector<8x64xf32>,
    return
  }
  func.func @transform_0(%arg0: i32) -> (i32, i32) {
    %c0_i32 = arith.constant 0 : i32
    %c0_i32_0 = arith.constant 0 : i32
    %c0_i32_1 = arith.constant 0 : i32
    return %c0_i32, %c0_i32_0 : i32, i32
  }
  func.func @transform_1(%arg0: i32) -> (i32, i32) {
    %c0_i32 = arith.constant 0 : i32
    %c0_i32_0 = arith.constant 0 : i32
    %c0_i32_1 = arith.constant 0 : i32
    return %c0_i32, %c0_i32_0 : i32, i32
  }
  func.func @transform_2(%arg0: i32) -> (i32, i32) {
    %c0_i32 = arith.constant 0 : i32
    %c0_i32_0 = arith.constant 0 : i32
    %c0_i32_1 = arith.constant 0 : i32
    return %c0_i32, %c0_i32_0 : i32, i32
  }
  func.func @transform_3(%arg0: i32) -> (i32, i32) {
    %c0_i32 = arith.constant 0 : i32
    %c0_i32_0 = arith.constant 0 : i32
    %c0_i32_1 = arith.constant 0 : i32
    return %c0_i32, %c0_i32_0 : i32, i32
  }
  func.func @transform_4(%arg0: i32) -> (i32, i32) {
    %c0_i32 = arith.constant 0 : i32
    %c0_i32_0 = arith.constant 0 : i32
    %c0_i32_1 = arith.constant 0 : i32
    return %c0_i32, %c0_i32_0 : i32, i32
  }
  func.func @transform_5(%arg0: i32) -> (i32, i32) {
    %c0_i32 = arith.constant 0 : i32
    %c0_i32_0 = arith.constant 0 : i32
    %c0_i32_1 = arith.constant 0 : i32
    return %c0_i32, %c0_i32_0 : i32, i32
  }
  func.func @transform_6(%arg0: i32) -> (i32, i32) {
    %c0_i32 = arith.constant 0 : i32
    %c0_i32_0 = arith.constant 0 : i32
    %c0_i32_1 = arith.constant 0 : i32
    return %c0_i32, %c0_i32_0 : i32, i32
  }
  func.func @transform_7(%arg0: i32) -> (i32, i32) {
    %c0_i32 = arith.constant 0 : i32
    %c0_i32_0 = arith.constant 0 : i32
    %c0_i32_1 = arith.constant 0 : i32
    return %c0_i32, %c0_i32_0 : i32, i32
  }
  func.func @transform_8(%arg0: i32) -> (i32, i32) {
    %c0_i32 = arith.constant 0 : i32
    %c0_i32_0 = arith.constant 0 : i32
    %c0_i32_1 = arith.constant 0 : i32
    return %c0_i32, %c0_i32_0 : i32, i32
  }
  func.func @transform_9(%arg0: i32) -> (i32, i32) {
    %c0_i32 = arith.constant 0 : i32
    %c0_i32_0 = arith.constant 0 : i32
    %c0_i32_1 = arith.constant 0 : i32
    return %c0_i32, %c0_i32_0 : i32, i32
  }
  func.func @transform_10(%arg0: i32) -> (i32, i32) {
    %c0_i32 = arith.constant 0 : i32
    %c0_i32_0 = arith.constant 0 : i32
    %c0_i32_1 = arith.constant 0 : i32
    return %c0_i32, %c0_i32_0 : i32, i32
  }
  func.func @transform_11(%arg0: i32) -> (i32, i32) {
    %c0_i32 = arith.constant 0 : i32
    %c0_i32_0 = arith.constant 0 : i32
    %c0_i32_1 = arith.constant 0 : i32
    return %c0_i32, %c0_i32_0 : i32, i32
  }
  func.func @transform_12(%arg0: i32) -> (i32, i32) {
    %c0_i32 = arith.constant 0 : i32
    %c0_i32_0 = arith.constant 0 : i32
    %c0_i32_1 = arith.constant 0 : i32
    return %c0_i32, %c0_i32_0 : i32, i32
  }
  func.func @transform_13(%arg0: i32) -> (i32, i32) {
    %c0_i32 = arith.constant 0 : i32
    %c0_i32_0 = arith.constant 0 : i32
    %c0_i32_1 = arith.constant 0 : i32
    return %c0_i32, %c0_i32_0 : i32, i32
  }
  func.func @transform_14(%arg0: i32) -> (i32, i32) {
    %c0_i32 = arith.constant 0 : i32
    %c0_i32_0 = arith.constant 0 : i32
    %c0_i32_1 = arith.constant 0 : i32
    return %c0_i32, %c0_i32_0 : i32, i32
  }
  func.func @transform_15(%arg0: i32) -> (i32, i32) {
    %c0_i32 = arith.constant 0 : i32
    %c0_i32_0 = arith.constant 0 : i32
    %c0_i32_1 = arith.constant 0 : i32
    return %c0_i32, %c0_i32_0 : i32, i32
  }
  func.func @transform_16(%arg0: i32) -> (i32, i32) {
    %c0_i32 = arith.constant 0 : i32
    %c0_i32_0 = arith.constant 0 : i32
    %c0_i32_1 = arith.constant 0 : i32
    return %c0_i32, %c0_i32_0 : i32, i32
  }
}

</mosaic_0001>

<bundles_post_ra>
// kernel: tae_forward.1
= control target key start
LH: loop header
LB: loop body
LE: loop exit
PB: predicated region body
PF: predicated region fallthrough
CT: control target
= control target key end

     0   :  { %v7353_v3 = vmov 0.0   ;;  %vm143_vm0 = vcmask 1041408   ;;  %vm94_vm1 = vcmask 408576   ;;  %v84_v57 = vlaneseq  ;;  %s7355_s24 = smov 50   ;;  %s7356_s18 = smov 100   ;;  %s9206_s1 = inlined_call_operand.vmem [shape: f32[50,200], index: 1, kind: input, shape index: {}]   ;;  %s9207_s2 = inlined_call_operand.vmem [shape: f32[50,200], index: 2, kind: input, shape index: {}]   ;;  %s9208_s0 = inlined_call_operand.vmem [shape: f32[128,50], index: 0, kind: input, shape index: {}]   ;;  %s9209_s3 = inlined_call_operand.vmem [shape: f32[1,200], index: 3, kind: input, shape index: {}]   ;;  %s9210_s4 = inlined_call_operand.vmem [shape: f32[50,200], index: 4, kind: input, shape index: {}]   ;;  %s9211_s6 = inlined_call_operand.vmem [shape: f32[1,200], index: 6, kind: input, shape index: {}]   ;;  %s9212_s5 = inlined_call_operand.vmem [shape: f32[50,200], index: 5, kind: input, shape index: {}]   ;;  %s9213_s7 = inlined_call_operand.vmem [shape: f32[50,4], index: 7, kind: input, shape index: {}]   ;;  %s9214_s10 = inlined_call_operand.vmem [shape: f32[50,4], index: 10, kind: input, shape index: {}]   ;;  %s9215_s8 = inlined_call_operand.vmem [shape: f32[1,4], index: 8, kind: input, shape index: {}]   ;;  %s9216_s9 = inlined_call_operand.vmem [shape: f32[1,4], index: 9, kind: input, shape index: {}]   ;;  %s9217_s12 = inlined_call_operand.vmem [shape: f32[1,4], index: 12, kind: input, shape index: {}]   ;;  %s9218_s11 = inlined_call_operand.vmem [shape: f32[1,4], index: 11, kind: input, shape index: {}]   ;;  %s9219_s13 = inlined_call_operand.vmem [shape: f32[16,64], index: 13, kind: input, shape index: {}]   ;;  %s9220_s15 = inlined_call_operand.vmem [shape: f32[8,16], index: 15, kind: output, shape index: {0}]   ;;  %s9221_s14 = inlined_call_operand.vmem [shape: f32[1,64], index: 14, kind: input, shape index: {}]   ;;  %s9222_s16 = inlined_call_operand.vmem [shape: f32[8,64], index: 16, kind: output, shape index: {1}]  }
   0x1   :  { %9224 = sst [smem:[#allocation6_spill]] %s9206_s1  ;;  %214 = vmatprep.mubr.f32.mxu0 %v7353_v3  ;;  %440 = vmatprep.mubr.f32.mxu1 %v7353_v3  ;;  %v570_v20 = vld [vmem:[%s9207_s2 + $0x8] sm:$0xff]  ;;  %v572_v21 = vld [vmem:[%s9207_s2 + $0x18] sm:$0xff]  ;;  %v569_v22 = vld [vmem:[%s9207_s2] sm:$0xff]  ;;  %vm312_vm2 = vcmask 588800   ;;  %vm686_vm3 = vcmask 228352  }
   0x2   :  { %s9225_s23 = sld [smem:[#allocation6_spill]]  ;;  %v571_v23 = vld [vmem:[%s9207_s2 + $0x10] sm:$0xff]  ;;  %v574_v24 = vld [vmem:[%s9207_s2 + $0x28] sm:$0xff]  ;;  %v576_v25 = vld [vmem:[%s9207_s2 + $0x38] sm:$0xff]  ;;  %v7512_v27 = vpack.c.bf16 %v572_v21, %v570_v20  ;;  %v7705_v58 = vshrl.u32 %v84_v57, 7  ;;  %vm7363_vm4 = vmmov 0  }
   0x3   :  { %v7517_v28 = vld [vmem:[%s9208_s0] sm:$0xff]  ;;  %v7519_v29 = vpack.c.bf16 %v571_v23, %v569_v22  ;;  %v7521_v30 = vpack.c.bf16 %v576_v25, %v574_v24  ;;  %v575_v32 = vld [vmem:[%s9207_s2 + $0x30] sm:$0xff]  ;;  %v578_v33 = vld [vmem:[%s9207_s2 + $0x48] sm:$0xff] }
   0x4   :  { %v573_v31 = vld [vmem:[%s9207_s2 + $0x20] sm:$0xff]  ;;  %v580_v34 = vld [vmem:[%s9207_s2 + $0x58] sm:$0xff]  ;;  %v7544_v35 = vld [vmem:[%s9208_s0 + $0x8] sm:$0xff]  ;;  %v86_v59 = vsub.s32 0, %v7705_v58  ;;  %v90_v61 = vsub.s32 1, %v7705_v58 }
   0x5   :  { %v7546_v36 = vpack.c.bf16 %v575_v32, %v573_v31  ;;  %v7549_v37 = vpack.c.bf16 %v580_v34, %v578_v33  ;;  %v577_v38 = vld [vmem:[%s9207_s2 + $0x40] sm:$0xff]  ;;  %v579_v39 = vld [vmem:[%s9207_s2 + $0x50] sm:$0xff]  ;;  %v7572_v42 = vld [vmem:[%s9207_s2 + $0x68] sm:$0x3] }
   0x6   :  { %v7563_v40 = vld [vmem:[%s9208_s0 + $0x10] sm:$0xff]  ;;  %v7566_v41 = vpack.c.bf16 %v579_v39, %v577_v38  ;;  %v7580_v43 = vld [vmem:[%s9208_s0 + $0x18] sm:$0xff]  ;;  %v7588_v44 = vld [vmem:[%s9207_s2 + $0x60] sm:$0x3] }
   0x7   :  { %v7596_v45 = vld [vmem:[%s9208_s0 + $0x20] sm:$0xff]  ;;  %v7607_v46 = vld [vmem:[%s9208_s0 + $0x28] sm:$0xff]  ;;  %v7615_v47 = vld [vmem:[%s9208_s0 + $0x30] sm:$0xff] }
   0x8   :  { %v69_v0 = vld [vmem:[%s9225_s23 + $0x8] sm:$0xff]  ;;  %v71_v1 = vld [vmem:[%s9225_s23 + $0x18] sm:$0xff]  ;;  %v68_v2 = vld [vmem:[%s9225_s23] sm:$0xff] }
   0x9   :  { %v6194_v4 = vpack.c.bf16 %v71_v1, %v69_v0  ;;  %v70_v5 = vld [vmem:[%s9225_s23 + $0x10] sm:$0xff]  ;;  %v73_v6 = vld [vmem:[%s9225_s23 + $0x28] sm:$0xff]  ;;  %v75_v7 = vld [vmem:[%s9225_s23 + $0x38] sm:$0xff] }
   0xa   :  { %v6196_v8 = vpack.c.bf16 %v70_v5, %v68_v2  ;;  %v6198_v9 = vpack.c.bf16 %v75_v7, %v73_v6  ;;  %v72_v10 = vld [vmem:[%s9225_s23 + $0x20] sm:$0xff]  ;;  %v74_v11 = vld [vmem:[%s9225_s23 + $0x30] sm:$0xff]  ;;  %v77_v12 = vld [vmem:[%s9225_s23 + $0x48] sm:$0xff] }
   0xb   :  { %6195 = vmatprep.subr.bf16.mxu0 %v6194_v4  ;;  %v79_v13 = vld [vmem:[%s9225_s23 + $0x58] sm:$0xff]  ;;  %v6200_v14 = vpack.c.bf16 %v74_v11, %v72_v10  ;;  %v76_v16 = vld [vmem:[%s9225_s23 + $0x40] sm:$0xff]  ;;  %v78_v17 = vld [vmem:[%s9225_s23 + $0x50] sm:$0xff] }
   0xc   :  { %6197 = vmatpush1.bf16.msra.mxu0 %v6196_v8  ;;  %v6202_v15 = vpack.c.bf16 %v79_v13, %v77_v12  ;;  %v6204_v18 = vpack.c.bf16 %v78_v17, %v76_v16  ;;  %v81_v19 = vld [vmem:[%s9225_s23 + $0x68] sm:$0x3]  ;;  %v80_v26 = vld [vmem:[%s9225_s23 + $0x60] sm:$0x3]  ;;  %v7623_v48 = vld [vmem:[%s9208_s0 + $0x38] sm:$0xff] }
   0xd   :  { %6199 = vmatprep.subr.bf16.mxu0 %v6198_v9  ;;  %v7631_v49 = vld [vmem:[%s9208_s0 + $0x40] sm:$0xff]  ;;  %v7639_v50 = vld [vmem:[%s9208_s0 + $0x48] sm:$0xff]  ;;  %v7647_v51 = vld [vmem:[%s9208_s0 + $0x50] sm:$0xff] }
   0xe   :  { %v7655_v52 = vld [vmem:[%s9208_s0 + $0x58] sm:$0xff]  ;;  %v7663_v53 = vld [vmem:[%s9208_s0 + $0x60] sm:$0xff]  ;;  %v7671_v54 = vld [vmem:[%s9208_s0 + $0x68] sm:$0xff] }
   0xf   :  { %v7679_v55 = vld [vmem:[%s9208_s0 + $0x70] sm:$0xff]  ;;  %v7687_v56 = vld [vmem:[%s9208_s0 + $0x78] sm:$0xff]  ;;  %v82_v60 = vld [vmem:[%s9209_s3] sm:$0x3]  ;;  %s7354_s3 = smov 28   ;;  %s7361_s0 = smov 2  }
  0x10   :  { %6201 = vmatpush1.bf16.msra.mxu0 %v6200_v14  ;;  %v7714_v62 = vrot.slane %v82_v60, %v86_v59  ;;  %v7718_v63 = vrot.slane %v82_v60, %v90_v61 }
  0x11   :  { %6203 = vmatprep.subr.bf16.mxu0 %v6202_v15 }
  0x14   :  { %6205 = vmatpush1.bf16.msra.mxu0 %v6204_v18 }
  0x15   :  { %5892 = vmatprep.subr.msk.mxu0 %vm143_vm0, %v81_v19 }
  0x18   :  { %5893 = vmatpush1.msk.msra.mxu0 %vm143_vm0, %v80_v26 }
  0x19   :  { %5894 = vmatmul.mubr.msk.f32.vlgmr.msra.gmra.mrb[0].mxu0 %vm94_vm1, %v7517_v28  ;;  %6219 = vmatprep.subr.bf16.mxu0 %v7512_v27 }
  0x1a   :  { %6221 = vmatpush1.bf16.msra.mxu0 %v7519_v29  ;;  %220 = vmatprep.mubr.f32.mxu0 %v7353_v3 }
  0x1b   :  { %6223 = vmatprep.subr.bf16.mxu0 %v7521_v30 }
  0x1d   :  { %5895 = vmatmul.mubr.msk.f32.gmra.mrb[2].mxu0 %vm94_vm1, %v7544_v35 }
  0x1e   :  { %226 = vmatprep.mubr.f32.mxu0 %v7353_v3  ;;  %6225 = vmatpush1.bf16.msra.mxu0 %v7546_v36 }
  0x1f   :  { %6227 = vmatprep.subr.bf16.mxu0 %v7549_v37 }
  0x21   :  { %5896 = vmatmul.mubr.msk.f32.gmra.mrb[4].mxu0 %vm94_vm1, %v7563_v40 }
  0x22   :  { %232 = vmatprep.mubr.f32.mxu0 %v7353_v3  ;;  %6229 = vmatpush1.bf16.msra.mxu0 %v7566_v41 }
  0x23   :  { %5928 = vmatprep.subr.msk.mxu0 %vm143_vm0, %v7572_v42 }
  0x25   :  { %5897 = vmatmul.mubr.msk.f32.gmra.mrb[6].mxu0 %vm94_vm1, %v7580_v43 }
  0x26   :  { %238 = vmatprep.mubr.f32.mxu0 %v7353_v3  ;;  %5929 = vmatpush1.msk.msra.mxu0 %vm143_vm0, %v7588_v44 }
  0x27   :  { %6243 = vmatprep.subr.bf16.mxu0 %v7512_v27 }
  0x29   :  { %5898 = vmatmul.mubr.msk.f32.gmra.mrb[8].mxu0 %vm94_vm1, %v7596_v45 }
  0x2a   :  { %244 = vmatprep.mubr.f32.mxu0 %v7353_v3 }
  0x2d   :  { %5899 = vmatmul.mubr.msk.f32.gmra.mrb[10].mxu0 %vm94_vm1, %v7607_v46 }
  0x2e   :  { %250 = vmatprep.mubr.f32.mxu0 %v7353_v3 }
  0x31   :  { %5900 = vmatmul.mubr.msk.f32.gmra.mrb[12].mxu0 %vm94_vm1, %v7615_v47 }
  0x32   :  { %256 = vmatprep.mubr.f32.mxu0 %v7353_v3 }
  0x35   :  { %5901 = vmatmul.mubr.msk.f32.gmra.mrb[14].mxu0 %vm94_vm1, %v7623_v48 }
  0x36   :  { %262 = vmatprep.mubr.f32.mxu0 %v7353_v3 }
  0x39   :  { %5902 = vmatmul.mubr.msk.f32.gmra.mrb[16].mxu0 %vm94_vm1, %v7631_v49 }
  0x3a   :  { %268 = vmatprep.mubr.f32.mxu0 %v7353_v3 }
  0x3d   :  { %5903 = vmatmul.mubr.msk.f32.gmra.mrb[18].mxu0 %vm94_vm1, %v7639_v50 }
  0x3e   :  { %274 = vmatprep.mubr.f32.mxu0 %v7353_v3 }
  0x41   :  { %5904 = vmatmul.mubr.msk.f32.gmra.mrb[20].mxu0 %vm94_vm1, %v7647_v51 }
  0x42   :  { %280 = vmatprep.mubr.f32.mxu0 %v7353_v3 }
  0x45   :  { %5905 = vmatmul.mubr.msk.f32.gmra.mrb[22].mxu0 %vm94_vm1, %v7655_v52 }
  0x46   :  { %286 = vmatprep.mubr.f32.mxu0 %v7353_v3 }
  0x49   :  { %5906 = vmatmul.mubr.msk.f32.gmra.mrb[24].mxu0 %vm94_vm1, %v7663_v53 }
  0x4a   :  { %292 = vmatprep.mubr.f32.mxu0 %v7353_v3 }
  0x4d   :  { %5907 = vmatmul.mubr.msk.f32.gmra.mrb[26].mxu0 %vm94_vm1, %v7671_v54 }
  0x4e   :  { %298 = vmatprep.mubr.f32.mxu0 %v7353_v3 }
  0x51   :  { %5908 = vmatmul.mubr.msk.f32.gmra.mrb[28].mxu0 %vm94_vm1, %v7679_v55 }
  0x52   :  { %304 = vmatprep.mubr.f32.mxu0 %v7353_v3 }
  0x55   :  { %5909 = vmatmul.mubr.msk.f32.gmra.mrb[30].mxu0 %vm94_vm1, %v7687_v56 }
  0x56   :  { %658 = vmatprep.mubr.f32.mxu0 %v7353_v3 }
  0x59   :  { %659 = vmatmul.mubr.f32.vlgmr.msra.gmra.mrb[32].mxu0 %v7353_v3 }
  0x5a   :  { %6245 = vmatpush1.bf16.msra.mxu0 %v7519_v29  ;;  %889 = vmatprep.mubr.f32.mxu0 %v7353_v3 }
  0x5b   :  { %6247 = vmatprep.subr.bf16.mxu0 %v7521_v30 }
  0x5e   :  { %6249 = vmatpush1.bf16.msra.mxu0 %v7546_v36 }
  0x5f   :  { %6251 = vmatprep.subr.bf16.mxu0 %v7549_v37 }
  0x62   :  { %6253 = vmatpush1.bf16.msra.mxu0 %v7566_v41 }
  0x63   :  { %5933 = vmatprep.subr.msk.mxu0 %vm143_vm0, %v7572_v42 }
  0x66   :  { %5934 = vmatpush1.msk.msra.mxu0 %vm143_vm0, %v7588_v44 }
  0x67   :  { %6267 = vmatprep.subr.bf16.mxu0 %v7512_v27 }
  0xec   :  { %v216_v0 = vpop.f32.mrb[0].mxu0 }
  0xed   :  { %v7721_v1 = vadd.f32 %v216_v0, %v7714_v62  ;;  %v218_v2 = vpop.f32.mrb[1].mxu0 }
  0xee   :  { %v219_v4 = vadd.f32 %v218_v2, %v7718_v63 }
  0xf0   :  { %313 = vst.msk [vmem:[#allocation2 + $0x8] sm:$0xff] %vm312_vm2, %v219_v4  ;;  %v222_v5 = vpop.f32.mrb[2].mxu0 }
  0xf1   :  { %v7726_v6 = vadd.f32 %v222_v5, %v7714_v62  ;;  %v224_v7 = vpop.f32.mrb[3].mxu0 }
  0xf2   :  { %v225_v8 = vadd.f32 %v224_v7, %v7718_v63 }
  0xf4   :  { %315 = vst.msk [vmem:[#allocation2 + $0x18] sm:$0xff] %vm312_vm2, %v225_v8  ;;  %v228_v9 = vpop.f32.mrb[4].mxu0 }
  0xf5   :  { %v7731_v10 = vadd.f32 %v228_v9, %v7714_v62  ;;  %v230_v11 = vpop.f32.mrb[5].mxu0 }
  0xf6   :  { %v231_v12 = vadd.f32 %v230_v11, %v7718_v63 }
  0xf8   :  { %317 = vst.msk [vmem:[#allocation2 + $0x28] sm:$0xff] %vm312_vm2, %v231_v12  ;;  %v234_v13 = vpop.f32.mrb[6].mxu0 }
  0xf9   :  { %v7736_v14 = vadd.f32 %v234_v13, %v7714_v62  ;;  %v236_v15 = vpop.f32.mrb[7].mxu0 }
  0xfa   :  { %v237_v16 = vadd.f32 %v236_v15, %v7718_v63 }
  0xfc   :  { %319 = vst.msk [vmem:[#allocation2 + $0x38] sm:$0xff] %vm312_vm2, %v237_v16  ;;  %v240_v17 = vpop.f32.mrb[8].mxu0 }
  0xfd   :  { %v7741_v18 = vadd.f32 %v240_v17, %v7714_v62  ;;  %v242_v19 = vpop.f32.mrb[9].mxu0 }
  0xfe   :  { %v243_v20 = vadd.f32 %v242_v19, %v7718_v63 }
 0x100   :  { %321 = vst.msk [vmem:[#allocation2 + $0x48] sm:$0xff] %vm312_vm2, %v243_v20  ;;  %v246_v21 = vpop.f32.mrb[10].mxu0 }
 0x101   :  { %v7746_v22 = vadd.f32 %v246_v21, %v7714_v62  ;;  %v248_v23 = vpop.f32.mrb[11].mxu0 }
 0x102   :  { %v249_v24 = vadd.f32 %v248_v23, %v7718_v63 }
 0x104   :  { %323 = vst.msk [vmem:[#allocation2 + $0x58] sm:$0xff] %vm312_vm2, %v249_v24  ;;  %v252_v25 = vpop.f32.mrb[12].mxu0 }
 0x105   :  { %v253_v26 = vadd.f32 %v252_v25, %v7714_v62  ;;  %v254_v31 = vpop.f32.mrb[13].mxu0 }
 0x106   :  { %v255_v32 = vadd.f32 %v254_v31, %v7718_v63 }
 0x107   :  { %324 = vst [vmem:[#allocation2 + $0x60] sm:$0xff] %v253_v26 }
 0x108   :  { %325 = vst.msk [vmem:[#allocation2 + $0x68] sm:$0xff] %vm312_vm2, %v255_v32  ;;  %v258_v33 = vpop.f32.mrb[14].mxu0 }
 0x109   :  { %v259_v34 = vadd.f32 %v258_v33, %v7714_v62  ;;  %v260_v38 = vpop.f32.mrb[15].mxu0 }
 0x10a   :  { %v261_v39 = vadd.f32 %v260_v38, %v7718_v63 }
 0x10b   :  { %326 = vst [vmem:[#allocation2 + $0x70] sm:$0xff] %v259_v34 }
 0x10c   :  { %327 = vst.msk [vmem:[#allocation2 + $0x78] sm:$0xff] %vm312_vm2, %v261_v39  ;;  %v264_v60 = vpop.f32.mrb[16].mxu0 }
 0x10d   :  { %v265_v0 = vadd.f32 %v264_v60, %v7714_v62  ;;  %v266_v2 = vpop.f32.mrb[17].mxu0 }
 0x10e   :  { %v267_v4 = vadd.f32 %v266_v2, %v7718_v63 }
 0x10f   :  { %328 = vst [vmem:[#allocation2 + $0x80] sm:$0xff] %v265_v0 }
 0x110   :  { %329 = vst.msk [vmem:[#allocation2 + $0x88] sm:$0xff] %vm312_vm2, %v267_v4  ;;  %v270_v5 = vpop.f32.mrb[18].mxu0 }
 0x111   :  { %v271_v7 = vadd.f32 %v270_v5, %v7714_v62  ;;  %v272_v8 = vpop.f32.mrb[19].mxu0 }
 0x112   :  { %v273_v9 = vadd.f32 %v272_v8, %v7718_v63 }
 0x113   :  { %330 = vst [vmem:[#allocation2 + $0x90] sm:$0xff] %v271_v7 }
 0x114   :  { %331 = vst.msk [vmem:[#allocation2 + $0x98] sm:$0xff] %vm312_vm2, %v273_v9  ;;  %v276_v11 = vpop.f32.mrb[20].mxu0 }
 0x115   :  { %v277_v12 = vadd.f32 %v276_v11, %v7714_v62  ;;  %v278_v13 = vpop.f32.mrb[21].mxu0  ;;  %v584_v11 = vld [vmem:[#allocation2 + $0x8] sm:$0xff] }
 0x116   :  { %v279_v15 = vadd.f32 %v278_v13, %v7718_v63 }
 0x117   :  { %332 = vst [vmem:[#allocation2 + $0xa0] sm:$0xff] %v277_v12 }
 0x118   :  { %333 = vst.msk [vmem:[#allocation2 + $0xa8] sm:$0xff] %vm312_vm2, %v279_v15  ;;  %v282_v16 = vpop.f32.mrb[22].mxu0 }
 0x119   :  { %v283_v17 = vadd.f32 %v282_v16, %v7714_v62  ;;  %v284_v19 = vpop.f32.mrb[23].mxu0 }
 0x11a   :  { %v285_v20 = vadd.f32 %v284_v19, %v7718_v63 }
 0x11b   :  { %334 = vst [vmem:[#allocation2 + $0xb0] sm:$0xff] %v283_v17 }
 0x11c   :  { %335 = vst.msk [vmem:[#allocation2 + $0xb8] sm:$0xff] %vm312_vm2, %v285_v20  ;;  %v288_v21 = vpop.f32.mrb[24].mxu0 }
 0x11d   :  { %v289_v23 = vadd.f32 %v288_v21, %v7714_v62  ;;  %v290_v24 = vpop.f32.mrb[25].mxu0 }
 0x11e   :  { %v291_v25 = vadd.f32 %v290_v24, %v7718_v63 }
 0x11f   :  { %336 = vst [vmem:[#allocation2 + $0xc0] sm:$0xff] %v289_v23 }
 0x120   :  { %337 = vst.msk [vmem:[#allocation2 + $0xc8] sm:$0xff] %vm312_vm2, %v291_v25  ;;  %v294_v26 = vpop.f32.mrb[26].mxu0 }
 0x121   :  { %v295_v31 = vadd.f32 %v294_v26, %v7714_v62  ;;  %v296_v32 = vpop.f32.mrb[27].mxu0 }
 0x122   :  { %v297_v33 = vadd.f32 %v296_v32, %v7718_v63  ;;  %v347_v32 = vld [vmem:[%s9210_s4 + $0x18] sm:$0xff] }
 0x123   :  { %338 = vst [vmem:[#allocation2 + $0xd0] sm:$0xff] %v295_v31  ;;  %v345_v31 = vld [vmem:[%s9210_s4 + $0x8] sm:$0xff] }
 0x124   :  { %339 = vst.msk [vmem:[#allocation2 + $0xd8] sm:$0xff] %vm312_vm2, %v297_v33  ;;  %v300_v34 = vpop.f32.mrb[28].mxu0  ;;  %v344_v33 = vld [vmem:[%s9210_s4] sm:$0xff] }
 0x125   :  { %v301_v38 = vadd.f32 %v300_v34, %v7714_v62  ;;  %v302_v39 = vpop.f32.mrb[29].mxu0  ;;  %v6206_v34 = vpack.c.bf16 %v347_v32, %v345_v31 }
 0x126   :  { %v303_v60 = vadd.f32 %v302_v39, %v7718_v63  ;;  %v349_v39 = vld [vmem:[%s9210_s4 + $0x28] sm:$0xff] }
 0x127   :  { %340 = vst [vmem:[#allocation2 + $0xe0] sm:$0xff] %v301_v38  ;;  %v346_v38 = vld [vmem:[%s9210_s4 + $0x10] sm:$0xff]  ;;  %6207 = vmatprep.subr.bf16.mxu1 %v6206_v34 }
 0x128   :  { %341 = vst.msk [vmem:[#allocation2 + $0xe8] sm:$0xff] %vm312_vm2, %v303_v60  ;;  %v306_v0 = vpop.f32.mrb[30].mxu0  ;;  %v351_v60 = vld [vmem:[%s9210_s4 + $0x38] sm:$0xff] }
 0x129   :  { %v307_v2 = vadd.f32 %v306_v0, %v7714_v62  ;;  %v308_v4 = vpop.f32.mrb[31].mxu0  ;;  %v6208_v0 = vpack.c.bf16 %v346_v38, %v344_v33 }
 0x12a   :  { %v309_v5 = vadd.f32 %v308_v4, %v7718_v63  ;;  %v348_v4 = vld [vmem:[%s9210_s4 + $0x20] sm:$0xff] }
 0x12b   :  { %342 = vst [vmem:[#allocation2 + $0xf0] sm:$0xff] %v307_v2  ;;  %v6210_v2 = vpack.c.bf16 %v351_v60, %v349_v39  ;;  %6209 = vmatpush1.bf16.msra.mxu1 %v6208_v0 }
 0x12c   :  { %343 = vst.msk [vmem:[#allocation2 + $0xf8] sm:$0xff] %vm312_vm2, %v309_v5  ;;  %v660_v7 = vpop.f32.mrb[32].mxu0  ;;  %v350_v5 = vld [vmem:[%s9210_s4 + $0x30] sm:$0xff] }
 0x12d   :  { %v665_v8 = vadd.f32 %v660_v7, %v7721_v1  ;;  %v662_v9 = vpop.f32.mrb[33].mxu0  ;;  %v353_v7 = vld [vmem:[%s9210_s4 + $0x48] sm:$0xff]  ;;  %6211 = vmatprep.subr.bf16.mxu1 %v6210_v2 }
 0x12e   :  { %v7781_v12 = vadd.f32 %v662_v9, %v584_v11  ;;  %v6212_v9 = vpack.c.bf16 %v350_v5, %v348_v4 }
 0x12f   :  { %6642 = vtanh.f32 %v665_v8  ;;  %v667_v63 = vsub.f32 0.0, %v665_v8  ;;  %v355_v8 = vld [vmem:[%s9210_s4 + $0x58] sm:$0xff] }
 0x130   :  { %6644 = vtanh.f32 %v7781_v12  ;;  %v6214_v11 = vpack.c.bf16 %v355_v8, %v353_v7  ;;  %6213 = vmatpush1.bf16.msra.mxu1 %v6212_v9 }
 0x131   :  { %v669_v15 = vmul.f32 1.442695, %v667_v63 }
 0x132   :  { %6215 = vmatprep.subr.bf16.mxu1 %v6214_v11 }
 0x133   :  { %6646 = vpow2.f32 %v669_v15 }
 0x139   :  { %v6643_v13 = vpop.eup %6642 }
 0x13a   :  { %682 = vrot.lane.b32.xlu0 %v6643_v13, %s7354_s3  ;;  %v6645_v62 = vpop.eup %6644  ;;  %v352_v13 = vld [vmem:[%s9210_s4 + $0x40] sm:$0xff] }
 0x13d   :  { %v6647_v16 = vpop.eup %6646 }
 0x13e   :  { %684 = vrot.lane.b32.xlu0 %v6645_v62, %s7354_s3  ;;  %v673_v17 = vadd.f32 1.0, %v6647_v16  ;;  %v354_v62 = vld [vmem:[%s9210_s4 + $0x50] sm:$0xff]  ;;  %v357_v16 = vld [vmem:[%s9210_s4 + $0x68] sm:$0x3] }
 0x13f   :  { %v6216_v63 = vpack.c.bf16 %v354_v62, %v352_v13 }
 0x140   :  { %6648 = vrcp.f32 %v673_v17  ;;  %v356_v17 = vld [vmem:[%s9210_s4 + $0x60] sm:$0x3]  ;;  %s7357_s4 = smov 106  }
 0x141   :  { %6217 = vmatpush1.bf16.msra.mxu1 %v6216_v63 }
 0x142   :  { %5910 = vmatprep.subr.msk.mxu1 %vm143_vm0, %v357_v16 }
 0x145   :  { %5911 = vmatpush1.msk.msra.mxu1 %vm143_vm0, %v356_v17 }
 0x146   :  { %5912 = vmatmul.mubr.msk.f32.vlgmr.msra.gmra.mrb[0].mxu1 %vm94_vm1, %v7517_v28  ;;  %6231 = vmatprep.subr.bf16.mxu1 %v7512_v27  ;;  %v668_v28 = vsub.f32 0.0, %v7781_v12 }
 0x147   :  { %6233 = vmatpush1.bf16.msra.mxu1 %v7519_v29  ;;  %446 = vmatprep.mubr.f32.mxu1 %v7353_v3 }
 0x148   :  { %6235 = vmatprep.subr.bf16.mxu1 %v7521_v30 }
 0x14a   :  { %v6649_v20 = vpop.eup %6648  ;;  %5913 = vmatmul.mubr.msk.f32.gmra.mrb[2].mxu1 %vm94_vm1, %v7544_v35  ;;  %v671_v35 = vmul.f32 1.442695, %v668_v28 }
 0x14b   :  { %v679_v24 = vmul.f32 0.0, %v6649_v20  ;;  %452 = vmatprep.mubr.f32.mxu1 %v7353_v3  ;;  %6237 = vmatpush1.bf16.msra.mxu1 %v7546_v36 }
 0x14c   :  { %6239 = vmatprep.subr.bf16.mxu1 %v7549_v37 }
 0x14e   :  { %5914 = vmatmul.mubr.msk.f32.gmra.mrb[4].mxu1 %vm94_vm1, %v7563_v40 }
 0x14f   :  { %458 = vmatprep.mubr.f32.mxu1 %v7353_v3  ;;  %6241 = vmatpush1.bf16.msra.mxu1 %v7566_v41 }
 0x150   :  { %5930 = vmatprep.subr.msk.mxu1 %vm143_vm0, %v7572_v42 }
 0x152   :  { %5915 = vmatmul.mubr.msk.f32.gmra.mrb[6].mxu1 %vm94_vm1, %v7580_v43 }
 0x153   :  { %464 = vmatprep.mubr.f32.mxu1 %v7353_v3  ;;  %5931 = vmatpush1.msk.msra.mxu1 %vm143_vm0, %v7588_v44 }
 0x154   :  { %6255 = vmatprep.subr.bf16.mxu1 %v7512_v27 }
 0x156   :  { %5916 = vmatmul.mubr.msk.f32.gmra.mrb[8].mxu1 %vm94_vm1, %v7596_v45 }
 0x157   :  { %470 = vmatprep.mubr.f32.mxu1 %v7353_v3 }
 0x15a   :  { %5917 = vmatmul.mubr.msk.f32.gmra.mrb[10].mxu1 %vm94_vm1, %v7607_v46 }
 0x15b   :  { %476 = vmatprep.mubr.f32.mxu1 %v7353_v3 }
 0x15e   :  { %5918 = vmatmul.mubr.msk.f32.gmra.mrb[12].mxu1 %vm94_vm1, %v7615_v47 }
 0x15f   :  { %482 = vmatprep.mubr.f32.mxu1 %v7353_v3 }
 0x162   :  { %5919 = vmatmul.mubr.msk.f32.gmra.mrb[14].mxu1 %vm94_vm1, %v7623_v48  ;;  %v358_v48 = vld [vmem:[%s9211_s6] sm:$0x3] }
 0x163   :  { %488 = vmatprep.mubr.f32.mxu1 %v7353_v3 }
 0x166   :  { %5920 = vmatmul.mubr.msk.f32.gmra.mrb[16].mxu1 %vm94_vm1, %v7631_v49  ;;  %v7902_v49 = vrot.slane %v358_v48, %v86_v59 }
 0x167   :  { %494 = vmatprep.mubr.f32.mxu1 %v7353_v3 }
 0x16a   :  { %5921 = vmatmul.mubr.msk.f32.gmra.mrb[18].mxu1 %vm94_vm1, %v7639_v50  ;;  %v7906_v50 = vrot.slane %v358_v48, %v90_v61 }
 0x16b   :  { %500 = vmatprep.mubr.f32.mxu1 %v7353_v3 }
 0x16e   :  { %5922 = vmatmul.mubr.msk.f32.gmra.mrb[20].mxu1 %vm94_vm1, %v7647_v51 }
 0x16f   :  { %506 = vmatprep.mubr.f32.mxu1 %v7353_v3 }
 0x172   :  { %5923 = vmatmul.mubr.msk.f32.gmra.mrb[22].mxu1 %vm94_vm1, %v7655_v52 }
 0x173   :  { %512 = vmatprep.mubr.f32.mxu1 %v7353_v3 }
 0x176   :  { %5924 = vmatmul.mubr.msk.f32.gmra.mrb[24].mxu1 %vm94_vm1, %v7663_v53 }
 0x177   :  { %518 = vmatprep.mubr.f32.mxu1 %v7353_v3 }
 0x17a   :  { %5925 = vmatmul.mubr.msk.f32.gmra.mrb[26].mxu1 %vm94_vm1, %v7671_v54 }
 0x17b   :  { %524 = vmatprep.mubr.f32.mxu1 %v7353_v3 }
 0x17e   :  { %5926 = vmatmul.mubr.msk.f32.gmra.mrb[28].mxu1 %vm94_vm1, %v7679_v55 }
 0x17f   :  { %530 = vmatprep.mubr.f32.mxu1 %v7353_v3 }
 0x182   :  { %5927 = vmatmul.mubr.msk.f32.gmra.mrb[30].mxu1 %vm94_vm1, %v7687_v56 }
 0x183   :  { %774 = vmatprep.mubr.f32.mxu1 %v7353_v3 }
 0x1ac   :  { %v683_v1 = vpop.permute.xlu0 %682 }
 0x1b0   :  { %v685_v19 = vpop.permute.xlu0 %684 }
 0x1b1   :  { %v687_v21 = vsel %vm686_vm3, %v683_v1, %v685_v19 }
 0x1b2   :  { %v689_v23 = vmul.f32 %v6649_v20, %v687_v21 }
 0x1b4   :  { %691 = vrot.lane.b32.xlu1 %v689_v23, %s7355_s24 }
 0x219   :  { %v442_v51 = vpop.f32.mrb[0].mxu1 }
 0x21a   :  { %v443_v52 = vadd.f32 %v442_v51, %v7902_v49  ;;  %v444_v53 = vpop.f32.mrb[1].mxu1 }
 0x21b   :  { %v445_v54 = vadd.f32 %v444_v53, %v7906_v50 }
 0x21c   :  { %537 = vst [vmem:[#allocation3] sm:$0xff] %v443_v52 }
 0x21d   :  { %538 = vst.msk [vmem:[#allocation3 + $0x8] sm:$0xff] %vm312_vm2, %v445_v54  ;;  %v448_v55 = vpop.f32.mrb[2].mxu1 }
 0x21e   :  { %v449_v56 = vadd.f32 %v448_v55, %v7902_v49  ;;  %v450_v12 = vpop.f32.mrb[3].mxu1 }
 0x21f   :  { %v451_v59 = vadd.f32 %v450_v12, %v7906_v50 }
 0x220   :  { %539 = vst [vmem:[#allocation3 + $0x10] sm:$0xff] %v449_v56 }
 0x221   :  { %540 = vst.msk [vmem:[#allocation3 + $0x18] sm:$0xff] %vm312_vm2, %v451_v59  ;;  %v454_v58 = vpop.f32.mrb[4].mxu1 }
 0x222   :  { %v455_v61 = vadd.f32 %v454_v58, %v7902_v49  ;;  %v456_v1 = vpop.f32.mrb[5].mxu1 }
 0x223   :  { %v457_v19 = vadd.f32 %v456_v1, %v7906_v50 }
 0x224   :  { %541 = vst [vmem:[#allocation3 + $0x20] sm:$0xff] %v455_v61 }
 0x225   :  { %542 = vst.msk [vmem:[#allocation3 + $0x28] sm:$0xff] %vm312_vm2, %v457_v19  ;;  %v460_v20 = vpop.f32.mrb[6].mxu1 }
 0x226   :  { %v692_v25 = vpop.permute.xlu1 %691  ;;  %v461_v23 = vadd.f32 %v460_v20, %v7902_v49 }
 0x227   :  { %v7788_v26 = vadd.f32 %v692_v25, %v679_v24  ;;  %v462_v24 = vpop.f32.mrb[7].mxu1 }
 0x228   :  { %v463_v25 = vadd.f32 %v462_v24, %v7906_v50  ;;  %543 = vst [vmem:[#allocation3 + $0x30] sm:$0xff] %v461_v23 }
 0x229   :  { %6650 = vtanh.f32 %v7788_v26  ;;  %v466_v31 = vpop.f32.mrb[8].mxu1 }
 0x22a   :  { %6652 = vpow2.f32 %v671_v35  ;;  %544 = vst.msk [vmem:[#allocation3 + $0x38] sm:$0xff] %vm312_vm2, %v463_v25  ;;  %v467_v32 = vadd.f32 %v466_v31, %v7902_v49  ;;  %v468_v33 = vpop.f32.mrb[9].mxu1 }
 0x22b   :  { %v469_v34 = vadd.f32 %v468_v33, %v7906_v50 }
 0x22c   :  { %545 = vst [vmem:[#allocation3 + $0x40] sm:$0xff] %v467_v32 }
 0x22d   :  { %546 = vst.msk [vmem:[#allocation3 + $0x48] sm:$0xff] %vm312_vm2, %v469_v34  ;;  %v472_v38 = vpop.f32.mrb[10].mxu1 }
 0x22e   :  { %v473_v39 = vadd.f32 %v472_v38, %v7902_v49  ;;  %v474_v60 = vpop.f32.mrb[11].mxu1  ;;  %v707_v38 = vld [vmem:[#allocation2 + $0x18] sm:$0xff] }
 0x22f   :  { %v475_v0 = vadd.f32 %v474_v60, %v7906_v50 }
 0x230   :  { %547 = vst [vmem:[#allocation3 + $0x50] sm:$0xff] %v473_v39 }
 0x231   :  { %548 = vst.msk [vmem:[#allocation3 + $0x58] sm:$0xff] %vm312_vm2, %v475_v0  ;;  %v478_v2 = vpop.f32.mrb[12].mxu1 }
 0x232   :  { %v479_v4 = vadd.f32 %v478_v2, %v7902_v49  ;;  %v480_v5 = vpop.f32.mrb[13].mxu1 }
 0x233   :  { %v6651_v15 = vpop.eup %6650  ;;  %v481_v7 = vadd.f32 %v480_v5, %v7906_v50 }
 0x234   :  { %697 = vrot.lane.b32.xlu1 %v6651_v15, %s7356_s18  ;;  %v6653_v40 = vpop.eup %6652  ;;  %549 = vst [vmem:[#allocation3 + $0x60] sm:$0xff] %v479_v4 }
 0x235   :  { %v674_v43 = vadd.f32 1.0, %v6653_v40  ;;  %550 = vst.msk [vmem:[#allocation3 + $0x68] sm:$0xff] %vm312_vm2, %v481_v7  ;;  %v484_v8 = vpop.f32.mrb[14].mxu1 }
 0x236   :  { %v485_v9 = vadd.f32 %v484_v8, %v7902_v49  ;;  %v486_v11 = vpop.f32.mrb[15].mxu1 }
 0x237   :  { %6654 = vrcp.f32 %v674_v43  ;;  %v487_v13 = vadd.f32 %v486_v11, %v7906_v50 }
 0x238   :  { %551 = vst [vmem:[#allocation3 + $0x70] sm:$0xff] %v485_v9 }
 0x239   :  { %552 = vst.msk [vmem:[#allocation3 + $0x78] sm:$0xff] %vm312_vm2, %v487_v13  ;;  %v490_v62 = vpop.f32.mrb[16].mxu1 }
 0x23a   :  { %v491_v63 = vadd.f32 %v490_v62, %v7902_v49  ;;  %v492_v15 = vpop.f32.mrb[17].mxu1 }
 0x23b   :  { %v493_v16 = vadd.f32 %v492_v15, %v7906_v50 }
 0x23c   :  { %553 = vst [vmem:[#allocation3 + $0x80] sm:$0xff] %v491_v63 }
 0x23d   :  { %554 = vst.msk [vmem:[#allocation3 + $0x88] sm:$0xff] %vm312_vm2, %v493_v16  ;;  %v496_v17 = vpop.f32.mrb[18].mxu1 }
 0x23e   :  { %v497_v28 = vadd.f32 %v496_v17, %v7902_v49  ;;  %v498_v35 = vpop.f32.mrb[19].mxu1 }
 0x23f   :  { %v499_v40 = vadd.f32 %v498_v35, %v7906_v50 }
 0x240   :  { %555 = vst [vmem:[#allocation3 + $0x90] sm:$0xff] %v497_v28 }
 0x241   :  { %v6655_v45 = vpop.eup %6654  ;;  %556 = vst.msk [vmem:[#allocation3 + $0x98] sm:$0xff] %vm312_vm2, %v499_v40  ;;  %v502_v43 = vpop.f32.mrb[20].mxu1 }
 0x2a6   :  { %v698_v46 = vpop.permute.xlu1 %697 }
 0x2a7   :  { %v700_v47 = vmul.f32 %v6655_v45, %v698_v46  ;;  %v503_v45 = vadd.f32 %v502_v43, %v7902_v49  ;;  %v504_v46 = vpop.f32.mrb[21].mxu1 }
 0x2a8   :  { %v508_v48 = vpop.f32.mrb[22].mxu1 }
 0x2a9   :  { %702 = vrot.lane.b32.xlu0 %v700_v47, %s7357_s4  ;;  %v505_v47 = vadd.f32 %v504_v46, %v7906_v50  ;;  %557 = vst [vmem:[#allocation3 + $0xa0] sm:$0xff] %v503_v45  ;;  %v509_v51 = vadd.f32 %v508_v48, %v7902_v49  ;;  %v510_v52 = vpop.f32.mrb[23].mxu1  ;;  %v822_v48 = vld [vmem:[#allocation2 + $0x28] sm:$0xff] }
 0x2aa   :  { %v511_v53 = vadd.f32 %v510_v52, %v7906_v50  ;;  %v514_v54 = vpop.f32.mrb[24].mxu1 }
 0x2ab   :  { %558 = vst.msk [vmem:[#allocation3 + $0xa8] sm:$0xff] %vm312_vm2, %v505_v47  ;;  %559 = vst [vmem:[#allocation3 + $0xb0] sm:$0xff] %v509_v51  ;;  %v515_v55 = vadd.f32 %v514_v54, %v7902_v49  ;;  %v516_v56 = vpop.f32.mrb[25].mxu1 }
 0x2ac   :  { %560 = vst.msk [vmem:[#allocation3 + $0xb8] sm:$0xff] %vm312_vm2, %v511_v53  ;;  %v517_v12 = vadd.f32 %v516_v56, %v7906_v50  ;;  %v520_v59 = vpop.f32.mrb[26].mxu1 }
 0x2ad   :  { %561 = vst [vmem:[#allocation3 + $0xc0] sm:$0xff] %v515_v55  ;;  %v521_v58 = vadd.f32 %v520_v59, %v7902_v49  ;;  %v522_v61 = vpop.f32.mrb[27].mxu1 }
 0x2ae   :  { %562 = vst.msk [vmem:[#allocation3 + $0xc8] sm:$0xff] %vm312_vm2, %v517_v12  ;;  %v523_v1 = vadd.f32 %v522_v61, %v7906_v50  ;;  %v526_v19 = vpop.f32.mrb[28].mxu1 }
 0x2af   :  { %563 = vst [vmem:[#allocation3 + $0xd0] sm:$0xff] %v521_v58  ;;  %v527_v20 = vadd.f32 %v526_v19, %v7902_v49 }
 0x2b0   :  { %564 = vst.msk [vmem:[#allocation3 + $0xd8] sm:$0xff] %vm312_vm2, %v523_v1 }
 0x2b1   :  { %565 = vst [vmem:[#allocation3 + $0xe0] sm:$0xff] %v527_v20 }
 0x31b   :  { %v703_v21 = vpop.permute.xlu0 %702 }
 0x31c   :  { %705 = vst.msk [vmem:[#allocation4] sm:$0xff] %vm94_vm1, %v703_v21  ;;  %5932 = vmatmul.mubr.msk.f32.vlgmr.msra.gmra.mrb[32].mxu1 %vm94_vm1, %v703_v21  ;;  %v528_v21 = vpop.f32.mrb[29].mxu1 }
 0x31d   :  { %6257 = vmatpush1.bf16.msra.mxu1 %v7519_v29  ;;  %1004 = vmatprep.mubr.f32.mxu1 %v7353_v3  ;;  %v529_v23 = vadd.f32 %v528_v21, %v7906_v50  ;;  %v532_v24 = vpop.f32.mrb[30].mxu1 }
 0x31e   :  { %6259 = vmatprep.subr.bf16.mxu1 %v7521_v30  ;;  %v533_v25 = vadd.f32 %v532_v24, %v7902_v49  ;;  %v534_v31 = vpop.f32.mrb[31].mxu1 }
 0x31f   :  { %566 = vst.msk [vmem:[#allocation3 + $0xe8] sm:$0xff] %vm312_vm2, %v529_v23  ;;  %v535_v32 = vadd.f32 %v534_v31, %v7906_v50 }
 0x320   :  { %567 = vst [vmem:[#allocation3 + $0xf0] sm:$0xff] %v533_v25 }
 0x321   :  { %6261 = vmatpush1.bf16.msra.mxu1 %v7546_v36  ;;  %568 = vst.msk [vmem:[#allocation3 + $0xf8] sm:$0xff] %vm312_vm2, %v535_v32 }
 0x322   :  { %6263 = vmatprep.subr.bf16.mxu1 %v7549_v37 }
 0x325   :  { %6265 = vmatpush1.bf16.msra.mxu1 %v7566_v41 }
 0x326   :  { %5936 = vmatprep.subr.msk.mxu1 %vm143_vm0, %v7572_v42 }
 0x329   :  { %5937 = vmatpush1.msk.msra.mxu1 %vm143_vm0, %v7588_v44 }
 0x32a   :  { %6279 = vmatprep.subr.bf16.mxu1 %v7512_v27 }
 0x3ef   :  { %v776_v33 = vpop.f32.mrb[32].mxu1 }
 0x3f0   :  { %v781_v34 = vadd.f32 %v776_v33, %v7726_v6  ;;  %v778_v39 = vpop.f32.mrb[33].mxu1 }
 0x3f1   :  { %v782_v60 = vadd.f32 %v778_v39, %v707_v38 }
 0x3f2   :  { %6656 = vtanh.f32 %v781_v34  ;;  %v783_v49 = vsub.f32 0.0, %v781_v34 }
 0x3f3   :  { %6658 = vtanh.f32 %v782_v60  ;;  %v784_v16 = vsub.f32 0.0, %v782_v60 }
 0x3f4   :  { %v785_v4 = vmul.f32 1.442695, %v783_v49  ;;  %v937_v49 = vld [vmem:[#allocation2 + $0x38] sm:$0xff] }
 0x3f5   :  { %v787_v17 = vmul.f32 1.442695, %v784_v16 }
 0x3f6   :  { %6660 = vpow2.f32 %v785_v4 }
 0x3fc   :  { %v6657_v0 = vpop.eup %6656 }
 0x3fd   :  { %v6659_v2 = vpop.eup %6658  ;;  %798 = vrot.lane.b32.xlu1 %v6657_v0, %s7354_s3 }
 0x3fe   :  { %800 = vrot.lane.b32.xlu0 %v6659_v2, %s7354_s3 }
 0x400   :  { %v6661_v50 = vpop.eup %6660 }
 0x401   :  { %v789_v5 = vadd.f32 1.0, %v6661_v50 }
 0x403   :  { %6662 = vrcp.f32 %v789_v5 }
 0x40d   :  { %v6663_v6 = vpop.eup %6662 }
 0x40e   :  { %v795_v13 = vmul.f32 %v6663_v6, %v7788_v26 }
 0x46f   :  { %v799_v7 = vpop.permute.xlu1 %798 }
 0x470   :  { %v801_v8 = vpop.permute.xlu0 %800 }
 0x471   :  { %v802_v9 = vsel %vm686_vm3, %v799_v7, %v801_v8 }
 0x472   :  { %v804_v11 = vmul.f32 %v6663_v6, %v802_v9 }
 0x474   :  { %806 = vrot.lane.b32.xlu1 %v804_v11, %s7355_s24 }
 0x4e6   :  { %v807_v62 = vpop.permute.xlu1 %806 }
 0x4e7   :  { %v809_v63 = vadd.f32 %v807_v62, %v795_v13 }
 0x4e9   :  { %6664 = vtanh.f32 %v809_v63 }
 0x4ea   :  { %6666 = vpow2.f32 %v787_v17 }
 0x4f3   :  { %v6665_v15 = vpop.eup %6664 }
 0x4f4   :  { %812 = vrot.lane.b32.xlu0 %v6665_v15, %s7356_s18  ;;  %v6667_v28 = vpop.eup %6666 }
 0x4f5   :  { %v790_v35 = vadd.f32 1.0, %v6667_v28 }
 0x4f7   :  { %6668 = vrcp.f32 %v790_v35 }
 0x501   :  { %v6669_v40 = vpop.eup %6668 }
 0x566   :  { %v813_v43 = vpop.permute.xlu0 %812 }
 0x567   :  { %v815_v45 = vmul.f32 %v6669_v40, %v813_v43 }
 0x569   :  { %817 = vrot.lane.b32.xlu1 %v815_v45, %s7357_s4 }
 0x5db   :  { %v818_v46 = vpop.permute.xlu1 %817 }
 0x5dc   :  { %820 = vst.msk [vmem:[#allocation4 + $0x8] sm:$0xff] %vm94_vm1, %v818_v46  ;;  %5935 = vmatmul.mubr.msk.f32.vlgmr.msra.gmra.mrb[34].mxu0 %vm94_vm1, %v818_v46 }
 0x5dd   :  { %6269 = vmatpush1.bf16.msra.mxu0 %v7519_v29  ;;  %1119 = vmatprep.mubr.f32.mxu0 %v7353_v3 }
 0x5de   :  { %6271 = vmatprep.subr.bf16.mxu0 %v7521_v30 }
 0x5e1   :  { %6273 = vmatpush1.bf16.msra.mxu0 %v7546_v36 }
 0x5e2   :  { %6275 = vmatprep.subr.bf16.mxu0 %v7549_v37 }
 0x5e5   :  { %6277 = vmatpush1.bf16.msra.mxu0 %v7566_v41 }
 0x5e6   :  { %5939 = vmatprep.subr.msk.mxu0 %vm143_vm0, %v7572_v42 }
 0x5e9   :  { %5940 = vmatpush1.msk.msra.mxu0 %vm143_vm0, %v7588_v44 }
 0x5ea   :  { %6291 = vmatprep.subr.bf16.mxu0 %v7512_v27 }
 0x6af   :  { %v891_v26 = vpop.f32.mrb[34].mxu0 }
 0x6b0   :  { %v896_v47 = vadd.f32 %v891_v26, %v7731_v10  ;;  %v893_v51 = vpop.f32.mrb[35].mxu0 }
 0x6b1   :  { %v897_v52 = vadd.f32 %v893_v51, %v822_v48  ;;  %v8028_v48 = vld [vmem:[%s9207_s2 + $0x68] sm:$0x3]  ;;  %v8035_v51 = vld [vmem:[%s9207_s2 + $0x60] sm:$0x3] }
 0x6b2   :  { %6670 = vtanh.f32 %v896_v47  ;;  %v898_v55 = vsub.f32 0.0, %v896_v47 }
 0x6b3   :  { %6672 = vtanh.f32 %v897_v52  ;;  %v899_v25 = vsub.f32 0.0, %v897_v52 }
 0x6b4   :  { %v900_v56 = vmul.f32 1.442695, %v898_v55 }
 0x6b5   :  { %v902_v31 = vmul.f32 1.442695, %v899_v25 }
 0x6b6   :  { %6674 = vpow2.f32 %v900_v56 }
 0x6bc   :  { %v6671_v53 = vpop.eup %6670 }
 0x6bd   :  { %v6673_v54 = vpop.eup %6672  ;;  %913 = vrot.lane.b32.xlu0 %v6671_v53, %s7354_s3 }
 0x6be   :  { %915 = vrot.lane.b32.xlu1 %v6673_v54, %s7354_s3  ;;  %v1052_v54 = vld [vmem:[#allocation2 + $0x48] sm:$0xff] }
 0x6c0   :  { %v6675_v12 = vpop.eup %6674 }
 0x6c1   :  { %v904_v59 = vadd.f32 1.0, %v6675_v12 }
 0x6c3   :  { %6676 = vrcp.f32 %v904_v59 }
 0x6cd   :  { %v6677_v10 = vpop.eup %6676 }
 0x6ce   :  { %v910_v20 = vmul.f32 %v6677_v10, %v809_v63 }
 0x72f   :  { %v914_v58 = vpop.permute.xlu0 %913 }
 0x730   :  { %v916_v61 = vpop.permute.xlu1 %915 }
 0x731   :  { %v917_v1 = vsel %vm686_vm3, %v914_v58, %v916_v61 }
 0x732   :  { %v919_v19 = vmul.f32 %v6677_v10, %v917_v1 }
 0x734   :  { %921 = vrot.lane.b32.xlu0 %v919_v19, %s7355_s24 }
 0x7a6   :  { %v922_v21 = vpop.permute.xlu0 %921 }
 0x7a7   :  { %v924_v23 = vadd.f32 %v922_v21, %v910_v20 }
 0x7a9   :  { %6678 = vtanh.f32 %v924_v23 }
 0x7aa   :  { %6680 = vpow2.f32 %v902_v31 }
 0x7b3   :  { %v6679_v24 = vpop.eup %6678 }
 0x7b4   :  { %927 = vrot.lane.b32.xlu1 %v6679_v24, %s7356_s18  ;;  %v6681_v32 = vpop.eup %6680 }
 0x7b5   :  { %v905_v33 = vadd.f32 1.0, %v6681_v32 }
 0x7b7   :  { %6682 = vrcp.f32 %v905_v33 }
 0x7c1   :  { %v6683_v34 = vpop.eup %6682 }
 0x826   :  { %v928_v38 = vpop.permute.xlu1 %927 }
 0x827   :  { %v930_v39 = vmul.f32 %v6683_v34, %v928_v38 }
 0x829   :  { %932 = vrot.lane.b32.xlu0 %v930_v39, %s7357_s4 }
 0x89b   :  { %v933_v60 = vpop.permute.xlu0 %932 }
 0x89c   :  { %935 = vst.msk [vmem:[#allocation4 + $0x10] sm:$0xff] %vm94_vm1, %v933_v60  ;;  %5938 = vmatmul.mubr.msk.f32.vlgmr.msra.gmra.mrb[34].mxu1 %vm94_vm1, %v933_v60 }
 0x89d   :  { %6281 = vmatpush1.bf16.msra.mxu1 %v7519_v29  ;;  %1234 = vmatprep.mubr.f32.mxu1 %v7353_v3 }
 0x89e   :  { %6283 = vmatprep.subr.bf16.mxu1 %v7521_v30 }
 0x8a1   :  { %6285 = vmatpush1.bf16.msra.mxu1 %v7546_v36 }
 0x8a2   :  { %6287 = vmatprep.subr.bf16.mxu1 %v7549_v37 }
 0x8a5   :  { %6289 = vmatpush1.bf16.msra.mxu1 %v7566_v41 }
 0x8a6   :  { %5942 = vmatprep.subr.msk.mxu1 %vm143_vm0, %v7572_v42 }
 0x8a9   :  { %5943 = vmatpush1.msk.msra.mxu1 %vm143_vm0, %v7588_v44 }
 0x8aa   :  { %6303 = vmatprep.subr.bf16.mxu1 %v7512_v27 }
 0x96f   :  { %v1006_v0 = vpop.f32.mrb[34].mxu1 }
 0x970   :  { %v1011_v2 = vadd.f32 %v1006_v0, %v7736_v14  ;;  %v1008_v4 = vpop.f32.mrb[35].mxu1 }
 0x971   :  { %v1012_v50 = vadd.f32 %v1008_v4, %v937_v49 }
 0x972   :  { %6684 = vtanh.f32 %v1011_v2  ;;  %v1013_v42 = vsub.f32 0.0, %v1011_v2 }
 0x973   :  { %6686 = vtanh.f32 %v1012_v50  ;;  %v1014_v28 = vsub.f32 0.0, %v1012_v50 }
 0x974   :  { %v1015_v8 = vmul.f32 1.442695, %v1013_v42 }
 0x975   :  { %v1017_v35 = vmul.f32 1.442695, %v1014_v28 }
 0x976   :  { %6688 = vpow2.f32 %v1015_v8 }
 0x97c   :  { %v6685_v5 = vpop.eup %6684 }
 0x97d   :  { %v6687_v7 = vpop.eup %6686  ;;  %1028 = vrot.lane.b32.xlu1 %v6685_v5, %s7354_s3  ;;  %v1167_v5 = vld [vmem:[#allocation2 + $0x58] sm:$0xff] }
 0x97e   :  { %1030 = vrot.lane.b32.xlu0 %v6687_v7, %s7354_s3 }
 0x980   :  { %v6689_v44 = vpop.eup %6688 }
 0x981   :  { %v1019_v6 = vadd.f32 1.0, %v6689_v44 }
 0x983   :  { %6690 = vrcp.f32 %v1019_v6 }
 0x98d   :  { %v6691_v14 = vpop.eup %6690 }
 0x98e   :  { %v1025_v63 = vmul.f32 %v6691_v14, %v924_v23 }
 0x9ef   :  { %v1029_v9 = vpop.permute.xlu1 %1028 }
 0x9f0   :  { %v1031_v11 = vpop.permute.xlu0 %1030 }
 0x9f1   :  { %v1032_v13 = vsel %vm686_vm3, %v1029_v9, %v1031_v11 }
 0x9f2   :  { %v1034_v62 = vmul.f32 %v6691_v14, %v1032_v13 }
 0x9f4   :  { %1036 = vrot.lane.b32.xlu1 %v1034_v62, %s7355_s24 }
 0xa66   :  { %v1037_v15 = vpop.permute.xlu1 %1036 }
 0xa67   :  { %v1039_v16 = vadd.f32 %v1037_v15, %v1025_v63 }
 0xa69   :  { %6692 = vtanh.f32 %v1039_v16 }
 0xa6a   :  { %6694 = vpow2.f32 %v1017_v35 }
 0xa73   :  { %v6693_v17 = vpop.eup %6692 }
 0xa74   :  { %1042 = vrot.lane.b32.xlu0 %v6693_v17, %s7356_s18  ;;  %v6695_v40 = vpop.eup %6694 }
 0xa75   :  { %v1020_v43 = vadd.f32 1.0, %v6695_v40 }
 0xa77   :  { %6696 = vrcp.f32 %v1020_v43 }
 0xa81   :  { %v6697_v45 = vpop.eup %6696 }
 0xae6   :  { %v1043_v46 = vpop.permute.xlu0 %1042 }
 0xae7   :  { %v1045_v26 = vmul.f32 %v6697_v45, %v1043_v46 }
 0xae9   :  { %1047 = vrot.lane.b32.xlu1 %v1045_v26, %s7357_s4 }
 0xb5b   :  { %v1048_v47 = vpop.permute.xlu1 %1047 }
 0xb5c   :  { %1050 = vst.msk [vmem:[#allocation4 + $0x18] sm:$0xff] %vm94_vm1, %v1048_v47  ;;  %5941 = vmatmul.mubr.msk.f32.vlgmr.msra.gmra.mrb[36].mxu0 %vm94_vm1, %v1048_v47 }
 0xb5d   :  { %6293 = vmatpush1.bf16.msra.mxu0 %v7519_v29  ;;  %1349 = vmatprep.mubr.f32.mxu0 %v7353_v3 }
 0xb5e   :  { %6295 = vmatprep.subr.bf16.mxu0 %v7521_v30 }
 0xb61   :  { %6297 = vmatpush1.bf16.msra.mxu0 %v7546_v36 }
 0xb62   :  { %6299 = vmatprep.subr.bf16.mxu0 %v7549_v37 }
 0xb65   :  { %6301 = vmatpush1.bf16.msra.mxu0 %v7566_v41 }
 0xb66   :  { %5945 = vmatprep.subr.msk.mxu0 %vm143_vm0, %v8028_v48 }
 0xb69   :  { %5946 = vmatpush1.msk.msra.mxu0 %vm143_vm0, %v8035_v51 }
 0xb6a   :  { %6315 = vmatprep.subr.bf16.mxu0 %v7512_v27 }
 0xc2f   :  { %v1121_v52 = vpop.f32.mrb[36].mxu0 }
 0xc30   :  { %v1126_v53 = vadd.f32 %v1121_v52, %v7741_v18  ;;  %v1123_v55 = vpop.f32.mrb[37].mxu0 }
 0xc31   :  { %v1127_v56 = vadd.f32 %v1123_v55, %v1052_v54  ;;  %v7348_v55 = vld [vmem:[#allocation2 + $0x60] sm:$0xff] }
 0xc32   :  { %6698 = vtanh.f32 %v1126_v53  ;;  %v1128_v58 = vsub.f32 0.0, %v1126_v53 }
 0xc33   :  { %6700 = vtanh.f32 %v1127_v56  ;;  %v1129_v33 = vsub.f32 0.0, %v1127_v56 }
 0xc34   :  { %v1130_v61 = vmul.f32 1.442695, %v1128_v58 }
 0xc35   :  { %v1132_v34 = vmul.f32 1.442695, %v1129_v33 }
 0xc36   :  { %6702 = vpow2.f32 %v1130_v61 }
 0xc3c   :  { %v6699_v12 = vpop.eup %6698 }
 0xc3d   :  { %v6701_v59 = vpop.eup %6700  ;;  %1143 = vrot.lane.b32.xlu0 %v6699_v12, %s7354_s3  ;;  %v1282_v12 = vld [vmem:[#allocation2 + $0x68] sm:$0xff] }
 0xc3e   :  { %1145 = vrot.lane.b32.xlu1 %v6701_v59, %s7354_s3 }
 0xc40   :  { %v6703_v10 = vpop.eup %6702 }
 0xc41   :  { %v1134_v1 = vadd.f32 1.0, %v6703_v10 }
 0xc43   :  { %6704 = vrcp.f32 %v1134_v1 }
 0xc4d   :  { %v6705_v18 = vpop.eup %6704 }
 0xc4e   :  { %v1140_v24 = vmul.f32 %v6705_v18, %v1039_v16 }
 0xcaf   :  { %v1144_v19 = vpop.permute.xlu0 %1143 }
 0xcb0   :  { %v1146_v20 = vpop.permute.xlu1 %1145 }
 0xcb1   :  { %v1147_v21 = vsel %vm686_vm3, %v1144_v19, %v1146_v20 }
 0xcb2   :  { %v1149_v23 = vmul.f32 %v6705_v18, %v1147_v21 }
 0xcb4   :  { %1151 = vrot.lane.b32.xlu0 %v1149_v23, %s7355_s24 }
 0xd26   :  { %v1152_v25 = vpop.permute.xlu0 %1151 }
 0xd27   :  { %v1154_v31 = vadd.f32 %v1152_v25, %v1140_v24 }
 0xd29   :  { %6706 = vtanh.f32 %v1154_v31 }
 0xd2a   :  { %6708 = vpow2.f32 %v1132_v34 }
 0xd33   :  { %v6707_v32 = vpop.eup %6706 }
 0xd34   :  { %1157 = vrot.lane.b32.xlu1 %v6707_v32, %s7356_s18  ;;  %v6709_v38 = vpop.eup %6708 }
 0xd35   :  { %v1135_v39 = vadd.f32 1.0, %v6709_v38 }
 0xd37   :  { %6710 = vrcp.f32 %v1135_v39 }
 0xd41   :  { %v6711_v60 = vpop.eup %6710 }
 0xda6   :  { %v1158_v0 = vpop.permute.xlu1 %1157 }
 0xda7   :  { %v1160_v2 = vmul.f32 %v6711_v60, %v1158_v0 }
 0xda9   :  { %1162 = vrot.lane.b32.xlu0 %v1160_v2, %s7357_s4 }
 0xe1b   :  { %v1163_v49 = vpop.permute.xlu0 %1162 }
 0xe1c   :  { %1165 = vst.msk [vmem:[#allocation4 + $0x20] sm:$0xff] %vm94_vm1, %v1163_v49  ;;  %5944 = vmatmul.mubr.msk.f32.vlgmr.msra.gmra.mrb[36].mxu1 %vm94_vm1, %v1163_v49 }
 0xe1d   :  { %6305 = vmatpush1.bf16.msra.mxu1 %v7519_v29  ;;  %1464 = vmatprep.mubr.f32.mxu1 %v7353_v3 }
 0xe1e   :  { %6307 = vmatprep.subr.bf16.mxu1 %v7521_v30 }
 0xe21   :  { %6309 = vmatpush1.bf16.msra.mxu1 %v7546_v36 }
 0xe22   :  { %6311 = vmatprep.subr.bf16.mxu1 %v7549_v37 }
 0xe25   :  { %6313 = vmatpush1.bf16.msra.mxu1 %v7566_v41 }
 0xe26   :  { %5948 = vmatprep.subr.msk.mxu1 %vm143_vm0, %v8028_v48 }
 0xe29   :  { %5949 = vmatpush1.msk.msra.mxu1 %vm143_vm0, %v8035_v51 }
 0xe2a   :  { %6327 = vmatprep.subr.bf16.mxu1 %v7512_v27 }
 0xeef   :  { %v1236_v4 = vpop.f32.mrb[36].mxu1 }
 0xef0   :  { %v1241_v50 = vadd.f32 %v1236_v4, %v7746_v22  ;;  %v1238_v7 = vpop.f32.mrb[37].mxu1 }
 0xef1   :  { %v1242_v42 = vadd.f32 %v1238_v7, %v1167_v5  ;;  %v1396_v7 = vld [vmem:[#allocation2 + $0x70] sm:$0xff] }
 0xef2   :  { %6712 = vtanh.f32 %v1241_v50  ;;  %v1243_v6 = vsub.f32 0.0, %v1241_v50 }
 0xef3   :  { %6714 = vtanh.f32 %v1242_v42  ;;  %v1244_v40 = vsub.f32 0.0, %v1242_v42 }
 0xef4   :  { %v1245_v9 = vmul.f32 1.442695, %v1243_v6 }
 0xef5   :  { %v1247_v43 = vmul.f32 1.442695, %v1244_v40 }
 0xef6   :  { %6716 = vpow2.f32 %v1245_v9 }
 0xefc   :  { %v6713_v8 = vpop.eup %6712 }
 0xefd   :  { %v6715_v44 = vpop.eup %6714  ;;  %1258 = vrot.lane.b32.xlu1 %v6713_v8, %s7354_s3 }
 0xefe   :  { %1260 = vrot.lane.b32.xlu0 %v6715_v44, %s7354_s3  ;;  %v1397_v44 = vld [vmem:[#allocation2 + $0x78] sm:$0xff] }
 0xf00   :  { %v6717_v11 = vpop.eup %6716 }
 0xf01   :  { %v1249_v14 = vadd.f32 1.0, %v6717_v11 }
 0xf03   :  { %6718 = vrcp.f32 %v1249_v14 }
 0xf0d   :  { %v6719_v22 = vpop.eup %6718 }
 0xf0e   :  { %v1255_v16 = vmul.f32 %v6719_v22, %v1154_v31 }
 0xf6f   :  { %v1259_v13 = vpop.permute.xlu1 %1258 }
 0xf70   :  { %v1261_v62 = vpop.permute.xlu0 %1260 }
 0xf71   :  { %v1262_v63 = vsel %vm686_vm3, %v1259_v13, %v1261_v62 }
 0xf72   :  { %v1264_v15 = vmul.f32 %v6719_v22, %v1262_v63 }
 0xf74   :  { %1266 = vrot.lane.b32.xlu1 %v1264_v15, %s7355_s24 }
 0xfe6   :  { %v1267_v17 = vpop.permute.xlu1 %1266 }
 0xfe7   :  { %v1269_v28 = vadd.f32 %v1267_v17, %v1255_v16 }
 0xfe9   :  { %6720 = vtanh.f32 %v1269_v28 }
 0xfea   :  { %6722 = vpow2.f32 %v1247_v43 }
 0xff3   :  { %v6721_v35 = vpop.eup %6720 }
 0xff4   :  { %1272 = vrot.lane.b32.xlu0 %v6721_v35, %s7356_s18  ;;  %v6723_v45 = vpop.eup %6722 }
 0xff5   :  { %v1250_v46 = vadd.f32 1.0, %v6723_v45 }
 0xff7   :  { %6724 = vrcp.f32 %v1250_v46 }
0x1001   :  { %v6725_v26 = vpop.eup %6724 }
0x1066   :  { %v1273_v47 = vpop.permute.xlu0 %1272 }
0x1067   :  { %v1275_v52 = vmul.f32 %v6725_v26, %v1273_v47 }
0x1069   :  { %1277 = vrot.lane.b32.xlu1 %v1275_v52, %s7357_s4 }
0x10db   :  { %v1278_v53 = vpop.permute.xlu1 %1277 }
0x10dc   :  { %1280 = vst.msk [vmem:[#allocation4 + $0x28] sm:$0xff] %vm94_vm1, %v1278_v53  ;;  %5947 = vmatmul.mubr.msk.f32.vlgmr.msra.gmra.mrb[38].mxu0 %vm94_vm1, %v1278_v53 }
0x10dd   :  { %6317 = vmatpush1.bf16.msra.mxu0 %v7519_v29  ;;  %1579 = vmatprep.mubr.f32.mxu0 %v7353_v3 }
0x10de   :  { %6319 = vmatprep.subr.bf16.mxu0 %v7521_v30 }
0x10e1   :  { %6321 = vmatpush1.bf16.msra.mxu0 %v7546_v36 }
0x10e2   :  { %6323 = vmatprep.subr.bf16.mxu0 %v7549_v37 }
0x10e5   :  { %6325 = vmatpush1.bf16.msra.mxu0 %v7566_v41 }
0x10e6   :  { %5951 = vmatprep.subr.msk.mxu0 %vm143_vm0, %v8028_v48 }
0x10e9   :  { %5952 = vmatpush1.msk.msra.mxu0 %vm143_vm0, %v8035_v51 }
0x10ea   :  { %6339 = vmatprep.subr.bf16.mxu0 %v7512_v27 }
0x11af   :  { %v1351_v54 = vpop.f32.mrb[38].mxu0 }
0x11b0   :  { %v1356_v56 = vadd.f32 %v7348_v55, %v1351_v54  ;;  %v1353_v59 = vpop.f32.mrb[39].mxu0 }
0x11b1   :  { %v1357_v58 = vadd.f32 %v1353_v59, %v1282_v12  ;;  %v1511_v59 = vld [vmem:[#allocation2 + $0x80] sm:$0xff] }
0x11b2   :  { %6726 = vtanh.f32 %v1356_v56  ;;  %v1358_v1 = vsub.f32 0.0, %v1356_v56 }
0x11b3   :  { %6728 = vtanh.f32 %v1357_v58  ;;  %v1359_v39 = vsub.f32 0.0, %v1357_v58 }
0x11b4   :  { %v1360_v19 = vmul.f32 1.442695, %v1358_v1 }
0x11b5   :  { %v1362_v60 = vmul.f32 1.442695, %v1359_v39 }
0x11b6   :  { %6730 = vpow2.f32 %v1360_v19 }
0x11bc   :  { %v6727_v61 = vpop.eup %6726 }
0x11bd   :  { %v6729_v10 = vpop.eup %6728  ;;  %1373 = vrot.lane.b32.xlu0 %v6727_v61, %s7354_s3 }
0x11be   :  { %1375 = vrot.lane.b32.xlu1 %v6729_v10, %s7354_s3  ;;  %v1512_v10 = vld [vmem:[#allocation2 + $0x88] sm:$0xff] }
0x11c0   :  { %v6731_v20 = vpop.eup %6730 }
0x11c1   :  { %v1364_v18 = vadd.f32 1.0, %v6731_v20 }
0x11c3   :  { %6732 = vrcp.f32 %v1364_v18 }
0x11cd   :  { %v6733_v24 = vpop.eup %6732 }
0x11ce   :  { %v1370_v32 = vmul.f32 %v6733_v24, %v1269_v28 }
0x122f   :  { %v1374_v21 = vpop.permute.xlu0 %1373 }
0x1230   :  { %v1376_v23 = vpop.permute.xlu1 %1375 }
0x1231   :  { %v1377_v25 = vsel %vm686_vm3, %v1374_v21, %v1376_v23 }
0x1232   :  { %v1379_v31 = vmul.f32 %v6733_v24, %v1377_v25 }
0x1234   :  { %1381 = vrot.lane.b32.xlu0 %v1379_v31, %s7355_s24 }
0x12a6   :  { %v1382_v33 = vpop.permute.xlu0 %1381 }
0x12a7   :  { %v1384_v34 = vadd.f32 %v1382_v33, %v1370_v32 }
0x12a9   :  { %6734 = vtanh.f32 %v1384_v34 }
0x12aa   :  { %6736 = vpow2.f32 %v1362_v60 }
0x12b3   :  { %v6735_v38 = vpop.eup %6734 }
0x12b4   :  { %1387 = vrot.lane.b32.xlu1 %v6735_v38, %s7356_s18  ;;  %v6737_v0 = vpop.eup %6736 }
0x12b5   :  { %v1365_v2 = vadd.f32 1.0, %v6737_v0 }
0x12b7   :  { %6738 = vrcp.f32 %v1365_v2 }
0x12c1   :  { %v6739_v49 = vpop.eup %6738 }
0x1326   :  { %v1388_v4 = vpop.permute.xlu1 %1387 }
0x1327   :  { %v1390_v50 = vmul.f32 %v6739_v49, %v1388_v4 }
0x1329   :  { %1392 = vrot.lane.b32.xlu0 %v1390_v50, %s7357_s4 }
0x139b   :  { %v1393_v5 = vpop.permute.xlu0 %1392 }
0x139c   :  { %1395 = vst.msk [vmem:[#allocation4 + $0x30] sm:$0xff] %vm94_vm1, %v1393_v5  ;;  %5950 = vmatmul.mubr.msk.f32.vlgmr.msra.gmra.mrb[38].mxu1 %vm94_vm1, %v1393_v5 }
0x139d   :  { %6329 = vmatpush1.bf16.msra.mxu1 %v7519_v29  ;;  %1694 = vmatprep.mubr.f32.mxu1 %v7353_v3 }
0x139e   :  { %6331 = vmatprep.subr.bf16.mxu1 %v7521_v30 }
0x13a1   :  { %6333 = vmatpush1.bf16.msra.mxu1 %v7546_v36 }
0x13a2   :  { %6335 = vmatprep.subr.bf16.mxu1 %v7549_v37 }
0x13a5   :  { %6337 = vmatpush1.bf16.msra.mxu1 %v7566_v41 }
0x13a6   :  { %5954 = vmatprep.subr.msk.mxu1 %vm143_vm0, %v8028_v48 }
0x13a9   :  { %5955 = vmatpush1.msk.msra.mxu1 %vm143_vm0, %v8035_v51 }
0x13aa   :  { %6351 = vmatprep.subr.bf16.mxu1 %v7512_v27 }
0x146f   :  { %v1466_v42 = vpop.f32.mrb[38].mxu1 }
0x1470   :  { %v1471_v8 = vadd.f32 %v1466_v42, %v1396_v7  ;;  %v1468_v6 = vpop.f32.mrb[39].mxu1 }
0x1471   :  { %v1472_v9 = vadd.f32 %v1468_v6, %v1397_v44  ;;  %v1626_v6 = vld [vmem:[#allocation2 + $0x90] sm:$0xff] }
0x1472   :  { %6740 = vtanh.f32 %v1471_v8  ;;  %v1473_v13 = vsub.f32 0.0, %v1471_v8 }
0x1473   :  { %6742 = vtanh.f32 %v1472_v9  ;;  %v1474_v26 = vsub.f32 0.0, %v1472_v9 }
0x1474   :  { %v1475_v62 = vmul.f32 1.442695, %v1473_v13 }
0x1475   :  { %v1477_v47 = vmul.f32 1.442695, %v1474_v26 }
0x1476   :  { %6744 = vpow2.f32 %v1475_v62 }
0x147c   :  { %v6741_v11 = vpop.eup %6740 }
0x147d   :  { %v6743_v14 = vpop.eup %6742  ;;  %1488 = vrot.lane.b32.xlu1 %v6741_v11, %s7354_s3 }
0x147e   :  { %1490 = vrot.lane.b32.xlu0 %v6743_v14, %s7354_s3  ;;  %v1627_v14 = vld [vmem:[#allocation2 + $0x98] sm:$0xff] }
0x1480   :  { %v6745_v22 = vpop.eup %6744 }
0x1481   :  { %v1479_v63 = vadd.f32 1.0, %v6745_v22 }
0x1483   :  { %6746 = vrcp.f32 %v1479_v63 }
0x148d   :  { %v6747_v17 = vpop.eup %6746 }
0x148e   :  { %v1485_v40 = vmul.f32 %v6747_v17, %v1384_v34 }
0x14ef   :  { %v1489_v15 = vpop.permute.xlu1 %1488 }
0x14f0   :  { %v1491_v16 = vpop.permute.xlu0 %1490 }
0x14f1   :  { %v1492_v28 = vsel %vm686_vm3, %v1489_v15, %v1491_v16 }
0x14f2   :  { %v1494_v35 = vmul.f32 %v6747_v17, %v1492_v28 }
0x14f4   :  { %1496 = vrot.lane.b32.xlu1 %v1494_v35, %s7355_s24 }
0x1566   :  { %v1497_v43 = vpop.permute.xlu1 %1496 }
0x1567   :  { %v1499_v45 = vadd.f32 %v1497_v43, %v1485_v40 }
0x1569   :  { %6748 = vtanh.f32 %v1499_v45 }
0x156a   :  { %6750 = vpow2.f32 %v1477_v47 }
0x1573   :  { %v6749_v46 = vpop.eup %6748 }
0x1574   :  { %1502 = vrot.lane.b32.xlu0 %v6749_v46, %s7356_s18  ;;  %v6751_v52 = vpop.eup %6750 }
0x1575   :  { %v1480_v53 = vadd.f32 1.0, %v6751_v52 }
0x1577   :  { %6752 = vrcp.f32 %v1480_v53 }
0x1581   :  { %v6753_v54 = vpop.eup %6752 }
0x15e6   :  { %v1503_v55 = vpop.permute.xlu0 %1502 }
0x15e7   :  { %v1505_v56 = vmul.f32 %v6753_v54, %v1503_v55 }
0x15e9   :  { %1507 = vrot.lane.b32.xlu1 %v1505_v56, %s7357_s4 }
0x165b   :  { %v1508_v12 = vpop.permute.xlu1 %1507 }
0x165c   :  { %1510 = vst.msk [vmem:[#allocation4 + $0x38] sm:$0xff] %vm94_vm1, %v1508_v12  ;;  %5953 = vmatmul.mubr.msk.f32.vlgmr.msra.gmra.mrb[40].mxu0 %vm94_vm1, %v1508_v12 }
0x165d   :  { %6341 = vmatpush1.bf16.msra.mxu0 %v7519_v29  ;;  %1809 = vmatprep.mubr.f32.mxu0 %v7353_v3 }
0x165e   :  { %6343 = vmatprep.subr.bf16.mxu0 %v7521_v30 }
0x1661   :  { %6345 = vmatpush1.bf16.msra.mxu0 %v7546_v36 }
0x1662   :  { %6347 = vmatprep.subr.bf16.mxu0 %v7549_v37 }
0x1665   :  { %6349 = vmatpush1.bf16.msra.mxu0 %v7566_v41 }
0x1666   :  { %5957 = vmatprep.subr.msk.mxu0 %vm143_vm0, %v8028_v48 }
0x1669   :  { %5958 = vmatpush1.msk.msra.mxu0 %vm143_vm0, %v8035_v51 }
0x166a   :  { %6363 = vmatprep.subr.bf16.mxu0 %v7512_v27 }
0x172f   :  { %v1581_v58 = vpop.f32.mrb[40].mxu0 }
0x1730   :  { %v1586_v61 = vadd.f32 %v1581_v58, %v1511_v59  ;;  %v1583_v1 = vpop.f32.mrb[41].mxu0 }
0x1731   :  { %v1587_v19 = vadd.f32 %v1583_v1, %v1512_v10  ;;  %v1741_v1 = vld [vmem:[#allocation2 + $0xa0] sm:$0xff] }
0x1732   :  { %6754 = vtanh.f32 %v1586_v61  ;;  %v1588_v21 = vsub.f32 0.0, %v1586_v61 }
0x1733   :  { %6756 = vtanh.f32 %v1587_v19  ;;  %v1589_v49 = vsub.f32 0.0, %v1587_v19 }
0x1734   :  { %v1590_v23 = vmul.f32 1.442695, %v1588_v21 }
0x1735   :  { %v1592_v4 = vmul.f32 1.442695, %v1589_v49 }
0x1736   :  { %6758 = vpow2.f32 %v1590_v23 }
0x173c   :  { %v6755_v20 = vpop.eup %6754 }
0x173d   :  { %v6757_v18 = vpop.eup %6756  ;;  %1603 = vrot.lane.b32.xlu0 %v6755_v20, %s7354_s3 }
0x173e   :  { %1605 = vrot.lane.b32.xlu1 %v6757_v18, %s7354_s3  ;;  %v1742_v18 = vld [vmem:[#allocation2 + $0xa8] sm:$0xff] }
0x1740   :  { %v6759_v24 = vpop.eup %6758 }
0x1741   :  { %v1594_v25 = vadd.f32 1.0, %v6759_v24 }
0x1743   :  { %6760 = vrcp.f32 %v1594_v25 }
0x174d   :  { %v6761_v33 = vpop.eup %6760 }
0x174e   :  { %v1600_v39 = vmul.f32 %v6761_v33, %v1499_v45 }
0x17af   :  { %v1604_v31 = vpop.permute.xlu0 %1603 }
0x17b0   :  { %v1606_v32 = vpop.permute.xlu1 %1605 }
0x17b1   :  { %v1607_v34 = vsel %vm686_vm3, %v1604_v31, %v1606_v32 }
0x17b2   :  { %v1609_v38 = vmul.f32 %v6761_v33, %v1607_v34 }
0x17b4   :  { %1611 = vrot.lane.b32.xlu0 %v1609_v38, %s7355_s24 }
0x1826   :  { %v1612_v60 = vpop.permute.xlu0 %1611 }
0x1827   :  { %v1614_v0 = vadd.f32 %v1612_v60, %v1600_v39 }
0x1829   :  { %6762 = vtanh.f32 %v1614_v0 }
0x182a   :  { %6764 = vpow2.f32 %v1592_v4 }
0x1833   :  { %v6763_v2 = vpop.eup %6762 }
0x1834   :  { %1617 = vrot.lane.b32.xlu1 %v6763_v2, %s7356_s18  ;;  %v6765_v50 = vpop.eup %6764 }
0x1835   :  { %v1595_v5 = vadd.f32 1.0, %v6765_v50 }
0x1837   :  { %6766 = vrcp.f32 %v1595_v5 }
0x1841   :  { %v6767_v7 = vpop.eup %6766 }
0x18a6   :  { %v1618_v42 = vpop.permute.xlu1 %1617 }
0x18a7   :  { %v1620_v8 = vmul.f32 %v6767_v7, %v1618_v42 }
0x18a9   :  { %1622 = vrot.lane.b32.xlu0 %v1620_v8, %s7357_s4 }
0x191b   :  { %v1623_v44 = vpop.permute.xlu0 %1622 }
0x191c   :  { %1625 = vst.msk [vmem:[#allocation4 + $0x40] sm:$0xff] %vm94_vm1, %v1623_v44  ;;  %5956 = vmatmul.mubr.msk.f32.vlgmr.msra.gmra.mrb[40].mxu1 %vm94_vm1, %v1623_v44 }
0x191d   :  { %6353 = vmatpush1.bf16.msra.mxu1 %v7519_v29  ;;  %1924 = vmatprep.mubr.f32.mxu1 %v7353_v3 }
0x191e   :  { %6355 = vmatprep.subr.bf16.mxu1 %v7521_v30 }
0x1921   :  { %6357 = vmatpush1.bf16.msra.mxu1 %v7546_v36 }
0x1922   :  { %6359 = vmatprep.subr.bf16.mxu1 %v7549_v37 }
0x1925   :  { %6361 = vmatpush1.bf16.msra.mxu1 %v7566_v41 }
0x1926   :  { %5960 = vmatprep.subr.msk.mxu1 %vm143_vm0, %v8028_v48 }
0x1929   :  { %5961 = vmatpush1.msk.msra.mxu1 %vm143_vm0, %v8035_v51 }
0x192a   :  { %6375 = vmatprep.subr.bf16.mxu1 %v7512_v27 }
0x19ef   :  { %v1696_v9 = vpop.f32.mrb[40].mxu1 }
0x19f0   :  { %v1701_v11 = vadd.f32 %v1696_v9, %v1626_v6  ;;  %v1698_v13 = vpop.f32.mrb[41].mxu1 }
0x19f1   :  { %v1702_v62 = vadd.f32 %v1698_v13, %v1627_v14  ;;  %v1856_v13 = vld [vmem:[#allocation2 + $0xb0] sm:$0xff] }
0x19f2   :  { %6768 = vtanh.f32 %v1701_v11  ;;  %v1703_v15 = vsub.f32 0.0, %v1701_v11 }
0x19f3   :  { %6770 = vtanh.f32 %v1702_v62  ;;  %v1704_v54 = vsub.f32 0.0, %v1702_v62 }
0x19f4   :  { %v1705_v16 = vmul.f32 1.442695, %v1703_v15 }
0x19f5   :  { %v1707_v55 = vmul.f32 1.442695, %v1704_v54 }
0x19f6   :  { %6772 = vpow2.f32 %v1705_v16 }
0x19fc   :  { %v6769_v22 = vpop.eup %6768 }
0x19fd   :  { %v6771_v63 = vpop.eup %6770  ;;  %1718 = vrot.lane.b32.xlu1 %v6769_v22, %s7354_s3 }
0x19fe   :  { %1720 = vrot.lane.b32.xlu0 %v6771_v63, %s7354_s3  ;;  %v1857_v63 = vld [vmem:[#allocation2 + $0xb8] sm:$0xff] }
0x1a00   :  { %v6773_v17 = vpop.eup %6772 }
0x1a01   :  { %v1709_v28 = vadd.f32 1.0, %v6773_v17 }
0x1a03   :  { %6774 = vrcp.f32 %v1709_v28 }
0x1a0d   :  { %v6775_v43 = vpop.eup %6774 }
0x1a0e   :  { %v1715_v26 = vmul.f32 %v6775_v43, %v1614_v0 }
0x1a6f   :  { %v1719_v35 = vpop.permute.xlu1 %1718 }
0x1a70   :  { %v1721_v40 = vpop.permute.xlu0 %1720 }
0x1a71   :  { %v1722_v45 = vsel %vm686_vm3, %v1719_v35, %v1721_v40 }
0x1a72   :  { %v1724_v46 = vmul.f32 %v6775_v43, %v1722_v45 }
0x1a74   :  { %1726 = vrot.lane.b32.xlu1 %v1724_v46, %s7355_s24 }
0x1ae6   :  { %v1727_v47 = vpop.permute.xlu1 %1726 }
0x1ae7   :  { %v1729_v52 = vadd.f32 %v1727_v47, %v1715_v26 }
0x1ae9   :  { %6776 = vtanh.f32 %v1729_v52 }
0x1aea   :  { %6778 = vpow2.f32 %v1707_v55 }
0x1af3   :  { %v6777_v53 = vpop.eup %6776 }
0x1af4   :  { %1732 = vrot.lane.b32.xlu0 %v6777_v53, %s7356_s18  ;;  %v6779_v56 = vpop.eup %6778 }
0x1af5   :  { %v1710_v12 = vadd.f32 1.0, %v6779_v56 }
0x1af7   :  { %6780 = vrcp.f32 %v1710_v12 }
0x1b01   :  { %v6781_v59 = vpop.eup %6780 }
0x1b66   :  { %v1733_v58 = vpop.permute.xlu0 %1732 }
0x1b67   :  { %v1735_v61 = vmul.f32 %v6781_v59, %v1733_v58 }
0x1b69   :  { %1737 = vrot.lane.b32.xlu1 %v1735_v61, %s7357_s4 }
0x1bdb   :  { %v1738_v10 = vpop.permute.xlu1 %1737 }
0x1bdc   :  { %1740 = vst.msk [vmem:[#allocation4 + $0x48] sm:$0xff] %vm94_vm1, %v1738_v10  ;;  %5959 = vmatmul.mubr.msk.f32.vlgmr.msra.gmra.mrb[42].mxu0 %vm94_vm1, %v1738_v10 }
0x1bdd   :  { %6365 = vmatpush1.bf16.msra.mxu0 %v7519_v29  ;;  %2039 = vmatprep.mubr.f32.mxu0 %v7353_v3 }
0x1bde   :  { %6367 = vmatprep.subr.bf16.mxu0 %v7521_v30 }
0x1be1   :  { %6369 = vmatpush1.bf16.msra.mxu0 %v7546_v36 }
0x1be2   :  { %6371 = vmatprep.subr.bf16.mxu0 %v7549_v37 }
0x1be5   :  { %6373 = vmatpush1.bf16.msra.mxu0 %v7566_v41 }
0x1be6   :  { %5963 = vmatprep.subr.msk.mxu0 %vm143_vm0, %v8028_v48 }
0x1be9   :  { %5964 = vmatpush1.msk.msra.mxu0 %vm143_vm0, %v8035_v51 }
0x1bea   :  { %6387 = vmatprep.subr.bf16.mxu0 %v7512_v27 }
0x1caf   :  { %v1811_v19 = vpop.f32.mrb[42].mxu0 }
0x1cb0   :  { %v1816_v20 = vadd.f32 %v1811_v19, %v1741_v1  ;;  %v1813_v21 = vpop.f32.mrb[43].mxu0 }
0x1cb1   :  { %v1817_v23 = vadd.f32 %v1813_v21, %v1742_v18  ;;  %v1971_v18 = vld [vmem:[#allocation2 + $0xc0] sm:$0xff] }
0x1cb2   :  { %6782 = vtanh.f32 %v1816_v20  ;;  %v1818_v31 = vsub.f32 0.0, %v1816_v20 }
0x1cb3   :  { %6784 = vtanh.f32 %v1817_v23  ;;  %v1819_v7 = vsub.f32 0.0, %v1817_v23 }
0x1cb4   :  { %v1820_v32 = vmul.f32 1.442695, %v1818_v31 }
0x1cb5   :  { %v1822_v42 = vmul.f32 1.442695, %v1819_v7 }
0x1cb6   :  { %6786 = vpow2.f32 %v1820_v32 }
0x1cbc   :  { %v6783_v24 = vpop.eup %6782 }
0x1cbd   :  { %v6785_v25 = vpop.eup %6784  ;;  %1833 = vrot.lane.b32.xlu0 %v6783_v24, %s7354_s3  ;;  %v1972_v24 = vld [vmem:[#allocation2 + $0xc8] sm:$0xff] }
0x1cbe   :  { %1835 = vrot.lane.b32.xlu1 %v6785_v25, %s7354_s3 }
0x1cc0   :  { %v6787_v33 = vpop.eup %6786 }
0x1cc1   :  { %v1824_v34 = vadd.f32 1.0, %v6787_v33 }
0x1cc3   :  { %6788 = vrcp.f32 %v1824_v34 }
0x1ccd   :  { %v6789_v60 = vpop.eup %6788 }
0x1cce   :  { %v1830_v49 = vmul.f32 %v6789_v60, %v1729_v52 }
0x1d2f   :  { %v1834_v38 = vpop.permute.xlu0 %1833 }
0x1d30   :  { %v1836_v39 = vpop.permute.xlu1 %1835 }
0x1d31   :  { %v1837_v0 = vsel %vm686_vm3, %v1834_v38, %v1836_v39 }
0x1d32   :  { %v1839_v2 = vmul.f32 %v6789_v60, %v1837_v0 }
0x1d34   :  { %1841 = vrot.lane.b32.xlu0 %v1839_v2, %s7355_s24 }
0x1da6   :  { %v1842_v4 = vpop.permute.xlu0 %1841 }
0x1da7   :  { %v1844_v50 = vadd.f32 %v1842_v4, %v1830_v49 }
0x1da9   :  { %6790 = vtanh.f32 %v1844_v50 }
0x1daa   :  { %6792 = vpow2.f32 %v1822_v42 }
0x1db3   :  { %v6791_v5 = vpop.eup %6790 }
0x1db4   :  { %1847 = vrot.lane.b32.xlu1 %v6791_v5, %s7356_s18  ;;  %v6793_v8 = vpop.eup %6792 }
0x1db5   :  { %v1825_v44 = vadd.f32 1.0, %v6793_v8 }
0x1db7   :  { %6794 = vrcp.f32 %v1825_v44 }
0x1dc1   :  { %v6795_v6 = vpop.eup %6794 }
0x1e26   :  { %v1848_v9 = vpop.permute.xlu1 %1847 }
0x1e27   :  { %v1850_v11 = vmul.f32 %v6795_v6, %v1848_v9 }
0x1e29   :  { %1852 = vrot.lane.b32.xlu0 %v1850_v11, %s7357_s4 }
0x1e9b   :  { %v1853_v14 = vpop.permute.xlu0 %1852 }
0x1e9c   :  { %1855 = vst.msk [vmem:[#allocation4 + $0x50] sm:$0xff] %vm94_vm1, %v1853_v14  ;;  %5962 = vmatmul.mubr.msk.f32.vlgmr.msra.gmra.mrb[42].mxu1 %vm94_vm1, %v1853_v14 }
0x1e9d   :  { %6377 = vmatpush1.bf16.msra.mxu1 %v7519_v29  ;;  %2154 = vmatprep.mubr.f32.mxu1 %v7353_v3 }
0x1e9e   :  { %6379 = vmatprep.subr.bf16.mxu1 %v7521_v30 }
0x1ea1   :  { %6381 = vmatpush1.bf16.msra.mxu1 %v7546_v36 }
0x1ea2   :  { %6383 = vmatprep.subr.bf16.mxu1 %v7549_v37 }
0x1ea5   :  { %6385 = vmatpush1.bf16.msra.mxu1 %v7566_v41 }
0x1ea6   :  { %5966 = vmatprep.subr.msk.mxu1 %vm143_vm0, %v8028_v48 }
0x1ea9   :  { %5967 = vmatpush1.msk.msra.mxu1 %vm143_vm0, %v8035_v51 }
0x1eaa   :  { %6399 = vmatprep.subr.bf16.mxu1 %v7512_v27 }
0x1f6f   :  { %v1926_v62 = vpop.f32.mrb[42].mxu1 }
0x1f70   :  { %v1931_v22 = vadd.f32 %v1926_v62, %v1856_v13  ;;  %v1928_v15 = vpop.f32.mrb[43].mxu1 }
0x1f71   :  { %v1932_v16 = vadd.f32 %v1928_v15, %v1857_v63  ;;  %v2086_v63 = vld [vmem:[#allocation2 + $0xd0] sm:$0xff] }
0x1f72   :  { %6796 = vtanh.f32 %v1931_v22  ;;  %v1933_v35 = vsub.f32 0.0, %v1931_v22 }
0x1f73   :  { %6798 = vtanh.f32 %v1932_v16  ;;  %v1934_v12 = vsub.f32 0.0, %v1932_v16 }
0x1f74   :  { %v1935_v40 = vmul.f32 1.442695, %v1933_v35 }
0x1f75   :  { %v1937_v59 = vmul.f32 1.442695, %v1934_v12 }
0x1f76   :  { %6800 = vpow2.f32 %v1935_v40 }
0x1f7c   :  { %v6797_v17 = vpop.eup %6796 }
0x1f7d   :  { %v6799_v28 = vpop.eup %6798  ;;  %1948 = vrot.lane.b32.xlu1 %v6797_v17, %s7354_s3 }
0x1f7e   :  { %1950 = vrot.lane.b32.xlu0 %v6799_v28, %s7354_s3 }
0x1f80   :  { %v6801_v43 = vpop.eup %6800 }
0x1f81   :  { %v1939_v45 = vadd.f32 1.0, %v6801_v43 }
0x1f83   :  { %6802 = vrcp.f32 %v1939_v45 }
0x1f8d   :  { %v6803_v26 = vpop.eup %6802 }
0x1f8e   :  { %v1945_v53 = vmul.f32 %v6803_v26, %v1844_v50 }
0x1fef   :  { %v1949_v27 = vpop.permute.xlu1 %1948 }
0x1ff0   :  { %v1951_v46 = vpop.permute.xlu0 %1950 }
0x1ff1   :  { %v1952_v47 = vsel %vm686_vm3, %v1949_v27, %v1951_v46 }
0x1ff2   :  { %v1954_v52 = vmul.f32 %v6803_v26, %v1952_v47 }
0x1ff4   :  { %1956 = vrot.lane.b32.xlu1 %v1954_v52, %s7355_s24  ;;  %v2432_v52 = vld [vmem:[%s9212_s5 + $0x8] sm:$0xff] }
0x2066   :  { %v1957_v54 = vpop.permute.xlu1 %1956 }
0x2067   :  { %v1959_v55 = vadd.f32 %v1957_v54, %v1945_v53  ;;  %v2434_v53 = vld [vmem:[%s9212_s5 + $0x18] sm:$0xff] }
0x2068   :  { %v8224_v54 = vpack.c.bf16 %v2434_v53, %v2432_v52 }
0x2069   :  { %6804 = vtanh.f32 %v1959_v55 }
0x206a   :  { %6806 = vpow2.f32 %v1937_v59 }
0x2073   :  { %v6805_v56 = vpop.eup %6804 }
0x2074   :  { %1962 = vrot.lane.b32.xlu0 %v6805_v56, %s7356_s18  ;;  %v6807_v58 = vpop.eup %6806 }
0x2075   :  { %v1940_v61 = vadd.f32 1.0, %v6807_v58 }
0x2077   :  { %6808 = vrcp.f32 %v1940_v61 }
0x2081   :  { %v6809_v10 = vpop.eup %6808 }
0x20e6   :  { %v1963_v1 = vpop.permute.xlu0 %1962 }
0x20e7   :  { %v1965_v19 = vmul.f32 %v6809_v10, %v1963_v1 }
0x20e9   :  { %1967 = vrot.lane.b32.xlu1 %v1965_v19, %s7357_s4  ;;  %v2431_v19 = vld [vmem:[%s9212_s5] sm:$0xff] }
0x215b   :  { %v1968_v20 = vpop.permute.xlu1 %1967 }
0x215c   :  { %1970 = vst.msk [vmem:[#allocation4 + $0x58] sm:$0xff] %vm94_vm1, %v1968_v20  ;;  %5965 = vmatmul.mubr.msk.f32.vlgmr.msra.gmra.mrb[44].mxu0 %vm94_vm1, %v1968_v20  ;;  %v2433_v20 = vld [vmem:[%s9212_s5 + $0x10] sm:$0xff] }
0x215d   :  { %6389 = vmatpush1.bf16.msra.mxu0 %v7519_v29  ;;  %2269 = vmatprep.mubr.f32.mxu0 %v7353_v3 }
0x215e   :  { %6391 = vmatprep.subr.bf16.mxu0 %v7521_v30 }
0x2161   :  { %6393 = vmatpush1.bf16.msra.mxu0 %v7546_v36 }
0x2162   :  { %6395 = vmatprep.subr.bf16.mxu0 %v7549_v37 }
0x2165   :  { %6397 = vmatpush1.bf16.msra.mxu0 %v7566_v41 }
0x2166   :  { %5969 = vmatprep.subr.msk.mxu0 %vm143_vm0, %v8028_v48 }
0x2169   :  { %5970 = vmatpush1.msk.msra.mxu0 %vm143_vm0, %v8035_v51 }
0x216a   :  { %6411 = vmatprep.subr.bf16.mxu0 %v8224_v54 }
0x222f   :  { %v2041_v21 = vpop.f32.mrb[44].mxu0 }
0x2230   :  { %v2046_v23 = vadd.f32 %v2041_v21, %v1971_v18  ;;  %v2043_v25 = vpop.f32.mrb[45].mxu0  ;;  %v2436_v18 = vld [vmem:[%s9212_s5 + $0x28] sm:$0xff]  ;;  %v2438_v21 = vld [vmem:[%s9212_s5 + $0x38] sm:$0xff] }
0x2231   :  { %v2047_v31 = vadd.f32 %v2043_v25, %v1972_v24  ;;  %v8244_v24 = vpack.c.bf16 %v2438_v21, %v2436_v18  ;;  %v2435_v25 = vld [vmem:[%s9212_s5 + $0x20] sm:$0xff] }
0x2232   :  { %6810 = vtanh.f32 %v2046_v23  ;;  %v2048_v34 = vsub.f32 0.0, %v2046_v23  ;;  %v8242_v23 = vpack.c.bf16 %v2433_v20, %v2431_v19 }
0x2233   :  { %6812 = vtanh.f32 %v2047_v31  ;;  %v2049_v44 = vsub.f32 0.0, %v2047_v31  ;;  %v2437_v31 = vld [vmem:[%s9212_s5 + $0x30] sm:$0xff] }
0x2234   :  { %v2050_v38 = vmul.f32 1.442695, %v2048_v34  ;;  %v2442_v34 = vld [vmem:[%s9212_s5 + $0x58] sm:$0xff] }
0x2235   :  { %v2052_v6 = vmul.f32 1.442695, %v2049_v44 }
0x2236   :  { %6814 = vpow2.f32 %v2050_v38  ;;  %v8261_v38 = vpack.c.bf16 %v2437_v31, %v2435_v25 }
0x223c   :  { %v6811_v32 = vpop.eup %6810 }
0x223d   :  { %v6813_v33 = vpop.eup %6812  ;;  %2063 = vrot.lane.b32.xlu0 %v6811_v32, %s7354_s3 }
0x223e   :  { %2065 = vrot.lane.b32.xlu1 %v6813_v33, %s7354_s3  ;;  %v2440_v33 = vld [vmem:[%s9212_s5 + $0x48] sm:$0xff] }
0x2240   :  { %v6815_v39 = vpop.eup %6814 }
0x2241   :  { %v2054_v60 = vadd.f32 1.0, %v6815_v39  ;;  %v8265_v39 = vpack.c.bf16 %v2442_v34, %v2440_v33 }
0x2243   :  { %6816 = vrcp.f32 %v2054_v60  ;;  %v2439_v60 = vld [vmem:[%s9212_s5 + $0x40] sm:$0xff] }
0x224d   :  { %v6817_v49 = vpop.eup %6816 }
0x224e   :  { %v2060_v5 = vmul.f32 %v6817_v49, %v1959_v55 }
0x22af   :  { %v2064_v0 = vpop.permute.xlu0 %2063 }
0x22b0   :  { %v2066_v2 = vpop.permute.xlu1 %2065 }
0x22b1   :  { %v2067_v4 = vsel %vm686_vm3, %v2064_v0, %v2066_v2  ;;  %v2441_v0 = vld [vmem:[%s9212_s5 + $0x50] sm:$0xff] }
0x22b2   :  { %v2069_v50 = vmul.f32 %v6817_v49, %v2067_v4  ;;  %v8274_v2 = vpack.c.bf16 %v2441_v0, %v2439_v60  ;;  %v8280_v49 = vld [vmem:[%s9212_s5 + $0x68] sm:$0x3]  ;;  %v8288_v4 = vld [vmem:[%s9212_s5 + $0x60] sm:$0x3] }
0x22b4   :  { %2071 = vrot.lane.b32.xlu0 %v2069_v50, %s7355_s24  ;;  %v2201_v50 = vld [vmem:[#allocation2 + $0xe0] sm:$0xff] }
0x2326   :  { %v2072_v7 = vpop.permute.xlu0 %2071 }
0x2327   :  { %v2074_v42 = vadd.f32 %v2072_v7, %v2060_v5 }
0x2329   :  { %6818 = vtanh.f32 %v2074_v42 }
0x232a   :  { %6820 = vpow2.f32 %v2052_v6 }
0x2333   :  { %v6819_v8 = vpop.eup %6818 }
0x2334   :  { %2077 = vrot.lane.b32.xlu1 %v6819_v8, %s7356_s18  ;;  %v6821_v9 = vpop.eup %6820 }
0x2335   :  { %v2055_v11 = vadd.f32 1.0, %v6821_v9 }
0x2337   :  { %6822 = vrcp.f32 %v2055_v11  ;;  %v2445_v11 = vld [vmem:[#allocation3 + $0xf0] sm:$0xff] }
0x2341   :  { %v6823_v14 = vpop.eup %6822 }
0x23a6   :  { %v2078_v13 = vpop.permute.xlu1 %2077 }
0x23a7   :  { %v2080_v62 = vmul.f32 %v6823_v14, %v2078_v13 }
0x23a9   :  { %2082 = vrot.lane.b32.xlu0 %v2080_v62, %s7357_s4  ;;  %v2446_v62 = vld [vmem:[#allocation3 + $0xf8] sm:$0xff] }
0x241b   :  { %v2083_v22 = vpop.permute.xlu0 %2082 }
0x241c   :  { %2085 = vst.msk [vmem:[#allocation4 + $0x60] sm:$0xff] %vm94_vm1, %v2083_v22  ;;  %5968 = vmatmul.mubr.msk.f32.vlgmr.msra.gmra.mrb[44].mxu1 %vm94_vm1, %v2083_v22 }
0x241d   :  { %6401 = vmatpush1.bf16.msra.mxu1 %v7519_v29  ;;  %2384 = vmatprep.mubr.f32.mxu1 %v7353_v3  ;;  %v2087_v29 = vld [vmem:[#allocation2 + $0xd8] sm:$0xff] }
0x241e   :  { %6403 = vmatprep.subr.bf16.mxu1 %v7521_v30 }
0x2421   :  { %6405 = vmatpush1.bf16.msra.mxu1 %v7546_v36 }
0x2422   :  { %6407 = vmatprep.subr.bf16.mxu1 %v7549_v37 }
0x2425   :  { %6409 = vmatpush1.bf16.msra.mxu1 %v7566_v41 }
0x2426   :  { %5972 = vmatprep.subr.msk.mxu1 %vm143_vm0, %v8028_v48 }
0x2429   :  { %5973 = vmatpush1.msk.msra.mxu1 %vm143_vm0, %v8035_v51 }
0x242a   :  { %6423 = vmatprep.subr.bf16.mxu1 %v8224_v54 }
0x24ef   :  { %v2156_v15 = vpop.f32.mrb[44].mxu1 }
0x24f0   :  { %v2161_v16 = vadd.f32 %v2156_v15, %v2086_v63  ;;  %v2158_v17 = vpop.f32.mrb[45].mxu1 }
0x24f1   :  { %v2162_v28 = vadd.f32 %v2158_v17, %v2087_v29 }
0x24f2   :  { %6824 = vtanh.f32 %v2161_v16  ;;  %v2163_v37 = vsub.f32 0.0, %v2161_v16 }
0x24f3   :  { %6826 = vtanh.f32 %v2162_v28  ;;  %v2164_v56 = vsub.f32 0.0, %v2162_v28 }
0x24f4   :  { %v2165_v41 = vmul.f32 1.442695, %v2163_v37 }
0x24f5   :  { %v2167_v12 = vmul.f32 1.442695, %v2164_v56 }
0x24f6   :  { %6828 = vpow2.f32 %v2165_v41 }
0x24fc   :  { %v6825_v30 = vpop.eup %6824 }
0x24fd   :  { %v6827_v36 = vpop.eup %6826  ;;  %2178 = vrot.lane.b32.xlu1 %v6825_v30, %s7354_s3 }
0x24fe   :  { %2180 = vrot.lane.b32.xlu0 %v6827_v36, %s7354_s3 }
0x2500   :  { %v6829_v48 = vpop.eup %6828 }
0x2501   :  { %v2169_v35 = vadd.f32 1.0, %v6829_v48 }
0x2503   :  { %6830 = vrcp.f32 %v2169_v35 }
0x250d   :  { %v6831_v43 = vpop.eup %6830 }
0x250e   :  { %v2175_v46 = vmul.f32 %v6831_v43, %v2074_v42  ;;  %v2202_v42 = vld [vmem:[#allocation2 + $0xe8] sm:$0xff] }
0x256f   :  { %v2179_v51 = vpop.permute.xlu1 %2178 }
0x2570   :  { %v2181_v40 = vpop.permute.xlu0 %2180 }
0x2571   :  { %v2182_v45 = vsel %vm686_vm3, %v2179_v51, %v2181_v40 }
0x2572   :  { %v2184_v27 = vmul.f32 %v6831_v43, %v2182_v45 }
0x2574   :  { %2186 = vrot.lane.b32.xlu1 %v2184_v27, %s7355_s24 }
0x25e6   :  { %v2187_v26 = vpop.permute.xlu1 %2186 }
0x25e7   :  { %v8215_v47 = vadd.f32 %v2187_v26, %v2175_v46 }
0x25e9   :  { %6832 = vtanh.f32 %v8215_v47 }
0x25ea   :  { %6834 = vpow2.f32 %v2167_v12 }
0x25f3   :  { %v6833_v55 = vpop.eup %6832 }
0x25f4   :  { %2192 = vrot.lane.b32.xlu0 %v6833_v55, %s7356_s18  ;;  %v6835_v59 = vpop.eup %6834 }
0x25f5   :  { %v2170_v58 = vadd.f32 1.0, %v6835_v59 }
0x25f7   :  { %6836 = vrcp.f32 %v2170_v58 }
0x2601   :  { %v6837_v61 = vpop.eup %6836 }
0x2666   :  { %v2193_v10 = vpop.permute.xlu0 %2192 }
0x2667   :  { %v2195_v1 = vmul.f32 %v6837_v61, %v2193_v10 }
0x2669   :  { %2197 = vrot.lane.b32.xlu1 %v2195_v1, %s7357_s4 }
0x26db   :  { %v2198_v32 = vpop.permute.xlu1 %2197 }
0x26dc   :  { %2200 = vst.msk [vmem:[#allocation4 + $0x68] sm:$0xff] %vm94_vm1, %v2198_v32  ;;  %5971 = vmatmul.mubr.msk.f32.vlgmr.msra.gmra.mrb[46].mxu0 %vm94_vm1, %v2198_v32 }
0x26dd   :  { %6413 = vmatpush1.bf16.msra.mxu0 %v8242_v23  ;;  %2517 = vmatprep.mubr.f32.mxu0 %v7353_v3 }
0x26de   :  { %6415 = vmatprep.subr.bf16.mxu0 %v8244_v24 }
0x26e1   :  { %6417 = vmatpush1.bf16.msra.mxu0 %v8261_v38 }
0x26e2   :  { %6419 = vmatprep.subr.bf16.mxu0 %v8265_v39 }
0x26e5   :  { %6421 = vmatpush1.bf16.msra.mxu0 %v8274_v2 }
0x26e6   :  { %5975 = vmatprep.subr.msk.mxu0 %vm143_vm0, %v8280_v49 }
0x26e9   :  { %5976 = vmatpush1.msk.msra.mxu0 %vm143_vm0, %v8288_v4 }
0x26ea   :  { %2518 = vmatmul.mubr.f32.vlgmr.msra.gmra.mrb[48].mxu0 %v7353_v3  ;;  %6435 = vmatprep.subr.bf16.mxu0 %v8224_v54 }
0x26eb   :  { %6437 = vmatpush1.bf16.msra.mxu0 %v8242_v23  ;;  %2747 = vmatprep.mubr.f32.mxu0 %v7353_v3 }
0x26ec   :  { %6439 = vmatprep.subr.bf16.mxu0 %v8244_v24 }
0x26ef   :  { %6441 = vmatpush1.bf16.msra.mxu0 %v8261_v38 }
0x26f0   :  { %6443 = vmatprep.subr.bf16.mxu0 %v8265_v39 }
0x26f3   :  { %6445 = vmatpush1.bf16.msra.mxu0 %v8274_v2 }
0x26f4   :  { %5980 = vmatprep.subr.msk.mxu0 %vm143_vm0, %v8280_v49 }
0x26f7   :  { %5981 = vmatpush1.msk.msra.mxu0 %vm143_vm0, %v8288_v4 }
0x26f8   :  { %6459 = vmatprep.subr.bf16.mxu0 %v8224_v54 }
0x27af   :  { %v2271_v5 = vpop.f32.mrb[46].mxu0 }
0x27b0   :  { %v2276_v7 = vadd.f32 %v2271_v5, %v2201_v50  ;;  %v2273_v8 = vpop.f32.mrb[47].mxu0 }
0x27b1   :  { %v2277_v44 = vadd.f32 %v2273_v8, %v2202_v42 }
0x27b2   :  { %6838 = vtanh.f32 %v2276_v7  ;;  %v2278_v29 = vsub.f32 0.0, %v2276_v7 }
0x27b3   :  { %6840 = vtanh.f32 %v2277_v44  ;;  %v2279_v19 = vsub.f32 0.0, %v2277_v44 }
0x27b4   :  { %v2280_v17 = vmul.f32 1.442695, %v2278_v29 }
0x27b5   :  { %v2282_v20 = vmul.f32 1.442695, %v2279_v19 }
0x27bc   :  { %v6839_v6 = vpop.eup %6838 }
0x27bd   :  { %v6841_v9 = vpop.eup %6840  ;;  %v2519_v14 = vpop.f32.mrb[48].mxu0  ;;  %2293 = vrot.lane.b32.xlu0 %v6839_v6, %s7354_s3  ;;  %v2564_v6 = vld [vmem:[#allocation3 + $0xe0] sm:$0xff] }
0x27be   :  { %v2524_v13 = vadd.f32 %v2519_v14, %v2445_v11  ;;  %v2521_v22 = vpop.f32.mrb[49].mxu0  ;;  %2295 = vrot.lane.b32.xlu1 %v6841_v9, %s7354_s3  ;;  %v2565_v14 = vld [vmem:[#allocation3 + $0xe8] sm:$0xff] }
0x27bf   :  { %v2525_v63 = vadd.f32 %v2521_v22, %v2446_v62 }
0x27c0   :  { %6842 = vtanh.f32 %v2524_v13  ;;  %v2526_v28 = vsub.f32 0.0, %v2524_v13 }
0x27c1   :  { %6844 = vtanh.f32 %v2525_v63 }
0x27c2   :  { %6846 = vpow2.f32 %v2280_v17  ;;  %v2528_v36 = vmul.f32 1.442695, %v2526_v28 }
0x27c4   :  { %6848 = vpow2.f32 %v2528_v36 }
0x27ca   :  { %v6843_v15 = vpop.eup %6842 }
0x27cb   :  { %v6845_v16 = vpop.eup %6844  ;;  %2541 = vrot.lane.b32.xlu0 %v6843_v15, %s7354_s3 }
0x27cc   :  { %2543 = vrot.lane.b32.xlu1 %v6845_v16, %s7354_s3  ;;  %v6847_v30 = vpop.eup %6846 }
0x27cd   :  { %v2284_v37 = vadd.f32 1.0, %v6847_v30 }
0x27ce   :  { %v6849_v41 = vpop.eup %6848 }
0x27cf   :  { %6850 = vrcp.f32 %v2284_v37  ;;  %v2532_v40 = vadd.f32 1.0, %v6849_v41 }
0x27d1   :  { %6852 = vrcp.f32 %v2532_v40 }
0x27d9   :  { %v6851_v51 = vpop.eup %6850 }
0x27da   :  { %v2290_v55 = vmul.f32 %v6851_v51, %v8215_v47  ;;  %v2527_v47 = vsub.f32 0.0, %v2525_v63 }
0x27db   :  { %v6853_v26 = vpop.eup %6852 }
0x27dc   :  { %v2538_v58 = vmul.f32 0.0, %v6853_v26  ;;  %v2530_v21 = vmul.f32 1.442695, %v2527_v47 }
0x282f   :  { %v2294_v48 = vpop.permute.xlu0 %2293 }
0x2830   :  { %v2296_v35 = vpop.permute.xlu1 %2295 }
0x2831   :  { %v2297_v43 = vsel %vm686_vm3, %v2294_v48, %v2296_v35 }
0x2832   :  { %v2299_v45 = vmul.f32 %v6851_v51, %v2297_v43 }
0x2834   :  { %2301 = vrot.lane.b32.xlu0 %v2299_v45, %s7355_s24 }
0x283d   :  { %v2542_v27 = vpop.permute.xlu0 %2541 }
0x283e   :  { %v2544_v46 = vpop.permute.xlu1 %2543 }
0x283f   :  { %v2545_v52 = vsel %vm686_vm3, %v2542_v27, %v2544_v46 }
0x2840   :  { %v2547_v53 = vmul.f32 %v6853_v26, %v2545_v52 }
0x2842   :  { %2549 = vrot.lane.b32.xlu1 %v2547_v53, %s7355_s24 }
0x28a6   :  { %v2302_v56 = vpop.permute.xlu0 %2301 }
0x28a7   :  { %v8314_v12 = vadd.f32 %v2302_v56, %v2290_v55  ;;  %v2679_v56 = vld [vmem:[#allocation3 + $0xd0] sm:$0xff] }
0x28a9   :  { %6854 = vtanh.f32 %v8314_v12 }
0x28b3   :  { %v6855_v59 = vpop.eup %6854 }
0x28b4   :  { %v2550_v61 = vpop.permute.xlu1 %2549  ;;  %2307 = vrot.lane.b32.xlu0 %v6855_v59, %s7356_s18 }
0x28b5   :  { %v8318_v10 = vadd.f32 %v2550_v61, %v2538_v58  ;;  %v2680_v61 = vld [vmem:[#allocation3 + $0xd8] sm:$0xff] }
0x28b7   :  { %6856 = vtanh.f32 %v8318_v10 }
0x28b8   :  { %6858 = vpow2.f32 %v2282_v20 }
0x28b9   :  { %6860 = vpow2.f32 %v2530_v21 }
0x28c1   :  { %v6857_v1 = vpop.eup %6856 }
0x28c2   :  { %2555 = vrot.lane.b32.xlu1 %v6857_v1, %s7356_s18  ;;  %v6859_v18 = vpop.eup %6858 }
0x28c3   :  { %v2285_v25 = vadd.f32 1.0, %v6859_v18  ;;  %v6861_v31 = vpop.eup %6860 }
0x28c4   :  { %v2533_v33 = vadd.f32 1.0, %v6861_v31 }
0x28c5   :  { %6862 = vrcp.f32 %v2285_v25 }
0x28c6   :  { %6864 = vrcp.f32 %v2533_v33 }
0x28cf   :  { %v6863_v32 = vpop.eup %6862 }
0x28d0   :  { %v6865_v0 = vpop.eup %6864 }
0x2926   :  { %v2308_v34 = vpop.permute.xlu0 %2307 }
0x2927   :  { %v2310_v60 = vmul.f32 %v6863_v32, %v2308_v34 }
0x2929   :  { %2312 = vrot.lane.b32.xlu0 %v2310_v60, %s7357_s4 }
0x2934   :  { %v2556_v50 = vpop.permute.xlu1 %2555 }
0x2935   :  { %v2558_v5 = vmul.f32 %v6865_v0, %v2556_v50 }
0x2937   :  { %2560 = vrot.lane.b32.xlu1 %v2558_v5, %s7357_s4 }
0x299b   :  { %v2313_v7 = vpop.permute.xlu0 %2312 }
0x299c   :  { %2315 = vst.msk [vmem:[#allocation4 + $0x70] sm:$0xff] %vm94_vm1, %v2313_v7  ;;  %5974 = vmatmul.mubr.msk.f32.vlgmr.msra.gmra.mrb[46].mxu1 %vm94_vm1, %v2313_v7 }
0x299d   :  { %6425 = vmatpush1.bf16.msra.mxu1 %v8242_v23  ;;  %2632 = vmatprep.mubr.f32.mxu1 %v7353_v3 }
0x299e   :  { %6427 = vmatprep.subr.bf16.mxu1 %v8244_v24 }
0x29a1   :  { %6429 = vmatpush1.bf16.msra.mxu1 %v8261_v38 }
0x29a2   :  { %6431 = vmatprep.subr.bf16.mxu1 %v8265_v39 }
0x29a5   :  { %6433 = vmatpush1.bf16.msra.mxu1 %v8274_v2 }
0x29a6   :  { %5977 = vmatprep.subr.msk.mxu1 %vm143_vm0, %v8280_v49 }
0x29a9   :  { %v2561_v42 = vpop.permute.xlu1 %2560  ;;  %5978 = vmatpush1.msk.msra.mxu1 %vm143_vm0, %v8288_v4 }
0x29aa   :  { %2563 = vst.msk [vmem:[#allocation5 + $0x78] sm:$0xff] %vm94_vm1, %v2561_v42  ;;  %5979 = vmatmul.mubr.msk.f32.vlgmr.msra.gmra.mrb[48].mxu1 %vm94_vm1, %v2561_v42  ;;  %6447 = vmatprep.subr.bf16.mxu1 %v8224_v54 }
0x29ab   :  { %6449 = vmatpush1.bf16.msra.mxu1 %v8242_v23  ;;  %2862 = vmatprep.mubr.f32.mxu1 %v7353_v3 }
0x29ac   :  { %6451 = vmatprep.subr.bf16.mxu1 %v8244_v24 }
0x29af   :  { %6453 = vmatpush1.bf16.msra.mxu1 %v8261_v38 }
0x29b0   :  { %6455 = vmatprep.subr.bf16.mxu1 %v8265_v39 }
0x29b3   :  { %6457 = vmatpush1.bf16.msra.mxu1 %v8274_v2 }
0x29b4   :  { %5983 = vmatprep.subr.msk.mxu1 %vm143_vm0, %v8280_v49 }
0x29b7   :  { %5984 = vmatpush1.msk.msra.mxu1 %vm143_vm0, %v8288_v4 }
0x29b8   :  { %6471 = vmatprep.subr.bf16.mxu1 %v8224_v54 }
0x2a6f   :  { %v8350_v8 = vpop.f32.mrb[46].mxu1 }
0x2a70   :  { %v8352_v44 = vpop.f32.mrb[47].mxu1 }
0x2a7d   :  { %v2634_v9 = vpop.f32.mrb[48].mxu1 }
0x2a7e   :  { %v2639_v11 = vadd.f32 %v2634_v9, %v2564_v6  ;;  %v2636_v13 = vpop.f32.mrb[49].mxu1 }
0x2a7f   :  { %v2640_v62 = vadd.f32 %v2636_v13, %v2565_v14 }
0x2a80   :  { %6866 = vtanh.f32 %v2639_v11  ;;  %v2641_v15 = vsub.f32 0.0, %v2639_v11 }
0x2a81   :  { %6868 = vtanh.f32 %v2640_v62  ;;  %v2642_v43 = vsub.f32 0.0, %v2640_v62 }
0x2a82   :  { %v2643_v16 = vmul.f32 1.442695, %v2641_v15 }
0x2a83   :  { %v2645_v45 = vmul.f32 1.442695, %v2642_v43 }
0x2a84   :  { %6870 = vpow2.f32 %v2643_v16 }
0x2a8a   :  { %v6867_v22 = vpop.eup %6866 }
0x2a8b   :  { %v6869_v63 = vpop.eup %6868  ;;  %2656 = vrot.lane.b32.xlu0 %v6867_v22, %s7354_s3 }
0x2a8c   :  { %2658 = vrot.lane.b32.xlu1 %v6869_v63, %s7354_s3  ;;  %v2794_v63 = vld [vmem:[#allocation3 + $0xc0] sm:$0xff] }
0x2a8e   :  { %v6871_v29 = vpop.eup %6870 }
0x2a8f   :  { %v2647_v17 = vadd.f32 1.0, %v6871_v29  ;;  %v2795_v29 = vld [vmem:[#allocation3 + $0xc8] sm:$0xff] }
0x2a91   :  { %6872 = vrcp.f32 %v2647_v17 }
0x2a9b   :  { %v6873_v36 = vpop.eup %6872 }
0x2a9c   :  { %v2653_v48 = vmul.f32 %v6873_v36, %v8318_v10 }
0x2afd   :  { %v2657_v28 = vpop.permute.xlu0 %2656 }
0x2afe   :  { %v2659_v30 = vpop.permute.xlu1 %2658 }
0x2aff   :  { %v2660_v37 = vsel %vm686_vm3, %v2657_v28, %v2659_v30 }
0x2b00   :  { %v2662_v41 = vmul.f32 %v6873_v36, %v2660_v37 }
0x2b02   :  { %2664 = vrot.lane.b32.xlu0 %v2662_v41, %s7355_s24 }
0x2b74   :  { %v2665_v35 = vpop.permute.xlu0 %2664 }
0x2b75   :  { %v2667_v51 = vadd.f32 %v2665_v35, %v2653_v48 }
0x2b77   :  { %6874 = vtanh.f32 %v2667_v51 }
0x2b78   :  { %6876 = vpow2.f32 %v2645_v45 }
0x2b81   :  { %v6875_v40 = vpop.eup %6874 }
0x2b82   :  { %2670 = vrot.lane.b32.xlu1 %v6875_v40, %s7356_s18  ;;  %v6877_v27 = vpop.eup %6876 }
0x2b83   :  { %v2648_v46 = vadd.f32 1.0, %v6877_v27 }
0x2b85   :  { %6878 = vrcp.f32 %v2648_v46 }
0x2b8f   :  { %v6879_v26 = vpop.eup %6878 }
0x2bf4   :  { %v2671_v52 = vpop.permute.xlu1 %2670 }
0x2bf5   :  { %v2673_v53 = vmul.f32 %v6879_v26, %v2671_v52 }
0x2bf7   :  { %2675 = vrot.lane.b32.xlu0 %v2673_v53, %s7357_s4 }
0x2c69   :  { %v2676_v55 = vpop.permute.xlu0 %2675 }
0x2c6a   :  { %2678 = vst.msk [vmem:[#allocation5 + $0x70] sm:$0xff] %vm94_vm1, %v2676_v55  ;;  %5982 = vmatmul.mubr.msk.f32.vlgmr.msra.gmra.mrb[50].mxu0 %vm94_vm1, %v2676_v55 }
0x2c6b   :  { %6461 = vmatpush1.bf16.msra.mxu0 %v8242_v23  ;;  %2977 = vmatprep.mubr.f32.mxu0 %v7353_v3 }
0x2c6c   :  { %6463 = vmatprep.subr.bf16.mxu0 %v8244_v24 }
0x2c6f   :  { %6465 = vmatpush1.bf16.msra.mxu0 %v8261_v38 }
0x2c70   :  { %6467 = vmatprep.subr.bf16.mxu0 %v8265_v39 }
0x2c73   :  { %6469 = vmatpush1.bf16.msra.mxu0 %v8274_v2 }
0x2c74   :  { %5986 = vmatprep.subr.msk.mxu0 %vm143_vm0, %v8280_v49 }
0x2c77   :  { %5987 = vmatpush1.msk.msra.mxu0 %vm143_vm0, %v8288_v4 }
0x2c78   :  { %6483 = vmatprep.subr.bf16.mxu0 %v8224_v54 }
0x2d3d   :  { %v2749_v59 = vpop.f32.mrb[50].mxu0 }
0x2d3e   :  { %v2754_v58 = vadd.f32 %v2749_v59, %v2679_v56  ;;  %v2751_v10 = vpop.f32.mrb[51].mxu0 }
0x2d3f   :  { %v2755_v1 = vadd.f32 %v2751_v10, %v2680_v61 }
0x2d40   :  { %6880 = vtanh.f32 %v2754_v58  ;;  %v2756_v47 = vsub.f32 0.0, %v2754_v58 }
0x2d41   :  { %6882 = vtanh.f32 %v2755_v1  ;;  %v2757_v42 = vsub.f32 0.0, %v2755_v1 }
0x2d42   :  { %v2758_v18 = vmul.f32 1.442695, %v2756_v47 }
0x2d43   :  { %v2760_v6 = vmul.f32 1.442695, %v2757_v42 }
0x2d44   :  { %6884 = vpow2.f32 %v2758_v18 }
0x2d4a   :  { %v6881_v19 = vpop.eup %6880 }
0x2d4b   :  { %v6883_v20 = vpop.eup %6882  ;;  %2771 = vrot.lane.b32.xlu1 %v6881_v19, %s7354_s3 }
0x2d4c   :  { %2773 = vrot.lane.b32.xlu0 %v6883_v20, %s7354_s3  ;;  %v2909_v20 = vld [vmem:[#allocation3 + $0xb0] sm:$0xff] }
0x2d4e   :  { %v6885_v21 = vpop.eup %6884 }
0x2d4f   :  { %v2762_v25 = vadd.f32 1.0, %v6885_v21  ;;  %v2910_v21 = vld [vmem:[#allocation3 + $0xb8] sm:$0xff] }
0x2d51   :  { %6886 = vrcp.f32 %v2762_v25 }
0x2d5b   :  { %v6887_v33 = vpop.eup %6886 }
0x2d5c   :  { %v2768_v0 = vmul.f32 %v6887_v33, %v2667_v51 }
0x2dbd   :  { %v2772_v31 = vpop.permute.xlu1 %2771 }
0x2dbe   :  { %v2774_v32 = vpop.permute.xlu0 %2773 }
0x2dbf   :  { %v2775_v34 = vsel %vm686_vm3, %v2772_v31, %v2774_v32 }
0x2dc0   :  { %v2777_v60 = vmul.f32 %v6887_v33, %v2775_v34 }
0x2dc2   :  { %2779 = vrot.lane.b32.xlu1 %v2777_v60, %s7355_s24 }
0x2e34   :  { %v2780_v50 = vpop.permute.xlu1 %2779 }
0x2e35   :  { %v2782_v5 = vadd.f32 %v2780_v50, %v2768_v0 }
0x2e37   :  { %6888 = vtanh.f32 %v2782_v5 }
0x2e38   :  { %6890 = vpow2.f32 %v2760_v6 }
0x2e41   :  { %v6889_v7 = vpop.eup %6888 }
0x2e42   :  { %2785 = vrot.lane.b32.xlu0 %v6889_v7, %s7356_s18  ;;  %v6891_v9 = vpop.eup %6890 }
0x2e43   :  { %v2763_v11 = vadd.f32 1.0, %v6891_v9 }
0x2e45   :  { %6892 = vrcp.f32 %v2763_v11 }
0x2e4f   :  { %v6893_v14 = vpop.eup %6892 }
0x2eb4   :  { %v2786_v13 = vpop.permute.xlu0 %2785 }
0x2eb5   :  { %v2788_v62 = vmul.f32 %v6893_v14, %v2786_v13 }
0x2eb7   :  { %2790 = vrot.lane.b32.xlu1 %v2788_v62, %s7357_s4 }
0x2f29   :  { %v2791_v22 = vpop.permute.xlu1 %2790 }
0x2f2a   :  { %2793 = vst.msk [vmem:[#allocation5 + $0x68] sm:$0xff] %vm94_vm1, %v2791_v22  ;;  %5985 = vmatmul.mubr.msk.f32.vlgmr.msra.gmra.mrb[50].mxu1 %vm94_vm1, %v2791_v22 }
0x2f2b   :  { %6473 = vmatpush1.bf16.msra.mxu1 %v8242_v23  ;;  %3092 = vmatprep.mubr.f32.mxu1 %v7353_v3 }
0x2f2c   :  { %6475 = vmatprep.subr.bf16.mxu1 %v8244_v24 }
0x2f2f   :  { %6477 = vmatpush1.bf16.msra.mxu1 %v8261_v38 }
0x2f30   :  { %6479 = vmatprep.subr.bf16.mxu1 %v8265_v39 }
0x2f33   :  { %6481 = vmatpush1.bf16.msra.mxu1 %v8274_v2 }
0x2f34   :  { %5989 = vmatprep.subr.msk.mxu1 %vm143_vm0, %v8280_v49 }
0x2f37   :  { %5990 = vmatpush1.msk.msra.mxu1 %vm143_vm0, %v8288_v4 }
0x2f38   :  { %6495 = vmatprep.subr.bf16.mxu1 %v8224_v54 }
0x2ffd   :  { %v2864_v15 = vpop.f32.mrb[50].mxu1 }
0x2ffe   :  { %v2869_v16 = vadd.f32 %v2864_v15, %v2794_v63  ;;  %v2866_v17 = vpop.f32.mrb[51].mxu1 }
0x2fff   :  { %v2870_v28 = vadd.f32 %v2866_v17, %v2795_v29 }
0x3000   :  { %6894 = vtanh.f32 %v2869_v16  ;;  %v2871_v37 = vsub.f32 0.0, %v2869_v16 }
0x3001   :  { %6896 = vtanh.f32 %v2870_v28  ;;  %v2872_v55 = vsub.f32 0.0, %v2870_v28 }
0x3002   :  { %v2873_v41 = vmul.f32 1.442695, %v2871_v37 }
0x3003   :  { %v2875_v56 = vmul.f32 1.442695, %v2872_v55 }
0x3004   :  { %6898 = vpow2.f32 %v2873_v41 }
0x300a   :  { %v6895_v30 = vpop.eup %6894 }
0x300b   :  { %v6897_v36 = vpop.eup %6896  ;;  %2886 = vrot.lane.b32.xlu0 %v6895_v30, %s7354_s3 }
0x300c   :  { %2888 = vrot.lane.b32.xlu1 %v6897_v36, %s7354_s3  ;;  %v3024_v36 = vld [vmem:[#allocation3 + $0xa0] sm:$0xff] }
0x300e   :  { %v6899_v48 = vpop.eup %6898 }
0x300f   :  { %v2877_v35 = vadd.f32 1.0, %v6899_v48  ;;  %v3025_v48 = vld [vmem:[#allocation3 + $0xa8] sm:$0xff] }
0x3011   :  { %6900 = vrcp.f32 %v2877_v35 }
0x301b   :  { %v6901_v43 = vpop.eup %6900 }
0x301c   :  { %v2883_v46 = vmul.f32 %v6901_v43, %v2782_v5 }
0x307d   :  { %v2887_v51 = vpop.permute.xlu0 %2886 }
0x307e   :  { %v2889_v40 = vpop.permute.xlu1 %2888 }
0x307f   :  { %v2890_v45 = vsel %vm686_vm3, %v2887_v51, %v2889_v40 }
0x3080   :  { %v2892_v27 = vmul.f32 %v6901_v43, %v2890_v45 }
0x3082   :  { %2894 = vrot.lane.b32.xlu0 %v2892_v27, %s7355_s24 }
0x30f4   :  { %v2895_v26 = vpop.permute.xlu0 %2894 }
0x30f5   :  { %v2897_v52 = vadd.f32 %v2895_v26, %v2883_v46 }
0x30f7   :  { %6902 = vtanh.f32 %v2897_v52 }
0x30f8   :  { %6904 = vpow2.f32 %v2875_v56 }
0x3101   :  { %v6903_v53 = vpop.eup %6902 }
0x3102   :  { %2900 = vrot.lane.b32.xlu1 %v6903_v53, %s7356_s18  ;;  %v6905_v59 = vpop.eup %6904 }
0x3103   :  { %v2878_v58 = vadd.f32 1.0, %v6905_v59 }
0x3105   :  { %6906 = vrcp.f32 %v2878_v58 }
0x310f   :  { %v6907_v61 = vpop.eup %6906 }
0x3174   :  { %v2901_v10 = vpop.permute.xlu1 %2900 }
0x3175   :  { %v2903_v1 = vmul.f32 %v6907_v61, %v2901_v10 }
0x3177   :  { %2905 = vrot.lane.b32.xlu0 %v2903_v1, %s7357_s4 }
0x31e9   :  { %v2906_v19 = vpop.permute.xlu0 %2905 }
0x31ea   :  { %2908 = vst.msk [vmem:[#allocation5 + $0x60] sm:$0xff] %vm94_vm1, %v2906_v19  ;;  %5988 = vmatmul.mubr.msk.f32.vlgmr.msra.gmra.mrb[52].mxu0 %vm94_vm1, %v2906_v19 }
0x31eb   :  { %6485 = vmatpush1.bf16.msra.mxu0 %v8242_v23  ;;  %3207 = vmatprep.mubr.f32.mxu0 %v7353_v3 }
0x31ec   :  { %6487 = vmatprep.subr.bf16.mxu0 %v8244_v24 }
0x31ef   :  { %6489 = vmatpush1.bf16.msra.mxu0 %v8261_v38 }
0x31f0   :  { %6491 = vmatprep.subr.bf16.mxu0 %v8265_v39 }
0x31f3   :  { %6493 = vmatpush1.bf16.msra.mxu0 %v8274_v2 }
0x31f4   :  { %5992 = vmatprep.subr.msk.mxu0 %vm143_vm0, %v8280_v49 }
0x31f7   :  { %5993 = vmatpush1.msk.msra.mxu0 %vm143_vm0, %v8288_v4 }
0x31f8   :  { %6507 = vmatprep.subr.bf16.mxu0 %v8224_v54 }
0x32bd   :  { %v2979_v47 = vpop.f32.mrb[52].mxu0 }
0x32be   :  { %v2984_v18 = vadd.f32 %v2979_v47, %v2909_v20  ;;  %v2981_v25 = vpop.f32.mrb[53].mxu0 }
0x32bf   :  { %v2985_v31 = vadd.f32 %v2981_v25, %v2910_v21 }
0x32c0   :  { %6908 = vtanh.f32 %v2984_v18  ;;  %v2986_v34 = vsub.f32 0.0, %v2984_v18 }
0x32c1   :  { %6910 = vtanh.f32 %v2985_v31  ;;  %v2987_v22 = vsub.f32 0.0, %v2985_v31 }
0x32c2   :  { %v2988_v60 = vmul.f32 1.442695, %v2986_v34 }
0x32c3   :  { %v2990_v63 = vmul.f32 1.442695, %v2987_v22 }
0x32c4   :  { %6912 = vpow2.f32 %v2988_v60 }
0x32ca   :  { %v6909_v32 = vpop.eup %6908 }
0x32cb   :  { %v6911_v33 = vpop.eup %6910  ;;  %3001 = vrot.lane.b32.xlu1 %v6909_v32, %s7354_s3 }
0x32cc   :  { %3003 = vrot.lane.b32.xlu0 %v6911_v33, %s7354_s3  ;;  %v3139_v33 = vld [vmem:[#allocation3 + $0x90] sm:$0xff] }
0x32ce   :  { %v6913_v0 = vpop.eup %6912 }
0x32cf   :  { %v2992_v50 = vadd.f32 1.0, %v6913_v0  ;;  %v3140_v0 = vld [vmem:[#allocation3 + $0x98] sm:$0xff] }
0x32d1   :  { %6914 = vrcp.f32 %v2992_v50 }
0x32db   :  { %v6915_v42 = vpop.eup %6914 }
0x32dc   :  { %v2998_v11 = vmul.f32 %v6915_v42, %v2897_v52 }
0x333d   :  { %v3002_v5 = vpop.permute.xlu1 %3001 }
0x333e   :  { %v3004_v7 = vpop.permute.xlu0 %3003 }
0x333f   :  { %v3005_v6 = vsel %vm686_vm3, %v3002_v5, %v3004_v7 }
0x3340   :  { %v3007_v9 = vmul.f32 %v6915_v42, %v3005_v6 }
0x3342   :  { %3009 = vrot.lane.b32.xlu1 %v3007_v9, %s7355_s24 }
0x33b4   :  { %v3010_v14 = vpop.permute.xlu1 %3009 }
0x33b5   :  { %v3012_v13 = vadd.f32 %v3010_v14, %v2998_v11 }
0x33b7   :  { %6916 = vtanh.f32 %v3012_v13 }
0x33b8   :  { %6918 = vpow2.f32 %v2990_v63 }
0x33c1   :  { %v6917_v62 = vpop.eup %6916 }
0x33c2   :  { %3015 = vrot.lane.b32.xlu0 %v6917_v62, %s7356_s18  ;;  %v6919_v15 = vpop.eup %6918 }
0x33c3   :  { %v2993_v16 = vadd.f32 1.0, %v6919_v15 }
0x33c5   :  { %6920 = vrcp.f32 %v2993_v16 }
0x33cf   :  { %v6921_v29 = vpop.eup %6920 }
0x3434   :  { %v3016_v17 = vpop.permute.xlu0 %3015 }
0x3435   :  { %v3018_v28 = vmul.f32 %v6921_v29, %v3016_v17 }
0x3437   :  { %3020 = vrot.lane.b32.xlu1 %v3018_v28, %s7357_s4 }
0x34a9   :  { %v3021_v30 = vpop.permute.xlu1 %3020 }
0x34aa   :  { %3023 = vst.msk [vmem:[#allocation5 + $0x58] sm:$0xff] %vm94_vm1, %v3021_v30  ;;  %5991 = vmatmul.mubr.msk.f32.vlgmr.msra.gmra.mrb[52].mxu1 %vm94_vm1, %v3021_v30 }
0x34ab   :  { %6497 = vmatpush1.bf16.msra.mxu1 %v8242_v23  ;;  %3322 = vmatprep.mubr.f32.mxu1 %v7353_v3 }
0x34ac   :  { %6499 = vmatprep.subr.bf16.mxu1 %v8244_v24 }
0x34af   :  { %6501 = vmatpush1.bf16.msra.mxu1 %v8261_v38 }
0x34b0   :  { %6503 = vmatprep.subr.bf16.mxu1 %v8265_v39 }
0x34b3   :  { %6505 = vmatpush1.bf16.msra.mxu1 %v8274_v2 }
0x34b4   :  { %5995 = vmatprep.subr.msk.mxu1 %vm143_vm0, %v8280_v49 }
0x34b7   :  { %5996 = vmatpush1.msk.msra.mxu1 %vm143_vm0, %v8288_v4 }
0x34b8   :  { %6519 = vmatprep.subr.bf16.mxu1 %v8224_v54 }
0x357d   :  { %v3094_v37 = vpop.f32.mrb[52].mxu1 }
0x357e   :  { %v3099_v41 = vadd.f32 %v3094_v37, %v3024_v36  ;;  %v3096_v35 = vpop.f32.mrb[53].mxu1 }
0x357f   :  { %v3100_v51 = vadd.f32 %v3096_v35, %v3025_v48 }
0x3580   :  { %6922 = vtanh.f32 %v3099_v41  ;;  %v3101_v45 = vsub.f32 0.0, %v3099_v41 }
0x3581   :  { %6924 = vtanh.f32 %v3100_v51  ;;  %v3102_v19 = vsub.f32 0.0, %v3100_v51 }
0x3582   :  { %v3103_v27 = vmul.f32 1.442695, %v3101_v45 }
0x3583   :  { %v3105_v20 = vmul.f32 1.442695, %v3102_v19 }
0x3584   :  { %6926 = vpow2.f32 %v3103_v27 }
0x358a   :  { %v6923_v40 = vpop.eup %6922 }
0x358b   :  { %v6925_v43 = vpop.eup %6924  ;;  %3116 = vrot.lane.b32.xlu0 %v6923_v40, %s7354_s3 }
0x358c   :  { %3118 = vrot.lane.b32.xlu1 %v6925_v43, %s7354_s3  ;;  %v3254_v43 = vld [vmem:[#allocation3 + $0x80] sm:$0xff] }
0x358e   :  { %v6927_v46 = vpop.eup %6926 }
0x358f   :  { %v3107_v26 = vadd.f32 1.0, %v6927_v46  ;;  %v3255_v46 = vld [vmem:[#allocation3 + $0x88] sm:$0xff] }
0x3591   :  { %6928 = vrcp.f32 %v3107_v26 }
0x359b   :  { %v6929_v55 = vpop.eup %6928 }
0x359c   :  { %v3113_v58 = vmul.f32 %v6929_v55, %v3012_v13 }
0x35fd   :  { %v3117_v52 = vpop.permute.xlu0 %3116 }
0x35fe   :  { %v3119_v53 = vpop.permute.xlu1 %3118 }
0x35ff   :  { %v3120_v56 = vsel %vm686_vm3, %v3117_v52, %v3119_v53 }
0x3600   :  { %v3122_v59 = vmul.f32 %v6929_v55, %v3120_v56 }
0x3602   :  { %3124 = vrot.lane.b32.xlu0 %v3122_v59, %s7355_s24 }
0x3674   :  { %v3125_v61 = vpop.permute.xlu0 %3124 }
0x3675   :  { %v3127_v10 = vadd.f32 %v3125_v61, %v3113_v58 }
0x3677   :  { %6930 = vtanh.f32 %v3127_v10 }
0x3678   :  { %6932 = vpow2.f32 %v3105_v20 }
0x3681   :  { %v6931_v1 = vpop.eup %6930 }
0x3682   :  { %3130 = vrot.lane.b32.xlu1 %v6931_v1, %s7356_s18  ;;  %v6933_v47 = vpop.eup %6932 }
0x3683   :  { %v3108_v18 = vadd.f32 1.0, %v6933_v47 }
0x3685   :  { %6934 = vrcp.f32 %v3108_v18 }
0x368f   :  { %v6935_v21 = vpop.eup %6934 }
0x36f4   :  { %v3131_v25 = vpop.permute.xlu1 %3130 }
0x36f5   :  { %v3133_v31 = vmul.f32 %v6935_v21, %v3131_v25 }
0x36f7   :  { %3135 = vrot.lane.b32.xlu0 %v3133_v31, %s7357_s4 }
0x3769   :  { %v3136_v32 = vpop.permute.xlu0 %3135 }
0x376a   :  { %3138 = vst.msk [vmem:[#allocation5 + $0x50] sm:$0xff] %vm94_vm1, %v3136_v32  ;;  %5994 = vmatmul.mubr.msk.f32.vlgmr.msra.gmra.mrb[54].mxu0 %vm94_vm1, %v3136_v32 }
0x376b   :  { %6509 = vmatpush1.bf16.msra.mxu0 %v8242_v23  ;;  %3437 = vmatprep.mubr.f32.mxu0 %v7353_v3 }
0x376c   :  { %6511 = vmatprep.subr.bf16.mxu0 %v8244_v24 }
0x376f   :  { %6513 = vmatpush1.bf16.msra.mxu0 %v8261_v38 }
0x3770   :  { %6515 = vmatprep.subr.bf16.mxu0 %v8265_v39 }
0x3773   :  { %6517 = vmatpush1.bf16.msra.mxu0 %v8274_v2 }
0x3774   :  { %5998 = vmatprep.subr.msk.mxu0 %vm143_vm0, %v8280_v49 }
0x3777   :  { %5999 = vmatpush1.msk.msra.mxu0 %vm143_vm0, %v8288_v4 }
0x3778   :  { %6531 = vmatprep.subr.bf16.mxu0 %v8224_v54 }
0x383d   :  { %v3209_v34 = vpop.f32.mrb[54].mxu0 }
0x383e   :  { %v3214_v60 = vadd.f32 %v3209_v34, %v3139_v33  ;;  %v3211_v50 = vpop.f32.mrb[55].mxu0 }
0x383f   :  { %v3215_v5 = vadd.f32 %v3211_v50, %v3140_v0 }
0x3840   :  { %6936 = vtanh.f32 %v3214_v60  ;;  %v3216_v6 = vsub.f32 0.0, %v3214_v60 }
0x3841   :  { %6938 = vtanh.f32 %v3215_v5  ;;  %v3217_v30 = vsub.f32 0.0, %v3215_v5 }
0x3842   :  { %v3218_v9 = vmul.f32 1.442695, %v3216_v6 }
0x3843   :  { %v3220_v36 = vmul.f32 1.442695, %v3217_v30 }
0x3844   :  { %6940 = vpow2.f32 %v3218_v9 }
0x384a   :  { %v6937_v7 = vpop.eup %6936 }
0x384b   :  { %v6939_v42 = vpop.eup %6938  ;;  %3231 = vrot.lane.b32.xlu1 %v6937_v7, %s7354_s3 }
0x384c   :  { %3233 = vrot.lane.b32.xlu0 %v6939_v42, %s7354_s3  ;;  %v3369_v42 = vld [vmem:[#allocation3 + $0x70] sm:$0xff] }
0x384e   :  { %v6941_v11 = vpop.eup %6940 }
0x384f   :  { %v3222_v14 = vadd.f32 1.0, %v6941_v11  ;;  %v3370_v11 = vld [vmem:[#allocation3 + $0x78] sm:$0xff] }
0x3851   :  { %6942 = vrcp.f32 %v3222_v14 }
0x385b   :  { %v6943_v22 = vpop.eup %6942 }
0x385c   :  { %v3228_v16 = vmul.f32 %v6943_v22, %v3127_v10 }
0x38bd   :  { %v3232_v13 = vpop.permute.xlu1 %3231 }
0x38be   :  { %v3234_v62 = vpop.permute.xlu0 %3233 }
0x38bf   :  { %v3235_v63 = vsel %vm686_vm3, %v3232_v13, %v3234_v62 }
0x38c0   :  { %v3237_v15 = vmul.f32 %v6943_v22, %v3235_v63 }
0x38c2   :  { %3239 = vrot.lane.b32.xlu1 %v3237_v15, %s7355_s24 }
0x3934   :  { %v3240_v29 = vpop.permute.xlu1 %3239 }
0x3935   :  { %v3242_v17 = vadd.f32 %v3240_v29, %v3228_v16 }
0x3937   :  { %6944 = vtanh.f32 %v3242_v17 }
0x3938   :  { %6946 = vpow2.f32 %v3220_v36 }
0x3941   :  { %v6945_v28 = vpop.eup %6944 }
0x3942   :  { %3245 = vrot.lane.b32.xlu0 %v6945_v28, %s7356_s18  ;;  %v6947_v37 = vpop.eup %6946 }
0x3943   :  { %v3223_v41 = vadd.f32 1.0, %v6947_v37 }
0x3945   :  { %6948 = vrcp.f32 %v3223_v41 }
0x394f   :  { %v6949_v48 = vpop.eup %6948 }
0x39b4   :  { %v3246_v35 = vpop.permute.xlu0 %3245 }
0x39b5   :  { %v3248_v51 = vmul.f32 %v6949_v48, %v3246_v35 }
0x39b7   :  { %3250 = vrot.lane.b32.xlu1 %v3248_v51, %s7357_s4 }
0x3a29   :  { %v3251_v40 = vpop.permute.xlu1 %3250 }
0x3a2a   :  { %3253 = vst.msk [vmem:[#allocation5 + $0x48] sm:$0xff] %vm94_vm1, %v3251_v40  ;;  %5997 = vmatmul.mubr.msk.f32.vlgmr.msra.gmra.mrb[54].mxu1 %vm94_vm1, %v3251_v40 }
0x3a2b   :  { %6521 = vmatpush1.bf16.msra.mxu1 %v8242_v23  ;;  %3552 = vmatprep.mubr.f32.mxu1 %v7353_v3 }
0x3a2c   :  { %6523 = vmatprep.subr.bf16.mxu1 %v8244_v24 }
0x3a2f   :  { %6525 = vmatpush1.bf16.msra.mxu1 %v8261_v38 }
0x3a30   :  { %6527 = vmatprep.subr.bf16.mxu1 %v8265_v39 }
0x3a33   :  { %6529 = vmatpush1.bf16.msra.mxu1 %v8274_v2 }
0x3a34   :  { %6001 = vmatprep.subr.msk.mxu1 %vm143_vm0, %v8280_v49 }
0x3a37   :  { %6002 = vmatpush1.msk.msra.mxu1 %vm143_vm0, %v8288_v4 }
0x3a38   :  { %6543 = vmatprep.subr.bf16.mxu1 %v8224_v54 }
0x3afd   :  { %v3324_v45 = vpop.f32.mrb[54].mxu1 }
0x3afe   :  { %v3329_v27 = vadd.f32 %v3324_v45, %v3254_v43  ;;  %v3326_v26 = vpop.f32.mrb[55].mxu1 }
0x3aff   :  { %v3330_v52 = vadd.f32 %v3326_v26, %v3255_v46 }
0x3b00   :  { %6950 = vtanh.f32 %v3329_v27  ;;  %v3331_v56 = vsub.f32 0.0, %v3329_v27 }
0x3b01   :  { %6952 = vtanh.f32 %v3330_v52  ;;  %v3332_v32 = vsub.f32 0.0, %v3330_v52  ;;  %v8505_v52 = vld [vmem:[%s9212_s5 + $0x68] sm:$0x3] }
0x3b02   :  { %v3333_v59 = vmul.f32 1.442695, %v3331_v56 }
0x3b03   :  { %v3335_v33 = vmul.f32 1.442695, %v3332_v32 }
0x3b04   :  { %6954 = vpow2.f32 %v3333_v59 }
0x3b0a   :  { %v6951_v53 = vpop.eup %6950 }
0x3b0b   :  { %v6953_v55 = vpop.eup %6952  ;;  %3346 = vrot.lane.b32.xlu0 %v6951_v53, %s7354_s3  ;;  %v8512_v53 = vld [vmem:[%s9212_s5 + $0x60] sm:$0x3] }
0x3b0c   :  { %3348 = vrot.lane.b32.xlu1 %v6953_v55, %s7354_s3  ;;  %v3484_v55 = vld [vmem:[#allocation3 + $0x60] sm:$0xff] }
0x3b0e   :  { %v6955_v58 = vpop.eup %6954 }
0x3b0f   :  { %v3337_v61 = vadd.f32 1.0, %v6955_v58  ;;  %v3485_v58 = vld [vmem:[#allocation3 + $0x68] sm:$0xff] }
0x3b11   :  { %6956 = vrcp.f32 %v3337_v61 }
0x3b1b   :  { %v6957_v19 = vpop.eup %6956 }
0x3b1c   :  { %v3343_v18 = vmul.f32 %v6957_v19, %v3242_v17 }
0x3b7d   :  { %v3347_v10 = vpop.permute.xlu0 %3346 }
0x3b7e   :  { %v3349_v1 = vpop.permute.xlu1 %3348 }
0x3b7f   :  { %v3350_v20 = vsel %vm686_vm3, %v3347_v10, %v3349_v1 }
0x3b80   :  { %v3352_v47 = vmul.f32 %v6957_v19, %v3350_v20 }
0x3b82   :  { %3354 = vrot.lane.b32.xlu0 %v3352_v47, %s7355_s24 }
0x3bf4   :  { %v3355_v21 = vpop.permute.xlu0 %3354 }
0x3bf5   :  { %v3357_v25 = vadd.f32 %v3355_v21, %v3343_v18 }
0x3bf7   :  { %6958 = vtanh.f32 %v3357_v25 }
0x3bf8   :  { %6960 = vpow2.f32 %v3335_v33 }
0x3c01   :  { %v6959_v31 = vpop.eup %6958 }
0x3c02   :  { %3360 = vrot.lane.b32.xlu1 %v6959_v31, %s7356_s18  ;;  %v6961_v34 = vpop.eup %6960 }
0x3c03   :  { %v3338_v60 = vadd.f32 1.0, %v6961_v34 }
0x3c05   :  { %6962 = vrcp.f32 %v3338_v60 }
0x3c0f   :  { %v6963_v0 = vpop.eup %6962 }
0x3c74   :  { %v3361_v50 = vpop.permute.xlu1 %3360 }
0x3c75   :  { %v3363_v5 = vmul.f32 %v6963_v0, %v3361_v50 }
0x3c77   :  { %3365 = vrot.lane.b32.xlu0 %v3363_v5, %s7357_s4 }
0x3ce9   :  { %v3366_v7 = vpop.permute.xlu0 %3365 }
0x3cea   :  { %3368 = vst.msk [vmem:[#allocation5 + $0x40] sm:$0xff] %vm94_vm1, %v3366_v7  ;;  %6000 = vmatmul.mubr.msk.f32.vlgmr.msra.gmra.mrb[56].mxu0 %vm94_vm1, %v3366_v7 }
0x3ceb   :  { %6533 = vmatpush1.bf16.msra.mxu0 %v8242_v23  ;;  %3667 = vmatprep.mubr.f32.mxu0 %v7353_v3 }
0x3cec   :  { %6535 = vmatprep.subr.bf16.mxu0 %v8244_v24 }
0x3cef   :  { %6537 = vmatpush1.bf16.msra.mxu0 %v8261_v38 }
0x3cf0   :  { %6539 = vmatprep.subr.bf16.mxu0 %v8265_v39 }
0x3cf3   :  { %6541 = vmatpush1.bf16.msra.mxu0 %v8274_v2 }
0x3cf4   :  { %6004 = vmatprep.subr.msk.mxu0 %vm143_vm0, %v8280_v49 }
0x3cf7   :  { %6005 = vmatpush1.msk.msra.mxu0 %vm143_vm0, %v8288_v4 }
0x3cf8   :  { %6555 = vmatprep.subr.bf16.mxu0 %v8224_v54 }
0x3dbd   :  { %v3439_v6 = vpop.f32.mrb[56].mxu0 }
0x3dbe   :  { %v3444_v9 = vadd.f32 %v3439_v6, %v3369_v42  ;;  %v3441_v14 = vpop.f32.mrb[57].mxu0 }
0x3dbf   :  { %v3445_v13 = vadd.f32 %v3441_v14, %v3370_v11 }
0x3dc0   :  { %6964 = vtanh.f32 %v3444_v9  ;;  %v3446_v49 = vsub.f32 0.0, %v3444_v9 }
0x3dc1   :  { %6966 = vtanh.f32 %v3445_v13  ;;  %v3447_v35 = vsub.f32 0.0, %v3445_v13 }
0x3dc2   :  { %v3448_v63 = vmul.f32 1.442695, %v3446_v49 }
0x3dc3   :  { %v3450_v51 = vmul.f32 1.442695, %v3447_v35 }
0x3dc4   :  { %6968 = vpow2.f32 %v3448_v63 }
0x3dca   :  { %v6965_v62 = vpop.eup %6964 }
0x3dcb   :  { %v6967_v22 = vpop.eup %6966  ;;  %3461 = vrot.lane.b32.xlu1 %v6965_v62, %s7354_s3 }
0x3dcc   :  { %3463 = vrot.lane.b32.xlu0 %v6967_v22, %s7354_s3  ;;  %v3599_v22 = vld [vmem:[#allocation3 + $0x50] sm:$0xff] }
0x3dce   :  { %v6969_v4 = vpop.eup %6968 }
0x3dcf   :  { %v3452_v15 = vadd.f32 1.0, %v6969_v4  ;;  %v3600_v4 = vld [vmem:[#allocation3 + $0x58] sm:$0xff] }
0x3dd1   :  { %6970 = vrcp.f32 %v3452_v15 }
0x3ddb   :  { %v6971_v17 = vpop.eup %6970 }
0x3ddc   :  { %v3458_v36 = vmul.f32 %v6971_v17, %v3357_v25 }
0x3e3d   :  { %v3462_v16 = vpop.permute.xlu1 %3461 }
0x3e3e   :  { %v3464_v29 = vpop.permute.xlu0 %3463 }
0x3e3f   :  { %v3465_v28 = vsel %vm686_vm3, %v3462_v16, %v3464_v29 }
0x3e40   :  { %v3467_v30 = vmul.f32 %v6971_v17, %v3465_v28 }
0x3e42   :  { %3469 = vrot.lane.b32.xlu1 %v3467_v30, %s7355_s24 }
0x3eb4   :  { %v3470_v37 = vpop.permute.xlu1 %3469 }
0x3eb5   :  { %v3472_v41 = vadd.f32 %v3470_v37, %v3458_v36 }
0x3eb7   :  { %6972 = vtanh.f32 %v3472_v41 }
0x3eb8   :  { %6974 = vpow2.f32 %v3450_v51 }
0x3ec1   :  { %v6973_v48 = vpop.eup %6972 }
0x3ec2   :  { %3475 = vrot.lane.b32.xlu0 %v6973_v48, %s7356_s18  ;;  %v6975_v40 = vpop.eup %6974 }
0x3ec3   :  { %v3453_v43 = vadd.f32 1.0, %v6975_v40 }
0x3ec5   :  { %6976 = vrcp.f32 %v3453_v43 }
0x3ecf   :  { %v6977_v45 = vpop.eup %6976 }
0x3f34   :  { %v3476_v27 = vpop.permute.xlu0 %3475 }
0x3f35   :  { %v3478_v46 = vmul.f32 %v6977_v45, %v3476_v27 }
0x3f37   :  { %3480 = vrot.lane.b32.xlu1 %v3478_v46, %s7357_s4 }
0x3fa9   :  { %v3481_v26 = vpop.permute.xlu1 %3480 }
0x3faa   :  { %3483 = vst.msk [vmem:[#allocation5 + $0x38] sm:$0xff] %vm94_vm1, %v3481_v26  ;;  %6003 = vmatmul.mubr.msk.f32.vlgmr.msra.gmra.mrb[56].mxu1 %vm94_vm1, %v3481_v26 }
0x3fab   :  { %6545 = vmatpush1.bf16.msra.mxu1 %v8242_v23  ;;  %3782 = vmatprep.mubr.f32.mxu1 %v7353_v3 }
0x3fac   :  { %6547 = vmatprep.subr.bf16.mxu1 %v8244_v24 }
0x3faf   :  { %6549 = vmatpush1.bf16.msra.mxu1 %v8261_v38 }
0x3fb0   :  { %6551 = vmatprep.subr.bf16.mxu1 %v8265_v39 }
0x3fb3   :  { %6553 = vmatpush1.bf16.msra.mxu1 %v8274_v2 }
0x3fb4   :  { %6007 = vmatprep.subr.msk.mxu1 %vm143_vm0, %v8505_v52 }
0x3fb7   :  { %6008 = vmatpush1.msk.msra.mxu1 %vm143_vm0, %v8512_v53 }
0x3fb8   :  { %6567 = vmatprep.subr.bf16.mxu1 %v8224_v54 }
0x407d   :  { %v3554_v56 = vpop.f32.mrb[56].mxu1 }
0x407e   :  { %v3559_v59 = vadd.f32 %v3554_v56, %v3484_v55  ;;  %v3556_v61 = vpop.f32.mrb[57].mxu1 }
0x407f   :  { %v3560_v10 = vadd.f32 %v3556_v61, %v3485_v58 }
0x4080   :  { %6978 = vtanh.f32 %v3559_v59  ;;  %v3561_v20 = vsub.f32 0.0, %v3559_v59 }
0x4081   :  { %6980 = vtanh.f32 %v3560_v10  ;;  %v3562_v7 = vsub.f32 0.0, %v3560_v10 }
0x4082   :  { %v3563_v47 = vmul.f32 1.442695, %v3561_v20 }
0x4083   :  { %v3565_v42 = vmul.f32 1.442695, %v3562_v7 }
0x4084   :  { %6982 = vpow2.f32 %v3563_v47 }
0x408a   :  { %v6979_v1 = vpop.eup %6978 }
0x408b   :  { %v6981_v19 = vpop.eup %6980  ;;  %3576 = vrot.lane.b32.xlu0 %v6979_v1, %s7354_s3 }
0x408c   :  { %3578 = vrot.lane.b32.xlu1 %v6981_v19, %s7354_s3  ;;  %v3714_v19 = vld [vmem:[#allocation3 + $0x40] sm:$0xff] }
0x408e   :  { %v6983_v18 = vpop.eup %6982 }
0x408f   :  { %v3567_v21 = vadd.f32 1.0, %v6983_v18  ;;  %v3715_v18 = vld [vmem:[#allocation3 + $0x48] sm:$0xff] }
0x4091   :  { %6984 = vrcp.f32 %v3567_v21 }
0x409b   :  { %v6985_v32 = vpop.eup %6984 }
0x409c   :  { %v3573_v60 = vmul.f32 %v6985_v32, %v3472_v41 }
0x40fd   :  { %v3577_v25 = vpop.permute.xlu0 %3576 }
0x40fe   :  { %v3579_v31 = vpop.permute.xlu1 %3578 }
0x40ff   :  { %v3580_v33 = vsel %vm686_vm3, %v3577_v25, %v3579_v31 }
0x4100   :  { %v3582_v34 = vmul.f32 %v6985_v32, %v3580_v33 }
0x4102   :  { %3584 = vrot.lane.b32.xlu0 %v3582_v34, %s7355_s24 }
0x4174   :  { %v3585_v0 = vpop.permute.xlu0 %3584 }
0x4175   :  { %v3587_v50 = vadd.f32 %v3585_v0, %v3573_v60 }
0x4177   :  { %6986 = vtanh.f32 %v3587_v50 }
0x4178   :  { %6988 = vpow2.f32 %v3565_v42 }
0x4181   :  { %v6987_v5 = vpop.eup %6986 }
0x4182   :  { %3590 = vrot.lane.b32.xlu1 %v6987_v5, %s7356_s18  ;;  %v6989_v6 = vpop.eup %6988 }
0x4183   :  { %v3568_v9 = vadd.f32 1.0, %v6989_v6 }
0x4185   :  { %6990 = vrcp.f32 %v3568_v9 }
0x418f   :  { %v6991_v11 = vpop.eup %6990 }
0x41f4   :  { %v3591_v14 = vpop.permute.xlu1 %3590 }
0x41f5   :  { %v3593_v13 = vmul.f32 %v6991_v11, %v3591_v14 }
0x41f7   :  { %3595 = vrot.lane.b32.xlu0 %v3593_v13, %s7357_s4 }
0x4269   :  { %v3596_v62 = vpop.permute.xlu0 %3595 }
0x426a   :  { %3598 = vst.msk [vmem:[#allocation5 + $0x30] sm:$0xff] %vm94_vm1, %v3596_v62  ;;  %6006 = vmatmul.mubr.msk.f32.vlgmr.msra.gmra.mrb[58].mxu0 %vm94_vm1, %v3596_v62 }
0x426b   :  { %6557 = vmatpush1.bf16.msra.mxu0 %v8242_v23  ;;  %3897 = vmatprep.mubr.f32.mxu0 %v7353_v3 }
0x426c   :  { %6559 = vmatprep.subr.bf16.mxu0 %v8244_v24 }
0x426f   :  { %6561 = vmatpush1.bf16.msra.mxu0 %v8261_v38 }
0x4270   :  { %6563 = vmatprep.subr.bf16.mxu0 %v8265_v39 }
0x4273   :  { %6565 = vmatpush1.bf16.msra.mxu0 %v8274_v2 }
0x4274   :  { %6010 = vmatprep.subr.msk.mxu0 %vm143_vm0, %v8505_v52 }
0x4277   :  { %6011 = vmatpush1.msk.msra.mxu0 %vm143_vm0, %v8512_v53 }
0x4278   :  { %6579 = vmatprep.subr.bf16.mxu0 %v8224_v54 }
0x433d   :  { %v3669_v49 = vpop.f32.mrb[58].mxu0 }
0x433e   :  { %v3674_v63 = vadd.f32 %v3669_v49, %v3599_v22  ;;  %v3671_v15 = vpop.f32.mrb[59].mxu0 }
0x433f   :  { %v3675_v16 = vadd.f32 %v3671_v15, %v3600_v4 }
0x4340   :  { %6992 = vtanh.f32 %v3674_v63  ;;  %v3676_v28 = vsub.f32 0.0, %v3674_v63 }
0x4341   :  { %6994 = vtanh.f32 %v3675_v16  ;;  %v3677_v26 = vsub.f32 0.0, %v3675_v16 }
0x4342   :  { %v3678_v30 = vmul.f32 1.442695, %v3676_v28 }
0x4343   :  { %v3680_v55 = vmul.f32 1.442695, %v3677_v26 }
0x4344   :  { %6996 = vpow2.f32 %v3678_v30  ;;  %v3830_v30 = vld [vmem:[#allocation3 + $0x38] sm:$0xff] }
0x434a   :  { %v6993_v29 = vpop.eup %6992 }
0x434b   :  { %v6995_v17 = vpop.eup %6994  ;;  %3691 = vrot.lane.b32.xlu1 %v6993_v29, %s7354_s3  ;;  %v3829_v29 = vld [vmem:[#allocation3 + $0x30] sm:$0xff] }
0x434c   :  { %3693 = vrot.lane.b32.xlu0 %v6995_v17, %s7354_s3 }
0x434e   :  { %v6997_v36 = vpop.eup %6996 }
0x434f   :  { %v3682_v37 = vadd.f32 1.0, %v6997_v36 }
0x4351   :  { %6998 = vrcp.f32 %v3682_v37 }
0x435b   :  { %v6999_v35 = vpop.eup %6998 }
0x435c   :  { %v3688_v43 = vmul.f32 %v6999_v35, %v3587_v50 }
0x43bd   :  { %v3692_v41 = vpop.permute.xlu1 %3691 }
0x43be   :  { %v3694_v48 = vpop.permute.xlu0 %3693 }
0x43bf   :  { %v3695_v51 = vsel %vm686_vm3, %v3692_v41, %v3694_v48 }
0x43c0   :  { %v3697_v40 = vmul.f32 %v6999_v35, %v3695_v51 }
0x43c2   :  { %3699 = vrot.lane.b32.xlu1 %v3697_v40, %s7355_s24 }
0x4434   :  { %v3700_v45 = vpop.permute.xlu1 %3699 }
0x4435   :  { %v3702_v27 = vadd.f32 %v3700_v45, %v3688_v43 }
0x4437   :  { %7000 = vtanh.f32 %v3702_v27 }
0x4438   :  { %7002 = vpow2.f32 %v3680_v55 }
0x4441   :  { %v7001_v46 = vpop.eup %7000 }
0x4442   :  { %3705 = vrot.lane.b32.xlu0 %v7001_v46, %s7356_s18  ;;  %v7003_v56 = vpop.eup %7002 }
0x4443   :  { %v3683_v59 = vadd.f32 1.0, %v7003_v56 }
0x4445   :  { %7004 = vrcp.f32 %v3683_v59 }
0x444f   :  { %v7005_v58 = vpop.eup %7004 }
0x44b4   :  { %v3706_v61 = vpop.permute.xlu0 %3705 }
0x44b5   :  { %v3708_v10 = vmul.f32 %v7005_v58, %v3706_v61 }
0x44b7   :  { %3710 = vrot.lane.b32.xlu1 %v3708_v10, %s7357_s4 }
0x4529   :  { %v3711_v1 = vpop.permute.xlu1 %3710 }
0x452a   :  { %3713 = vst.msk [vmem:[#allocation5 + $0x28] sm:$0xff] %vm94_vm1, %v3711_v1  ;;  %6009 = vmatmul.mubr.msk.f32.vlgmr.msra.gmra.mrb[58].mxu1 %vm94_vm1, %v3711_v1 }
0x452b   :  { %6569 = vmatpush1.bf16.msra.mxu1 %v8242_v23  ;;  %4012 = vmatprep.mubr.f32.mxu1 %v7353_v3 }
0x452c   :  { %6571 = vmatprep.subr.bf16.mxu1 %v8244_v24 }
0x452f   :  { %6573 = vmatpush1.bf16.msra.mxu1 %v8261_v38 }
0x4530   :  { %6575 = vmatprep.subr.bf16.mxu1 %v8265_v39 }
0x4533   :  { %6577 = vmatpush1.bf16.msra.mxu1 %v8274_v2 }
0x4534   :  { %6013 = vmatprep.subr.msk.mxu1 %vm143_vm0, %v8505_v52 }
0x4537   :  { %6014 = vmatpush1.msk.msra.mxu1 %vm143_vm0, %v8512_v53 }
0x4538   :  { %6591 = vmatprep.subr.bf16.mxu1 %v8224_v54 }
0x45fd   :  { %v3784_v20 = vpop.f32.mrb[58].mxu1 }
0x45fe   :  { %v3789_v47 = vadd.f32 %v3784_v20, %v3714_v19  ;;  %v3786_v21 = vpop.f32.mrb[59].mxu1 }
0x45ff   :  { %v3790_v25 = vadd.f32 %v3786_v21, %v3715_v18 }
0x4600   :  { %7006 = vtanh.f32 %v3789_v47  ;;  %v3791_v33 = vsub.f32 0.0, %v3789_v47 }
0x4601   :  { %7008 = vtanh.f32 %v3790_v25  ;;  %v3792_v13 = vsub.f32 0.0, %v3790_v25 }
0x4602   :  { %v3793_v34 = vmul.f32 1.442695, %v3791_v33 }
0x4603   :  { %v3795_v62 = vmul.f32 1.442695, %v3792_v13 }
0x4604   :  { %7010 = vpow2.f32 %v3793_v34 }
0x460a   :  { %v7007_v31 = vpop.eup %7006 }
0x460b   :  { %v7009_v32 = vpop.eup %7008  ;;  %3806 = vrot.lane.b32.xlu0 %v7007_v31, %s7354_s3  ;;  %v3944_v31 = vld [vmem:[#allocation3 + $0x20] sm:$0xff] }
0x460c   :  { %3808 = vrot.lane.b32.xlu1 %v7009_v32, %s7354_s3 }
0x460e   :  { %v7011_v60 = vpop.eup %7010 }
0x460f   :  { %v3797_v0 = vadd.f32 1.0, %v7011_v60 }
0x4611   :  { %7012 = vrcp.f32 %v3797_v0 }
0x461b   :  { %v7013_v5 = vpop.eup %7012 }
0x461c   :  { %v3803_v6 = vmul.f32 %v7013_v5, %v3702_v27 }
0x467d   :  { %v3807_v54 = vpop.permute.xlu0 %3806 }
0x467e   :  { %v3809_v50 = vpop.permute.xlu1 %3808 }
0x467f   :  { %v3810_v7 = vsel %vm686_vm3, %v3807_v54, %v3809_v50 }
0x4680   :  { %v3812_v42 = vmul.f32 %v7013_v5, %v3810_v7 }
0x4682   :  { %3814 = vrot.lane.b32.xlu0 %v3812_v42, %s7355_s24 }
0x46f4   :  { %v3815_v9 = vpop.permute.xlu0 %3814 }
0x46f5   :  { %v3817_v11 = vadd.f32 %v3815_v9, %v3803_v6 }
0x46f7   :  { %7014 = vtanh.f32 %v3817_v11 }
0x46f8   :  { %7016 = vpow2.f32 %v3795_v62 }
0x4701   :  { %v7015_v14 = vpop.eup %7014 }
0x4702   :  { %3820 = vrot.lane.b32.xlu1 %v7015_v14, %s7356_s18  ;;  %v7017_v22 = vpop.eup %7016 }
0x4703   :  { %v3798_v49 = vadd.f32 1.0, %v7017_v22 }
0x4705   :  { %7018 = vrcp.f32 %v3798_v49 }
0x470f   :  { %v7019_v63 = vpop.eup %7018 }
0x4774   :  { %v3821_v4 = vpop.permute.xlu1 %3820 }
0x4775   :  { %v3823_v15 = vmul.f32 %v7019_v63, %v3821_v4 }
0x4777   :  { %3825 = vrot.lane.b32.xlu0 %v3823_v15, %s7357_s4 }
0x47e9   :  { %v3826_v16 = vpop.permute.xlu0 %3825 }
0x47ea   :  { %3828 = vst.msk [vmem:[#allocation5 + $0x20] sm:$0xff] %vm94_vm1, %v3826_v16  ;;  %6012 = vmatmul.mubr.msk.f32.vlgmr.msra.gmra.mrb[60].mxu0 %vm94_vm1, %v3826_v16  ;;  %v4059_v16 = vld [vmem:[#allocation3 + $0x10] sm:$0xff] }
0x47eb   :  { %6581 = vmatpush1.bf16.msra.mxu0 %v8242_v23  ;;  %4127 = vmatprep.mubr.f32.mxu0 %v7353_v3 }
0x47ec   :  { %6583 = vmatprep.subr.bf16.mxu0 %v8244_v24 }
0x47ef   :  { %6585 = vmatpush1.bf16.msra.mxu0 %v8261_v38 }
0x47f0   :  { %6587 = vmatprep.subr.bf16.mxu0 %v8265_v39 }
0x47f3   :  { %6589 = vmatpush1.bf16.msra.mxu0 %v8274_v2 }
0x47f4   :  { %6016 = vmatprep.subr.msk.mxu0 %vm143_vm0, %v8505_v52 }
0x47f7   :  { %6017 = vmatpush1.msk.msra.mxu0 %vm143_vm0, %v8512_v53 }
0x48bd   :  { %v3899_v17 = vpop.f32.mrb[60].mxu0 }
0x48be   :  { %v3904_v28 = vadd.f32 %v3899_v17, %v3829_v29  ;;  %v3901_v36 = vpop.f32.mrb[61].mxu0 }
0x48bf   :  { %v3905_v37 = vadd.f32 %v3901_v36, %v3830_v30 }
0x48c0   :  { %7020 = vtanh.f32 %v3904_v28  ;;  %v3906_v35 = vsub.f32 0.0, %v3904_v28  ;;  %v4060_v28 = vld [vmem:[#allocation3 + $0x18] sm:$0xff] }
0x48c1   :  { %7022 = vtanh.f32 %v3905_v37  ;;  %v3907_v10 = vsub.f32 0.0, %v3905_v37 }
0x48c2   :  { %v3908_v51 = vmul.f32 1.442695, %v3906_v35 }
0x48c3   :  { %v3910_v1 = vmul.f32 1.442695, %v3907_v10 }
0x48c4   :  { %7024 = vpow2.f32 %v3908_v51 }
0x48ca   :  { %v7021_v41 = vpop.eup %7020 }
0x48cb   :  { %v7023_v48 = vpop.eup %7022  ;;  %3921 = vrot.lane.b32.xlu1 %v7021_v41, %s7354_s3 }
0x48cc   :  { %3923 = vrot.lane.b32.xlu0 %v7023_v48, %s7354_s3 }
0x48ce   :  { %v7025_v40 = vpop.eup %7024 }
0x48cf   :  { %v3912_v43 = vadd.f32 1.0, %v7025_v40 }
0x48d1   :  { %7026 = vrcp.f32 %v3912_v43 }
0x48db   :  { %v7027_v46 = vpop.eup %7026 }
0x48dc   :  { %v3918_v56 = vmul.f32 %v7027_v46, %v3817_v11 }
0x493d   :  { %v3922_v45 = vpop.permute.xlu1 %3921 }
0x493e   :  { %v3924_v27 = vpop.permute.xlu0 %3923 }
0x493f   :  { %v3925_v26 = vsel %vm686_vm3, %v3922_v45, %v3924_v27 }
0x4940   :  { %v3927_v55 = vmul.f32 %v7027_v46, %v3925_v26 }
0x4942   :  { %3929 = vrot.lane.b32.xlu1 %v3927_v55, %s7355_s24 }
0x49b4   :  { %v3930_v59 = vpop.permute.xlu1 %3929 }
0x49b5   :  { %v3932_v58 = vadd.f32 %v3930_v59, %v3918_v56 }
0x49b7   :  { %7028 = vtanh.f32 %v3932_v58 }
0x49b8   :  { %7030 = vpow2.f32 %v3910_v1 }
0x49c1   :  { %v7029_v61 = vpop.eup %7028 }
0x49c2   :  { %3935 = vrot.lane.b32.xlu0 %v7029_v61, %s7356_s18  ;;  %v7031_v19 = vpop.eup %7030 }
0x49c3   :  { %v3913_v20 = vadd.f32 1.0, %v7031_v19 }
0x49c5   :  { %7032 = vrcp.f32 %v3913_v20 }
0x49cf   :  { %v7033_v47 = vpop.eup %7032 }
0x4a34   :  { %v3936_v18 = vpop.permute.xlu0 %3935 }
0x4a35   :  { %v3938_v21 = vmul.f32 %v7033_v47, %v3936_v18 }
0x4a37   :  { %3940 = vrot.lane.b32.xlu1 %v3938_v21, %s7357_s4 }
0x4aa9   :  { %v3941_v25 = vpop.permute.xlu1 %3940 }
0x4aaa   :  { %3943 = vst.msk [vmem:[#allocation5 + $0x18] sm:$0xff] %vm94_vm1, %v3941_v25  ;;  %6015 = vmatmul.mubr.msk.f32.vlgmr.msra.gmra.mrb[60].mxu1 %vm94_vm1, %v3941_v25  ;;  %v4174_v25 = vld [vmem:[#allocation3] sm:$0xff] }
0x4aab   :  { %6593 = vmatpush1.bf16.msra.mxu1 %v8242_v23  ;;  %4242 = vmatprep.mubr.f32.mxu1 %v7353_v3  ;;  %v3945_v23 = vld [vmem:[#allocation3 + $0x28] sm:$0xff] }
0x4aac   :  { %6595 = vmatprep.subr.bf16.mxu1 %v8244_v24 }
0x4aaf   :  { %6597 = vmatpush1.bf16.msra.mxu1 %v8261_v38 }
0x4ab0   :  { %6599 = vmatprep.subr.bf16.mxu1 %v8265_v39 }
0x4ab3   :  { %6601 = vmatpush1.bf16.msra.mxu1 %v8274_v2 }
0x4ab4   :  { %6019 = vmatprep.subr.msk.mxu1 %vm143_vm0, %v8505_v52 }
0x4ab7   :  { %6020 = vmatpush1.msk.msra.mxu1 %vm143_vm0, %v8512_v53 }
0x4b7d   :  { %v4014_v32 = vpop.f32.mrb[60].mxu1 }
0x4b7e   :  { %v4019_v33 = vadd.f32 %v4014_v32, %v3944_v31  ;;  %v4016_v34 = vpop.f32.mrb[61].mxu1 }
0x4b7f   :  { %v4020_v60 = vadd.f32 %v4016_v34, %v3945_v23  ;;  %v2316_v34 = vld [vmem:[#allocation2 + $0xf0] sm:$0xff] }
0x4b80   :  { %7034 = vtanh.f32 %v4019_v33  ;;  %v4021_v39 = vsub.f32 0.0, %v4019_v33  ;;  %v4175_v33 = vld [vmem:[#allocation3 + $0x8] sm:$0xff] }
0x4b81   :  { %7036 = vtanh.f32 %v4020_v60  ;;  %v4022_v14 = vsub.f32 0.0, %v4020_v60 }
0x4b82   :  { %v4023_v2 = vmul.f32 1.442695, %v4021_v39 }
0x4b83   :  { %v4025_v13 = vmul.f32 1.442695, %v4022_v14 }
0x4b84   :  { %7038 = vpow2.f32 %v4023_v2 }
0x4b8a   :  { %v7035_v24 = vpop.eup %7034 }
0x4b8b   :  { %v7037_v38 = vpop.eup %7036  ;;  %4036 = vrot.lane.b32.xlu0 %v7035_v24, %s7354_s3  ;;  %v2391_v24 = vadd.f32 %v8350_v8, %v2316_v34  ;;  %v4553_v34 = vld [vmem:[%s9214_s10 + $0x30] sm:$0x3] }
0x4b8c   :  { %4038 = vrot.lane.b32.xlu1 %v7037_v38, %s7354_s3  ;;  %v2317_v38 = vld [vmem:[#allocation2 + $0xf8] sm:$0xff] }
0x4b8d   :  { %v8614_v39 = vadd.f32 %v8352_v44, %v2317_v38  ;;  %v2393_v44 = vsub.f32 0.0, %v2391_v24 }
0x4b8e   :  { %v7039_v52 = vpop.eup %7038 }
0x4b8f   :  { %v4027_v0 = vadd.f32 1.0, %v7039_v52 }
0x4b91   :  { %7040 = vrcp.f32 %v4027_v0 }
0x4b9b   :  { %v7041_v50 = vpop.eup %7040 }
0x4b9c   :  { %v4033_v42 = vmul.f32 %v7041_v50, %v3932_v58 }
0x4bfd   :  { %v4037_v53 = vpop.permute.xlu0 %4036 }
0x4bfe   :  { %v4039_v54 = vpop.permute.xlu1 %4038 }
0x4bff   :  { %v4040_v5 = vsel %vm686_vm3, %v4037_v53, %v4039_v54 }
0x4c00   :  { %v4042_v7 = vmul.f32 %v7041_v50, %v4040_v5  ;;  %v2395_v50 = vmul.f32 1.442695, %v2393_v44  ;;  %v4289_v44 = vld [vmem:[#allocation4] sm:$0xff] }
0x4c02   :  { %4044 = vrot.lane.b32.xlu0 %v4042_v7, %s7355_s24 }
0x4c74   :  { %v4045_v6 = vpop.permute.xlu0 %4044 }
0x4c75   :  { %v4047_v9 = vadd.f32 %v4045_v6, %v4033_v42 }
0x4c77   :  { %7042 = vtanh.f32 %v4047_v9 }
0x4c78   :  { %7044 = vpow2.f32 %v4025_v13 }
0x4c81   :  { %v7043_v11 = vpop.eup %7042 }
0x4c82   :  { %4050 = vrot.lane.b32.xlu1 %v7043_v11, %s7356_s18  ;;  %v7045_v62 = vpop.eup %7044 }
0x4c83   :  { %v4028_v22 = vadd.f32 1.0, %v7045_v62 }
0x4c85   :  { %7046 = vrcp.f32 %v4028_v22 }
0x4c8f   :  { %v7047_v49 = vpop.eup %7046 }
0x4cf4   :  { %v4051_v63 = vpop.permute.xlu1 %4050 }
0x4cf5   :  { %v4053_v4 = vmul.f32 %v7047_v49, %v4051_v63 }
0x4cf7   :  { %4055 = vrot.lane.b32.xlu0 %v4053_v4, %s7357_s4 }
0x4d69   :  { %v4056_v15 = vpop.permute.xlu0 %4055 }
0x4d6a   :  { %4058 = vst.msk [vmem:[#allocation5 + $0x10] sm:$0xff] %vm94_vm1, %v4056_v15  ;;  %6018 = vmatmul.mubr.msk.f32.vlgmr.msra.gmra.mrb[62].mxu0 %vm94_vm1, %v4056_v15 }
0x4e3d   :  { %v4129_v29 = vpop.f32.mrb[62].mxu0 }
0x4e3e   :  { %v4134_v17 = vadd.f32 %v4129_v29, %v4059_v16  ;;  %v4131_v30 = vpop.f32.mrb[63].mxu0 }
0x4e3f   :  { %v4135_v36 = vadd.f32 %v4131_v30, %v4060_v28 }
0x4e40   :  { %7048 = vtanh.f32 %v4134_v17  ;;  %v4136_v48 = vsub.f32 0.0, %v4134_v17 }
0x4e41   :  { %7050 = vtanh.f32 %v4135_v36  ;;  %v4137_v61 = vsub.f32 0.0, %v4135_v36 }
0x4e42   :  { %v4138_v35 = vmul.f32 1.442695, %v4136_v48  ;;  %v4547_v48 = vld [vmem:[%s9214_s10] sm:$0xff] }
0x4e43   :  { %v4140_v10 = vmul.f32 1.442695, %v4137_v61  ;;  %v4340_v61 = vld [vmem:[%s9213_s7 + $0x18] sm:$0xff] }
0x4e44   :  { %7052 = vpow2.f32 %v4138_v35 }
0x4e4a   :  { %v7049_v37 = vpop.eup %7048 }
0x4e4b   :  { %v7051_v41 = vpop.eup %7050  ;;  %4151 = vrot.lane.b32.xlu1 %v7049_v37, %s7354_s3  ;;  %v4337_v37 = vld [vmem:[%s9213_s7] sm:$0xff] }
0x4e4c   :  { %4153 = vrot.lane.b32.xlu0 %v7051_v41, %s7354_s3  ;;  %v4338_v41 = vld [vmem:[%s9213_s7 + $0x8] sm:$0xff] }
0x4e4d   :  { %v6602_v35 = vpack.c.bf16 %v4338_v41, %v4337_v37  ;;  %v4297_v41 = vld [vmem:[#allocation4 + $0x40] sm:$0xff] }
0x4e4e   :  { %v7053_v51 = vpop.eup %7052 }
0x4e4f   :  { %v4142_v40 = vadd.f32 1.0, %v7053_v51  ;;  %6603 = vmatprep.subr.bf16.mxu0 %v6602_v35 }
0x4e50   :  { %6605 = vmatpush3.bf16.msra.mxu0 %v6602_v35  ;;  %v4314_v35 = vld [vmem:[#allocation5 + $0x48] sm:$0xff] }
0x4e51   :  { %7054 = vrcp.f32 %v4142_v40 }
0x4e5b   :  { %v7055_v27 = vpop.eup %7054 }
0x4e5c   :  { %v4148_v55 = vmul.f32 %v7055_v27, %v4047_v9 }
0x4ebd   :  { %v4152_v43 = vpop.permute.xlu1 %4151 }
0x4ebe   :  { %v4154_v45 = vpop.permute.xlu0 %4153 }
0x4ebf   :  { %v4155_v46 = vsel %vm686_vm3, %v4152_v43, %v4154_v45 }
0x4ec0   :  { %v4157_v26 = vmul.f32 %v7055_v27, %v4155_v46  ;;  %v2394_v27 = vsub.f32 0.0, %v8614_v39 }
0x4ec2   :  { %4159 = vrot.lane.b32.xlu1 %v4157_v26, %s7355_s24  ;;  %v2397_v26 = vmul.f32 1.442695, %v2394_v27  ;;  %v4316_v27 = vld [vmem:[#allocation5 + $0x58] sm:$0xff] }
0x4f34   :  { %v4160_v56 = vpop.permute.xlu1 %4159 }
0x4f35   :  { %v8603_v59 = vadd.f32 %v4160_v56, %v4148_v55 }
0x4f37   :  { %7056 = vtanh.f32 %v8603_v59 }
0x4f38   :  { %7058 = vpow2.f32 %v4140_v10  ;;  %v4549_v10 = vld [vmem:[%s9214_s10 + $0x10] sm:$0xff] }
0x4f41   :  { %v7057_v58 = vpop.eup %7056 }
0x4f42   :  { %4165 = vrot.lane.b32.xlu0 %v7057_v58, %s7356_s18  ;;  %v7059_v1 = vpop.eup %7058  ;;  %v4339_v58 = vld [vmem:[%s9213_s7 + $0x10] sm:$0xff] }
0x4f43   :  { %v4143_v19 = vadd.f32 1.0, %v7059_v1 }
0x4f45   :  { %7060 = vrcp.f32 %v4143_v19  ;;  %v6606_v19 = vpack.c.bf16 %v4340_v61, %v4339_v58  ;;  %v4318_v58 = vld [vmem:[#allocation5 + $0x68] sm:$0xff]  ;;  %v4319_v61 = vld [vmem:[#allocation5 + $0x70] sm:$0xff] }
0x4f47   :  { %6607 = vmatprep.subr.bf16.mxu0 %v6606_v19 }
0x4f48   :  { %6609 = vmatpush3.bf16.msra.mxu0 %v6606_v19  ;;  %v4303_v19 = vld [vmem:[#allocation4 + $0x70] sm:$0xff] }
0x4f4f   :  { %v7061_v20 = vpop.eup %7060 }
0x4fb4   :  { %v4166_v47 = vpop.permute.xlu0 %4165 }
0x4fb5   :  { %v4168_v18 = vmul.f32 %v7061_v20, %v4166_v47  ;;  %v4550_v20 = vld [vmem:[%s9214_s10 + $0x18] sm:$0xff] }
0x4fb6   :  { %v6618_v47 = vpack.c.bf16 %v4550_v20, %v4549_v10  ;;  %v4302_v10 = vld [vmem:[#allocation4 + $0x68] sm:$0xff]  ;;  %v4335_v20 = vadd.f32 %v4319_v61, %v4303_v19 }
0x4fb7   :  { %4170 = vrot.lane.b32.xlu1 %v4168_v18, %s7357_s4  ;;  %v4341_v18 = vld [vmem:[%s9213_s7 + $0x20] sm:$0xff] }
0x5029   :  { %v4171_v21 = vpop.permute.xlu1 %4170 }
0x502a   :  { %4173 = vst.msk [vmem:[#allocation5 + $0x8] sm:$0xff] %vm94_vm1, %v4171_v21  ;;  %6021 = vmatmul.mubr.msk.f32.vlgmr.msra.gmra.mrb[62].mxu1 %vm94_vm1, %v4171_v21  ;;  %v4342_v21 = vld [vmem:[%s9213_s7 + $0x28] sm:$0xff] }
0x50fd   :  { %v4244_v31 = vpop.f32.mrb[62].mxu1 }
0x50fe   :  { %v4249_v32 = vadd.f32 %v4244_v31, %v4174_v25  ;;  %v4246_v23 = vpop.f32.mrb[63].mxu1  ;;  %v4551_v25 = vld [vmem:[%s9214_s10 + $0x20] sm:$0xff]  ;;  %v6610_v31 = vpack.c.bf16 %v4342_v21, %v4341_v18  ;;  %v4320_v18 = vld [vmem:[#allocation5 + $0x78] sm:$0xff] }
0x50ff   :  { %v8610_v60 = vadd.f32 %v4246_v23, %v4175_v33  ;;  %v4343_v23 = vld [vmem:[%s9213_s7 + $0x30] sm:$0x3] }
0x5100   :  { %7062 = vtanh.f32 %v4249_v32  ;;  %v4251_v8 = vsub.f32 0.0, %v4249_v32  ;;  %v4552_v32 = vld [vmem:[%s9214_s10 + $0x28] sm:$0xff]  ;;  %6611 = vmatprep.subr.bf16.mxu0 %v6610_v31 }
0x5101   :  { %7064 = vtanh.f32 %v8610_v60  ;;  %v4252_v45 = vsub.f32 0.0, %v8610_v60  ;;  %v6622_v33 = vpack.c.bf16 %v4552_v32, %v4551_v25  ;;  %6613 = vmatpush3.bf16.msra.mxu0 %v6610_v31  ;;  %v8717_v25 = vld [vmem:[%s9215_s8] ss:$0 sm:$0xff] }
0x5102   :  { %7066 = vtanh.f32 %v2391_v24  ;;  %v4253_v54 = vmul.f32 1.442695, %v4251_v8  ;;  %6123 = vmatprep.subr.msk.mxu0 %vm143_vm0, %v4343_v23  ;;  %v4306_v8 = vld [vmem:[#allocation5 + $0x8] sm:$0xff]  ;;  %v8722_v31 = vld [vmem:[%s9216_s9] ss:$0 sm:$0xff]  ;;  %s7358_s9 = smov 126  }
0x5103   :  { %7068 = vtanh.f32 %v8614_v39  ;;  %v4255_v46 = vmul.f32 1.442695, %v4252_v45  ;;  %v8727_v32 = vld [vmem:[%s9217_s12] ss:$0 sm:$0xff] }
0x5104   :  { %7070 = vpow2.f32 %v4253_v54 }
0x5105   :  { %7072 = vpow2.f32 %v2395_v50  ;;  %6124 = vmatpush3.msk.msra.mxu0 %vm143_vm0, %v4343_v23  ;;  %v4307_v50 = vld [vmem:[#allocation5 + $0x10] sm:$0xff] }
0x510a   :  { %v7063_v2 = vpop.eup %7062 }
0x510b   :  { %v7065_v52 = vpop.eup %7064  ;;  %4266 = vrot.lane.b32.xlu0 %v7063_v2, %s7354_s3 }
0x510c   :  { %4268 = vrot.lane.b32.xlu1 %v7065_v52, %s7354_s3  ;;  %v7067_v0 = vpop.eup %7066 }
0x510d   :  { %v7069_v53 = vpop.eup %7068 }
0x510e   :  { %v7071_v5 = vpop.eup %7070 }
0x510f   :  { %2408 = vrot.lane.b32.xlu0 %v7067_v0, %s7354_s3  ;;  %v4257_v7 = vadd.f32 1.0, %v7071_v5  ;;  %v7073_v42 = vpop.eup %7072 }
0x5110   :  { %2410 = vrot.lane.b32.xlu1 %v7069_v53, %s7354_s3  ;;  %v2399_v6 = vadd.f32 1.0, %v7073_v42 }
0x5111   :  { %7074 = vrcp.f32 %v4257_v7  ;;  %v4290_v7 = vld [vmem:[#allocation4 + $0x8] sm:$0xff] }
0x5112   :  { %7076 = vrcp.f32 %v2399_v6  ;;  %v4322_v42 = vadd.f32 %v4306_v8, %v4290_v7  ;;  %v4291_v6 = vld [vmem:[#allocation4 + $0x10] sm:$0xff] }
0x511b   :  { %v7075_v14 = vpop.eup %7074 }
0x511c   :  { %v7077_v63 = vpop.eup %7076  ;;  %v4263_v16 = vmul.f32 %v7075_v14, %v8603_v59 }
0x511d   :  { %v2405_v28 = vmul.f32 %v7077_v63, %v8314_v12  ;;  %v4548_v12 = vld [vmem:[%s9214_s10 + $0x8] sm:$0xff] }
0x511e   :  { %v6614_v51 = vpack.c.bf16 %v4548_v12, %v4547_v48  ;;  %v4315_v12 = vld [vmem:[#allocation5 + $0x50] sm:$0xff] }
0x5120   :  { %6615 = vmatprep.subr.bf16.mxu1 %v6614_v51 }
0x5121   :  { %6617 = vmatpush3.bf16.msra.mxu1 %v6614_v51  ;;  %v4298_v51 = vld [vmem:[#allocation4 + $0x48] sm:$0xff] }
0x5122   :  { %6619 = vmatprep.subr.bf16.mxu1 %v6618_v47 }
0x5125   :  { %6621 = vmatpush3.bf16.msra.mxu1 %v6618_v47 }
0x5126   :  { %6623 = vmatprep.subr.bf16.mxu1 %v6622_v33 }
0x5129   :  { %6625 = vmatpush3.bf16.msra.mxu1 %v6622_v33 }
0x512a   :  { %6161 = vmatprep.subr.msk.mxu1 %vm143_vm0, %v4553_v34 }
0x512d   :  { %6162 = vmatpush3.msk.msra.mxu1 %vm143_vm0, %v4553_v34  ;;  %v4718_v34 = vmul.f32 0.0, %v8717_v25 }
0x517d   :  { %v4267_v9 = vpop.permute.xlu0 %4266 }
0x517e   :  { %v4269_v11 = vpop.permute.xlu1 %4268 }
0x517f   :  { %v4270_v13 = vsel %vm686_vm3, %v4267_v9, %v4269_v11  ;;  %v4323_v9 = vadd.f32 %v4307_v50, %v4291_v6  ;;  %v4308_v11 = vld [vmem:[#allocation5 + $0x18] sm:$0xff] }
0x5180   :  { %v4272_v62 = vmul.f32 %v7075_v14, %v4270_v13  ;;  %v4309_v14 = vld [vmem:[#allocation5 + $0x20] sm:$0xff]  ;;  %v4292_v13 = vld [vmem:[#allocation4 + $0x18] sm:$0xff] }
0x5181   :  { %v2409_v22 = vpop.permute.xlu0 %2408 }
0x5182   :  { %4274 = vrot.lane.b32.xlu0 %v4272_v62, %s7355_s24  ;;  %v2411_v49 = vpop.permute.xlu1 %2410  ;;  %v4324_v62 = vadd.f32 %v4308_v11, %v4292_v13 }
0x5183   :  { %v2412_v4 = vsel %vm686_vm3, %v2409_v22, %v2411_v49  ;;  %v4293_v22 = vld [vmem:[#allocation4 + $0x20] sm:$0xff] }
0x5184   :  { %v2414_v15 = vmul.f32 %v7077_v63, %v2412_v4  ;;  %v4325_v49 = vadd.f32 %v4309_v14, %v4293_v22  ;;  %v4310_v63 = vld [vmem:[#allocation5 + $0x28] sm:$0xff]  ;;  %v4311_v4 = vld [vmem:[#allocation5 + $0x30] sm:$0xff] }
0x5186   :  { %2416 = vrot.lane.b32.xlu1 %v2414_v15, %s7355_s24  ;;  %v4294_v15 = vld [vmem:[#allocation4 + $0x28] sm:$0xff] }
0x51f4   :  { %v4275_v29 = vpop.permute.xlu0 %4274 }
0x51f5   :  { %v4277_v17 = vadd.f32 %v4275_v29, %v4263_v16  ;;  %v4326_v16 = vadd.f32 %v4310_v63, %v4294_v15  ;;  %v4295_v29 = vld [vmem:[#allocation4 + $0x30] sm:$0xff] }
0x51f7   :  { %7078 = vtanh.f32 %v4277_v17  ;;  %v4327_v17 = vadd.f32 %v4311_v4, %v4295_v29 }
0x51f8   :  { %v2417_v30 = vpop.permute.xlu1 %2416 }
0x51f9   :  { %v2419_v36 = vadd.f32 %v2417_v30, %v2405_v28  ;;  %v4312_v28 = vld [vmem:[#allocation5 + $0x38] sm:$0xff]  ;;  %v4313_v30 = vld [vmem:[#allocation5 + $0x40] sm:$0xff] }
0x51fa   :  { %v4329_v48 = vadd.f32 %v4313_v30, %v4297_v41 }
0x51fb   :  { %7080 = vtanh.f32 %v2419_v36  ;;  %v4296_v36 = vld [vmem:[#allocation4 + $0x38] sm:$0xff] }
0x51fc   :  { %7082 = vpow2.f32 %v4255_v46  ;;  %v4328_v37 = vadd.f32 %v4312_v28, %v4296_v36  ;;  %v4317_v46 = vld [vmem:[#allocation5 + $0x60] sm:$0xff] }
0x51fd   :  { %7084 = vpow2.f32 %v2397_v26  ;;  %v4300_v26 = vld [vmem:[#allocation4 + $0x58] sm:$0xff] }
0x5201   :  { %v7079_v40 = vpop.eup %7078 }
0x5202   :  { %4280 = vrot.lane.b32.xlu0 %v7079_v40, %s7356_s18  ;;  %v4330_v40 = vadd.f32 %v4314_v35, %v4298_v51 }
0x5205   :  { %v7081_v43 = vpop.eup %7080 }
0x5206   :  { %2422 = vrot.lane.b32.xlu1 %v7081_v43, %s7356_s18  ;;  %v7083_v55 = vpop.eup %7082  ;;  %v4299_v43 = vld [vmem:[#allocation4 + $0x50] sm:$0xff]  ;;  %s7359_s18 = smov 1  }
0x5207   :  { %v4258_v56 = vadd.f32 1.0, %v7083_v55  ;;  %v7085_v59 = vpop.eup %7084  ;;  %v4331_v45 = vadd.f32 %v4315_v12, %v4299_v43  ;;  %v4332_v55 = vadd.f32 %v4316_v27, %v4300_v26 }
0x5208   :  { %v2400_v1 = vadd.f32 1.0, %v7085_v59 }
0x5209   :  { %7086 = vrcp.f32 %v4258_v56  ;;  %v4301_v56 = vld [vmem:[#allocation4 + $0x60] sm:$0xff] }
0x520a   :  { %7088 = vrcp.f32 %v2400_v1  ;;  %v4333_v59 = vadd.f32 %v4317_v46, %v4301_v56  ;;  %v4334_v1 = vadd.f32 %v4318_v58, %v4302_v10 }
0x5213   :  { %v7087_v60 = vpop.eup %7086 }
0x5214   :  { %v7089_v39 = vpop.eup %7088 }
0x5274   :  { %v4281_v24 = vpop.permute.xlu0 %4280 }
0x5275   :  { %v4283_v38 = vmul.f32 %v7087_v60, %v4281_v24 }
0x5277   :  { %4285 = vrot.lane.b32.xlu0 %v4283_v38, %s7357_s4 }
0x5278   :  { %v2423_v2 = vpop.permute.xlu1 %2422 }
0x5279   :  { %v2425_v52 = vmul.f32 %v7089_v39, %v2423_v2 }
0x527b   :  { %2427 = vrot.lane.b32.xlu1 %v2425_v52, %s7357_s4 }
0x52e9   :  { %v4286_v0 = vpop.permute.xlu0 %4285 }
0x52ea   :  { %4288 = vst.msk [vmem:[#allocation5] sm:$0xff] %vm94_vm1, %v4286_v0 }
0x52ed   :  { %v2428_v53 = vpop.permute.xlu1 %2427 }
0x52ee   :  { %2430 = vst.msk [vmem:[#allocation4 + $0x78] sm:$0xff] %vm94_vm1, %v2428_v53 }
0x52f1   :  { %v4305_v54 = vld [vmem:[#allocation5] sm:$0xff] }
0x52f2   :  { %v4321_v5 = vadd.f32 %v4305_v54, %v4289_v44 }
0x52f4   :  { %6125 = vmatprep.mubr.msk.f32.mxu0 %vm94_vm1, %v4321_v5  ;;  %6163 = vmatprep.mubr.msk.f32.mxu1 %vm94_vm1, %v4321_v5 }
0x52f5   :  { %6126 = vmatmul.mubr.msk.f32.vlgmr.msra.gmra.mrb[64].mxu0 %vm94_vm1, %v4322_v42  ;;  %6164 = vmatmul.mubr.msk.f32.vlgmr.msra.gmra.mrb[64].mxu1 %vm94_vm1, %v4322_v42  ;;  %v4304_v47 = vld [vmem:[#allocation4 + $0x78] sm:$0xff] }
0x52f6   :  { %6128 = vmatprep.mubr.msk.f32.mxu0 %vm94_vm1, %v4323_v9  ;;  %6166 = vmatprep.mubr.msk.f32.mxu1 %vm94_vm1, %v4323_v9  ;;  %v4336_v21 = vadd.f32 %v4320_v18, %v4304_v47 }
0x52f9   :  { %6129 = vmatmul.mubr.msk.f32.gmra.mrb[66].mxu0 %vm94_vm1, %v4324_v62  ;;  %6167 = vmatmul.mubr.msk.f32.gmra.mrb[66].mxu1 %vm94_vm1, %v4324_v62 }
0x52fa   :  { %6131 = vmatprep.mubr.msk.f32.mxu0 %vm94_vm1, %v4325_v49  ;;  %6169 = vmatprep.mubr.msk.f32.mxu1 %vm94_vm1, %v4325_v49 }
0x52fd   :  { %6132 = vmatmul.mubr.msk.f32.gmra.mrb[68].mxu0 %vm94_vm1, %v4326_v16  ;;  %6170 = vmatmul.mubr.msk.f32.gmra.mrb[68].mxu1 %vm94_vm1, %v4326_v16 }
0x52fe   :  { %6134 = vmatprep.mubr.msk.f32.mxu0 %vm94_vm1, %v4327_v17  ;;  %6172 = vmatprep.mubr.msk.f32.mxu1 %vm94_vm1, %v4327_v17 }
0x5301   :  { %6135 = vmatmul.mubr.msk.f32.gmra.mrb[70].mxu0 %vm94_vm1, %v4328_v37  ;;  %6173 = vmatmul.mubr.msk.f32.gmra.mrb[70].mxu1 %vm94_vm1, %v4328_v37 }
0x5302   :  { %6137 = vmatprep.mubr.msk.f32.mxu0 %vm94_vm1, %v4329_v48  ;;  %6175 = vmatprep.mubr.msk.f32.mxu1 %vm94_vm1, %v4329_v48 }
0x5305   :  { %6138 = vmatmul.mubr.msk.f32.gmra.mrb[72].mxu0 %vm94_vm1, %v4330_v40  ;;  %6176 = vmatmul.mubr.msk.f32.gmra.mrb[72].mxu1 %vm94_vm1, %v4330_v40 }
0x5306   :  { %6140 = vmatprep.mubr.msk.f32.mxu0 %vm94_vm1, %v4331_v45  ;;  %6178 = vmatprep.mubr.msk.f32.mxu1 %vm94_vm1, %v4331_v45 }
0x5309   :  { %6141 = vmatmul.mubr.msk.f32.gmra.mrb[74].mxu0 %vm94_vm1, %v4332_v55  ;;  %6179 = vmatmul.mubr.msk.f32.gmra.mrb[74].mxu1 %vm94_vm1, %v4332_v55 }
0x530a   :  { %6143 = vmatprep.mubr.msk.f32.mxu0 %vm94_vm1, %v4333_v59  ;;  %6181 = vmatprep.mubr.msk.f32.mxu1 %vm94_vm1, %v4333_v59 }
0x530d   :  { %6144 = vmatmul.mubr.msk.f32.gmra.mrb[76].mxu0 %vm94_vm1, %v4334_v1  ;;  %6182 = vmatmul.mubr.msk.f32.gmra.mrb[76].mxu1 %vm94_vm1, %v4334_v1  ;;  %v8807_v1 = vld [vmem:[%s9218_s11] ss:$0 sm:$0xff] }
0x530e   :  { %6146 = vmatprep.mubr.msk.f32.mxu0 %vm94_vm1, %v4335_v20  ;;  %6184 = vmatprep.mubr.msk.f32.mxu1 %vm94_vm1, %v4335_v20 }
0x5311   :  { %6147 = vmatmul.mubr.msk.f32.gmra.mrb[78].mxu0 %vm94_vm1, %v4336_v21  ;;  %6185 = vmatmul.mubr.msk.f32.gmra.mrb[78].mxu1 %vm94_vm1, %v4336_v21 }
0x5312   :  { %6191 = vmatprep.mubr.msk.f32.mxu0 %vm7363_vm4, %v7353_v3 }
0x53c8   :  { %v6127_v33 = vpop.f32.mrb[64].mxu0  ;;  %v6165_v23 = vpop.f32.mrb[64].mxu1 }
0x53c9   :  { %v8731_v60 = vadd.f32 %v6127_v33, %v8722_v31  ;;  %v8734_v24 = vadd.f32 %v6165_v23, %v8727_v32  ;;  %v4468_v38 = vpop.f32.mrb[65].mxu0  ;;  %v4630_v39 = vpop.f32.mrb[65].mxu1  ;;  %v5285_v23 = vmul.f32 0.0, %v8807_v1 }
0x53ca   :  { %v4469_v2 = vadd.f32 %v8722_v31, %v4468_v38  ;;  %v8738_v52 = vadd.f32 %v8727_v32, %v4630_v39 }
0x53cc   :  { %v8740_v0 = vadd.f32 %v4718_v34, %v4469_v2  ;;  %v6130_v53 = vpop.f32.mrb[66].mxu0  ;;  %v6168_v8 = vpop.f32.mrb[66].mxu1 }
0x53cd   :  { %v8743_v44 = vadd.f32 %v6130_v53, %v8722_v31  ;;  %v8746_v54 = vadd.f32 %v6168_v8, %v8727_v32  ;;  %v4478_v50 = vpop.f32.mrb[67].mxu0  ;;  %v4640_v5 = vpop.f32.mrb[67].mxu1 }
0x53ce   :  { %7090 = vtanh.f32 %v8740_v0  ;;  %v8750_v7 = vadd.f32 %v8722_v31, %v4478_v50  ;;  %v8753_v42 = vadd.f32 %v8727_v32, %v4640_v5 }
0x53d0   :  { %v6133_v6 = vpop.f32.mrb[68].mxu0  ;;  %v6171_v9 = vpop.f32.mrb[68].mxu1 }
0x53d1   :  { %v8756_v11 = vadd.f32 %v6133_v6, %v8722_v31  ;;  %v8759_v14 = vadd.f32 %v6171_v9, %v8727_v32  ;;  %v4488_v13 = vpop.f32.mrb[69].mxu0  ;;  %v4650_v62 = vpop.f32.mrb[69].mxu1 }
0x53d2   :  { %v8762_v22 = vadd.f32 %v8722_v31, %v4488_v13  ;;  %v8765_v49 = vadd.f32 %v8727_v32, %v4650_v62  ;;  %v4720_v13 = vsub.f32 0.0, %v8740_v0 }
0x53d4   :  { %v6136_v63 = vpop.f32.mrb[70].mxu0  ;;  %v6174_v4 = vpop.f32.mrb[70].mxu1  ;;  %v4721_v62 = vmul.f32 1.442695, %v4720_v13 }
0x53d5   :  { %v8768_v15 = vadd.f32 %v6136_v63, %v8722_v31  ;;  %v8771_v16 = vadd.f32 %v6174_v4, %v8727_v32  ;;  %v4498_v29 = vpop.f32.mrb[71].mxu0  ;;  %v4660_v17 = vpop.f32.mrb[71].mxu1 }
0x53d6   :  { %v8774_v28 = vadd.f32 %v8722_v31, %v4498_v29  ;;  %v8777_v30 = vadd.f32 %v8727_v32, %v4660_v17 }
0x53d8   :  { %v7091_v36 = vpop.eup %7090  ;;  %v6139_v37 = vpop.f32.mrb[72].mxu0 }
0x53d9   :  { %v6177_v41 = vpop.f32.mrb[72].mxu1  ;;  %v8780_v48 = vadd.f32 %v6139_v37, %v8722_v31  ;;  %v4508_v12 = vpop.f32.mrb[73].mxu0  ;;  %4728 = vrot.lane.b32.xlu0 %v7091_v36, %s7358_s9 }
0x53da   :  { %v8783_v35 = vadd.f32 %v6177_v41, %v8727_v32  ;;  %v4670_v51 = vpop.f32.mrb[73].mxu1  ;;  %v8787_v40 = vadd.f32 %v8722_v31, %v4508_v12 }
0x53db   :  { %v8790_v43 = vadd.f32 %v8727_v32, %v4670_v51 }
0x53dc   :  { %v6142_v45 = vpop.f32.mrb[74].mxu0  ;;  %v6180_v27 = vpop.f32.mrb[74].mxu1 }
0x53dd   :  { %v8793_v46 = vadd.f32 %v6142_v45, %v8722_v31  ;;  %v8796_v26 = vadd.f32 %v6180_v27, %v8727_v32  ;;  %v4518_v55 = vpop.f32.mrb[75].mxu0  ;;  %v4680_v56 = vpop.f32.mrb[75].mxu1 }
0x53de   :  { %v8799_v59 = vadd.f32 %v8722_v31, %v4518_v55  ;;  %v8802_v58 = vadd.f32 %v8727_v32, %v4680_v56  ;;  %v7360_v56 = vmov 3  }
0x53df   :  { %6640 = vset.pattern.permute.xlu0 %v7360_v56  ;;  %6641 = vset.pattern.permute.xlu1 %v7360_v56 }
0x53e0   :  { %v6145_v61 = vpop.f32.mrb[76].mxu0  ;;  %v6183_v10 = vpop.f32.mrb[76].mxu1 }
0x53e1   :  { %v8810_v19 = vadd.f32 %v6145_v61, %v8722_v31  ;;  %v8813_v20 = vadd.f32 %v6183_v10, %v8727_v32  ;;  %v4528_v47 = vpop.f32.mrb[77].mxu0  ;;  %v4690_v18 = vpop.f32.mrb[77].mxu1 }
0x53e2   :  { %v8816_v21 = vadd.f32 %v8722_v31, %v4528_v47  ;;  %v8819_v33 = vadd.f32 %v8727_v32, %v4690_v18 }
0x53e4   :  { %v6148_v34 = vpop.f32.mrb[78].mxu0  ;;  %v6186_v38 = vpop.f32.mrb[78].mxu1 }
0x53e5   :  { %v8823_v39 = vadd.f32 %v6148_v34, %v8722_v31  ;;  %v4706_v2 = vadd.f32 %v6186_v38, %v8727_v32  ;;  %v4538_v53 = vpop.f32.mrb[79].mxu0  ;;  %v4700_v8 = vpop.f32.mrb[79].mxu1 }
0x53e6   :  { %v8827_v50 = vadd.f32 %v8722_v31, %v4538_v53  ;;  %v4701_v5 = vadd.f32 %v8727_v32, %v4700_v8 }
0x53e7   :  { %v5286_v6 = vadd.f32 %v5285_v23, %v4706_v2 }
0x53e9   :  { %7092 = vtanh.f32 %v5286_v6  ;;  %v5287_v29 = vsub.f32 0.0, %v5286_v6 }
0x53ea   :  { %7094 = vpow2.f32 %v4721_v62 }
0x53eb   :  { %v5288_v17 = vmul.f32 1.442695, %v5287_v29 }
0x53f3   :  { %v7093_v9 = vpop.eup %7092 }
0x53f4   :  { %5295 = vrot.lane.b32.xlu1 %v7093_v9, %s7358_s9  ;;  %v7095_v63 = vpop.eup %7094 }
0x53f5   :  { %v4723_v4 = vadd.f32 1.0, %v7095_v63 }
0x53f7   :  { %7096 = vrcp.f32 %v4723_v4 }
0x53f8   :  { %7098 = vpow2.f32 %v5288_v17 }
0x5401   :  { %v7097_v36 = vpop.eup %7096 }
0x5402   :  { %v7099_v32 = vpop.eup %7098  ;;  %v4726_v45 = vmul.f32 0.0, %v7097_v36 }
0x5403   :  { %v5290_v41 = vadd.f32 1.0, %v7099_v32 }
0x5405   :  { %7100 = vrcp.f32 %v5290_v41 }
0x540f   :  { %v7101_v12 = vpop.eup %7100 }
0x5410   :  { %v5293_v10 = vmul.f32 0.0, %v7101_v12 }
0x544b   :  { %v4729_v31 = vpop.permute.xlu0 %4728 }
0x544c   :  { %v4731_v37 = vmul.f32 %v7097_v36, %v4729_v31 }
0x544e   :  { %4733 = vrot.lane.b32.xlu0 %v4731_v37, %s7359_s18 }
0x5466   :  { %v5296_v51 = vpop.permute.xlu1 %5295 }
0x5467   :  { %v5298_v0 = vmul.f32 %v7101_v12, %v5296_v51 }
0x5469   :  { %5300 = vrot.lane.b32.xlu1 %v5298_v0, %s7359_s18 }
0x54c0   :  { %v4734_v27 = vpop.permute.xlu0 %4733 }
0x54c1   :  { %v4736_v55 = vadd.f32 %v4734_v27, %v4726_v45 }
0x54c3   :  { %7102 = vtanh.f32 %v4736_v55 }
0x54cd   :  { %v7103_v61 = vpop.eup %7102 }
0x54ce   :  { %4739 = vrot.lane.b32.xlu0 %v7103_v61, %s7361_s0 }
0x54db   :  { %v5301_v47 = vpop.permute.xlu1 %5300 }
0x54dc   :  { %v5303_v18 = vadd.f32 %v5301_v47, %v5293_v10 }
0x54de   :  { %7104 = vtanh.f32 %v5303_v18 }
0x54e8   :  { %v7105_v23 = vpop.eup %7104 }
0x54e9   :  { %5306 = vrot.lane.b32.xlu1 %v7105_v23, %s7361_s0 }
0x5540   :  { %v4740_v34 = vpop.permute.xlu0 %4739 }
0x5541   :  { %v4742_v38 = vmul.f32 %v7097_v36, %v4740_v34 }
0x5543   :  { %4748 = vperm.xlu0 %6640, %v4742_v38  }
0x555b   :  { %v5307_v2 = vpop.permute.xlu1 %5306 }
0x555c   :  { %v5309_v53 = vmul.f32 %v7101_v12, %v5307_v2 }
0x555e   :  { %5312 = vperm.xlu1 %6641, %v5309_v53  }
0x55c2   :  { %v8836_v8 = vpop.permute.xlu0 %4748 }
0x55c3   :  { %v4753_v6 = vmul.f32 %v8717_v25, %v8836_v8 }
0x55c5   :  { %v4754_v9 = vadd.f32 %v4753_v6, %v8731_v60 }
0x55c7   :  { %7106 = vtanh.f32 %v4754_v9  ;;  %v4755_v17 = vsub.f32 0.0, %v4754_v9 }
0x55c9   :  { %v4756_v36 = vmul.f32 1.442695, %v4755_v17 }
0x55d1   :  { %v7107_v13 = vpop.eup %7106 }
0x55d2   :  { %4763 = vrot.lane.b32.xlu1 %v7107_v13, %s7358_s9 }
0x55dd   :  { %v8842_v62 = vpop.permute.xlu1 %5312 }
0x55de   :  { %v5317_v63 = vmul.f32 %v8807_v1, %v8842_v62 }
0x55e0   :  { %v5318_v4 = vadd.f32 %v5317_v63, %v4701_v5 }
0x55e2   :  { %7108 = vtanh.f32 %v5318_v4  ;;  %v5319_v60 = vsub.f32 0.0, %v5318_v4 }
0x55e3   :  { %7110 = vpow2.f32 %v4756_v36 }
0x55e4   :  { %v5320_v32 = vmul.f32 1.442695, %v5319_v60 }
0x55ec   :  { %v7109_v29 = vpop.eup %7108 }
0x55ed   :  { %5327 = vrot.lane.b32.xlu0 %v7109_v29, %s7358_s9  ;;  %v7111_v31 = vpop.eup %7110 }
0x55ee   :  { %v4758_v37 = vadd.f32 1.0, %v7111_v31 }
0x55f0   :  { %7112 = vrcp.f32 %v4758_v37 }
0x55f1   :  { %7114 = vpow2.f32 %v5320_v32 }
0x55fa   :  { %v7113_v41 = vpop.eup %7112 }
0x55fb   :  { %v7115_v0 = vpop.eup %7114  ;;  %v4761_v61 = vmul.f32 %v7113_v41, %v4736_v55 }
0x55fc   :  { %v5322_v5 = vadd.f32 1.0, %v7115_v0 }
0x55fe   :  { %7116 = vrcp.f32 %v5322_v5 }
0x5608   :  { %v7117_v45 = vpop.eup %7116 }
0x5609   :  { %v5325_v34 = vmul.f32 %v7117_v45, %v5303_v18 }
0x5644   :  { %v4764_v12 = vpop.permute.xlu1 %4763 }
0x5645   :  { %v4766_v51 = vmul.f32 %v7113_v41, %v4764_v12 }
0x5647   :  { %4768 = vrot.lane.b32.xlu1 %v4766_v51, %s7359_s18 }
0x565f   :  { %v5328_v27 = vpop.permute.xlu0 %5327 }
0x5660   :  { %v5330_v56 = vmul.f32 %v7117_v45, %v5328_v27 }
0x5662   :  { %5332 = vrot.lane.b32.xlu0 %v5330_v56, %s7359_s18 }
0x56b9   :  { %v4769_v10 = vpop.permute.xlu1 %4768 }
0x56ba   :  { %v4771_v47 = vadd.f32 %v4769_v10, %v4761_v61 }
0x56bc   :  { %7118 = vtanh.f32 %v4771_v47 }
0x56c6   :  { %v7119_v23 = vpop.eup %7118 }
0x56c7   :  { %4774 = vrot.lane.b32.xlu1 %v7119_v23, %s7361_s0 }
0x56d4   :  { %v5333_v38 = vpop.permute.xlu0 %5332 }
0x56d5   :  { %v5335_v2 = vadd.f32 %v5333_v38, %v5325_v34 }
0x56d7   :  { %7120 = vtanh.f32 %v5335_v2 }
0x56e1   :  { %v7121_v53 = vpop.eup %7120 }
0x56e2   :  { %5338 = vrot.lane.b32.xlu0 %v7121_v53, %s7361_s0 }
0x5739   :  { %v4775_v6 = vpop.permute.xlu1 %4774 }
0x573a   :  { %v4777_v9 = vmul.f32 %v7113_v41, %v4775_v6 }
0x573c   :  { %4783 = vperm.xlu1 %6641, %v4777_v9  }
0x5754   :  { %v5339_v13 = vpop.permute.xlu0 %5338 }
0x5755   :  { %v5341_v63 = vmul.f32 %v7117_v45, %v5339_v13 }
0x5757   :  { %5344 = vperm.xlu0 %6640, %v5341_v63  }
0x57bb   :  { %v8851_v55 = vpop.permute.xlu1 %4783 }
0x57bc   :  { %v4788_v4 = vmul.f32 %v8717_v25, %v8851_v55 }
0x57be   :  { %v4789_v29 = vadd.f32 %v4788_v4, %v8750_v7 }
0x57c0   :  { %7122 = vtanh.f32 %v4789_v29  ;;  %v4790_v60 = vsub.f32 0.0, %v4789_v29 }
0x57c2   :  { %v4791_v32 = vmul.f32 1.442695, %v4790_v60 }
0x57ca   :  { %v7123_v18 = vpop.eup %7122 }
0x57cb   :  { %4798 = vrot.lane.b32.xlu1 %v7123_v18, %s7358_s9 }
0x57d6   :  { %v8857_v17 = vpop.permute.xlu0 %5344 }
0x57d7   :  { %v5349_v36 = vmul.f32 %v8807_v1, %v8857_v17 }
0x57d9   :  { %v5350_v31 = vadd.f32 %v5349_v36, %v8813_v20 }
0x57db   :  { %7124 = vtanh.f32 %v5350_v31  ;;  %v5351_v12 = vsub.f32 0.0, %v5350_v31 }
0x57dc   :  { %7126 = vpow2.f32 %v4791_v32 }
0x57dd   :  { %v5352_v51 = vmul.f32 1.442695, %v5351_v12 }
0x57e5   :  { %v7125_v37 = vpop.eup %7124 }
0x57e6   :  { %5359 = vrot.lane.b32.xlu0 %v7125_v37, %s7358_s9  ;;  %v7127_v41 = vpop.eup %7126 }
0x57e7   :  { %v4793_v7 = vadd.f32 1.0, %v7127_v41 }
0x57e9   :  { %7128 = vrcp.f32 %v4793_v7 }
0x57ea   :  { %7130 = vpow2.f32 %v5352_v51 }
0x57f3   :  { %v7129_v0 = vpop.eup %7128 }
0x57f4   :  { %v7131_v27 = vpop.eup %7130  ;;  %v4796_v23 = vmul.f32 %v7129_v0, %v4771_v47 }
0x57f5   :  { %v5354_v20 = vadd.f32 1.0, %v7131_v27 }
0x57f7   :  { %7132 = vrcp.f32 %v5354_v20 }
0x5801   :  { %v7133_v56 = vpop.eup %7132 }
0x5802   :  { %v5357_v6 = vmul.f32 %v7133_v56, %v5335_v2 }
0x583d   :  { %v4799_v5 = vpop.permute.xlu1 %4798 }
0x583e   :  { %v4801_v45 = vmul.f32 %v7129_v0, %v4799_v5 }
0x5840   :  { %4803 = vrot.lane.b32.xlu1 %v4801_v45, %s7359_s18 }
0x5858   :  { %v5360_v61 = vpop.permute.xlu0 %5359 }
0x5859   :  { %v5362_v10 = vmul.f32 %v7133_v56, %v5360_v61 }
0x585b   :  { %5364 = vrot.lane.b32.xlu0 %v5362_v10, %s7359_s18 }
0x58b2   :  { %v4804_v34 = vpop.permute.xlu1 %4803 }
0x58b3   :  { %v4806_v38 = vadd.f32 %v4804_v34, %v4796_v23 }
0x58b5   :  { %7134 = vtanh.f32 %v4806_v38 }
0x58bf   :  { %v7135_v53 = vpop.eup %7134 }
0x58c0   :  { %4809 = vrot.lane.b32.xlu1 %v7135_v53, %s7361_s0 }
0x58cd   :  { %v5365_v9 = vpop.permute.xlu0 %5364 }
0x58ce   :  { %v5367_v13 = vadd.f32 %v5365_v9, %v5357_v6 }
0x58d0   :  { %7136 = vtanh.f32 %v5367_v13 }
0x58da   :  { %v7137_v63 = vpop.eup %7136 }
0x58db   :  { %5370 = vrot.lane.b32.xlu0 %v7137_v63, %s7361_s0 }
0x5932   :  { %v4810_v4 = vpop.permute.xlu1 %4809 }
0x5933   :  { %v4812_v29 = vmul.f32 %v7129_v0, %v4810_v4 }
0x5935   :  { %4818 = vperm.xlu1 %6641, %v4812_v29  }
0x594d   :  { %v5371_v18 = vpop.permute.xlu0 %5370 }
0x594e   :  { %v5373_v36 = vmul.f32 %v7133_v56, %v5371_v18 }
0x5950   :  { %5376 = vperm.xlu0 %6640, %v5373_v36  }
0x59b4   :  { %v8867_v47 = vpop.permute.xlu1 %4818 }
0x59b5   :  { %v4823_v31 = vmul.f32 %v8717_v25, %v8867_v47 }
0x59b7   :  { %v4824_v37 = vadd.f32 %v4823_v31, %v8743_v44 }
0x59b9   :  { %7138 = vtanh.f32 %v4824_v37  ;;  %v4825_v12 = vsub.f32 0.0, %v4824_v37 }
0x59bb   :  { %v4826_v51 = vmul.f32 1.442695, %v4825_v12 }
0x59c3   :  { %v7139_v2 = vpop.eup %7138 }
0x59c4   :  { %4833 = vrot.lane.b32.xlu1 %v7139_v2, %s7358_s9 }
0x59cf   :  { %v8873_v60 = vpop.permute.xlu0 %5376 }
0x59d0   :  { %v5381_v32 = vmul.f32 %v8807_v1, %v8873_v60 }
0x59d2   :  { %v5382_v41 = vadd.f32 %v5381_v32, %v8819_v33 }
0x59d4   :  { %7140 = vtanh.f32 %v5382_v41  ;;  %v5383_v5 = vsub.f32 0.0, %v5382_v41 }
0x59d5   :  { %7142 = vpow2.f32 %v4826_v51 }
0x59d6   :  { %v5384_v45 = vmul.f32 1.442695, %v5383_v5 }
0x59de   :  { %v7141_v7 = vpop.eup %7140 }
0x59df   :  { %5391 = vrot.lane.b32.xlu0 %v7141_v7, %s7358_s9  ;;  %v7143_v0 = vpop.eup %7142 }
0x59e0   :  { %v4828_v44 = vadd.f32 1.0, %v7143_v0 }
0x59e2   :  { %7144 = vrcp.f32 %v4828_v44 }
0x59e3   :  { %7146 = vpow2.f32 %v5384_v45 }
0x59ec   :  { %v7145_v27 = vpop.eup %7144 }
0x59ed   :  { %v7147_v61 = vpop.eup %7146  ;;  %v4831_v53 = vmul.f32 %v7145_v27, %v4806_v38 }
0x59ee   :  { %v5386_v33 = vadd.f32 1.0, %v7147_v61 }
0x59f0   :  { %7148 = vrcp.f32 %v5386_v33 }
0x59fa   :  { %v7149_v10 = vpop.eup %7148 }
0x59fb   :  { %v5389_v4 = vmul.f32 %v7149_v10, %v5367_v13 }
0x5a36   :  { %v4834_v20 = vpop.permute.xlu1 %4833 }
0x5a37   :  { %v4836_v56 = vmul.f32 %v7145_v27, %v4834_v20 }
0x5a39   :  { %4838 = vrot.lane.b32.xlu1 %v4836_v56, %s7359_s18 }
0x5a51   :  { %v5392_v23 = vpop.permute.xlu0 %5391 }
0x5a52   :  { %v5394_v34 = vmul.f32 %v7149_v10, %v5392_v23 }
0x5a54   :  { %5396 = vrot.lane.b32.xlu0 %v5394_v34, %s7359_s18 }
0x5aab   :  { %v4839_v6 = vpop.permute.xlu1 %4838 }
0x5aac   :  { %v4841_v9 = vadd.f32 %v4839_v6, %v4831_v53 }
0x5aae   :  { %7150 = vtanh.f32 %v4841_v9 }
0x5ab8   :  { %v7151_v63 = vpop.eup %7150 }
0x5ab9   :  { %4844 = vrot.lane.b32.xlu1 %v7151_v63, %s7361_s0 }
0x5ac6   :  { %v5397_v29 = vpop.permute.xlu0 %5396 }
0x5ac7   :  { %v5399_v18 = vadd.f32 %v5397_v29, %v5389_v4 }
0x5ac9   :  { %7152 = vtanh.f32 %v5399_v18 }
0x5ad3   :  { %v7153_v36 = vpop.eup %7152 }
0x5ad4   :  { %5402 = vrot.lane.b32.xlu0 %v7153_v36, %s7361_s0 }
0x5b2b   :  { %v4845_v31 = vpop.permute.xlu1 %4844 }
0x5b2c   :  { %v4847_v37 = vmul.f32 %v7145_v27, %v4845_v31 }
0x5b2e   :  { %4853 = vperm.xlu1 %6641, %v4847_v37  }
0x5b46   :  { %v5403_v2 = vpop.permute.xlu0 %5402 }
0x5b47   :  { %v5405_v32 = vmul.f32 %v7149_v10, %v5403_v2 }
0x5b49   :  { %5408 = vperm.xlu0 %6640, %v5405_v32  }
0x5bad   :  { %v8883_v38 = vpop.permute.xlu1 %4853 }
0x5bae   :  { %v4858_v41 = vmul.f32 %v8717_v25, %v8883_v38 }
0x5bb0   :  { %v4859_v7 = vadd.f32 %v4858_v41, %v8762_v22 }
0x5bb2   :  { %7154 = vtanh.f32 %v4859_v7  ;;  %v4860_v5 = vsub.f32 0.0, %v4859_v7 }
0x5bb4   :  { %v4861_v45 = vmul.f32 1.442695, %v4860_v5 }
0x5bbc   :  { %v7155_v13 = vpop.eup %7154 }
0x5bbd   :  { %4868 = vrot.lane.b32.xlu1 %v7155_v13, %s7358_s9 }
0x5bc8   :  { %v8889_v12 = vpop.permute.xlu0 %5408 }
0x5bc9   :  { %v5413_v51 = vmul.f32 %v8807_v1, %v8889_v12 }
0x5bcb   :  { %v5414_v0 = vadd.f32 %v5413_v51, %v8796_v26 }
0x5bcd   :  { %7156 = vtanh.f32 %v5414_v0  ;;  %v5415_v20 = vsub.f32 0.0, %v5414_v0 }
0x5bce   :  { %7158 = vpow2.f32 %v4861_v45 }
0x5bcf   :  { %v5416_v56 = vmul.f32 1.442695, %v5415_v20 }
0x5bd7   :  { %v7157_v44 = vpop.eup %7156 }
0x5bd8   :  { %5423 = vrot.lane.b32.xlu0 %v7157_v44, %s7358_s9  ;;  %v7159_v27 = vpop.eup %7158 }
0x5bd9   :  { %v4863_v22 = vadd.f32 1.0, %v7159_v27 }
0x5bdb   :  { %7160 = vrcp.f32 %v4863_v22 }
0x5bdc   :  { %7162 = vpow2.f32 %v5416_v56 }
0x5be5   :  { %v7161_v61 = vpop.eup %7160 }
0x5be6   :  { %v7163_v23 = vpop.eup %7162  ;;  %v4866_v63 = vmul.f32 %v7161_v61, %v4841_v9 }
0x5be7   :  { %v5418_v26 = vadd.f32 1.0, %v7163_v23 }
0x5be9   :  { %7164 = vrcp.f32 %v5418_v26 }
0x5bf3   :  { %v7165_v34 = vpop.eup %7164 }
0x5bf4   :  { %v5421_v31 = vmul.f32 %v7165_v34, %v5399_v18 }
0x5c2f   :  { %v4869_v33 = vpop.permute.xlu1 %4868 }
0x5c30   :  { %v4871_v10 = vmul.f32 %v7161_v61, %v4869_v33 }
0x5c32   :  { %4873 = vrot.lane.b32.xlu1 %v4871_v10, %s7359_s18 }
0x5c4a   :  { %v5424_v53 = vpop.permute.xlu0 %5423 }
0x5c4b   :  { %v5426_v6 = vmul.f32 %v7165_v34, %v5424_v53 }
0x5c4d   :  { %5428 = vrot.lane.b32.xlu0 %v5426_v6, %s7359_s18 }
0x5ca4   :  { %v4874_v4 = vpop.permute.xlu1 %4873 }
0x5ca5   :  { %v4876_v29 = vadd.f32 %v4874_v4, %v4866_v63 }
0x5ca7   :  { %7166 = vtanh.f32 %v4876_v29 }
0x5cb1   :  { %v7167_v36 = vpop.eup %7166 }
0x5cb2   :  { %4879 = vrot.lane.b32.xlu1 %v7167_v36, %s7361_s0 }
0x5cbf   :  { %v5429_v37 = vpop.permute.xlu0 %5428 }
0x5cc0   :  { %v5431_v2 = vadd.f32 %v5429_v37, %v5421_v31 }
0x5cc2   :  { %7168 = vtanh.f32 %v5431_v2 }
0x5ccc   :  { %v7169_v32 = vpop.eup %7168 }
0x5ccd   :  { %5434 = vrot.lane.b32.xlu0 %v7169_v32, %s7361_s0 }
0x5d24   :  { %v4880_v41 = vpop.permute.xlu1 %4879 }
0x5d25   :  { %v4882_v7 = vmul.f32 %v7161_v61, %v4880_v41 }
0x5d27   :  { %4888 = vperm.xlu1 %6641, %v4882_v7  }
0x5d3f   :  { %v5435_v13 = vpop.permute.xlu0 %5434 }
0x5d40   :  { %v5437_v51 = vmul.f32 %v7165_v34, %v5435_v13 }
0x5d42   :  { %5440 = vperm.xlu0 %6640, %v5437_v51  }
0x5da6   :  { %v8899_v9 = vpop.permute.xlu1 %4888 }
0x5da7   :  { %v4893_v0 = vmul.f32 %v8717_v25, %v8899_v9 }
0x5da9   :  { %v4894_v44 = vadd.f32 %v4893_v0, %v8756_v11 }
0x5dab   :  { %7170 = vtanh.f32 %v4894_v44  ;;  %v4895_v20 = vsub.f32 0.0, %v4894_v44 }
0x5dad   :  { %v4896_v56 = vmul.f32 1.442695, %v4895_v20 }
0x5db5   :  { %v7171_v18 = vpop.eup %7170 }
0x5db6   :  { %4903 = vrot.lane.b32.xlu1 %v7171_v18, %s7358_s9 }
0x5dc1   :  { %v8905_v5 = vpop.permute.xlu0 %5440 }
0x5dc2   :  { %v5445_v45 = vmul.f32 %v8807_v1, %v8905_v5 }
0x5dc4   :  { %v5446_v27 = vadd.f32 %v5445_v45, %v8802_v58 }
0x5dc6   :  { %7172 = vtanh.f32 %v5446_v27  ;;  %v5447_v33 = vsub.f32 0.0, %v5446_v27 }
0x5dc7   :  { %7174 = vpow2.f32 %v4896_v56 }
0x5dc8   :  { %v5448_v10 = vmul.f32 1.442695, %v5447_v33 }
0x5dd0   :  { %v7173_v22 = vpop.eup %7172 }
0x5dd1   :  { %5455 = vrot.lane.b32.xlu0 %v7173_v22, %s7358_s9  ;;  %v7175_v61 = vpop.eup %7174 }
0x5dd2   :  { %v4898_v11 = vadd.f32 1.0, %v7175_v61 }
0x5dd4   :  { %7176 = vrcp.f32 %v4898_v11 }
0x5dd5   :  { %7178 = vpow2.f32 %v5448_v10 }
0x5dde   :  { %v7177_v23 = vpop.eup %7176 }
0x5ddf   :  { %v7179_v53 = vpop.eup %7178  ;;  %v4901_v36 = vmul.f32 %v7177_v23, %v4876_v29 }
0x5de0   :  { %v5450_v58 = vadd.f32 1.0, %v7179_v53 }
0x5de2   :  { %7180 = vrcp.f32 %v5450_v58 }
0x5dec   :  { %v7181_v6 = vpop.eup %7180 }
0x5ded   :  { %v5453_v41 = vmul.f32 %v7181_v6, %v5431_v2 }
0x5e28   :  { %v4904_v26 = vpop.permute.xlu1 %4903 }
0x5e29   :  { %v4906_v34 = vmul.f32 %v7177_v23, %v4904_v26 }
0x5e2b   :  { %4908 = vrot.lane.b32.xlu1 %v4906_v34, %s7359_s18 }
0x5e43   :  { %v5456_v63 = vpop.permute.xlu0 %5455 }
0x5e44   :  { %v5458_v4 = vmul.f32 %v7181_v6, %v5456_v63 }
0x5e46   :  { %5460 = vrot.lane.b32.xlu0 %v5458_v4, %s7359_s18 }
0x5e9d   :  { %v4909_v31 = vpop.permute.xlu1 %4908 }
0x5e9e   :  { %v4911_v37 = vadd.f32 %v4909_v31, %v4901_v36 }
0x5ea0   :  { %7182 = vtanh.f32 %v4911_v37 }
0x5eaa   :  { %v7183_v32 = vpop.eup %7182 }
0x5eab   :  { %4914 = vrot.lane.b32.xlu1 %v7183_v32, %s7361_s0 }
0x5eb8   :  { %v5461_v7 = vpop.permute.xlu0 %5460 }
0x5eb9   :  { %v5463_v13 = vadd.f32 %v5461_v7, %v5453_v41 }
0x5ebb   :  { %7184 = vtanh.f32 %v5463_v13 }
0x5ec5   :  { %v7185_v51 = vpop.eup %7184 }
0x5ec6   :  { %5466 = vrot.lane.b32.xlu0 %v7185_v51, %s7361_s0 }
0x5f1d   :  { %v4915_v0 = vpop.permute.xlu1 %4914 }
0x5f1e   :  { %v4917_v44 = vmul.f32 %v7177_v23, %v4915_v0 }
0x5f20   :  { %4923 = vperm.xlu1 %6641, %v4917_v44  }
0x5f38   :  { %v5467_v18 = vpop.permute.xlu0 %5466 }
0x5f39   :  { %v5469_v45 = vmul.f32 %v7181_v6, %v5467_v18 }
0x5f3b   :  { %5472 = vperm.xlu0 %6640, %v5469_v45  }
0x5f9f   :  { %v8915_v29 = vpop.permute.xlu1 %4923 }
0x5fa0   :  { %v4928_v27 = vmul.f32 %v8717_v25, %v8915_v29 }
0x5fa2   :  { %v4929_v22 = vadd.f32 %v4928_v27, %v8774_v28 }
0x5fa4   :  { %7186 = vtanh.f32 %v4929_v22  ;;  %v4930_v33 = vsub.f32 0.0, %v4929_v22 }
0x5fa6   :  { %v4931_v10 = vmul.f32 1.442695, %v4930_v33 }
0x5fae   :  { %v7187_v2 = vpop.eup %7186 }
0x5faf   :  { %4938 = vrot.lane.b32.xlu1 %v7187_v2, %s7358_s9 }
0x5fba   :  { %v8921_v20 = vpop.permute.xlu0 %5472 }
0x5fbb   :  { %v5477_v56 = vmul.f32 %v8807_v1, %v8921_v20 }
0x5fbd   :  { %v5478_v61 = vadd.f32 %v5477_v56, %v8783_v35 }
0x5fbf   :  { %7188 = vtanh.f32 %v5478_v61  ;;  %v5479_v26 = vsub.f32 0.0, %v5478_v61 }
0x5fc0   :  { %7190 = vpow2.f32 %v4931_v10 }
0x5fc1   :  { %v5480_v34 = vmul.f32 1.442695, %v5479_v26 }
0x5fc9   :  { %v7189_v11 = vpop.eup %7188 }
0x5fca   :  { %5487 = vrot.lane.b32.xlu0 %v7189_v11, %s7358_s9  ;;  %v7191_v23 = vpop.eup %7190 }
0x5fcb   :  { %v4933_v28 = vadd.f32 1.0, %v7191_v23 }
0x5fcd   :  { %7192 = vrcp.f32 %v4933_v28 }
0x5fce   :  { %7194 = vpow2.f32 %v5480_v34 }
0x5fd7   :  { %v7193_v53 = vpop.eup %7192 }
0x5fd8   :  { %v7195_v63 = vpop.eup %7194  ;;  %v4936_v32 = vmul.f32 %v7193_v53, %v4911_v37 }
0x5fd9   :  { %v5482_v35 = vadd.f32 1.0, %v7195_v63 }
0x5fdb   :  { %7196 = vrcp.f32 %v5482_v35 }
0x5fe5   :  { %v7197_v4 = vpop.eup %7196 }
0x5fe6   :  { %v5485_v0 = vmul.f32 %v7197_v4, %v5463_v13 }
0x6021   :  { %v4939_v58 = vpop.permute.xlu1 %4938 }
0x6022   :  { %v4941_v6 = vmul.f32 %v7193_v53, %v4939_v58 }
0x6024   :  { %4943 = vrot.lane.b32.xlu1 %v4941_v6, %s7359_s18 }
0x603c   :  { %v5488_v36 = vpop.permute.xlu0 %5487 }
0x603d   :  { %v5490_v31 = vmul.f32 %v7197_v4, %v5488_v36 }
0x603f   :  { %5492 = vrot.lane.b32.xlu0 %v5490_v31, %s7359_s18 }
0x6096   :  { %v4944_v41 = vpop.permute.xlu1 %4943 }
0x6097   :  { %v4946_v7 = vadd.f32 %v4944_v41, %v4936_v32 }
0x6099   :  { %7198 = vtanh.f32 %v4946_v7 }
0x60a3   :  { %v7199_v51 = vpop.eup %7198 }
0x60a4   :  { %4949 = vrot.lane.b32.xlu1 %v7199_v51, %s7361_s0 }
0x60b1   :  { %v5493_v44 = vpop.permute.xlu0 %5492 }
0x60b2   :  { %v5495_v18 = vadd.f32 %v5493_v44, %v5485_v0 }
0x60b4   :  { %7200 = vtanh.f32 %v5495_v18 }
0x60be   :  { %v7201_v45 = vpop.eup %7200 }
0x60bf   :  { %5498 = vrot.lane.b32.xlu0 %v7201_v45, %s7361_s0 }
0x6116   :  { %v4950_v27 = vpop.permute.xlu1 %4949 }
0x6117   :  { %v4952_v22 = vmul.f32 %v7193_v53, %v4950_v27 }
0x6119   :  { %4958 = vperm.xlu1 %6641, %v4952_v22  }
0x6131   :  { %v5499_v2 = vpop.permute.xlu0 %5498 }
0x6132   :  { %v5501_v56 = vmul.f32 %v7197_v4, %v5499_v2 }
0x6134   :  { %5504 = vperm.xlu0 %6640, %v5501_v56  }
0x6198   :  { %v8931_v37 = vpop.permute.xlu1 %4958 }
0x6199   :  { %v4963_v61 = vmul.f32 %v8717_v25, %v8931_v37 }
0x619b   :  { %v4964_v11 = vadd.f32 %v4963_v61, %v8768_v15 }
0x619d   :  { %7202 = vtanh.f32 %v4964_v11  ;;  %v4965_v26 = vsub.f32 0.0, %v4964_v11 }
0x619f   :  { %v4966_v34 = vmul.f32 1.442695, %v4965_v26 }
0x61a7   :  { %v7203_v13 = vpop.eup %7202 }
0x61a8   :  { %4973 = vrot.lane.b32.xlu1 %v7203_v13, %s7358_s9 }
0x61b3   :  { %v8937_v33 = vpop.permute.xlu0 %5504 }
0x61b4   :  { %v5509_v10 = vmul.f32 %v8807_v1, %v8937_v33 }
0x61b6   :  { %v5510_v23 = vadd.f32 %v5509_v10, %v8790_v43 }
0x61b8   :  { %7204 = vtanh.f32 %v5510_v23  ;;  %v5511_v58 = vsub.f32 0.0, %v5510_v23 }
0x61b9   :  { %7206 = vpow2.f32 %v4966_v34 }
0x61ba   :  { %v5512_v6 = vmul.f32 1.442695, %v5511_v58 }
0x61c2   :  { %v7205_v28 = vpop.eup %7204 }
0x61c3   :  { %5519 = vrot.lane.b32.xlu0 %v7205_v28, %s7358_s9  ;;  %v7207_v53 = vpop.eup %7206 }
0x61c4   :  { %v4968_v15 = vadd.f32 1.0, %v7207_v53 }
0x61c6   :  { %7208 = vrcp.f32 %v4968_v15 }
0x61c7   :  { %7210 = vpow2.f32 %v5512_v6 }
0x61d0   :  { %v7209_v63 = vpop.eup %7208 }
0x61d1   :  { %v7211_v36 = vpop.eup %7210  ;;  %v4971_v51 = vmul.f32 %v7209_v63, %v4946_v7 }
0x61d2   :  { %v5514_v43 = vadd.f32 1.0, %v7211_v36 }
0x61d4   :  { %7212 = vrcp.f32 %v5514_v43 }
0x61de   :  { %v7213_v31 = vpop.eup %7212 }
0x61df   :  { %v5517_v27 = vmul.f32 %v7213_v31, %v5495_v18 }
0x621a   :  { %v4974_v35 = vpop.permute.xlu1 %4973 }
0x621b   :  { %v4976_v4 = vmul.f32 %v7209_v63, %v4974_v35 }
0x621d   :  { %4978 = vrot.lane.b32.xlu1 %v4976_v4, %s7359_s18 }
0x6235   :  { %v5520_v32 = vpop.permute.xlu0 %5519 }
0x6236   :  { %v5522_v41 = vmul.f32 %v7213_v31, %v5520_v32 }
0x6238   :  { %5524 = vrot.lane.b32.xlu0 %v5522_v41, %s7359_s18 }
0x628f   :  { %v4979_v0 = vpop.permute.xlu1 %4978 }
0x6290   :  { %v4981_v44 = vadd.f32 %v4979_v0, %v4971_v51 }
0x6292   :  { %7214 = vtanh.f32 %v4981_v44 }
0x629c   :  { %v7215_v45 = vpop.eup %7214 }
0x629d   :  { %4984 = vrot.lane.b32.xlu1 %v7215_v45, %s7361_s0 }
0x62aa   :  { %v5525_v22 = vpop.permute.xlu0 %5524 }
0x62ab   :  { %v5527_v2 = vadd.f32 %v5525_v22, %v5517_v27 }
0x62ad   :  { %7216 = vtanh.f32 %v5527_v2 }
0x62b7   :  { %v7217_v56 = vpop.eup %7216 }
0x62b8   :  { %5530 = vrot.lane.b32.xlu0 %v7217_v56, %s7361_s0 }
0x630f   :  { %v4985_v61 = vpop.permute.xlu1 %4984 }
0x6310   :  { %v4987_v11 = vmul.f32 %v7209_v63, %v4985_v61 }
0x6312   :  { %4993 = vperm.xlu1 %6641, %v4987_v11  }
0x632a   :  { %v5531_v13 = vpop.permute.xlu0 %5530 }
0x632b   :  { %v5533_v10 = vmul.f32 %v7213_v31, %v5531_v13 }
0x632d   :  { %5536 = vperm.xlu0 %6640, %v5533_v10  }
0x6391   :  { %v8947_v7 = vpop.permute.xlu1 %4993 }
0x6392   :  { %v4998_v23 = vmul.f32 %v8717_v25, %v8947_v7 }
0x6394   :  { %v4999_v28 = vadd.f32 %v4998_v23, %v8787_v40 }
0x6396   :  { %7218 = vtanh.f32 %v4999_v28  ;;  %v5000_v58 = vsub.f32 0.0, %v4999_v28 }
0x6398   :  { %v5001_v6 = vmul.f32 1.442695, %v5000_v58 }
0x63a0   :  { %v7219_v18 = vpop.eup %7218 }
0x63a1   :  { %5008 = vrot.lane.b32.xlu1 %v7219_v18, %s7358_s9 }
0x63ac   :  { %v8953_v26 = vpop.permute.xlu0 %5536 }
0x63ad   :  { %v5541_v34 = vmul.f32 %v8807_v1, %v8953_v26 }
0x63af   :  { %v5542_v53 = vadd.f32 %v5541_v34, %v8771_v16  ;;  %v8968_v34 = vld [vmem:[%s9215_s8] ss:$0 sm:$0xff] }
0x63b1   :  { %7220 = vtanh.f32 %v5542_v53  ;;  %v5543_v63 = vsub.f32 0.0, %v5542_v53 }
0x63b2   :  { %7222 = vpow2.f32 %v5001_v6 }
0x63b3   :  { %v5544_v35 = vmul.f32 1.442695, %v5543_v63 }
0x63bb   :  { %v7221_v15 = vpop.eup %7220 }
0x63bc   :  { %5551 = vrot.lane.b32.xlu0 %v7221_v15, %s7358_s9  ;;  %v7223_v25 = vpop.eup %7222 }
0x63bd   :  { %v5003_v40 = vadd.f32 1.0, %v7223_v25 }
0x63bf   :  { %7224 = vrcp.f32 %v5003_v40 }
0x63c0   :  { %7226 = vpow2.f32 %v5544_v35 }
0x63c9   :  { %v7225_v4 = vpop.eup %7224 }
0x63ca   :  { %v7227_v31 = vpop.eup %7226  ;;  %v5006_v0 = vmul.f32 %v7225_v4, %v4981_v44 }
0x63cb   :  { %v5546_v16 = vadd.f32 1.0, %v7227_v31 }
0x63cd   :  { %7228 = vrcp.f32 %v5546_v16 }
0x63d7   :  { %v7229_v32 = vpop.eup %7228 }
0x63d8   :  { %v5549_v56 = vmul.f32 %v7229_v32, %v5527_v2 }
0x6413   :  { %v5009_v36 = vpop.permute.xlu1 %5008 }
0x6414   :  { %v5011_v43 = vmul.f32 %v7225_v4, %v5009_v36 }
0x6416   :  { %5013 = vrot.lane.b32.xlu1 %v5011_v43, %s7359_s18 }
0x642e   :  { %v5552_v41 = vpop.permute.xlu0 %5551 }
0x642f   :  { %v5554_v51 = vmul.f32 %v7229_v32, %v5552_v41 }
0x6431   :  { %5556 = vrot.lane.b32.xlu0 %v5554_v51, %s7359_s18 }
0x6488   :  { %v5014_v45 = vpop.permute.xlu1 %5013 }
0x6489   :  { %v5016_v27 = vadd.f32 %v5014_v45, %v5006_v0 }
0x648b   :  { %7230 = vtanh.f32 %v5016_v27 }
0x6495   :  { %v7231_v22 = vpop.eup %7230 }
0x6496   :  { %5019 = vrot.lane.b32.xlu1 %v7231_v22, %s7361_s0 }
0x64a3   :  { %v5557_v61 = vpop.permute.xlu0 %5556 }
0x64a4   :  { %v5559_v11 = vadd.f32 %v5557_v61, %v5549_v56 }
0x64a6   :  { %7232 = vtanh.f32 %v5559_v11 }
0x64b0   :  { %v7233_v13 = vpop.eup %7232 }
0x64b1   :  { %5562 = vrot.lane.b32.xlu0 %v7233_v13, %s7361_s0 }
0x6508   :  { %v5020_v10 = vpop.permute.xlu1 %5019 }
0x6509   :  { %v5022_v23 = vmul.f32 %v7225_v4, %v5020_v10 }
0x650b   :  { %5028 = vperm.xlu1 %6641, %v5022_v23  }
0x6523   :  { %v5563_v28 = vpop.permute.xlu0 %5562 }
0x6524   :  { %v5565_v18 = vmul.f32 %v7229_v32, %v5563_v28 }
0x6526   :  { %5568 = vperm.xlu0 %6640, %v5565_v18  }
0x658a   :  { %v8963_v44 = vpop.permute.xlu1 %5028 }
0x658b   :  { %v5033_v2 = vmul.f32 %v8968_v34, %v8963_v44 }
0x658d   :  { %v5034_v53 = vadd.f32 %v5033_v2, %v8780_v48 }
0x658f   :  { %7234 = vtanh.f32 %v5034_v53  ;;  %v5035_v63 = vsub.f32 0.0, %v5034_v53 }
0x6591   :  { %v5036_v35 = vmul.f32 1.442695, %v5035_v63  ;;  %v8995_v63 = vld [vmem:[%s9218_s11] ss:$0 sm:$0xff] }
0x6599   :  { %v7235_v15 = vpop.eup %7234 }
0x659a   :  { %5043 = vrot.lane.b32.xlu1 %v7235_v15, %s7358_s9 }
0x65a5   :  { %v8974_v58 = vpop.permute.xlu0 %5568 }
0x65a6   :  { %v5573_v6 = vmul.f32 %v8807_v1, %v8974_v58 }
0x65a8   :  { %v5574_v25 = vadd.f32 %v5573_v6, %v8777_v30 }
0x65aa   :  { %7236 = vtanh.f32 %v5574_v25  ;;  %v5575_v36 = vsub.f32 0.0, %v5574_v25 }
0x65ab   :  { %7238 = vpow2.f32 %v5036_v35 }
0x65ac   :  { %v5576_v43 = vmul.f32 1.442695, %v5575_v36 }
0x65b4   :  { %v7237_v40 = vpop.eup %7236 }
0x65b5   :  { %5583 = vrot.lane.b32.xlu0 %v7237_v40, %s7358_s9  ;;  %v7239_v4 = vpop.eup %7238 }
0x65b6   :  { %v5038_v48 = vadd.f32 1.0, %v7239_v4 }
0x65b8   :  { %7240 = vrcp.f32 %v5038_v48 }
0x65b9   :  { %7242 = vpow2.f32 %v5576_v43 }
0x65c2   :  { %v7241_v31 = vpop.eup %7240 }
0x65c3   :  { %v7243_v1 = vpop.eup %7242  ;;  %v5041_v45 = vmul.f32 %v7241_v31, %v5016_v27 }
0x65c4   :  { %v5578_v30 = vadd.f32 1.0, %v7243_v1 }
0x65c6   :  { %7244 = vrcp.f32 %v5578_v30 }
0x65d0   :  { %v7245_v41 = vpop.eup %7244 }
0x65d1   :  { %v5581_v13 = vmul.f32 %v7245_v41, %v5559_v11 }
0x660c   :  { %v5044_v16 = vpop.permute.xlu1 %5043 }
0x660d   :  { %v5046_v32 = vmul.f32 %v7241_v31, %v5044_v16 }
0x660f   :  { %5048 = vrot.lane.b32.xlu1 %v5046_v32, %s7359_s18 }
0x6627   :  { %v5584_v51 = vpop.permute.xlu0 %5583 }
0x6628   :  { %v5586_v0 = vmul.f32 %v7245_v41, %v5584_v51 }
0x662a   :  { %5588 = vrot.lane.b32.xlu0 %v5586_v0, %s7359_s18 }
0x6681   :  { %v5049_v22 = vpop.permute.xlu1 %5048 }
0x6682   :  { %v5051_v56 = vadd.f32 %v5049_v22, %v5041_v45 }
0x6684   :  { %7246 = vtanh.f32 %v5051_v56 }
0x668e   :  { %v7247_v61 = vpop.eup %7246 }
0x668f   :  { %5054 = vrot.lane.b32.xlu1 %v7247_v61, %s7361_s0 }
0x669c   :  { %v5589_v10 = vpop.permute.xlu0 %5588 }
0x669d   :  { %v5591_v23 = vadd.f32 %v5589_v10, %v5581_v13 }
0x669f   :  { %7248 = vtanh.f32 %v5591_v23 }
0x66a9   :  { %v7249_v28 = vpop.eup %7248 }
0x66aa   :  { %5594 = vrot.lane.b32.xlu0 %v7249_v28, %s7361_s0 }
0x6701   :  { %v5055_v18 = vpop.permute.xlu1 %5054 }
0x6702   :  { %v5057_v2 = vmul.f32 %v7241_v31, %v5055_v18 }
0x6704   :  { %5063 = vperm.xlu1 %6641, %v5057_v2  }
0x671c   :  { %v5595_v53 = vpop.permute.xlu0 %5594 }
0x671d   :  { %v5597_v15 = vmul.f32 %v7245_v41, %v5595_v53 }
0x671f   :  { %5600 = vperm.xlu0 %6640, %v5597_v15  }
0x6783   :  { %v8984_v27 = vpop.permute.xlu1 %5063 }
0x6784   :  { %v5068_v6 = vmul.f32 %v8968_v34, %v8984_v27 }
0x6786   :  { %v5069_v25 = vadd.f32 %v5068_v6, %v8799_v59 }
0x6788   :  { %7250 = vtanh.f32 %v5069_v25  ;;  %v5070_v59 = vsub.f32 0.0, %v5069_v25 }
0x678a   :  { %v5071_v36 = vmul.f32 1.442695, %v5070_v59 }
0x6792   :  { %v7251_v11 = vpop.eup %7250 }
0x6793   :  { %5078 = vrot.lane.b32.xlu1 %v7251_v11, %s7358_s9 }
0x679e   :  { %v8990_v40 = vpop.permute.xlu0 %5600 }
0x679f   :  { %v5605_v35 = vmul.f32 %v8995_v63, %v8990_v40 }
0x67a1   :  { %v5606_v4 = vadd.f32 %v5605_v35, %v8759_v14 }
0x67a3   :  { %7252 = vtanh.f32 %v5606_v4  ;;  %v5607_v16 = vsub.f32 0.0, %v5606_v4 }
0x67a4   :  { %7254 = vpow2.f32 %v5071_v36 }
0x67a5   :  { %v5608_v32 = vmul.f32 1.442695, %v5607_v16 }
0x67ad   :  { %v7253_v48 = vpop.eup %7252 }
0x67ae   :  { %5615 = vrot.lane.b32.xlu0 %v7253_v48, %s7358_s9  ;;  %v7255_v43 = vpop.eup %7254 }
0x67af   :  { %v5073_v31 = vadd.f32 1.0, %v7255_v43 }
0x67b1   :  { %7256 = vrcp.f32 %v5073_v31 }
0x67b2   :  { %7258 = vpow2.f32 %v5608_v32 }
0x67bb   :  { %v7257_v1 = vpop.eup %7256 }
0x67bc   :  { %v7259_v51 = vpop.eup %7258  ;;  %v5076_v61 = vmul.f32 %v7257_v1, %v5051_v56 }
0x67bd   :  { %v5610_v14 = vadd.f32 1.0, %v7259_v51 }
0x67bf   :  { %7260 = vrcp.f32 %v5610_v14 }
0x67c9   :  { %v7261_v0 = vpop.eup %7260 }
0x67ca   :  { %v5613_v18 = vmul.f32 %v7261_v0, %v5591_v23 }
0x6805   :  { %v5079_v30 = vpop.permute.xlu1 %5078 }
0x6806   :  { %v5081_v41 = vmul.f32 %v7257_v1, %v5079_v30 }
0x6808   :  { %5083 = vrot.lane.b32.xlu1 %v5081_v41, %s7359_s18 }
0x6820   :  { %v5616_v45 = vpop.permute.xlu0 %5615 }
0x6821   :  { %v5618_v22 = vmul.f32 %v7261_v0, %v5616_v45 }
0x6823   :  { %5620 = vrot.lane.b32.xlu0 %v5618_v22, %s7359_s18 }
0x687a   :  { %v5084_v13 = vpop.permute.xlu1 %5083 }
0x687b   :  { %v5086_v10 = vadd.f32 %v5084_v13, %v5076_v61 }
0x687d   :  { %7262 = vtanh.f32 %v5086_v10 }
0x6887   :  { %v7263_v28 = vpop.eup %7262 }
0x6888   :  { %5089 = vrot.lane.b32.xlu1 %v7263_v28, %s7361_s0 }
0x6895   :  { %v5621_v2 = vpop.permute.xlu0 %5620 }
0x6896   :  { %v5623_v53 = vadd.f32 %v5621_v2, %v5613_v18 }
0x6898   :  { %7264 = vtanh.f32 %v5623_v53 }
0x68a2   :  { %v7265_v15 = vpop.eup %7264 }
0x68a3   :  { %5626 = vrot.lane.b32.xlu0 %v7265_v15, %s7361_s0 }
0x68fa   :  { %v5090_v6 = vpop.permute.xlu1 %5089 }
0x68fb   :  { %v5092_v25 = vmul.f32 %v7257_v1, %v5090_v6 }
0x68fd   :  { %5098 = vperm.xlu1 %6641, %v5092_v25  }
0x6915   :  { %v5627_v11 = vpop.permute.xlu0 %5626 }
0x6916   :  { %v5629_v35 = vmul.f32 %v7261_v0, %v5627_v11 }
0x6918   :  { %5632 = vperm.xlu0 %6640, %v5629_v35  }
0x697c   :  { %v9005_v56 = vpop.permute.xlu1 %5098 }
0x697d   :  { %v5103_v4 = vmul.f32 %v8968_v34, %v9005_v56 }
0x697f   :  { %v5104_v48 = vadd.f32 %v5103_v4, %v8793_v46 }
0x6981   :  { %7266 = vtanh.f32 %v5104_v48  ;;  %v5105_v16 = vsub.f32 0.0, %v5104_v48 }
0x6983   :  { %v5106_v32 = vmul.f32 1.442695, %v5105_v16 }
0x698b   :  { %v7267_v23 = vpop.eup %7266 }
0x698c   :  { %5113 = vrot.lane.b32.xlu1 %v7267_v23, %s7358_s9 }
0x6997   :  { %v9011_v59 = vpop.permute.xlu0 %5632 }
0x6998   :  { %v5637_v36 = vmul.f32 %v8995_v63, %v9011_v59 }
0x699a   :  { %v5638_v43 = vadd.f32 %v5637_v36, %v8765_v49 }
0x699c   :  { %7268 = vtanh.f32 %v5638_v43  ;;  %v5639_v30 = vsub.f32 0.0, %v5638_v43 }
0x699d   :  { %7270 = vpow2.f32 %v5106_v32 }
0x699e   :  { %v5640_v41 = vmul.f32 1.442695, %v5639_v30 }
0x69a6   :  { %v7269_v31 = vpop.eup %7268 }
0x69a7   :  { %5647 = vrot.lane.b32.xlu0 %v7269_v31, %s7358_s9  ;;  %v7271_v1 = vpop.eup %7270 }
0x69a8   :  { %v5108_v46 = vadd.f32 1.0, %v7271_v1 }
0x69aa   :  { %7272 = vrcp.f32 %v5108_v46 }
0x69ab   :  { %7274 = vpow2.f32 %v5640_v41 }
0x69b4   :  { %v7273_v51 = vpop.eup %7272 }
0x69b5   :  { %v7275_v45 = vpop.eup %7274  ;;  %v5111_v28 = vmul.f32 %v7273_v51, %v5086_v10 }
0x69b6   :  { %v5642_v49 = vadd.f32 1.0, %v7275_v45 }
0x69b8   :  { %7276 = vrcp.f32 %v5642_v49 }
0x69c2   :  { %v7277_v22 = vpop.eup %7276 }
0x69c3   :  { %v5645_v6 = vmul.f32 %v7277_v22, %v5623_v53 }
0x69fe   :  { %v5114_v14 = vpop.permute.xlu1 %5113 }
0x69ff   :  { %v5116_v0 = vmul.f32 %v7273_v51, %v5114_v14 }
0x6a01   :  { %5118 = vrot.lane.b32.xlu1 %v5116_v0, %s7359_s18 }
0x6a19   :  { %v5648_v61 = vpop.permute.xlu0 %5647 }
0x6a1a   :  { %v5650_v13 = vmul.f32 %v7277_v22, %v5648_v61 }
0x6a1c   :  { %5652 = vrot.lane.b32.xlu0 %v5650_v13, %s7359_s18 }
0x6a73   :  { %v5119_v18 = vpop.permute.xlu1 %5118 }
0x6a74   :  { %v5121_v2 = vadd.f32 %v5119_v18, %v5111_v28 }
0x6a76   :  { %7278 = vtanh.f32 %v5121_v2 }
0x6a80   :  { %v7279_v15 = vpop.eup %7278 }
0x6a81   :  { %5124 = vrot.lane.b32.xlu1 %v7279_v15, %s7361_s0 }
0x6a8e   :  { %v5653_v25 = vpop.permute.xlu0 %5652 }
0x6a8f   :  { %v5655_v11 = vadd.f32 %v5653_v25, %v5645_v6 }
0x6a91   :  { %7280 = vtanh.f32 %v5655_v11 }
0x6a9b   :  { %v7281_v35 = vpop.eup %7280 }
0x6a9c   :  { %5658 = vrot.lane.b32.xlu0 %v7281_v35, %s7361_s0 }
0x6af3   :  { %v5125_v4 = vpop.permute.xlu1 %5124 }
0x6af4   :  { %v5127_v48 = vmul.f32 %v7273_v51, %v5125_v4 }
0x6af6   :  { %5133 = vperm.xlu1 %6641, %v5127_v48  }
0x6b0e   :  { %v5659_v23 = vpop.permute.xlu0 %5658 }
0x6b0f   :  { %v5661_v36 = vmul.f32 %v7277_v22, %v5659_v23 }
0x6b11   :  { %5664 = vperm.xlu0 %6640, %v5661_v36  }
0x6b75   :  { %v9021_v10 = vpop.permute.xlu1 %5133 }
0x6b76   :  { %v5138_v43 = vmul.f32 %v8968_v34, %v9021_v10 }
0x6b78   :  { %v5139_v31 = vadd.f32 %v5138_v43, %v8816_v21 }
0x6b7a   :  { %7282 = vtanh.f32 %v5139_v31  ;;  %v5140_v30 = vsub.f32 0.0, %v5139_v31 }
0x6b7c   :  { %v5141_v41 = vmul.f32 1.442695, %v5140_v30 }
0x6b84   :  { %v7283_v53 = vpop.eup %7282 }
0x6b85   :  { %5148 = vrot.lane.b32.xlu1 %v7283_v53, %s7358_s9 }
0x6b90   :  { %v9027_v16 = vpop.permute.xlu0 %5664 }
0x6b91   :  { %v5669_v32 = vmul.f32 %v8995_v63, %v9027_v16 }
0x6b93   :  { %v5670_v1 = vadd.f32 %v5669_v32, %v8746_v54 }
0x6b95   :  { %7284 = vtanh.f32 %v5670_v1  ;;  %v5671_v14 = vsub.f32 0.0, %v5670_v1 }
0x6b96   :  { %7286 = vpow2.f32 %v5141_v41 }
0x6b97   :  { %v5672_v0 = vmul.f32 1.442695, %v5671_v14 }
0x6b9f   :  { %v7285_v46 = vpop.eup %7284 }
0x6ba0   :  { %5679 = vrot.lane.b32.xlu0 %v7285_v46, %s7358_s9  ;;  %v7287_v51 = vpop.eup %7286 }
0x6ba1   :  { %v5143_v21 = vadd.f32 1.0, %v7287_v51 }
0x6ba3   :  { %7288 = vrcp.f32 %v5143_v21 }
0x6ba4   :  { %7290 = vpow2.f32 %v5672_v0 }
0x6bad   :  { %v7289_v45 = vpop.eup %7288 }
0x6bae   :  { %v7291_v61 = vpop.eup %7290  ;;  %v5146_v15 = vmul.f32 %v7289_v45, %v5121_v2 }
0x6baf   :  { %v5674_v54 = vadd.f32 1.0, %v7291_v61 }
0x6bb1   :  { %7292 = vrcp.f32 %v5674_v54 }
0x6bbb   :  { %v7293_v13 = vpop.eup %7292 }
0x6bbc   :  { %v5677_v4 = vmul.f32 %v7293_v13, %v5655_v11 }
0x6bf7   :  { %v5149_v49 = vpop.permute.xlu1 %5148 }
0x6bf8   :  { %v5151_v22 = vmul.f32 %v7289_v45, %v5149_v49 }
0x6bfa   :  { %5153 = vrot.lane.b32.xlu1 %v5151_v22, %s7359_s18 }
0x6c12   :  { %v5680_v28 = vpop.permute.xlu0 %5679 }
0x6c13   :  { %v5682_v18 = vmul.f32 %v7293_v13, %v5680_v28 }
0x6c15   :  { %5684 = vrot.lane.b32.xlu0 %v5682_v18, %s7359_s18 }
0x6c6c   :  { %v5154_v6 = vpop.permute.xlu1 %5153 }
0x6c6d   :  { %v5156_v25 = vadd.f32 %v5154_v6, %v5146_v15 }
0x6c6f   :  { %7294 = vtanh.f32 %v5156_v25 }
0x6c79   :  { %v7295_v35 = vpop.eup %7294 }
0x6c7a   :  { %5159 = vrot.lane.b32.xlu1 %v7295_v35, %s7361_s0 }
0x6c87   :  { %v5685_v48 = vpop.permute.xlu0 %5684 }
0x6c88   :  { %v5687_v23 = vadd.f32 %v5685_v48, %v5677_v4 }
0x6c8a   :  { %7296 = vtanh.f32 %v5687_v23 }
0x6c94   :  { %v7297_v36 = vpop.eup %7296 }
0x6c95   :  { %5690 = vrot.lane.b32.xlu0 %v7297_v36, %s7361_s0 }
0x6cec   :  { %v5160_v43 = vpop.permute.xlu1 %5159 }
0x6ced   :  { %v5162_v31 = vmul.f32 %v7289_v45, %v5160_v43 }
0x6cef   :  { %5168 = vperm.xlu1 %6641, %v5162_v31  }
0x6d07   :  { %v5691_v53 = vpop.permute.xlu0 %5690 }
0x6d08   :  { %v5693_v32 = vmul.f32 %v7293_v13, %v5691_v53 }
0x6d0a   :  { %5696 = vperm.xlu0 %6640, %v5693_v32  }
0x6d6e   :  { %v9037_v2 = vpop.permute.xlu1 %5168 }
0x6d6f   :  { %v5173_v1 = vmul.f32 %v8968_v34, %v9037_v2 }
0x6d71   :  { %v5174_v46 = vadd.f32 %v5173_v1, %v8810_v19 }
0x6d73   :  { %7298 = vtanh.f32 %v5174_v46  ;;  %v5175_v14 = vsub.f32 0.0, %v5174_v46 }
0x6d75   :  { %v5176_v0 = vmul.f32 1.442695, %v5175_v14 }
0x6d7d   :  { %v7299_v11 = vpop.eup %7298 }
0x6d7e   :  { %5183 = vrot.lane.b32.xlu1 %v7299_v11, %s7358_s9 }
0x6d89   :  { %v9043_v30 = vpop.permute.xlu0 %5696 }
0x6d8a   :  { %v5701_v41 = vmul.f32 %v8995_v63, %v9043_v30 }
0x6d8c   :  { %v5702_v51 = vadd.f32 %v5701_v41, %v8753_v42 }
0x6d8e   :  { %7300 = vtanh.f32 %v5702_v51  ;;  %v5703_v49 = vsub.f32 0.0, %v5702_v51 }
0x6d8f   :  { %7302 = vpow2.f32 %v5176_v0 }
0x6d90   :  { %v5704_v22 = vmul.f32 1.442695, %v5703_v49 }
0x6d98   :  { %v7301_v21 = vpop.eup %7300 }
0x6d99   :  { %5711 = vrot.lane.b32.xlu0 %v7301_v21, %s7358_s9  ;;  %v7303_v45 = vpop.eup %7302 }
0x6d9a   :  { %v5178_v19 = vadd.f32 1.0, %v7303_v45 }
0x6d9c   :  { %7304 = vrcp.f32 %v5178_v19 }
0x6d9d   :  { %7306 = vpow2.f32 %v5704_v22 }
0x6da6   :  { %v7305_v61 = vpop.eup %7304 }
0x6da7   :  { %v7307_v28 = vpop.eup %7306  ;;  %v5181_v35 = vmul.f32 %v7305_v61, %v5156_v25 }
0x6da8   :  { %v5706_v42 = vadd.f32 1.0, %v7307_v28 }
0x6daa   :  { %7308 = vrcp.f32 %v5706_v42 }
0x6db4   :  { %v7309_v18 = vpop.eup %7308 }
0x6db5   :  { %v5709_v43 = vmul.f32 %v7309_v18, %v5687_v23 }
0x6df0   :  { %v5184_v54 = vpop.permute.xlu1 %5183 }
0x6df1   :  { %v5186_v13 = vmul.f32 %v7305_v61, %v5184_v54 }
0x6df3   :  { %5188 = vrot.lane.b32.xlu1 %v5186_v13, %s7359_s18 }
0x6e0b   :  { %v5712_v15 = vpop.permute.xlu0 %5711 }
0x6e0c   :  { %v5714_v6 = vmul.f32 %v7309_v18, %v5712_v15 }
0x6e0e   :  { %5716 = vrot.lane.b32.xlu0 %v5714_v6, %s7359_s18 }
0x6e65   :  { %v5189_v4 = vpop.permute.xlu1 %5188 }
0x6e66   :  { %v5191_v48 = vadd.f32 %v5189_v4, %v5181_v35 }
0x6e68   :  { %7310 = vtanh.f32 %v5191_v48 }
0x6e72   :  { %v7311_v36 = vpop.eup %7310 }
0x6e73   :  { %5194 = vrot.lane.b32.xlu1 %v7311_v36, %s7361_s0 }
0x6e80   :  { %v5717_v31 = vpop.permute.xlu0 %5716 }
0x6e81   :  { %v5719_v53 = vadd.f32 %v5717_v31, %v5709_v43 }
0x6e83   :  { %7312 = vtanh.f32 %v5719_v53 }
0x6e8d   :  { %v7313_v32 = vpop.eup %7312 }
0x6e8e   :  { %5722 = vrot.lane.b32.xlu0 %v7313_v32, %s7361_s0 }
0x6ee5   :  { %v5195_v1 = vpop.permute.xlu1 %5194 }
0x6ee6   :  { %v5197_v46 = vmul.f32 %v7305_v61, %v5195_v1 }
0x6ee8   :  { %5203 = vperm.xlu1 %6641, %v5197_v46  }
0x6f00   :  { %v5723_v11 = vpop.permute.xlu0 %5722 }
0x6f01   :  { %v5725_v41 = vmul.f32 %v7309_v18, %v5723_v11 }
0x6f03   :  { %5728 = vperm.xlu0 %6640, %v5725_v41  }
0x6f67   :  { %v9053_v25 = vpop.permute.xlu1 %5203 }
0x6f68   :  { %v5208_v51 = vmul.f32 %v8968_v34, %v9053_v25 }
0x6f6a   :  { %v5209_v21 = vadd.f32 %v5208_v51, %v8827_v50 }
0x6f6c   :  { %7314 = vtanh.f32 %v5209_v21  ;;  %v5210_v49 = vsub.f32 0.0, %v5209_v21 }
0x6f6e   :  { %v5211_v22 = vmul.f32 1.442695, %v5210_v49 }
0x6f76   :  { %v7315_v23 = vpop.eup %7314 }
0x6f77   :  { %5218 = vrot.lane.b32.xlu1 %v7315_v23, %s7358_s9 }
0x6f82   :  { %v9059_v14 = vpop.permute.xlu0 %5728 }
0x6f83   :  { %v5733_v0 = vmul.f32 %v8995_v63, %v9059_v14 }
0x6f85   :  { %v5734_v45 = vadd.f32 %v5733_v0, %v8734_v24 }
0x6f87   :  { %7316 = vtanh.f32 %v5734_v45  ;;  %v5735_v54 = vsub.f32 0.0, %v5734_v45 }
0x6f88   :  { %7318 = vpow2.f32 %v5211_v22 }
0x6f89   :  { %v5736_v13 = vmul.f32 1.442695, %v5735_v54 }
0x6f91   :  { %v7317_v19 = vpop.eup %7316 }
0x6f92   :  { %5743 = vrot.lane.b32.xlu0 %v7317_v19, %s7358_s9  ;;  %v7319_v61 = vpop.eup %7318 }
0x6f93   :  { %v5213_v50 = vadd.f32 1.0, %v7319_v61 }
0x6f95   :  { %7320 = vrcp.f32 %v5213_v50 }
0x6f96   :  { %7322 = vpow2.f32 %v5736_v13 }
0x6f9f   :  { %v7321_v28 = vpop.eup %7320 }
0x6fa0   :  { %v7323_v15 = vpop.eup %7322  ;;  %v5216_v36 = vmul.f32 %v7321_v28, %v5191_v48 }
0x6fa1   :  { %v5738_v24 = vadd.f32 1.0, %v7323_v15 }
0x6fa3   :  { %7324 = vrcp.f32 %v5738_v24 }
0x6fad   :  { %v7325_v6 = vpop.eup %7324 }
0x6fae   :  { %v5741_v1 = vmul.f32 %v7325_v6, %v5719_v53 }
0x6fe9   :  { %v5219_v42 = vpop.permute.xlu1 %5218 }
0x6fea   :  { %v5221_v18 = vmul.f32 %v7321_v28, %v5219_v42 }
0x6fec   :  { %5223 = vrot.lane.b32.xlu1 %v5221_v18, %s7359_s18 }
0x7004   :  { %v5744_v35 = vpop.permute.xlu0 %5743 }
0x7005   :  { %v5746_v4 = vmul.f32 %v7325_v6, %v5744_v35 }
0x7007   :  { %5748 = vrot.lane.b32.xlu0 %v5746_v4, %s7359_s18 }
0x705e   :  { %v5224_v43 = vpop.permute.xlu1 %5223 }
0x705f   :  { %v5226_v31 = vadd.f32 %v5224_v43, %v5216_v36 }
0x7061   :  { %7326 = vtanh.f32 %v5226_v31 }
0x706b   :  { %v7327_v32 = vpop.eup %7326 }
0x706c   :  { %5229 = vrot.lane.b32.xlu1 %v7327_v32, %s7361_s0 }
0x7079   :  { %v5749_v46 = vpop.permute.xlu0 %5748 }
0x707a   :  { %v5751_v11 = vadd.f32 %v5749_v46, %v5741_v1 }
0x707c   :  { %7328 = vtanh.f32 %v5751_v11 }
0x7086   :  { %v7329_v41 = vpop.eup %7328 }
0x7087   :  { %5754 = vrot.lane.b32.xlu0 %v7329_v41, %s7361_s0 }
0x70de   :  { %v5230_v51 = vpop.permute.xlu1 %5229 }
0x70df   :  { %v5232_v21 = vmul.f32 %v7321_v28, %v5230_v51 }
0x70e1   :  { %5238 = vperm.xlu1 %6641, %v5232_v21  }
0x70f9   :  { %v5755_v23 = vpop.permute.xlu0 %5754 }
0x70fa   :  { %v5757_v0 = vmul.f32 %v7325_v6, %v5755_v23 }
0x70fc   :  { %5760 = vperm.xlu0 %6640, %v5757_v0  }
0x7160   :  { %v9069_v48 = vpop.permute.xlu1 %5238 }
0x7161   :  { %v5243_v45 = vmul.f32 %v8968_v34, %v9069_v48 }
0x7163   :  { %v5244_v19 = vadd.f32 %v5243_v45, %v8823_v39  ;;  %v7362_v45 = vmov 0.0|0.0  }
0x7164   :  { %6626 = vmatprep.subr.bf16.mxu0 %v7362_v45 }
0x7165   :  { %7330 = vtanh.f32 %v5244_v19  ;;  %v5245_v54 = vsub.f32 0.0, %v5244_v19  ;;  %v5801_v19 = vld [vmem:[%s9219_s13 + $0x8] sm:$0xff] }
0x7167   :  { %v5246_v13 = vmul.f32 1.442695, %v5245_v54 }
0x716f   :  { %v7331_v53 = vpop.eup %7330 }
0x7170   :  { %5253 = vrot.lane.b32.xlu1 %v7331_v53, %s7358_s9 }
0x717b   :  { %v9075_v49 = vpop.permute.xlu0 %5760 }
0x717c   :  { %v5765_v22 = vmul.f32 %v8995_v63, %v9075_v49 }
0x717e   :  { %v5766_v61 = vadd.f32 %v5765_v22, %v8738_v52 }
0x7180   :  { %7332 = vtanh.f32 %v5766_v61  ;;  %v5767_v28 = vsub.f32 0.0, %v5766_v61  ;;  %v9093_v61 = vand.u32 127, %v84_v57 }
0x7181   :  { %7334 = vpow2.f32 %v5246_v13 }
0x7182   :  { %v5768_v42 = vmul.f32 1.442695, %v5767_v28  ;;  %vm5233_vm5 = vcmp.eq.s32.totalorder %v9093_v61, 14  ;;  %vm4778_vm6 = vcmp.eq.s32.totalorder %v9093_v61, 1  ;;  %vm5198_vm7 = vcmp.eq.s32.totalorder %v9093_v61, 13 }
0x7183   :  { %vm4813_vm8 = vcmp.eq.s32.totalorder %v9093_v61, 2  ;;  %vm4743_vm9 = vcmp.eq.s32.totalorder %v9093_v61, 0  ;;  %vm5268_vm10 = vcmp.eq.s32.totalorder %v9093_v61, 15  ;;  %v4786_v3 = vsel %vm4778_vm6, %v8851_v55, 0.0 }
0x7184   :  { %vm4848_vm11 = vcmp.eq.s32.totalorder %v9093_v61, 3  ;;  %vm5163_vm12 = vcmp.eq.s32.totalorder %v9093_v61, 12  ;;  %v5379_v57 = vsel %vm5198_vm7, %v8873_v60, 0.0  ;;  %v4821_v54 = vsel %vm4813_vm8, %v8867_v47, 0.0 }
0x7185   :  { %v4751_v55 = vsel %vm4743_vm9, %v8836_v8, 0.0  ;;  %vm4883_vm13 = vcmp.eq.s32.totalorder %v9093_v61, 4  ;;  %vm5128_vm14 = vcmp.eq.s32.totalorder %v9093_v61, 11  ;;  %v4856_v60 = vsel %vm4848_vm11, %v8883_v38, 0.0 }
0x7186   :  { %v4787_v13 = vadd.f32 %v4786_v3, %v4751_v55  ;;  %v5411_v47 = vsel %vm5163_vm12, %v8889_v12, 0.0  ;;  %vm4918_vm15 = vcmp.eq.s32.totalorder %v9093_v61, 5  ;;  %vm5093_vm0 = vcmp.eq.s32.totalorder %v9093_v61, 10 }
0x7187   :  { %v5443_v28 = vsel %vm5128_vm14, %v8905_v5, 0.0  ;;  %vm4953_vm1 = vcmp.eq.s32.totalorder %v9093_v61, 6  ;;  %vm5058_vm2 = vcmp.eq.s32.totalorder %v9093_v61, 9  ;;  %vm4988_vm3 = vcmp.eq.s32.totalorder %v9093_v61, 7 }
0x7188   :  { %vm5023_vm4 = vcmp.eq.s32.totalorder %v9093_v61, 8 }
0x718a   :  { %v7333_v50 = vpop.eup %7332 }
0x718b   :  { %5775 = vrot.lane.b32.xlu0 %v7333_v50, %s7358_s9  ;;  %v7335_v34 = vpop.eup %7334  ;;  %v5347_v50 = vsel %vm5233_vm5, %v8857_v17, 0.0  ;;  %v5315_v17 = vsel %vm5268_vm10, %v8842_v62, 0.0  ;;  %v4822_v62 = vadd.f32 %v4821_v54, %v4787_v13 }
0x718c   :  { %v5248_v39 = vadd.f32 1.0, %v7335_v34  ;;  %v5348_v34 = vadd.f32 %v5347_v50, %v5315_v17 }
0x718d   :  { %v4857_v38 = vadd.f32 %v4856_v60, %v4822_v62 }
0x718e   :  { %7336 = vrcp.f32 %v5248_v39  ;;  %v5380_v8 = vadd.f32 %v5379_v57, %v5348_v34  ;;  %v4891_v39 = vsel %vm4883_vm13, %v8899_v9, 0.0 }
0x718f   :  { %7338 = vpow2.f32 %v5768_v42  ;;  %v4926_v42 = vsel %vm4918_vm15, %v8915_v29, 0.0  ;;  %v4892_v9 = vadd.f32 %v4891_v39, %v4857_v38 }
0x7190   :  { %v5412_v12 = vadd.f32 %v5411_v47, %v5380_v8 }
0x7192   :  { %v5444_v5 = vadd.f32 %v5443_v28, %v5412_v12 }
0x7198   :  { %v7337_v18 = vpop.eup %7336 }
0x7199   :  { %v7339_v63 = vpop.eup %7338  ;;  %v5251_v36 = vmul.f32 %v7337_v18, %v5226_v31  ;;  %v5800_v31 = vld [vmem:[%s9219_s13] sm:$0xff] }
0x719a   :  { %v5770_v52 = vadd.f32 1.0, %v7339_v63  ;;  %v4927_v63 = vadd.f32 %v4926_v42, %v4892_v9 }
0x719c   :  { %7340 = vrcp.f32 %v5770_v52  ;;  %v4996_v52 = vsel %vm4988_vm3, %v8947_v7, 0.0 }
0x71a6   :  { %v7341_v6 = vpop.eup %7340 }
0x71a7   :  { %v5773_v46 = vmul.f32 %v7341_v6, %v5751_v11  ;;  %v6627_v11 = vpack.c.bf16 %v5801_v19, %v5800_v31 }
0x71a9   :  { %6628 = vmatpush3.bf16.msra.mxu0 %v6627_v11 }
0x71e2   :  { %v5254_v15 = vpop.permute.xlu1 %5253 }
0x71e3   :  { %v5256_v24 = vmul.f32 %v7337_v18, %v5254_v15  ;;  %v4961_v15 = vsel %vm4953_vm1, %v8931_v37, 0.0  ;;  %v5066_v37 = vsel %vm5058_vm2, %v8984_v27, 0.0  ;;  %v5136_v27 = vsel %vm5128_vm14, %v9021_v10, 0.0 }
0x71e4   :  { %v5206_v10 = vsel %vm5198_vm7, %v9053_v25, 0.0  ;;  %vm5798_vm7 = vcmask 130048  }
0x71e5   :  { %5258 = vrot.lane.b32.xlu1 %v5256_v24, %s7359_s18  ;;  %v5507_v24 = vsel %vm5058_vm2, %v8937_v33, 0.0  ;;  %v5603_v33 = vsel %vm4953_vm1, %v8990_v40, 0.0  ;;  %v5667_v40 = vsel %vm4883_vm13, %v9027_v16, 0.0  ;;  %v5731_v16 = vsel %vm4813_vm8, %v9059_v14, 0.0 }
0x71fd   :  { %v5776_v35 = vpop.permute.xlu0 %5775 }
0x71fe   :  { %v5778_v4 = vmul.f32 %v7341_v6, %v5776_v35 }
0x7200   :  { %5780 = vrot.lane.b32.xlu0 %v5778_v4, %s7359_s18  ;;  %v5031_v4 = vsel %vm5023_vm4, %v8963_v44, 0.0  ;;  %v5635_v44 = vsel %vm4918_vm15, %v9011_v59, 0.0  ;;  %v5699_v59 = vsel %vm4848_vm11, %v9043_v30, 0.0  ;;  %v5763_v30 = vsel %vm4778_vm6, %v9075_v49, 0.0 }
0x7257   :  { %v5259_v43 = vpop.permute.xlu1 %5258 }
0x7258   :  { %v5261_v32 = vadd.f32 %v5259_v43, %v5251_v36  ;;  %v5571_v36 = vsel %vm4988_vm3, %v8974_v58, 0.0 }
0x725a   :  { %7342 = vtanh.f32 %v5261_v32 }
0x7264   :  { %v7343_v1 = vpop.eup %7342 }
0x7265   :  { %5264 = vrot.lane.b32.xlu1 %v7343_v1, %s7361_s0 }
0x7272   :  { %v5781_v41 = vpop.permute.xlu0 %5780 }
0x7273   :  { %v5783_v51 = vadd.f32 %v5781_v41, %v5773_v46 }
0x7275   :  { %7344 = vtanh.f32 %v5783_v51 }
0x727f   :  { %v7345_v21 = vpop.eup %7344 }
0x7280   :  { %5786 = vrot.lane.b32.xlu0 %v7345_v21, %s7361_s0 }
0x72d7   :  { %v5265_v23 = vpop.permute.xlu1 %5264 }
0x72d8   :  { %v5267_v0 = vmul.f32 %v7337_v18, %v5265_v23  ;;  %v5475_v18 = vsel %vm5093_vm0, %v8921_v20, 0.0  ;;  %v5539_v20 = vsel %vm5023_vm4, %v8953_v26, 0.0  ;;  %v5101_v26 = vsel %vm5093_vm0, %v9005_v56, 0.0 }
0x72d9   :  { %v5476_v29 = vadd.f32 %v5475_v18, %v5444_v5  ;;  %v5171_v56 = vsel %vm5163_vm12, %v9037_v2, 0.0  ;;  %v5241_v2 = vsel %vm5233_vm5, %v9069_v48, 0.0  ;;  %v6060_v48 = vld [vmem:[%s9221_s14] ss:$0 sm:$0xff]  ;;  %vm5882_vm5 = vcmask 523264  }
0x72da   :  { %5273 = vperm.xlu1 %6641, %v5267_v0  }
0x72db   :  { %v5508_v35 = vadd.f32 %v5507_v24, %v5476_v29 }
0x72dd   :  { %v5540_v32 = vadd.f32 %v5539_v20, %v5508_v35 }
0x72df   :  { %v5572_v7 = vadd.f32 %v5571_v36, %v5540_v32 }
0x72e1   :  { %v5604_v46 = vadd.f32 %v5603_v33, %v5572_v7 }
0x72e3   :  { %v5636_v51 = vadd.f32 %v5635_v44, %v5604_v46 }
0x72e5   :  { %v5668_v23 = vadd.f32 %v5667_v40, %v5636_v51 }
0x72e7   :  { %v5700_v31 = vadd.f32 %v5699_v59, %v5668_v23 }
0x72e9   :  { %v5732_v11 = vadd.f32 %v5731_v16, %v5700_v31 }
0x72eb   :  { %v5764_v50 = vadd.f32 %v5763_v30, %v5732_v11 }
0x72f2   :  { %v5787_v53 = vpop.permute.xlu0 %5786 }
0x72f3   :  { %v5789_v22 = vmul.f32 %v7341_v6, %v5787_v53  ;;  %v4962_v6 = vadd.f32 %v4961_v15, %v4927_v63 }
0x72f5   :  { %5792 = vperm.xlu0 %6640, %v5789_v22   ;;  %v4997_v43 = vadd.f32 %v4996_v52, %v4962_v6 }
0x72f7   :  { %v5032_v1 = vadd.f32 %v5031_v4, %v4997_v43 }
0x72f9   :  { %v5067_v58 = vadd.f32 %v5066_v37, %v5032_v1 }
0x72fb   :  { %v5102_v41 = vadd.f32 %v5101_v26, %v5067_v58 }
0x72fd   :  { %v5137_v21 = vadd.f32 %v5136_v27, %v5102_v41 }
0x72ff   :  { %v5172_v45 = vadd.f32 %v5171_v56, %v5137_v21 }
0x7301   :  { %v5207_v19 = vadd.f32 %v5206_v10, %v5172_v45 }
0x7303   :  { %v5242_v53 = vadd.f32 %v5241_v2, %v5207_v19 }
0x7359   :  { %v5274_v0 = vpop.permute.xlu1 %5273 }
0x735a   :  { %v5276_v25 = vsel %vm5268_vm10, %v5274_v0, 0.0 }
0x735b   :  { %v5277_v3 = vadd.f32 %v5276_v25, %v5242_v53 }
0x7374   :  { %v5793_v22 = vpop.permute.xlu0 %5792 }
0x7375   :  { %v5795_v14 = vsel %vm4743_vm9, %v5793_v22, 0.0 }
0x7376   :  { %v5796_v57 = vadd.f32 %v5795_v14, %v5764_v50 }
0x7378   :  { %v5797_v54 = vadd.f32 %v5796_v57, %v5277_v3 }
0x737a   :  { %5799 = vst.msk [vmem:[%s9220_s15] sm:$0xff] %vm5798_vm7, %v5797_v54  ;;  %6192 = vmatmul.mubr.msk.f32.vlgmr.msra.gmra.mrb[80].mxu0 %vm5798_vm7, %v5797_v54 }
0x744d   :  { %v5878_v49 = vpop.f32.mrb[80].mxu0 }
0x744e   :  { %v5879_v17 = vadd.f32 %v6060_v48, %v5878_v49  ;;  %v6193_v55 = vpop.f32.mrb[81].mxu0 }
0x7450   :  { %5883 = vst.msk [vmem:[%s9222_s16] sm:$0xff] %vm5882_vm5, %v5879_v17 }

</bundles_post_ra>
